<compile_context>
chip_gen: v7x
topology: tpu7x:2x2x1
jax: 0.10.0
libtpu: 0.0.40
codegen_flags: <defaults>
</compile_context>

<pallas_src>
import functools
import math

import jax
import jax.numpy as jnp
import numpy as np
from jax.experimental import pallas as pl
from jax.experimental.pallas import tpu as pltpu


# ----------------------------------------------------------------------------
# Fused qkv + RoPE + attention + fc kernel (one grid step per batch group)
# ----------------------------------------------------------------------------
def fused_mha_kernel(x_ref, w_qkv_ref, cos_ref, sin_a_ref, sin_b_ref,
                     hmask_ref, bias_ref, w_fc_ref, b_fc_ref, o_ref, *,
                     num_heads, mxu_dtype, exact):
    # x_ref     : (rows, Dp)  rows = G*L*S ordered (b, l, s), Dp = padded D
    # w_qkv_ref : (Dp, 3*Dp)  q-scale pre-folded, pre-cast to mxu_dtype
    # cos/sin_a/sin_b_ref : (rows, Dp) f32 rotary tables
    # hmask_ref : (H, Dp)     0/1 lane masks selecting each head's features
    # bias_ref  : (rows, rows) additive mask (0 / -1e30)
    # w_fc_ref  : (Dp, Dp)    b_fc_ref : (1, Dp)
    rows, dp = x_ref.shape

    # ---- fused qkv projection: one (rows, Dp) @ (Dp, 3Dp) MXU matmul --------
    qkv = jnp.dot(x_ref[...], w_qkv_ref[...],
                  preferred_element_type=jnp.float32)        # (rows, 3Dp) f32
    q = qkv[:, :dp]
    k = qkv[:, dp:2 * dp]
    v = qkv[:, 2 * dp:]

    # ---- axial RoPE via XLU lane rolls (no MXU matmul, f32 elementwise) -----
    cos = cos_ref[...]
    sin_a = sin_a_ref[...]
    sin_b = sin_b_ref[...]

    def rope(t):
        t_next = pltpu.roll(t, dp - 1, axis=1)   # t[(j + 1) mod Dp]
        t_prev = pltpu.roll(t, 1, axis=1)        # t[(j - 1) mod Dp]
        return t * cos + t_next * sin_a + t_prev * sin_b

    q = rope(q).astype(mxu_dtype)
    k = rope(k).astype(mxu_dtype)
    v = v.astype(mxu_dtype)

    bias = bias_ref[...]            # same-batch & same-spatial (& causal) mask
    masks = hmask_ref[...]          # (H, Dp)
    recip = functools.partial(pl.reciprocal, approx=not exact)

    # ---- per-head attention: full-lane operands, f32 accumulation -----------
    attn = jnp.zeros((rows, dp), jnp.float32)
    for h in range(num_heads):                                # static unroll
        hm = masks[h:h + 1, :]                                # (1, Dp) 0/1
        s = jnp.einsum('qd,kd->qk', q * hm, k,
                       preferred_element_type=jnp.float32) + bias
        m = jnp.max(s, axis=-1, keepdims=True)                # softmax in f32
        p = jnp.exp(s - m)
        denom = jnp.sum(p, axis=-1, keepdims=True)
        o_h = jnp.dot(p.astype(mxu_dtype), v * hm,
                      preferred_element_type=jnp.float32)     # zeros off-head
        attn = attn + o_h * recip(denom)

    # ---- fc epilogue: single full-width matmul ------------------------------
    y = jnp.dot(attn.astype(mxu_dtype), w_fc_ref[...],
                preferred_element_type=jnp.float32) + b_fc_ref[...]
    o_ref[...] = y.astype(o_ref.dtype)


# ----------------------------------------------------------------------------
# Rotary-embedding setup (matches RotaryEmbedding(dim=32, freqs_for='pixel',
# max_freq=256).get_axial_freqs(*dims))
# ----------------------------------------------------------------------------
def axial_rope_cos_sin(space_dims, d_model, rot_dim=32, max_freq=256.0):
    inv = jnp.linspace(1.0, max_freq / 2.0, rot_dim // 2,
                       dtype=jnp.float32) * jnp.pi            # 'pixel' freqs

    def axis_freqs(n):
        pos = jnp.linspace(-1.0, 1.0, n, dtype=jnp.float32)
        f = pos[:, None] * inv[None, :]                       # (n, rot_dim//2)
        return jnp.repeat(f, 2, axis=-1)                      # (f0,f0,f1,f1,..)

    per_axis = []
    naxes = len(space_dims)
    for ax, n in enumerate(space_dims):
        f = axis_freqs(n)
        shape = [1] * naxes + [rot_dim]
        shape[ax] = n
        per_axis.append(jnp.broadcast_to(
            f.reshape(shape), tuple(space_dims) + (rot_dim,)))
    freqs = jnp.concatenate(per_axis, axis=-1)                # (*dims, rot_tot)
    rot_total = freqs.shape[-1]
    assert rot_total <= d_model
    cos = jnp.cos(freqs)
    sin = jnp.sin(freqs)
    if rot_total < d_model:                                   # untouched tail
        pad = d_model - rot_total
        cos = jnp.concatenate(
            [cos, jnp.ones(tuple(space_dims) + (pad,), jnp.float32)], axis=-1)
        sin = jnp.concatenate(
            [sin, jnp.zeros(tuple(space_dims) + (pad,), jnp.float32)], axis=-1)
    return cos, sin                                           # (*dims, d_model)


# ----------------------------------------------------------------------------
# Forward pass wrapper
# ----------------------------------------------------------------------------
def multi_head_attention(x, w_qkv, w_fc, b_fc, num_heads, causal,
                         mxu_dtype=jnp.bfloat16, out_dtype=jnp.float32,
                         max_rows_per_step=1024):
    """x: (B, L, *spatial, D) -> (B, L, *spatial, D)."""
    B, L = x.shape[0], x.shape[1]
    D = x.shape[-1]
    spatial = tuple(x.shape[2:-1])
    S = int(np.prod(spatial)) if spatial else 1
    rows_b = L * S
    M_total = B * rows_b
    assert D % num_heads == 0
    dh = D // num_heads
    exact = jnp.dtype(mxu_dtype) == jnp.dtype(jnp.float32)

    # Lane padding D -> Dp (multiple of 128) so every intermediate / the
    # output store is lane-dense.
    Dp = max(128, ((D + 127) // 128) * 128)

    # Batch grouping: G batches per grid step so the matmul M dim is large.
    candidates = [g for g in range(1, B + 1)
                  if B % g == 0 and g * rows_b <= max_rows_per_step
                  and (g * rows_b) % 8 == 0]
    G = max(candidates) if candidates else B
    Mg = G * rows_b
    n_groups = M_total // Mg

    # ---- rotary tables: cos plus parity/sign-masked sin (for the roll RoPE) -
    cos, sin = axial_rope_cos_sin((L,) + spatial, D)          # (*dims, D) f32
    cos = cos.reshape(rows_b, D)
    sin = sin.reshape(rows_b, D)
    even = (jnp.arange(D) % 2) == 0
    sin_a = jnp.where(even, -sin, 0.0)     # pairs with t[j+1] at even lanes
    sin_b = jnp.where(even, 0.0, sin)      # pairs with t[j-1] at odd lanes

    def prep_rope(a, pad_val):
        a = jnp.pad(a, ((0, 0), (0, Dp - D)), constant_values=pad_val)
        return jnp.tile(a.astype(jnp.float32), (G, 1))        # (Mg, Dp)

    cos_g = prep_rope(cos, 1.0)
    sin_a_g = prep_rope(sin_a, 0.0)
    sin_b_g = prep_rope(sin_b, 0.0)

    # ---- additive attention bias (same-batch, same-spatial-slot, causal) ----
    r = np.arange(Mg)
    b_idx, l_idx, s_idx = r // rows_b, (r % rows_b) // S, r % S
    keep = ((b_idx[:, None] == b_idx[None, :]) &
            (s_idx[:, None] == s_idx[None, :]))
    if causal:
        keep &= l_idx[None, :] <= l_idx[:, None]
    bias = jnp.asarray(np.where(keep, 0.0, -1e30), jnp.float32)   # (Mg, Mg)

    # ---- 0/1 head lane masks -------------------------------------------------
    hmask = np.zeros((num_heads, Dp), np.float32)
    for h in range(num_heads):
        hmask[h, h * dh:(h + 1) * dh] = 1.0
    hmask = jnp.asarray(hmask).astype(mxu_dtype)

    # ---- weights: fold 1/sqrt(dh) into q columns, zero-pad, pre-cast --------
    wq = w_qkv[:, :D] * (1.0 / math.sqrt(dh))
    wk = w_qkv[:, D:2 * D]
    wv = w_qkv[:, 2 * D:]

    def pad_w(w):
        return jnp.pad(w, ((0, Dp - D), (0, Dp - D)))

    w_qkv_p = jnp.concatenate([pad_w(wq), pad_w(wk), pad_w(wv)],
                              axis=1).astype(mxu_dtype)       # (Dp, 3*Dp)
    w_fc_p = pad_w(w_fc).astype(mxu_dtype)                    # (Dp, Dp)
    b_fc_p = jnp.pad(b_fc, (0, Dp - D)).reshape(1, Dp).astype(jnp.float32)

    x2 = jnp.pad(x.reshape(M_total, D),
                 ((0, 0), (0, Dp - D))).astype(mxu_dtype)     # (M_total, Dp)

    kernel = functools.partial(fused_mha_kernel, num_heads=num_heads,
                               mxu_dtype=mxu_dtype, exact=exact)

    out = pl.pallas_call(
        kernel,
        out_shape=jax.ShapeDtypeStruct((M_total, Dp), out_dtype),
        grid=(n_groups,),
        in_specs=[
            pl.BlockSpec((Mg, Dp), lambda g: (g, 0)),            # x
            pl.BlockSpec((Dp, 3 * Dp), lambda g: (0, 0)),        # w_qkv
            pl.BlockSpec((Mg, Dp), lambda g: (0, 0)),            # cos
            pl.BlockSpec((Mg, Dp), lambda g: (0, 0)),            # sin_a
            pl.BlockSpec((Mg, Dp), lambda g: (0, 0)),            # sin_b
            pl.BlockSpec((num_heads, Dp), lambda g: (0, 0)),     # head masks
            pl.BlockSpec((Mg, Mg), lambda g: (0, 0)),            # attn bias
            pl.BlockSpec((Dp, Dp), lambda g: (0, 0)),            # w_fc
            pl.BlockSpec((1, Dp), lambda g: (0, 0)),             # b_fc
        ],
        out_specs=pl.BlockSpec((Mg, Dp), lambda g: (g, 0)),
        compiler_params=pltpu.CompilerParams(
            dimension_semantics=("parallel",),
            vmem_limit_bytes=32 * 1024 * 1024),
    )(x2, w_qkv_p, cos_g, sin_a_g, sin_b_g, hmask, bias, w_fc_p, b_fc_p)

    return out[:, :D].reshape(x.shape)


# ----------------------------------------------------------------------------
# Pure-JAX f32 reference (same math, no Pallas) for validation
# ----------------------------------------------------------------------------
def reference(x, w_qkv, w_fc, b_fc, num_heads, causal):
    B, L, S, D = x.shape
    dh = D // num_heads
    hi = jax.lax.Precision.HIGHEST
    qkv = jnp.dot(x, w_qkv, precision=hi)
    q, k, v = jnp.split(qkv, 3, axis=-1)
    cos, sin = axial_rope_cos_sin((L, S), D)

    def rot_half(t):
        t2 = t.reshape(*t.shape[:-1], -1, 2)
        x1, x2 = t2[..., 0], t2[..., 1]
        return jnp.stack([-x2, x1], axis=-1).reshape(t.shape)

    q = q * cos + rot_half(q) * sin
    k = k * cos + rot_half(k) * sin

    def split_heads(t):
        return t.reshape(B, L, S, num_heads, dh).transpose(0, 2, 3, 1, 4)

    qh, kh, vh = split_heads(q), split_heads(k), split_heads(v)
    s = jnp.einsum('bshqd,bshkd->bshqk', qh, kh, precision=hi) / math.sqrt(dh)
    if causal:
        qi = jnp.arange(L)[:, None]
        ki = jnp.arange(L)[None, :]
        s = jnp.where(ki <= qi, s, -jnp.inf)
    p = jax.nn.softmax(s, axis=-1)
    o = jnp.einsum('bshqk,bshkd->bshqd', p, vh, precision=hi)
    o = o.transpose(0, 3, 1, 2, 4).reshape(B, L, S, D)
    return jnp.dot(o, w_fc, precision=hi) + b_fc


# ----------------------------------------------------------------------------
if __name__ == "__main__":
    B, L, S, D, H = 2, 16, 4, 64, 8     # "B L * D", one spatial axis; 128 rows
    causal = True

    key = jax.random.PRNGKey(0)
    kx, kq, kf, kb = jax.random.split(key, 4)
    x = jax.random.normal(kx, (B, L, S, D), jnp.float32)
    bound = 1.0 / math.sqrt(D)
    w_qkv = jax.random.uniform(kq, (D, 3 * D), jnp.float32, -bound, bound)
    w_fc = jax.random.uniform(kf, (D, D), jnp.float32, -bound, bound)
    b_fc = jax.random.uniform(kb, (D,), jnp.float32, -bound, bound)

    ref = jax.block_until_ready(reference(x, w_qkv, w_fc, b_fc, H, causal))

    # f32 MXU-operand mode: check of the fused qkv/RoPE/attention/fc math
    out_f32 = jax.block_until_ready(
        multi_head_attention(x, w_qkv, w_fc, b_fc, H, causal,
                             mxu_dtype=jnp.float32))
    assert out_f32.shape == (B, L, S, D)
    np.testing.assert_allclose(np.asarray(out_f32), np.asarray(ref),
                               atol=1e-2, rtol=1e-2)

    # default performance mode (bf16 MXU operands, f32 accum / f32 softmax)
    out_bf16 = jax.block_until_ready(
        multi_head_attention(x, w_qkv, w_fc, b_fc, H, causal))
    assert out_bf16.shape == (B, L, S, D)
    np.testing.assert_allclose(np.asarray(out_bf16), np.asarray(ref),
                               atol=1e-1, rtol=1e-1)

    print("KERNEL_OK")
</pallas_src>

<mosaic_0001>
module attributes {stable_mosaic.version = 11 : i64} {
  func.func @fused_mha_kernel(%arg0: i32, %arg1: memref<128x128xf32, #tpu.memory_space<vmem>>, %arg2: memref<128x384xf32, #tpu.memory_space<vmem>>, %arg3: memref<128x128xf32, #tpu.memory_space<vmem>>, %arg4: memref<128x128xf32, #tpu.memory_space<vmem>>, %arg5: memref<128x128xf32, #tpu.memory_space<vmem>>, %arg6: memref<8x128xf32, #tpu.memory_space<vmem>>, %arg7: memref<128x128xf32, #tpu.memory_space<vmem>>, %arg8: memref<128x128xf32, #tpu.memory_space<vmem>>, %arg9: memref<1x128xf32, #tpu.memory_space<vmem>>, %arg10: memref<128x128xf32, #tpu.memory_space<vmem>>) attributes {dimension_semantics = [#tpu.dimension_semantics<parallel>], iteration_bounds = array<i64: 1>, scalar_prefetch = 0 : i64, scratch_operands = 0 : i64, tpu.core_type = #tpu.core_type<tc>, window_params = [{transform_indices = @transform_0, window_bounds = array<i64: 128, 128>}, {pipeline_mode = #tpu.pipeline_mode<synchronous>, transform_indices = @transform_1, window_bounds = array<i64: 128, 384>}, {pipeline_mode = #tpu.pipeline_mode<synchronous>, transform_indices = @transform_2, window_bounds = array<i64: 128, 128>}, {pipeline_mode = #tpu.pipeline_mode<synchronous>, transform_indices = @transform_3, window_bounds = array<i64: 128, 128>}, {pipeline_mode = #tpu.pipeline_mode<synchronous>, transform_indices = @transform_4, window_bounds = array<i64: 128, 128>}, {pipeline_mode = #tpu.pipeline_mode<synchronous>, transform_indices = @transform_5, window_bounds = array<i64: 8, 128>}, {pipeline_mode = #tpu.pipeline_mode<synchronous>, transform_indices = @transform_6, window_bounds = array<i64: 128, 128>}, {pipeline_mode = #tpu.pipeline_mode<synchronous>, transform_indices = @transform_7, window_bounds = array<i64: 128, 128>}, {pipeline_mode = #tpu.pipeline_mode<synchronous>, transform_indices = @transform_8, window_bounds = array<i64: 1, 128>}, {transform_indices = @transform_9, window_bounds = array<i64: 128, 128>}]} {
    %c0 = arith.constant 0 : index
    %c0_0 = arith.constant 0 : index
    %0 = vector.load %arg1[%c0, %c0_0] : memref<128x128xf32, #tpu.memory_space<vmem>>, vector<128x128xf32>
    %c0_1 = arith.constant 0 : index
    %c0_2 = arith.constant 0 : index
    %1 = vector.load %arg2[%c0_1, %c0_2] : memref<128x384xf32, #tpu.memory_space<vmem>>, vector<128x384xf32>
    %cst = arith.constant dense<0.000000e+00> : vector<128x384xf32>
    %2 = tpu.matmul %0, %1, %cst {dimension_numbers = #tpu.dot_dimension_numbers<[1], [0], [0], [1], [0, 0, 1, 1], [], []>} : vector<128x128xf32>, vector<128x384xf32>, vector<128x384xf32> -> vector<128x384xf32>
    %3 = vector.extract_strided_slice %2 {offsets = [0, 0], sizes = [128, 128], strides = [1, 1]} : vector<128x384xf32> to vector<128x128xf32>
    %4 = vector.extract_strided_slice %2 {offsets = [0, 128], sizes = [128, 128], strides = [1, 1]} : vector<128x384xf32> to vector<128x128xf32>
    %5 = vector.extract_strided_slice %2 {offsets = [0, 256], sizes = [128, 128], strides = [1, 1]} : vector<128x384xf32> to vector<128x128xf32>
    %c0_3 = arith.constant 0 : index
    %c0_4 = arith.constant 0 : index
    %6 = vector.load %arg3[%c0_3, %c0_4] : memref<128x128xf32, #tpu.memory_space<vmem>>, vector<128x128xf32>
    %c0_5 = arith.constant 0 : index
    %c0_6 = arith.constant 0 : index
    %7 = vector.load %arg4[%c0_5, %c0_6] : memref<128x128xf32, #tpu.memory_space<vmem>>, vector<128x128xf32>
    %c0_7 = arith.constant 0 : index
    %c0_8 = arith.constant 0 : index
    %8 = vector.load %arg5[%c0_7, %c0_8] : memref<128x128xf32, #tpu.memory_space<vmem>>, vector<128x128xf32>
    %c127_i32 = arith.constant 127 : i32
    %9 = tpu.dynamic_rotate %3 by %c127_i32 dim 1 : vector<128x128xf32>, i32 -> vector<128x128xf32>
    %c1_i32 = arith.constant 1 : i32
    %10 = tpu.dynamic_rotate %3 by %c1_i32 dim 1 : vector<128x128xf32>, i32 -> vector<128x128xf32>
    %11 = arith.mulf %3, %6 : vector<128x128xf32>
    %12 = arith.mulf %9, %7 : vector<128x128xf32>
    %13 = arith.addf %11, %12 : vector<128x128xf32>
    %14 = arith.mulf %10, %8 : vector<128x128xf32>
    %15 = arith.addf %13, %14 : vector<128x128xf32>
    %c127_i32_9 = arith.constant 127 : i32
    %16 = tpu.dynamic_rotate %4 by %c127_i32_9 dim 1 : vector<128x128xf32>, i32 -> vector<128x128xf32>
    %c1_i32_10 = arith.constant 1 : i32
    %17 = tpu.dynamic_rotate %4 by %c1_i32_10 dim 1 : vector<128x128xf32>, i32 -> vector<128x128xf32>
    %18 = arith.mulf %4, %6 : vector<128x128xf32>
    %19 = arith.mulf %16, %7 : vector<128x128xf32>
    %20 = arith.addf %18, %19 : vector<128x128xf32>
    %21 = arith.mulf %17, %8 : vector<128x128xf32>
    %22 = arith.addf %20, %21 : vector<128x128xf32>
    %c0_11 = arith.constant 0 : index
    %c0_12 = arith.constant 0 : index
    %23 = vector.load %arg7[%c0_11, %c0_12] : memref<128x128xf32, #tpu.memory_space<vmem>>, vector<128x128xf32>
    %c0_13 = arith.constant 0 : index
    %c0_14 = arith.constant 0 : index
    %24 = vector.load %arg6[%c0_13, %c0_14] : memref<8x128xf32, #tpu.memory_space<vmem>>, vector<8x128xf32>
    %cst_15 = arith.constant 0.000000e+00 : f32
    %25 = vector.broadcast %cst_15 : f32 to vector<128x128xf32>
    %26 = vector.extract_strided_slice %24 {offsets = [0, 0], sizes = [1, 128], strides = [1, 1]} : vector<8x128xf32> to vector<1x128xf32>
    %27 = vector.broadcast %26 : vector<1x128xf32> to vector<128x128xf32>
    %28 = arith.mulf %15, %27 : vector<128x128xf32>
    "tpu.trace_start"() <{level = 10 : i32, message = "qd,kd->qk"}> : () -> ()
    %cst_16 = arith.constant dense<0.000000e+00> : vector<128x128xf32>
    %29 = tpu.matmul %28, %22, %cst_16 {dimension_numbers = #tpu.dot_dimension_numbers<[1], [1], [0], [0], [0, 0, 1, 0], [], []>} : vector<128x128xf32>, vector<128x128xf32>, vector<128x128xf32> -> vector<128x128xf32>
    "tpu.trace_stop"() : () -> ()
    %30 = arith.addf %29, %23 : vector<128x128xf32>
    %cst_17 = arith.constant dense<0xFF800000> : vector<128xf32>
    %31 = vector.multi_reduction <maximumf>, %30, %cst_17 [1] : vector<128x128xf32> to vector<128xf32>
    %32 = vector.shape_cast %31 : vector<128xf32> to vector<128x1xf32>
    %33 = vector.broadcast %32 : vector<128x1xf32> to vector<128x128xf32>
    %34 = arith.subf %30, %33 : vector<128x128xf32>
    %35 = math.exp %34 : vector<128x128xf32>
    %cst_18 = arith.constant dense<0.000000e+00> : vector<128xf32>
    %36 = vector.multi_reduction <add>, %35, %cst_18 [1] : vector<128x128xf32> to vector<128xf32>
    %37 = vector.shape_cast %36 : vector<128xf32> to vector<128x1xf32>
    %38 = vector.broadcast %26 : vector<1x128xf32> to vector<128x128xf32>
    %39 = arith.mulf %5, %38 : vector<128x128xf32>
    %cst_19 = arith.constant dense<0.000000e+00> : vector<128x128xf32>
    %40 = tpu.matmul %35, %39, %cst_19 {dimension_numbers = #tpu.dot_dimension_numbers<[1], [0], [0], [1], [0, 0, 1, 1], [], []>} : vector<128x128xf32>, vector<128x128xf32>, vector<128x128xf32> -> vector<128x128xf32>
    %41 = tpu.reciprocal %37 : vector<128x1xf32> -> vector<128x1xf32>
    %42 = vector.broadcast %41 : vector<128x1xf32> to vector<128x128xf32>
    %43 = arith.mulf %40, %42 : vector<128x128xf32>
    %44 = arith.addf %25, %43 : vector<128x128xf32>
    %45 = vector.extract_strided_slice %24 {offsets = [1, 0], sizes = [1, 128], strides = [1, 1]} : vector<8x128xf32> to vector<1x128xf32>
    %46 = vector.broadcast %45 : vector<1x128xf32> to vector<128x128xf32>
    %47 = arith.mulf %15, %46 : vector<128x128xf32>
    "tpu.trace_start"() <{level = 10 : i32, message = "qd,kd->qk"}> : () -> ()
    %cst_20 = arith.constant dense<0.000000e+00> : vector<128x128xf32>
    %48 = tpu.matmul %47, %22, %cst_20 {dimension_numbers = #tpu.dot_dimension_numbers<[1], [1], [0], [0], [0, 0, 1, 0], [], []>} : vector<128x128xf32>, vector<128x128xf32>, vector<128x128xf32> -> vector<128x128xf32>
    "tpu.trace_stop"() : () -> ()
    %49 = arith.addf %48, %23 : vector<128x128xf32>
    %cst_21 = arith.constant dense<0xFF800000> : vector<128xf32>
    %50 = vector.multi_reduction <maximumf>, %49, %cst_21 [1] : vector<128x128xf32> to vector<128xf32>
    %51 = vector.shape_cast %50 : vector<128xf32> to vector<128x1xf32>
    %52 = vector.broadcast %51 : vector<128x1xf32> to vector<128x128xf32>
    %53 = arith.subf %49, %52 : vector<128x128xf32>
    %54 = math.exp %53 : vector<128x128xf32>
    %cst_22 = arith.constant dense<0.000000e+00> : vector<128xf32>
    %55 = vector.multi_reduction <add>, %54, %cst_22 [1] : vector<128x128xf32> to vector<128xf32>
    %56 = vector.shape_cast %55 : vector<128xf32> to vector<128x1xf32>
    %57 = vector.broadcast %45 : vector<1x128xf32> to vector<128x128xf32>
    %58 = arith.mulf %5, %57 : vector<128x128xf32>
    %cst_23 = arith.constant dense<0.000000e+00> : vector<128x128xf32>
    %59 = tpu.matmul %54, %58, %cst_23 {dimension_numbers = #tpu.dot_dimension_numbers<[1], [0], [0], [1], [0, 0, 1, 1], [], []>} : vector<128x128xf32>, vector<128x128xf32>, vector<128x128xf32> -> vector<128x128xf32>
    %60 = tpu.reciprocal %56 : vector<128x1xf32> -> vector<128x1xf32>
    %61 = vector.broadcast %60 : vector<128x1xf32> to vector<128x128xf32>
    %62 = arith.mulf %59, %61 : vector<128x128xf32>
    %63 = arith.addf %44, %62 : vector<128x128xf32>
    %64 = vector.extract_strided_slice %24 {offsets = [2, 0], sizes = [1, 128], strides = [1, 1]} : vector<8x128xf32> to vector<1x128xf32>
    %65 = vector.broadcast %64 : vector<1x128xf32> to vector<128x128xf32>
    %66 = arith.mulf %15, %65 : vector<128x128xf32>
    "tpu.trace_start"() <{level = 10 : i32, message = "qd,kd->qk"}> : () -> ()
    %cst_24 = arith.constant dense<0.000000e+00> : vector<128x128xf32>
    %67 = tpu.matmul %66, %22, %cst_24 {dimension_numbers = #tpu.dot_dimension_numbers<[1], [1], [0], [0], [0, 0, 1, 0], [], []>} : vector<128x128xf32>, vector<128x128xf32>, vector<128x128xf32> -> vector<128x128xf32>
    "tpu.trace_stop"() : () -> ()
    %68 = arith.addf %67, %23 : vector<128x128xf32>
    %cst_25 = arith.constant dense<0xFF800000> : vector<128xf32>
    %69 = vector.multi_reduction <maximumf>, %68, %cst_25 [1] : vector<128x128xf32> to vector<128xf32>
    %70 = vector.shape_cast %69 : vector<128xf32> to vector<128x1xf32>
    %71 = vector.broadcast %70 : vector<128x1xf32> to vector<128x128xf32>
    %72 = arith.subf %68, %71 : vector<128x128xf32>
    %73 = math.exp %72 : vector<128x128xf32>
    %cst_26 = arith.constant dense<0.000000e+00> : vector<128xf32>
    %74 = vector.multi_reduction <add>, %73, %cst_26 [1] : vector<128x128xf32> to vector<128xf32>
    %75 = vector.shape_cast %74 : vector<128xf32> to vector<128x1xf32>
    %76 = vector.broadcast %64 : vector<1x128xf32> to vector<128x128xf32>
    %77 = arith.mulf %5, %76 : vector<128x128xf32>
    %cst_27 = arith.constant dense<0.000000e+00> : vector<128x128xf32>
    %78 = tpu.matmul %73, %77, %cst_27 {dimension_numbers = #tpu.dot_dimension_numbers<[1], [0], [0], [1], [0, 0, 1, 1], [], []>} : vector<128x128xf32>, vector<128x128xf32>, vector<128x128xf32> -> vector<128x128xf32>
    %79 = tpu.reciprocal %75 : vector<128x1xf32> -> vector<128x1xf32>
    %80 = vector.broadcast %79 : vector<128x1xf32> to vector<128x128xf32>
    %81 = arith.mulf %78, %80 : vector<128x128xf32>
    %82 = arith.addf %63, %81 : vector<128x128xf32>
    %83 = vector.extract_strided_slice %24 {offsets = [3, 0], sizes = [1, 128], strides = [1, 1]} : vector<8x128xf32> to vector<1x128xf32>
    %84 = vector.broadcast %83 : vector<1x128xf32> to vector<128x128xf32>
    %85 = arith.mulf %15, %84 : vector<128x128xf32>
    "tpu.trace_start"() <{level = 10 : i32, message = "qd,kd->qk"}> : () -> ()
    %cst_28 = arith.constant dense<0.000000e+00> : vector<128x128xf32>
    %86 = tpu.matmul %85, %22, %cst_28 {dimension_numbers = #tpu.dot_dimension_numbers<[1], [1], [0], [0], [0, 0, 1, 0], [], []>} : vector<128x128xf32>, vector<128x128xf32>, vector<128x128xf32> -> vector<128x128xf32>
    "tpu.trace_stop"() : () -> ()
    %87 = arith.addf %86, %23 : vector<128x128xf32>
    %cst_29 = arith.constant dense<0xFF800000> : vector<128xf32>
    %88 = vector.multi_reduction <maximumf>, %87, %cst_29 [1] : vector<128x128xf32> to vector<128xf32>
    %89 = vector.shape_cast %88 : vector<128xf32> to vector<128x1xf32>
    %90 = vector.broadcast %89 : vector<128x1xf32> to vector<128x128xf32>
    %91 = arith.subf %87, %90 : vector<128x128xf32>
    %92 = math.exp %91 : vector<128x128xf32>
    %cst_30 = arith.constant dense<0.000000e+00> : vector<128xf32>
    %93 = vector.multi_reduction <add>, %92, %cst_30 [1] : vector<128x128xf32> to vector<128xf32>
    %94 = vector.shape_cast %93 : vector<128xf32> to vector<128x1xf32>
    %95 = vector.broadcast %83 : vector<1x128xf32> to vector<128x128xf32>
    %96 = arith.mulf %5, %95 : vector<128x128xf32>
    %cst_31 = arith.constant dense<0.000000e+00> : vector<128x128xf32>
    %97 = tpu.matmul %92, %96, %cst_31 {dimension_numbers = #tpu.dot_dimension_numbers<[1], [0], [0], [1], [0, 0, 1, 1], [], []>} : vector<128x128xf32>, vector<128x128xf32>, vector<128x128xf32> -> vector<128x128xf32>
    %98 = tpu.reciprocal %94 : vector<128x1xf32> -> vector<128x1xf32>
    %99 = vector.broadcast %98 : vector<128x1xf32> to vector<128x128xf32>
    %100 = arith.mulf %97, %99 : vector<128x128xf32>
    %101 = arith.addf %82, %100 : vector<128x128xf32>
    %102 = vector.extract_strided_slice %24 {offsets = [4, 0], sizes = [1, 128], strides = [1, 1]} : vector<8x128xf32> to vector<1x128xf32>
    %103 = vector.broadcast %102 : vector<1x128xf32> to vector<128x128xf32>
    %104 = arith.mulf %15, %103 : vector<128x128xf32>
    "tpu.trace_start"() <{level = 10 : i32, message = "qd,kd->qk"}> : () -> ()
    %cst_32 = arith.constant dense<0.000000e+00> : vector<128x128xf32>
    %105 = tpu.matmul %104, %22, %cst_32 {dimension_numbers = #tpu.dot_dimension_numbers<[1], [1], [0], [0], [0, 0, 1, 0], [], []>} : vector<128x128xf32>, vector<128x128xf32>, vector<128x128xf32> -> vector<128x128xf32>
    "tpu.trace_stop"() : () -> ()
    %106 = arith.addf %105, %23 : vector<128x128xf32>
    %cst_33 = arith.constant dense<0xFF800000> : vector<128xf32>
    %107 = vector.multi_reduction <maximumf>, %106, %cst_33 [1] : vector<128x128xf32> to vector<128xf32>
    %108 = vector.shape_cast %107 : vector<128xf32> to vector<128x1xf32>
    %109 = vector.broadcast %108 : vector<128x1xf32> to vector<128x128xf32>
    %110 = arith.subf %106, %109 : vector<128x128xf32>
    %111 = math.exp %110 : vector<128x128xf32>
    %cst_34 = arith.constant dense<0.000000e+00> : vector<128xf32>
    %112 = vector.multi_reduction <add>, %111, %cst_34 [1] : vector<128x128xf32> to vector<128xf32>
    %113 = vector.shape_cast %112 : vector<128xf32> to vector<128x1xf32>
    %114 = vector.broadcast %102 : vector<1x128xf32> to vector<128x128xf32>
    %115 = arith.mulf %5, %114 : vector<128x128xf32>
    %cst_35 = arith.constant dense<0.000000e+00> : vector<128x128xf32>
    %116 = tpu.matmul %111, %115, %cst_35 {dimension_numbers = #tpu.dot_dimension_numbers<[1], [0], [0], [1], [0, 0, 1, 1], [], []>} : vector<128x128xf32>, vector<128x128xf32>, vector<128x128xf32> -> vector<128x128xf32>
    %117 = tpu.reciprocal %113 : vector<128x1xf32> -> vector<128x1xf32>
    %118 = vector.broadcast %117 : vector<128x1xf32> to vector<128x128xf32>
    %119 = arith.mulf %116, %118 : vector<128x128xf32>
    %120 = arith.addf %101, %119 : vector<128x128xf32>
    %121 = vector.extract_strided_slice %24 {offsets = [5, 0], sizes = [1, 128], strides = [1, 1]} : vector<8x128xf32> to vector<1x128xf32>
    %122 = vector.broadcast %121 : vector<1x128xf32> to vector<128x128xf32>
    %123 = arith.mulf %15, %122 : vector<128x128xf32>
    "tpu.trace_start"() <{level = 10 : i32, message = "qd,kd->qk"}> : () -> ()
    %cst_36 = arith.constant dense<0.000000e+00> : vector<128x128xf32>
    %124 = tpu.matmul %123, %22, %cst_36 {dimension_numbers = #tpu.dot_dimension_numbers<[1], [1], [0], [0], [0, 0, 1, 0], [], []>} : vector<128x128xf32>, vector<128x128xf32>, vector<128x128xf32> -> vector<128x128xf32>
    "tpu.trace_stop"() : () -> ()
    %125 = arith.addf %124, %23 : vector<128x128xf32>
    %cst_37 = arith.constant dense<0xFF800000> : vector<128xf32>
    %126 = vector.multi_reduction <maximumf>, %125, %cst_37 [1] : vector<128x128xf32> to vector<128xf32>
    %127 = vector.shape_cast %126 : vector<128xf32> to vector<128x1xf32>
    %128 = vector.broadcast %127 : vector<128x1xf32> to vector<128x128xf32>
    %129 = arith.subf %125, %128 : vector<128x128xf32>
    %130 = math.exp %129 : vector<128x128xf32>
    %cst_38 = arith.constant dense<0.000000e+00> : vector<128xf32>
    %131 = vector.multi_reduction <add>, %130, %cst_38 [1] : vector<128x128xf32> to vector<128xf32>
    %132 = vector.shape_cast %131 : vector<128xf32> to vector<128x1xf32>
    %133 = vector.broadcast %121 : vector<1x128xf32> to vector<128x128xf32>
    %134 = arith.mulf %5, %133 : vector<128x128xf32>
    %cst_39 = arith.constant dense<0.000000e+00> : vector<128x128xf32>
    %135 = tpu.matmul %130, %134, %cst_39 {dimension_numbers = #tpu.dot_dimension_numbers<[1], [0], [0], [1], [0, 0, 1, 1], [], []>} : vector<128x128xf32>, vector<128x128xf32>, vector<128x128xf32> -> vector<128x128xf32>
    %136 = tpu.reciprocal %132 : vector<128x1xf32> -> vector<128x1xf32>
    %137 = vector.broadcast %136 : vector<128x1xf32> to vector<128x128xf32>
    %138 = arith.mulf %135, %137 : vector<128x128xf32>
    %139 = arith.addf %120, %138 : vector<128x128xf32>
    %140 = vector.extract_strided_slice %24 {offsets = [6, 0], sizes = [1, 128], strides = [1, 1]} : vector<8x128xf32> to vector<1x128xf32>
    %141 = vector.broadcast %140 : vector<1x128xf32> to vector<128x128xf32>
    %142 = arith.mulf %15, %141 : vector<128x128xf32>
    "tpu.trace_start"() <{level = 10 : i32, message = "qd,kd->qk"}> : () -> ()
    %cst_40 = arith.constant dense<0.000000e+00> : vector<128x128xf32>
    %143 = tpu.matmul %142, %22, %cst_40 {dimension_numbers = #tpu.dot_dimension_numbers<[1], [1], [0], [0], [0, 0, 1, 0], [], []>} : vector<128x128xf32>, vector<128x128xf32>, vector<128x128xf32> -> vector<128x128xf32>
    "tpu.trace_stop"() : () -> ()
    %144 = arith.addf %143, %23 : vector<128x128xf32>
    %cst_41 = arith.constant dense<0xFF800000> : vector<128xf32>
    %145 = vector.multi_reduction <maximumf>, %144, %cst_41 [1] : vector<128x128xf32> to vector<128xf32>
    %146 = vector.shape_cast %145 : vector<128xf32> to vector<128x1xf32>
    %147 = vector.broadcast %146 : vector<128x1xf32> to vector<128x128xf32>
    %148 = arith.subf %144, %147 : vector<128x128xf32>
    %149 = math.exp %148 : vector<128x128xf32>
    %cst_42 = arith.constant dense<0.000000e+00> : vector<128xf32>
    %150 = vector.multi_reduction <add>, %149, %cst_42 [1] : vector<128x128xf32> to vector<128xf32>
    %151 = vector.shape_cast %150 : vector<128xf32> to vector<128x1xf32>
    %152 = vector.broadcast %140 : vector<1x128xf32> to vector<128x128xf32>
    %153 = arith.mulf %5, %152 : vector<128x128xf32>
    %cst_43 = arith.constant dense<0.000000e+00> : vector<128x128xf32>
    %154 = tpu.matmul %149, %153, %cst_43 {dimension_numbers = #tpu.dot_dimension_numbers<[1], [0], [0], [1], [0, 0, 1, 1], [], []>} : vector<128x128xf32>, vector<128x128xf32>, vector<128x128xf32> -> vector<128x128xf32>
    %155 = tpu.reciprocal %151 : vector<128x1xf32> -> vector<128x1xf32>
    %156 = vector.broadcast %155 : vector<128x1xf32> to vector<128x128xf32>
    %157 = arith.mulf %154, %156 : vector<128x128xf32>
    %158 = arith.addf %139, %157 : vector<128x128xf32>
    %159 = vector.extract_strided_slice %24 {offsets = [7, 0], sizes = [1, 128], strides = [1, 1]} : vector<8x128xf32> to vector<1x128xf32>
    %160 = vector.broadcast %159 : vector<1x128xf32> to vector<128x128xf32>
    %161 = arith.mulf %15, %160 : vector<128x128xf32>
    "tpu.trace_start"() <{level = 10 : i32, message = "qd,kd->qk"}> : () -> ()
    %cst_44 = arith.constant dense<0.000000e+00> : vector<128x128xf32>
    %162 = tpu.matmul %161, %22, %cst_44 {dimension_numbers = #tpu.dot_dimension_numbers<[1], [1], [0], [0], [0, 0, 1, 0], [], []>} : vector<128x128xf32>, vector<128x128xf32>, vector<128x128xf32> -> vector<128x128xf32>
    "tpu.trace_stop"() : () -> ()
    %163 = arith.addf %162, %23 : vector<128x128xf32>
    %cst_45 = arith.constant dense<0xFF800000> : vector<128xf32>
    %164 = vector.multi_reduction <maximumf>, %163, %cst_45 [1] : vector<128x128xf32> to vector<128xf32>
    %165 = vector.shape_cast %164 : vector<128xf32> to vector<128x1xf32>
    %166 = vector.broadcast %165 : vector<128x1xf32> to vector<128x128xf32>
    %167 = arith.subf %163, %166 : vector<128x128xf32>
    %168 = math.exp %167 : vector<128x128xf32>
    %cst_46 = arith.constant dense<0.000000e+00> : vector<128xf32>
    %169 = vector.multi_reduction <add>, %168, %cst_46 [1] : vector<128x128xf32> to vector<128xf32>
    %170 = vector.shape_cast %169 : vector<128xf32> to vector<128x1xf32>
    %171 = vector.broadcast %159 : vector<1x128xf32> to vector<128x128xf32>
    %172 = arith.mulf %5, %171 : vector<128x128xf32>
    %cst_47 = arith.constant dense<0.000000e+00> : vector<128x128xf32>
    %173 = tpu.matmul %168, %172, %cst_47 {dimension_numbers = #tpu.dot_dimension_numbers<[1], [0], [0], [1], [0, 0, 1, 1], [], []>} : vector<128x128xf32>, vector<128x128xf32>, vector<128x128xf32> -> vector<128x128xf32>
    %174 = tpu.reciprocal %170 : vector<128x1xf32> -> vector<128x1xf32>
    %175 = vector.broadcast %174 : vector<128x1xf32> to vector<128x128xf32>
    %176 = arith.mulf %173, %175 : vector<128x128xf32>
    %177 = arith.addf %158, %176 : vector<128x128xf32>
    %c0_48 = arith.constant 0 : index
    %c0_49 = arith.constant 0 : index
    %178 = vector.load %arg8[%c0_48, %c0_49] : memref<128x128xf32, #tpu.memory_space<vmem>>, vector<128x128xf32>
    %cst_50 = arith.constant dense<0.000000e+00> : vector<128x128xf32>
    %179 = tpu.matmul %177, %178, %cst_50 {dimension_numbers = #tpu.dot_dimension_numbers<[1], [0], [0], [1], [0, 0, 1, 1], [], []>} : vector<128x128xf32>, vector<128x128xf32>, vector<128x128xf32> -> vector<128x128xf32>
    %c0_51 = arith.constant 0 : index
    %c0_52 = arith.constant 0 : index
    %180 = vector.load %arg9[%c0_51, %c0_52] : memref<1x128xf32, #tpu.memory_space<vmem>>, vector<1x128xf32>
    %181 = vector.broadcast %180 : vector<1x128xf32> to vector<128x128xf32>
    %182 = arith.addf %179, %181 : vector<128x128xf32>
    %c0_53 = arith.constant 0 : index
    %c0_54 = arith.constant 0 : index
    %183 = vector.load %arg10[%c0_53, %c0_54] : memref<128x128xf32, #tpu.memory_space<vmem>>, vector<128x128xf32>
    tpu.vector_store %arg10[%c0_53, %c0_54], %182 {strides = array<i32>} : memref<128x128xf32, #tpu.memory_space<vmem>>, vector<128x128xf32>,
    return
  }
  func.func @transform_0(%arg0: i32) -> (i32, i32) {
    %c0_i32 = arith.constant 0 : i32
    %c0_i32_0 = arith.constant 0 : i32
    return %arg0, %c0_i32 : i32, i32
  }
  func.func @transform_1(%arg0: i32) -> (i32, i32) {
    %c0_i32 = arith.constant 0 : i32
    %c0_i32_0 = arith.constant 0 : i32
    %c0_i32_1 = arith.constant 0 : i32
    return %c0_i32, %c0_i32_0 : i32, i32
  }
  func.func @transform_2(%arg0: i32) -> (i32, i32) {
    %c0_i32 = arith.constant 0 : i32
    %c0_i32_0 = arith.constant 0 : i32
    %c0_i32_1 = arith.constant 0 : i32
    return %c0_i32, %c0_i32_0 : i32, i32
  }
  func.func @transform_3(%arg0: i32) -> (i32, i32) {
    %c0_i32 = arith.constant 0 : i32
    %c0_i32_0 = arith.constant 0 : i32
    %c0_i32_1 = arith.constant 0 : i32
    return %c0_i32, %c0_i32_0 : i32, i32
  }
  func.func @transform_4(%arg0: i32) -> (i32, i32) {
    %c0_i32 = arith.constant 0 : i32
    %c0_i32_0 = arith.constant 0 : i32
    %c0_i32_1 = arith.constant 0 : i32
    return %c0_i32, %c0_i32_0 : i32, i32
  }
  func.func @transform_5(%arg0: i32) -> (i32, i32) {
    %c0_i32 = arith.constant 0 : i32
    %c0_i32_0 = arith.constant 0 : i32
    %c0_i32_1 = arith.constant 0 : i32
    return %c0_i32, %c0_i32_0 : i32, i32
  }
  func.func @transform_6(%arg0: i32) -> (i32, i32) {
    %c0_i32 = arith.constant 0 : i32
    %c0_i32_0 = arith.constant 0 : i32
    %c0_i32_1 = arith.constant 0 : i32
    return %c0_i32, %c0_i32_0 : i32, i32
  }
  func.func @transform_7(%arg0: i32) -> (i32, i32) {
    %c0_i32 = arith.constant 0 : i32
    %c0_i32_0 = arith.constant 0 : i32
    %c0_i32_1 = arith.constant 0 : i32
    return %c0_i32, %c0_i32_0 : i32, i32
  }
  func.func @transform_8(%arg0: i32) -> (i32, i32) {
    %c0_i32 = arith.constant 0 : i32
    %c0_i32_0 = arith.constant 0 : i32
    %c0_i32_1 = arith.constant 0 : i32
    return %c0_i32, %c0_i32_0 : i32, i32
  }
  func.func @transform_9(%arg0: i32) -> (i32, i32) {
    %c0_i32 = arith.constant 0 : i32
    %c0_i32_0 = arith.constant 0 : i32
    return %arg0, %c0_i32 : i32, i32
  }
}

</mosaic_0001>

<bundles_post_ra>
// kernel: tpu_custom_call.1
= control target key start
LH: loop header
LB: loop body
LE: loop exit
PB: predicated region body
PF: predicated region fallthrough
CT: control target
= control target key end

     0   :  { %14 = vsyncpa [#allocation3], 0  ;;  %s11144_s0 = inlined_call_operand.hbm [shape: f32[128,128], index: 0, kind: input, shape index: {}]   ;;  %s11145_s1 = inlined_call_operand.hbm [shape: f32[128,384], index: 1, kind: input, shape index: {}]   ;;  %s11146_s2 = inlined_call_operand.hbm [shape: f32[128,128], index: 2, kind: input, shape index: {}]   ;;  %s11147_s3 = inlined_call_operand.hbm [shape: f32[128,128], index: 3, kind: input, shape index: {}]   ;;  %s11148_s4 = inlined_call_operand.hbm [shape: f32[128,128], index: 4, kind: input, shape index: {}]   ;;  %s11149_s5 = inlined_call_operand.vmem [shape: f32[8,128], index: 5, kind: input, shape index: {}]   ;;  %s11150_s6 = inlined_call_operand.hbm [shape: f32[128,128], index: 6, kind: input, shape index: {}]   ;;  %s11151_s7 = inlined_call_operand.hbm [shape: f32[128,128], index: 7, kind: input, shape index: {}]   ;;  %s11152_s8 = inlined_call_operand.vmem [shape: f32[1,128], index: 8, kind: input, shape index: {}]   ;;  %s11153_s9 = inlined_call_operand.hbm [shape: f32[128,128], index: 9, kind: output, shape index: {}]  }
   0x1   :  { %15 = vsyncpa [#allocation6], 0 }
   0x2   :  { %16 = vsyncpa [#allocation9], 0 }
   0x3   :  { %17 = vsyncpa [#allocation12], 0 }
   0x4   :  { %18 = vsyncpa [#allocation4], 0  ;;  %s7904_s30 = smov [#allocation5]   ;;  %s7718_s13 = scalar_lea.hbm %s11145_s1, 6144 }
   0x5   :  { %s36_s10 = sshll.u32 %s7904_s30, 4  ;;  %p7719_p0 = scmp.ne.s32.totalorder %s11145_s1, %s7718_s13  ;;  %s37_s10 = int_to_ptr.vmem [resolvable:$true] %s36_s10 }
   0x6   :  { %p7722_p1 = scmp.lt.u32.totalorder %s7718_s13, %s11145_s1 }
   0x8   :  { %p7724_p2 = pnand %p7722_p1, %p7719_p0 }
   0xa   :  { %7727 = shalt.err (!%p7724_p2)
}
   0xb   :  { %s7728_s18 = scalar_lea.vmem %s37_s10, 6144  ;;  %p7733_p4 = scmp.lt.s32.totalorder %s37_s10, %s37_s10 }
   0xc   :  { %p7729_p3 = scmp.ne.s32.totalorder %s37_s10, %s7728_s18  ;;  %p7734_p5 = scmp.lt.s32.totalorder %s7728_s18, %s7728_s18 }
   0xe   :  { %p7735_p6 = por %p7734_p5, %p7733_p4 }
  0x10   :  { %p7736_p7 = pnand %p7735_p6, %p7729_p3 }
  0x12   :  { %7739 = shalt.err (!%p7736_p7)
}
  0x13   :  { %s7905_s19 = smov 384   ;;  %s7906_s20 = smov 24  }
  0x14   :  { %42 = dma.hbm_to_vmem [thread:$0]  %s11145_s1, 6144, %s37_s10, [#allocation6], %s7905_s19, %s7905_s19, %s7906_s20  }
  0x15   :  { %s7907_s23 = smov [#allocation8]   ;;  %s7908_s25 = smov [#allocation11]  }
  0x16   :  { %s60_s24 = sshll.u32 %s7907_s23, 4  ;;  %s86_s26 = sshll.u32 %s7908_s25, 4  ;;  %s61_s24 = int_to_ptr.vmem [resolvable:$true] %s60_s24  ;;  %s87_s26 = int_to_ptr.vmem [resolvable:$true] %s86_s26 }
  0x17   :  { %s7740_s29 = scalar_lea.hbm %s11147_s3, 2048 }
  0x18   :  { %p7741_p8 = scmp.ne.s32.totalorder %s11147_s3, %s7740_s29  ;;  %p7744_p9 = scmp.lt.u32.totalorder %s7740_s29, %s11147_s3 }
  0x1a   :  { %p7746_p10 = pnand %p7744_p9, %p7741_p8 }
  0x1c   :  { %7749 = shalt.err (!%p7746_p10)
}
  0x1d   :  { %s7750_s1 = scalar_lea.vmem %s61_s24, 2048  ;;  %p7755_p12 = scmp.lt.s32.totalorder %s61_s24, %s61_s24 }
  0x1e   :  { %p7751_p11 = scmp.ne.s32.totalorder %s61_s24, %s7750_s1  ;;  %p7756_p13 = scmp.lt.s32.totalorder %s7750_s1, %s7750_s1 }
  0x20   :  { %p7757_p0 = por %p7756_p13, %p7755_p12 }
  0x22   :  { %p7758_p1 = pnand %p7757_p0, %p7751_p11 }
  0x24   :  { %7761 = shalt.err (!%p7758_p1)
}
  0x25   :  { %s7909_s10 = smov 128   ;;  %s7910_s14 = smov 8  }
  0x26   :  { %66 = dma.hbm_to_vmem [thread:$0]  %s11147_s3, 2048, %s61_s24, [#allocation9], %s7909_s10, %s7909_s10, %s7910_s14  }
  0x27   :  { %s7762_s19 = scalar_lea.hbm %s11150_s6, 2048 }
  0x28   :  { %p7763_p2 = scmp.ne.s32.totalorder %s11150_s6, %s7762_s19  ;;  %p7766_p3 = scmp.lt.u32.totalorder %s7762_s19, %s11150_s6 }
  0x2a   :  { %p7768_p4 = pnand %p7766_p3, %p7763_p2 }
  0x2c   :  { %7771 = shalt.err (!%p7768_p4)
}
  0x2d   :  { %s7772_s25 = scalar_lea.vmem %s87_s26, 2048  ;;  %p7777_p6 = scmp.lt.s32.totalorder %s87_s26, %s87_s26 }
  0x2e   :  { %p7773_p5 = scmp.ne.s32.totalorder %s87_s26, %s7772_s25  ;;  %p7778_p7 = scmp.lt.s32.totalorder %s7772_s25, %s7772_s25 }
  0x30   :  { %p7779_p8 = por %p7778_p7, %p7777_p6 }
  0x32   :  { %p7780_p9 = pnand %p7779_p8, %p7773_p5 }
  0x34   :  { %7783 = shalt.err (!%p7780_p9)
}
  0x35   :  { %92 = dma.hbm_to_vmem [thread:$0]  %s11150_s6, 2048, %s87_s26, [#allocation12], %s7909_s10, %s7909_s10, %s7910_s14  }
  0x36   :  { %s7911_s27 = smov [#allocation2]   ;;  %s7912_s29 = smov [#allocation7]  }
  0x37   :  { %s24_s28 = sshll.u32 %s7911_s27, 4  ;;  %s48_s30 = sshll.u32 %s7912_s29, 4  ;;  %s25_s28 = int_to_ptr.vmem [resolvable:$true] %s24_s28  ;;  %s49_s30 = int_to_ptr.vmem [resolvable:$true] %s48_s30 }
  0x38   :  { %s7784_s13 = scalar_lea.hbm %s11144_s0, 2048 }
  0x39   :  { %p7785_p10 = scmp.ne.s32.totalorder %s11144_s0, %s7784_s13  ;;  %p7788_p11 = scmp.lt.u32.totalorder %s7784_s13, %s11144_s0 }
  0x3b   :  { %p7790_p12 = pnand %p7788_p11, %p7785_p10 }
  0x3d   :  { %7793 = shalt.err (!%p7790_p12)
}
  0x3e   :  { %s7794_s6 = scalar_lea.vmem %s25_s28, 2048  ;;  %p7799_p0 = scmp.lt.s32.totalorder %s25_s28, %s25_s28 }
  0x3f   :  { %p7795_p13 = scmp.ne.s32.totalorder %s25_s28, %s7794_s6  ;;  %p7800_p1 = scmp.lt.s32.totalorder %s7794_s6, %s7794_s6 }
  0x41   :  { %p7801_p2 = por %p7800_p1, %p7799_p0 }
  0x43   :  { %p7802_p3 = pnand %p7801_p2, %p7795_p13 }
  0x45   :  { %7805 = shalt.err (!%p7802_p3)
}
  0x46   :  { %30 = dma.hbm_to_vmem [thread:$0]  %s11144_s0, 2048, %s25_s28, [#allocation3], %s7909_s10, %s7909_s10, %s7910_s14  }
  0x47   :  { %s7806_s21 = scalar_lea.hbm %s11146_s2, 2048 }
  0x48   :  { %p7807_p4 = scmp.ne.s32.totalorder %s11146_s2, %s7806_s21  ;;  %p7810_p5 = scmp.lt.u32.totalorder %s7806_s21, %s11146_s2 }
  0x4a   :  { %p7812_p6 = pnand %p7810_p5, %p7807_p4 }
  0x4c   :  { %7815 = shalt.err (!%p7812_p6)
}
  0x4d   :  { %s7816_s24 = scalar_lea.vmem %s49_s30, 2048  ;;  %p7821_p8 = scmp.lt.s32.totalorder %s49_s30, %s49_s30 }
  0x4e   :  { %p7817_p7 = scmp.ne.s32.totalorder %s49_s30, %s7816_s24  ;;  %p7822_p9 = scmp.lt.s32.totalorder %s7816_s24, %s7816_s24 }
  0x50   :  { %p7823_p10 = por %p7822_p9, %p7821_p8 }
  0x52   :  { %p7824_p11 = pnand %p7823_p10, %p7817_p7 }
  0x54   :  { %7827 = shalt.err (!%p7824_p11)
}
  0x55   :  { %54 = dma.hbm_to_vmem [thread:$0]  %s11146_s2, 2048, %s49_s30, [#allocation6], %s7909_s10, %s7909_s10, %s7910_s14  }
  0x56   :  { %s7913_s28 = smov [#allocation10]   ;;  %s7914_s11 = smov [#allocation13]  }
  0x57   :  { %s72_s29 = sshll.u32 %s7913_s28, 4  ;;  %s98_s12 = sshll.u32 %s7914_s11, 4  ;;  %s73_s29 = int_to_ptr.vmem [resolvable:$true] %s72_s29  ;;  %s99_s12 = int_to_ptr.vmem [resolvable:$true] %s98_s12 }
  0x58   :  { %s7828_s15 = scalar_lea.hbm %s11148_s4, 2048 }
  0x59   :  { %p7829_p12 = scmp.ne.s32.totalorder %s11148_s4, %s7828_s15  ;;  %p7832_p13 = scmp.lt.u32.totalorder %s7828_s15, %s11148_s4 }
  0x5b   :  { %p7834_p0 = pnand %p7832_p13, %p7829_p12 }
  0x5d   :  { %7837 = shalt.err (!%p7834_p0)
}
  0x5e   :  { %s7838_s2 = scalar_lea.vmem %s73_s29, 2048  ;;  %p7843_p2 = scmp.lt.s32.totalorder %s73_s29, %s73_s29 }
  0x5f   :  { %p7839_p1 = scmp.ne.s32.totalorder %s73_s29, %s7838_s2  ;;  %p7844_p3 = scmp.lt.s32.totalorder %s7838_s2, %s7838_s2 }
  0x61   :  { %p7845_p4 = por %p7844_p3, %p7843_p2 }
  0x63   :  { %p7846_p5 = pnand %p7845_p4, %p7839_p1 }
  0x65   :  { %7849 = shalt.err (!%p7846_p5)
}
  0x66   :  { %78 = dma.hbm_to_vmem [thread:$0]  %s11148_s4, 2048, %s73_s29, [#allocation9], %s7909_s10, %s7909_s10, %s7910_s14  }
  0x67   :  { %s7850_s21 = scalar_lea.hbm %s11151_s7, 2048 }
  0x68   :  { %p7851_p6 = scmp.ne.s32.totalorder %s11151_s7, %s7850_s21  ;;  %p7854_p7 = scmp.lt.u32.totalorder %s7850_s21, %s11151_s7 }
  0x6a   :  { %p7856_p8 = pnand %p7854_p7, %p7851_p6 }
  0x6c   :  { %7859 = shalt.err (!%p7856_p8)
}
  0x6d   :  { %s7860_s24 = scalar_lea.vmem %s99_s12, 2048  ;;  %p7865_p10 = scmp.lt.s32.totalorder %s99_s12, %s99_s12 }
  0x6e   :  { %p7861_p9 = scmp.ne.s32.totalorder %s99_s12, %s7860_s24  ;;  %p7866_p11 = scmp.lt.s32.totalorder %s7860_s24, %s7860_s24 }
  0x70   :  { %p7867_p12 = por %p7866_p11, %p7865_p10 }
  0x72   :  { %p7868_p13 = pnand %p7867_p12, %p7861_p9 }
  0x74   :  { %7871 = shalt.err (!%p7868_p13)
}
  0x75   :  { %104 = dma.hbm_to_vmem [thread:$0]  %s11151_s7, 2048, %s99_s12, [#allocation12], %s7909_s10, %s7909_s10, %s7910_s14  }
  0x76   :  { %7894 = dma.done.wait [#allocation3], 2048  }
  0x77   :  { %7895 = vsyncadd [#allocation3], 4294965248 }
  0x78   :  { %7896 = dma.done.wait [#allocation6], 8192  }
  0x79   :  { %7897 = vsyncadd [#allocation6], 4294959104 }
  0x7a   :  { %7898 = dma.done.wait [#allocation9], 4096  }
  0x7b   :  { %7899 = vsyncadd [#allocation9], 4294963200 }
  0x7c   :  { %7900 = dma.done.wait [#allocation12], 4096  }
  0x7d   :  { %7901 = vsyncadd [#allocation12], 4294963200  ;;  %v7915_v0 = vmov 0.0   ;;  %v145_v1 = vld [vmem:[#allocation5 + $0x8] sm:$0xff]  ;;  %v148_v2 = vld [vmem:[#allocation5 + $0x20] sm:$0xff]  ;;  %s7916_s7 = smov 1  }
  0x7e   :  { %256 = vmatprep.mubr.f32.mxu0 %v7915_v0  ;;  %v144_v3 = vld [vmem:[#allocation5] sm:$0xff]  ;;  %v6528_v4 = vpack.c.bf16 %v148_v2, %v145_v1  ;;  %v147_v5 = vld [vmem:[#allocation5 + $0x18] sm:$0xff]  ;;  %v154_v7 = vld [vmem:[#allocation5 + $0x50] sm:$0xff]  ;;  %s7917_s27 = smov 127  }
  0x7f   :  { %v151_v6 = vld [vmem:[#allocation5 + $0x38] sm:$0xff]  ;;  %v6530_v8 = vpack.c.bf16 %v147_v5, %v144_v3  ;;  %v150_v10 = vld [vmem:[#allocation5 + $0x30] sm:$0xff]  ;;  %v153_v11 = vld [vmem:[#allocation5 + $0x48] sm:$0xff] }
  0x80   :  { %v6532_v9 = vpack.c.bf16 %v154_v7, %v151_v6  ;;  %v157_v12 = vld [vmem:[#allocation5 + $0x68] sm:$0xff]  ;;  %6529 = vmatprep.subr.bf16.mxu0 %v6528_v4  ;;  %v160_v13 = vld [vmem:[#allocation5 + $0x80] sm:$0xff]  ;;  %v6534_v14 = vpack.c.bf16 %v153_v11, %v150_v10  ;;  %v159_v17 = vld [vmem:[#allocation5 + $0x78] sm:$0xff] }
  0x81   :  { %6531 = vmatpush1.bf16.msra.mxu0 %v6530_v8  ;;  %v6536_v15 = vpack.c.bf16 %v160_v13, %v157_v12  ;;  %v156_v16 = vld [vmem:[#allocation5 + $0x60] sm:$0xff]  ;;  %v163_v18 = vld [vmem:[#allocation5 + $0x98] sm:$0xff]  ;;  %v166_v19 = vld [vmem:[#allocation5 + $0xb0] sm:$0xff] }
  0x82   :  { %6533 = vmatprep.subr.bf16.mxu0 %v6532_v9  ;;  %v6538_v20 = vpack.c.bf16 %v159_v17, %v156_v16  ;;  %v6540_v21 = vpack.c.bf16 %v166_v19, %v163_v18  ;;  %v162_v22 = vld [vmem:[#allocation5 + $0x90] sm:$0xff]  ;;  %v165_v23 = vld [vmem:[#allocation5 + $0xa8] sm:$0xff]  ;;  %v172_v25 = vld [vmem:[#allocation5 + $0xe0] sm:$0xff] }
  0x83   :  { %v169_v24 = vld [vmem:[#allocation5 + $0xc8] sm:$0xff]  ;;  %v8072_v26 = vld [vmem:[#allocation2] sm:$0xff]  ;;  %v6542_v27 = vpack.c.bf16 %v165_v23, %v162_v22  ;;  %v171_v30 = vld [vmem:[#allocation5 + $0xd8] sm:$0xff] }
  0x84   :  { %5552 = vmatprep.mubr.f32.mxu1 %v8072_v26  ;;  %v6544_v28 = vpack.c.bf16 %v172_v25, %v169_v24  ;;  %v168_v29 = vld [vmem:[#allocation5 + $0xc0] sm:$0xff]  ;;  %v175_v31 = vld [vmem:[#allocation5 + $0xf8] sm:$0xff]  ;;  %v178_v32 = vld [vmem:[#allocation5 + $0x110] sm:$0xff] }
  0x85   :  { %6535 = vmatpush1.bf16.msra.mxu0 %v6534_v14  ;;  %v174_v33 = vld [vmem:[#allocation5 + $0xf0] sm:$0xff]  ;;  %v6546_v34 = vpack.c.bf16 %v171_v30, %v168_v29  ;;  %v149_v36 = vld [vmem:[#allocation5 + $0x28] sm:$0xff]  ;;  %v152_v37 = vld [vmem:[#allocation5 + $0x40] sm:$0xff]  ;;  %v6548_v38 = vpack.c.bf16 %v178_v32, %v175_v31 }
  0x86   :  { %6537 = vmatprep.subr.bf16.mxu0 %v6536_v15  ;;  %v146_v35 = vld [vmem:[#allocation5 + $0x10] sm:$0xff]  ;;  %v177_v39 = vld [vmem:[#allocation5 + $0x108] sm:$0xff]  ;;  %v155_v42 = vld [vmem:[#allocation5 + $0x58] sm:$0xff] }
  0x87   :  { %v181_v40 = vld [vmem:[#allocation5 + $0x128] sm:$0xff]  ;;  %v6560_v41 = vpack.c.bf16 %v149_v36, %v146_v35  ;;  %v184_v43 = vld [vmem:[#allocation5 + $0x140] sm:$0xff]  ;;  %v6564_v44 = vpack.c.bf16 %v155_v42, %v152_v37  ;;  %v158_v45 = vld [vmem:[#allocation5 + $0x70] sm:$0xff]  ;;  %v6550_v47 = vpack.c.bf16 %v177_v39, %v174_v33 }
  0x88   :  { %v161_v46 = vld [vmem:[#allocation5 + $0x88] sm:$0xff]  ;;  %v6552_v48 = vpack.c.bf16 %v184_v43, %v181_v40  ;;  %v180_v49 = vld [vmem:[#allocation5 + $0x120] sm:$0xff]  ;;  %v183_v50 = vld [vmem:[#allocation5 + $0x138] sm:$0xff] }
  0x89   :  { %6539 = vmatpush1.bf16.msra.mxu0 %v6538_v20  ;;  %6561 = vmatprep.subr.bf16.mxu1 %v6560_v41  ;;  %v187_v51 = vld [vmem:[#allocation5 + $0x158] sm:$0xff]  ;;  %v6568_v52 = vpack.c.bf16 %v161_v46, %v158_v45  ;;  %v190_v53 = vld [vmem:[#allocation5 + $0x170] sm:$0xff]  ;;  %v164_v54 = vld [vmem:[#allocation5 + $0xa0] sm:$0xff]  ;;  %v6554_v56 = vpack.c.bf16 %v183_v50, %v180_v49 }
  0x8a   :  { %6541 = vmatprep.subr.bf16.mxu0 %v6540_v21  ;;  %6563 = vmatpush3.bf16.msra.mxu1 %v6560_v41  ;;  %v167_v55 = vld [vmem:[#allocation5 + $0xb8] sm:$0xff]  ;;  %v6556_v57 = vpack.c.bf16 %v190_v53, %v187_v51  ;;  %v186_v58 = vld [vmem:[#allocation5 + $0x150] sm:$0xff]  ;;  %v189_v59 = vld [vmem:[#allocation5 + $0x168] sm:$0xff] }
  0x8b   :  { %6565 = vmatprep.subr.bf16.mxu1 %v6564_v44  ;;  %v6572_v60 = vpack.c.bf16 %v167_v55, %v164_v54  ;;  %v170_v61 = vld [vmem:[#allocation5 + $0xd0] sm:$0xff]  ;;  %v173_v62 = vld [vmem:[#allocation5 + $0xe8] sm:$0xff]  ;;  %v6558_v63 = vpack.c.bf16 %v189_v59, %v186_v58  ;;  %v176_v2 = vld [vmem:[#allocation5 + $0x100] sm:$0xff] }
  0x8c   :  { %v6576_v1 = vpack.c.bf16 %v173_v62, %v170_v61  ;;  %v179_v3 = vld [vmem:[#allocation5 + $0x118] sm:$0xff]  ;;  %v182_v5 = vld [vmem:[#allocation5 + $0x130] sm:$0xff]  ;;  %v185_v6 = vld [vmem:[#allocation5 + $0x148] sm:$0xff] }
  0x8d   :  { %6543 = vmatpush1.bf16.msra.mxu0 %v6542_v27  ;;  %v6580_v4 = vpack.c.bf16 %v179_v3, %v176_v2  ;;  %v129_v7 = vld [vmem:[#allocation2 + $0x8] sm:$0xff]  ;;  %v6584_v8 = vpack.c.bf16 %v185_v6, %v182_v5  ;;  %v188_v9 = vld [vmem:[#allocation5 + $0x160] sm:$0xff]  ;;  %v191_v10 = vld [vmem:[#allocation5 + $0x178] sm:$0xff] }
  0x8e   :  { %6545 = vmatprep.subr.bf16.mxu0 %v6544_v28  ;;  %6567 = vmatpush3.bf16.msra.mxu1 %v6564_v44  ;;  %v130_v11 = vld [vmem:[#allocation2 + $0x10] sm:$0xff]  ;;  %v6588_v12 = vpack.c.bf16 %v191_v10, %v188_v9  ;;  %v131_v13 = vld [vmem:[#allocation2 + $0x18] sm:$0xff]  ;;  %v132_v14 = vld [vmem:[#allocation2 + $0x20] sm:$0xff]  ;;  %v851_v28 = vlaneseq }
  0x8f   :  { %6569 = vmatprep.subr.bf16.mxu1 %v6568_v52  ;;  %v133_v15 = vld [vmem:[#allocation2 + $0x28] sm:$0xff]  ;;  %v134_v16 = vld [vmem:[#allocation2 + $0x30] sm:$0xff]  ;;  %v135_v17 = vld [vmem:[#allocation2 + $0x38] sm:$0xff] }
  0x90   :  { %v136_v18 = vld [vmem:[#allocation2 + $0x40] sm:$0xff]  ;;  %v137_v19 = vld [vmem:[#allocation2 + $0x48] sm:$0xff]  ;;  %v138_v20 = vld [vmem:[#allocation2 + $0x50] sm:$0xff]  ;;  %v8109_v32 = vshrl.u32 %v851_v28, 7 }
  0x91   :  { %6547 = vmatpush1.bf16.msra.mxu0 %v6546_v34  ;;  %v139_v21 = vld [vmem:[#allocation2 + $0x58] sm:$0xff]  ;;  %v140_v22 = vld [vmem:[#allocation2 + $0x60] sm:$0xff]  ;;  %v141_v23 = vld [vmem:[#allocation2 + $0x68] sm:$0xff] }
  0x92   :  { %6549 = vmatprep.subr.bf16.mxu0 %v6548_v38  ;;  %6571 = vmatpush3.bf16.msra.mxu1 %v6568_v52  ;;  %v142_v24 = vld [vmem:[#allocation2 + $0x70] sm:$0xff]  ;;  %v143_v25 = vld [vmem:[#allocation2 + $0x78] sm:$0xff]  ;;  %v8099_v29 = vld [vmem:[#allocation7 + $0x8] sm:$0xff]  ;;  %11402 = vst [vmem:[#allocation20_spill] sm:$0xff] %v8109_v32  ;;  %v853_v35 = vsub.s32 0, %v8109_v32 }
  0x93   :  { %6573 = vmatprep.subr.bf16.mxu1 %v6572_v60  ;;  %v8122_v36 = vld [vmem:[#allocation7 + $0x18] sm:$0xff]  ;;  %v8127_v37 = vld [vmem:[%s11149_s5] sm:$0xff] }
  0x94   :  { %v8138_v41 = vrot.slane %v8127_v37, %v853_v35 }
  0x95   :  { %6551 = vmatpush1.bf16.msra.mxu0 %v6550_v47  ;;  %v8158_v47 = vld [vmem:[#allocation7 + $0x28] sm:$0xff] }
  0x96   :  { %6553 = vmatprep.subr.bf16.mxu0 %v6552_v48  ;;  %6575 = vmatpush3.bf16.msra.mxu1 %v6572_v60  ;;  %11404 = vst [vmem:[#allocation22_spill] sm:$0xff] %v8138_v41 }
  0x97   :  { %6577 = vmatprep.subr.bf16.mxu1 %v6576_v1 }
  0x99   :  { %6555 = vmatpush1.bf16.msra.mxu0 %v6554_v56 }
  0x9a   :  { %6557 = vmatprep.subr.bf16.mxu0 %v6556_v57  ;;  %6579 = vmatpush3.bf16.msra.mxu1 %v6576_v1 }
  0x9b   :  { %6581 = vmatprep.subr.bf16.mxu1 %v6580_v4 }
  0x9d   :  { %6559 = vmatpush1.bf16.msra.mxu0 %v6558_v63  ;;  %v8196_v63 = vld [vmem:[#allocation7 + $0x38] sm:$0xff] }
  0x9e   :  { %6583 = vmatpush3.bf16.msra.mxu1 %v6580_v4 }
  0x9f   :  { %6585 = vmatprep.subr.bf16.mxu1 %v6584_v8 }
  0xa0   :  { %257 = vmatmul.mubr.f32.vlgmr.msra.gmra.mrb[0].mxu0 %v8072_v26 }
  0xa1   :  { %262 = vmatprep.mubr.f32.mxu0 %v7915_v0 }
  0xa2   :  { %6587 = vmatpush3.bf16.msra.mxu1 %v6584_v8 }
  0xa3   :  { %6589 = vmatprep.subr.bf16.mxu1 %v6588_v12 }
  0xa4   :  { %263 = vmatmul.mubr.f32.gmra.mrb[2].mxu0 %v129_v7 }
  0xa5   :  { %268 = vmatprep.mubr.f32.mxu0 %v7915_v0 }
  0xa6   :  { %6591 = vmatpush3.bf16.msra.mxu1 %v6588_v12 }
  0xa8   :  { %269 = vmatmul.mubr.f32.gmra.mrb[4].mxu0 %v130_v11 }
  0xa9   :  { %274 = vmatprep.mubr.f32.mxu0 %v7915_v0  ;;  %5553 = vmatmul.mubr.f32.vlgmr.msra.gmra.mrb[0].mxu1 %v129_v7 }
  0xaa   :  { %5555 = vmatprep.mubr.f32.mxu1 %v130_v11 }
  0xac   :  { %275 = vmatmul.mubr.f32.gmra.mrb[6].mxu0 %v131_v13 }
  0xad   :  { %280 = vmatprep.mubr.f32.mxu0 %v7915_v0  ;;  %5556 = vmatmul.mubr.f32.gmra.mrb[2].mxu1 %v131_v13 }
  0xae   :  { %5558 = vmatprep.mubr.f32.mxu1 %v132_v14 }
  0xb0   :  { %281 = vmatmul.mubr.f32.gmra.mrb[8].mxu0 %v132_v14 }
  0xb1   :  { %286 = vmatprep.mubr.f32.mxu0 %v7915_v0  ;;  %5559 = vmatmul.mubr.f32.gmra.mrb[4].mxu1 %v133_v15 }
  0xb2   :  { %5561 = vmatprep.mubr.f32.mxu1 %v134_v16 }
  0xb4   :  { %287 = vmatmul.mubr.f32.gmra.mrb[10].mxu0 %v133_v15 }
  0xb5   :  { %292 = vmatprep.mubr.f32.mxu0 %v7915_v0  ;;  %5562 = vmatmul.mubr.f32.gmra.mrb[6].mxu1 %v135_v17 }
  0xb6   :  { %5564 = vmatprep.mubr.f32.mxu1 %v136_v18 }
  0xb8   :  { %293 = vmatmul.mubr.f32.gmra.mrb[12].mxu0 %v134_v16  ;;  %v8234_v16 = vld [vmem:[#allocation7 + $0x48] sm:$0xff] }
  0xb9   :  { %298 = vmatprep.mubr.f32.mxu0 %v7915_v0  ;;  %5565 = vmatmul.mubr.f32.gmra.mrb[8].mxu1 %v137_v19 }
  0xba   :  { %5567 = vmatprep.mubr.f32.mxu1 %v138_v20 }
  0xbc   :  { %299 = vmatmul.mubr.f32.gmra.mrb[14].mxu0 %v135_v17 }
  0xbd   :  { %304 = vmatprep.mubr.f32.mxu0 %v7915_v0  ;;  %5568 = vmatmul.mubr.f32.gmra.mrb[10].mxu1 %v139_v21 }
  0xbe   :  { %5570 = vmatprep.mubr.f32.mxu1 %v140_v22 }
  0xc0   :  { %305 = vmatmul.mubr.f32.gmra.mrb[16].mxu0 %v136_v18 }
  0xc1   :  { %310 = vmatprep.mubr.f32.mxu0 %v7915_v0  ;;  %5571 = vmatmul.mubr.f32.gmra.mrb[12].mxu1 %v141_v23 }
  0xc2   :  { %5573 = vmatprep.mubr.f32.mxu1 %v142_v24 }
  0xc4   :  { %311 = vmatmul.mubr.f32.gmra.mrb[18].mxu0 %v137_v19 }
  0xc5   :  { %316 = vmatprep.mubr.f32.mxu0 %v7915_v0  ;;  %5574 = vmatmul.mubr.f32.gmra.mrb[14].mxu1 %v143_v25 }
  0xc8   :  { %317 = vmatmul.mubr.f32.gmra.mrb[20].mxu0 %v138_v20 }
  0xc9   :  { %322 = vmatprep.mubr.f32.mxu0 %v7915_v0 }
  0xcc   :  { %323 = vmatmul.mubr.f32.gmra.mrb[22].mxu0 %v139_v21 }
  0xcd   :  { %328 = vmatprep.mubr.f32.mxu0 %v7915_v0 }
  0xd0   :  { %329 = vmatmul.mubr.f32.gmra.mrb[24].mxu0 %v140_v22 }
  0xd1   :  { %334 = vmatprep.mubr.f32.mxu0 %v7915_v0 }
  0xd4   :  { %335 = vmatmul.mubr.f32.gmra.mrb[26].mxu0 %v141_v23 }
  0xd5   :  { %340 = vmatprep.mubr.f32.mxu0 %v7915_v0 }
  0xd8   :  { %341 = vmatmul.mubr.f32.gmra.mrb[28].mxu0 %v142_v24 }
  0xd9   :  { %346 = vmatprep.mubr.f32.mxu0 %v7915_v0 }
  0xdc   :  { %347 = vmatmul.mubr.f32.gmra.mrb[30].mxu0 %v143_v25 }
 0x173   :  { %v8091_v26 = vpop.f32.mrb[0].mxu0 }
 0x174   :  { %v8093_v27 = vpop.f32.mrb[1].mxu0 }
 0x175   :  { %722 = vrot.lane.b32.xlu1 %v8093_v27, %s7916_s7  ;;  %690 = vrot.lane.b32.xlu0 %v8093_v27, %s7917_s27 }
 0x177   :  { %v8101_v30 = vpop.f32.mrb[2].mxu0 }
 0x178   :  { %v8105_v0 = vmul.f32 %v8099_v29, %v8101_v30  ;;  %v8107_v31 = vpop.f32.mrb[3].mxu0 }
 0x179   :  { %724 = vrot.lane.b32.xlu1 %v8107_v31, %s7916_s7  ;;  %692 = vrot.lane.b32.xlu0 %v8107_v31, %s7917_s27 }
 0x17b   :  { %v8115_v33 = vpop.f32.mrb[4].mxu0 }
 0x17c   :  { %v8117_v34 = vpop.f32.mrb[5].mxu0  ;;  %v8146_v43 = vpop.f32.mrb[0].mxu1 }
 0x17d   :  { %694 = vrot.lane.b32.xlu0 %v8117_v34, %s7917_s27  ;;  %11405 = vst [vmem:[#allocation23_spill] sm:$0xff] %v8146_v43  ;;  %v8150_v45 = vpop.f32.mrb[1].mxu1  ;;  %v1129_v46 = vmul.f32 %v8146_v43, %v8138_v41 }
 0x17e   :  { %11406 = vst [vmem:[#allocation24_spill] sm:$0xff] %v8150_v45  ;;  %v1128_v48 = vmul.f32 %v8138_v41, %v8150_v45 }
 0x17f   :  { %v8129_v38 = vpop.f32.mrb[6].mxu0 }
 0x180   :  { %v8133_v39 = vmul.f32 %v8122_v36, %v8129_v38  ;;  %v8135_v40 = vpop.f32.mrb[7].mxu0  ;;  %v8164_v50 = vpop.f32.mrb[2].mxu1  ;;  %v6624_v51 = vpack.c.bf16 %v1129_v46, %v1128_v48 }
 0x181   :  { %726 = vrot.lane.b32.xlu0 %v8117_v34, %s7916_s7  ;;  %696 = vrot.lane.b32.xlu1 %v8135_v40, %s7917_s27  ;;  %11407 = vst [vmem:[#allocation25_spill] sm:$0xff] %v8164_v50  ;;  %v8172_v54 = vpop.f32.mrb[3].mxu1  ;;  %v1131_v55 = vmul.f32 %v8164_v50, %v8138_v41 }
 0x182   :  { %11403 = vst [vmem:[#allocation21_spill] sm:$0xff] %v8133_v39  ;;  %11409 = vst [vmem:[#allocation27_spill] sm:$0xff] %v8172_v54  ;;  %v1130_v56 = vmul.f32 %v8138_v41, %v8172_v54  ;;  %6625 = vmatprep.subr.bf16.mxu1 %v6624_v51 }
 0x183   :  { %v8144_v42 = vpop.f32.mrb[8].mxu0  ;;  %6627 = vmatpush3.bf16.msra.mxu1 %v6624_v51 }
 0x184   :  { %v8148_v44 = vpop.f32.mrb[9].mxu0  ;;  %v8184_v58 = vpop.f32.mrb[4].mxu1  ;;  %v6628_v59 = vpack.c.bf16 %v1131_v55, %v1130_v56  ;;  %v8272_v56 = vld [vmem:[#allocation7 + $0x58] sm:$0xff] }
 0x185   :  { %728 = vrot.lane.b32.xlu1 %v8135_v40, %s7916_s7  ;;  %698 = vrot.lane.b32.xlu0 %v8148_v44, %s7917_s27  ;;  %11410 = vst [vmem:[#allocation28_spill] sm:$0xff] %v8184_v58  ;;  %v8188_v61 = vpop.f32.mrb[5].mxu1  ;;  %v1133_v62 = vmul.f32 %v8184_v58, %v8138_v41 }
 0x186   :  { %11411 = vst [vmem:[#allocation29_spill] sm:$0xff] %v8188_v61  ;;  %v1132_v1 = vmul.f32 %v8138_v41, %v8188_v61  ;;  %6629 = vmatprep.subr.bf16.mxu1 %v6628_v59 }
 0x187   :  { %v8162_v49 = vpop.f32.mrb[10].mxu0  ;;  %6631 = vmatpush3.bf16.msra.mxu1 %v6628_v59 }
 0x188   :  { %v8168_v52 = vmul.f32 %v8158_v47, %v8162_v49  ;;  %v8170_v53 = vpop.f32.mrb[11].mxu0  ;;  %v8202_v3 = vpop.f32.mrb[6].mxu1  ;;  %v6632_v4 = vpack.c.bf16 %v1133_v62, %v1132_v1 }
 0x189   :  { %730 = vrot.lane.b32.xlu0 %v8148_v44, %s7916_s7  ;;  %700 = vrot.lane.b32.xlu1 %v8170_v53, %s7917_s27  ;;  %11412 = vst [vmem:[#allocation30_spill] sm:$0xff] %v8202_v3  ;;  %v8210_v7 = vpop.f32.mrb[7].mxu1  ;;  %v1135_v8 = vmul.f32 %v8202_v3, %v8138_v41 }
 0x18a   :  { %11408 = vst [vmem:[#allocation26_spill] sm:$0xff] %v8168_v52  ;;  %11414 = vst [vmem:[#allocation32_spill] sm:$0xff] %v8210_v7  ;;  %v1134_v9 = vmul.f32 %v8138_v41, %v8210_v7  ;;  %6633 = vmatprep.subr.bf16.mxu1 %v6632_v4 }
 0x18b   :  { %v8182_v57 = vpop.f32.mrb[12].mxu0  ;;  %6635 = vmatpush3.bf16.msra.mxu1 %v6632_v4 }
 0x18c   :  { %v8186_v60 = vpop.f32.mrb[13].mxu0  ;;  %v8222_v11 = vpop.f32.mrb[8].mxu1  ;;  %v6636_v12 = vpack.c.bf16 %v1135_v8, %v1134_v9 }
 0x18d   :  { %732 = vrot.lane.b32.xlu1 %v8170_v53, %s7916_s7  ;;  %702 = vrot.lane.b32.xlu0 %v8186_v60, %s7917_s27  ;;  %11415 = vst [vmem:[#allocation33_spill] sm:$0xff] %v8222_v11  ;;  %v8226_v14 = vpop.f32.mrb[9].mxu1  ;;  %v1137_v15 = vmul.f32 %v8222_v11, %v8138_v41 }
 0x18e   :  { %11416 = vst [vmem:[#allocation34_spill] sm:$0xff] %v8226_v14  ;;  %v1136_v17 = vmul.f32 %v8138_v41, %v8226_v14  ;;  %6637 = vmatprep.subr.bf16.mxu1 %v6636_v12 }
 0x18f   :  { %v8200_v2 = vpop.f32.mrb[14].mxu0  ;;  %6639 = vmatpush3.bf16.msra.mxu1 %v6636_v12 }
 0x190   :  { %v8206_v5 = vmul.f32 %v8196_v63, %v8200_v2  ;;  %v8208_v6 = vpop.f32.mrb[15].mxu0  ;;  %v8240_v19 = vpop.f32.mrb[10].mxu1  ;;  %v6640_v20 = vpack.c.bf16 %v1137_v15, %v1136_v17 }
 0x191   :  { %734 = vrot.lane.b32.xlu0 %v8186_v60, %s7916_s7  ;;  %704 = vrot.lane.b32.xlu1 %v8208_v6, %s7917_s27  ;;  %11417 = vst [vmem:[#allocation35_spill] sm:$0xff] %v8240_v19  ;;  %v8248_v23 = vpop.f32.mrb[11].mxu1  ;;  %v1139_v24 = vmul.f32 %v8240_v19, %v8138_v41 }
 0x192   :  { %11413 = vst [vmem:[#allocation31_spill] sm:$0xff] %v8206_v5  ;;  %11419 = vst [vmem:[#allocation37_spill] sm:$0xff] %v8248_v23  ;;  %v1138_v25 = vmul.f32 %v8138_v41, %v8248_v23  ;;  %6641 = vmatprep.subr.bf16.mxu1 %v6640_v20 }
 0x193   :  { %v8220_v10 = vpop.f32.mrb[16].mxu0  ;;  %6643 = vmatpush3.bf16.msra.mxu1 %v6640_v20 }
 0x194   :  { %v8224_v13 = vpop.f32.mrb[17].mxu0  ;;  %v8260_v35 = vpop.f32.mrb[12].mxu1  ;;  %v6644_v46 = vpack.c.bf16 %v1139_v24, %v1138_v25 }
 0x195   :  { %736 = vrot.lane.b32.xlu1 %v8208_v6, %s7916_s7  ;;  %706 = vrot.lane.b32.xlu0 %v8224_v13, %s7917_s27  ;;  %11421 = vst [vmem:[#allocation39_spill] sm:$0xff] %v8260_v35  ;;  %v8264_v51 = vpop.f32.mrb[13].mxu1  ;;  %v1141_v55 = vmul.f32 %v8260_v35, %v8138_v41 }
 0x196   :  { %11422 = vst [vmem:[#allocation40_spill] sm:$0xff] %v8264_v51  ;;  %v1140_v59 = vmul.f32 %v8138_v41, %v8264_v51  ;;  %6645 = vmatprep.subr.bf16.mxu1 %v6644_v46 }
 0x197   :  { %v8238_v18 = vpop.f32.mrb[18].mxu0  ;;  %6647 = vmatpush3.bf16.msra.mxu1 %v6644_v46  ;;  %v8304_v46 = vld [vmem:[#allocation7 + $0x68] sm:$0xff] }
 0x198   :  { %v8244_v21 = vmul.f32 %v8234_v16, %v8238_v18  ;;  %v8246_v22 = vpop.f32.mrb[19].mxu0  ;;  %v8278_v1 = vpop.f32.mrb[14].mxu1  ;;  %v6648_v4 = vpack.c.bf16 %v1141_v55, %v1140_v59 }
 0x199   :  { %738 = vrot.lane.b32.xlu0 %v8224_v13, %s7916_s7  ;;  %708 = vrot.lane.b32.xlu1 %v8246_v22, %s7917_s27  ;;  %11423 = vst [vmem:[#allocation41_spill] sm:$0xff] %v8278_v1  ;;  %v8286_v12 = vpop.f32.mrb[15].mxu1  ;;  %v1143_v15 = vmul.f32 %v8278_v1, %v8138_v41 }
 0x19a   :  { %11418 = vst [vmem:[#allocation36_spill] sm:$0xff] %v8244_v21  ;;  %11425 = vst [vmem:[#allocation43_spill] sm:$0xff] %v8286_v12  ;;  %v1142_v17 = vmul.f32 %v8138_v41, %v8286_v12  ;;  %6649 = vmatprep.subr.bf16.mxu1 %v6648_v4 }
 0x19b   :  { %v8258_v28 = vpop.f32.mrb[20].mxu0  ;;  %6651 = vmatpush3.bf16.msra.mxu1 %v6648_v4 }
 0x19c   :  { %11420 = vst [vmem:[#allocation38_spill] sm:$0xff] %v8258_v28  ;;  %v8262_v48 = vpop.f32.mrb[21].mxu0  ;;  %v6652_v24 = vpack.c.bf16 %v1143_v15, %v1142_v17 }
 0x19d   :  { %740 = vrot.lane.b32.xlu1 %v8246_v22, %s7916_s7  ;;  %710 = vrot.lane.b32.xlu0 %v8262_v48, %s7917_s27 }
 0x19e   :  { %6653 = vmatprep.subr.bf16.mxu1 %v6652_v24 }
 0x19f   :  { %v8276_v62 = vpop.f32.mrb[22].mxu0  ;;  %6655 = vmatpush3.bf16.msra.mxu1 %v6652_v24  ;;  %v8327_v24 = vld [vmem:[#allocation7 + $0x78] sm:$0xff] }
 0x1a0   :  { %v8282_v8 = vmul.f32 %v8272_v56, %v8276_v62  ;;  %v8284_v9 = vpop.f32.mrb[23].mxu0 }
 0x1a1   :  { %742 = vrot.lane.b32.xlu0 %v8262_v48, %s7916_s7  ;;  %712 = vrot.lane.b32.xlu1 %v8284_v9, %s7917_s27 }
 0x1a2   :  { %11424 = vst [vmem:[#allocation42_spill] sm:$0xff] %v8282_v8  ;;  %v1339_v8 = vsub.s32 1, %v8109_v32 }
 0x1a3   :  { %v8296_v20 = vpop.f32.mrb[24].mxu0 }
 0x1a4   :  { %11426 = vst [vmem:[#allocation44_spill] sm:$0xff] %v8296_v20  ;;  %v8298_v25 = vpop.f32.mrb[25].mxu0  ;;  %v8338_v52 = vrot.slane %v8127_v37, %v1339_v8 }
 0x1a5   :  { %744 = vrot.lane.b32.xlu1 %v8284_v9, %s7916_s7  ;;  %714 = vrot.lane.b32.xlu0 %v8298_v25, %s7917_s27 }
 0x1a6   :  { %11430 = vst [vmem:[#allocation48_spill] sm:$0xff] %v8338_v52  ;;  %v1614_v32 = vmul.f32 %v8338_v52, %v8150_v45  ;;  %v1615_v39 = vmul.f32 %v8146_v43, %v8338_v52  ;;  %v1616_v37 = vmul.f32 %v8338_v52, %v8172_v54  ;;  %v1617_v8 = vmul.f32 %v8164_v50, %v8338_v52  ;;  %v8501_v54 = vld [vmem:[#allocation8 + $0x28] sm:$0xff] }
 0x1a7   :  { %v8306_v55 = vpop.f32.mrb[26].mxu0 }
 0x1a8   :  { %v8310_v59 = vmul.f32 %v8304_v46, %v8306_v55  ;;  %v8312_v4 = vpop.f32.mrb[27].mxu0  ;;  %v8348_v41 = vpack.c.bf16 %v1615_v39, %v1614_v32  ;;  %v1618_v32 = vmul.f32 %v8338_v52, %v8188_v61  ;;  %v1619_v39 = vmul.f32 %v8184_v58, %v8338_v52  ;;  %v8470_v61 = vld [vmem:[#allocation8 + $0x10] sm:$0xff] }
 0x1a9   :  { %746 = vrot.lane.b32.xlu0 %v8298_v25, %s7916_s7  ;;  %716 = vrot.lane.b32.xlu1 %v8312_v4, %s7917_s27 }
 0x1aa   :  { %11427 = vst [vmem:[#allocation45_spill] sm:$0xff] %v8310_v59  ;;  %v8368_v43 = vpack.c.bf16 %v1619_v39, %v1618_v32  ;;  %v1622_v32 = vmul.f32 %v8338_v52, %v8226_v14 }
 0x1ab   :  { %v8318_v15 = vpop.f32.mrb[28].mxu0 }
 0x1ac   :  { %11428 = vst [vmem:[#allocation46_spill] sm:$0xff] %v8318_v15  ;;  %v8320_v17 = vpop.f32.mrb[29].mxu0 }
 0x1ad   :  { %748 = vrot.lane.b32.xlu1 %v8312_v4, %s7916_s7  ;;  %718 = vrot.lane.b32.xlu0 %v8320_v17, %s7917_s27 }
 0x1af   :  { %v8329_v59 = vpop.f32.mrb[30].mxu0 }
 0x1b0   :  { %v8333_v21 = vmul.f32 %v8327_v24, %v8329_v59  ;;  %v8335_v5 = vpop.f32.mrb[31].mxu0 }
 0x1b1   :  { %750 = vrot.lane.b32.xlu0 %v8320_v17, %s7916_s7  ;;  %720 = vrot.lane.b32.xlu1 %v8335_v5, %s7917_s27 }
 0x1b2   :  { %11429 = vst [vmem:[#allocation47_spill] sm:$0xff] %v8333_v21  ;;  %v8358_v21 = vpack.c.bf16 %v1617_v8, %v1616_v37  ;;  %v1620_v37 = vmul.f32 %v8338_v52, %v8210_v7  ;;  %v1621_v8 = vmul.f32 %v8202_v3, %v8338_v52 }
 0x1b4   :  { %v8378_v50 = vpack.c.bf16 %v1621_v8, %v1620_v37  ;;  %v1624_v37 = vmul.f32 %v8338_v52, %v8248_v23  ;;  %v1625_v8 = vmul.f32 %v8240_v19, %v8338_v52 }
 0x1b5   :  { %546 = vrot.lane.b32.xlu0 %v8091_v26, %s7917_s27  ;;  %752 = vrot.lane.b32.xlu1 %v8335_v5, %s7916_s7 }
 0x1b6   :  { %v8398_v3 = vpack.c.bf16 %v1625_v8, %v1624_v37  ;;  %v1628_v37 = vmul.f32 %v8338_v52, %v8286_v12  ;;  %v1629_v8 = vmul.f32 %v8278_v1, %v8338_v52 }
 0x1b8   :  { %v8418_v19 = vpack.c.bf16 %v1629_v8, %v1628_v37  ;;  %v8453_v37 = vld [vmem:[#allocation8 + $0x8] sm:$0xff] }
 0x1b9   :  { %578 = vrot.lane.b32.xlu0 %v8091_v26, %s7916_s7  ;;  %548 = vrot.lane.b32.xlu1 %v8101_v30, %s7917_s27 }
 0x1ba   :  { %11432 = vst [vmem:[#allocation50_spill] sm:$0xff] %v8418_v19  ;;  %v8547_v19 = vld [vmem:[#allocation7 + $0x40] sm:$0xff] }
 0x1bd   :  { %550 = vrot.lane.b32.xlu0 %v8115_v33, %s7917_s27  ;;  %580 = vrot.lane.b32.xlu1 %v8101_v30, %s7916_s7  ;;  %v1623_v30 = vmul.f32 %v8222_v11, %v8338_v52 }
 0x1bf   :  { %v8388_v39 = vpack.c.bf16 %v1623_v30, %v1622_v32  ;;  %v1626_v32 = vmul.f32 %v8338_v52, %v8264_v51 }
 0x1c1   :  { %582 = vrot.lane.b32.xlu0 %v8115_v33, %s7916_s7  ;;  %552 = vrot.lane.b32.xlu1 %v8129_v38, %s7917_s27 }
 0x1c5   :  { %554 = vrot.lane.b32.xlu0 %v8144_v42, %s7917_s27  ;;  %584 = vrot.lane.b32.xlu1 %v8129_v38, %s7916_s7  ;;  %v1627_v38 = vmul.f32 %v8260_v35, %v8338_v52  ;;  %v8459_v52 = vld [vmem:[#allocation10 + $0x8] sm:$0xff] }
 0x1c7   :  { %v8408_v30 = vpack.c.bf16 %v1627_v38, %v1626_v32 }
 0x1c9   :  { %586 = vrot.lane.b32.xlu0 %v8144_v42, %s7916_s7  ;;  %556 = vrot.lane.b32.xlu1 %v8162_v49, %s7917_s27  ;;  %11431 = vst [vmem:[#allocation49_spill] sm:$0xff] %v8408_v30 }
 0x1cd   :  { %558 = vrot.lane.b32.xlu0 %v8182_v57, %s7917_s27  ;;  %588 = vrot.lane.b32.xlu1 %v8162_v49, %s7916_s7  ;;  %v8444_v49 = vld [vmem:[#allocation8] sm:$0xff] }
 0x1d1   :  { %590 = vrot.lane.b32.xlu0 %v8182_v57, %s7916_s7  ;;  %560 = vrot.lane.b32.xlu1 %v8200_v2, %s7917_s27 }
 0x1d5   :  { %562 = vrot.lane.b32.xlu0 %v8220_v10, %s7917_s27  ;;  %592 = vrot.lane.b32.xlu1 %v8200_v2, %s7916_s7  ;;  %v8446_v2 = vld [vmem:[#allocation7] sm:$0xff] }
 0x1d6   :  { %v754_v8 = vmul.f32 %v8446_v2, %v8093_v27 }
 0x1d9   :  { %594 = vrot.lane.b32.xlu0 %v8220_v10, %s7916_s7  ;;  %564 = vrot.lane.b32.xlu1 %v8238_v18, %s7917_s27 }
 0x1dd   :  { %566 = vrot.lane.b32.xlu0 %v8258_v28, %s7917_s27  ;;  %596 = vrot.lane.b32.xlu1 %v8238_v18, %s7916_s7 }
 0x1e1   :  { %598 = vrot.lane.b32.xlu0 %v8258_v28, %s7916_s7  ;;  %568 = vrot.lane.b32.xlu1 %v8276_v62, %s7917_s27 }
 0x1e5   :  { %570 = vrot.lane.b32.xlu0 %v8296_v20, %s7917_s27  ;;  %600 = vrot.lane.b32.xlu1 %v8276_v62, %s7916_s7  ;;  %v8457_v62 = vld [vmem:[#allocation10] sm:$0xff] }
 0x1e7   :  { %v723_v32 = vpop.permute.xlu1 %722  ;;  %v691_v38 = vpop.permute.xlu0 %690 }
 0x1e8   :  { %v770_v18 = vmul.f32 %v691_v38, %v8444_v49  ;;  %v755_v38 = vmul.f32 %v8099_v29, %v8107_v31  ;;  %v802_v27 = vmul.f32 %v723_v32, %v8457_v62  ;;  %v8476_v29 = vld [vmem:[#allocation8 + $0x18] sm:$0xff] }
 0x1e9   :  { %602 = vrot.lane.b32.xlu0 %v8296_v20, %s7916_s7  ;;  %572 = vrot.lane.b32.xlu1 %v8306_v55, %s7917_s27 }
 0x1ea   :  { %v786_v35 = vadd.f32 %v770_v18, %v754_v8 }
 0x1eb   :  { %v725_v1 = vpop.permute.xlu1 %724  ;;  %v693_v12 = vpop.permute.xlu0 %692 }
 0x1ec   :  { %v771_v51 = vmul.f32 %v693_v12, %v8453_v37  ;;  %v803_v23 = vmul.f32 %v725_v1, %v8459_v52  ;;  %v818_v7 = vadd.f32 %v802_v27, %v786_v35  ;;  %v8480_v12 = vld [vmem:[#allocation7 + $0x10] sm:$0xff]  ;;  %v757_v35 = vmul.f32 %v8122_v36, %v8135_v40 }
 0x1ed   :  { %574 = vrot.lane.b32.xlu0 %v8318_v15, %s7917_s27  ;;  %604 = vrot.lane.b32.xlu1 %v8306_v55, %s7916_s7  ;;  %v8482_v55 = vld [vmem:[#allocation10 + $0x10] sm:$0xff] }
 0x1ee   :  { %v787_v11 = vadd.f32 %v771_v51, %v755_v38 }
 0x1ef   :  { %v695_v14 = vpop.permute.xlu0 %694 }
 0x1f0   :  { %v819_v58 = vadd.f32 %v803_v23, %v787_v11  ;;  %v772_v11 = vmul.f32 %v695_v14, %v8470_v61 }
 0x1f1   :  { %606 = vrot.lane.b32.xlu0 %v8318_v15, %s7916_s7  ;;  %576 = vrot.lane.b32.xlu1 %v8329_v59, %s7917_s27  ;;  %v8503_v15 = vld [vmem:[#allocation7 + $0x20] sm:$0xff] }
 0x1f2   :  { %v8478_v31 = vpack.c.bf16 %v819_v58, %v818_v7  ;;  %v8491_v58 = vld [vmem:[#allocation10 + $0x18] sm:$0xff]  ;;  %v756_v7 = vmul.f32 %v8480_v12, %v8117_v34  ;;  %v8505_v34 = vld [vmem:[#allocation10 + $0x20] sm:$0xff] }
 0x1f3   :  { %v727_v51 = vpop.permute.xlu0 %726  ;;  %v697_v1 = vpop.permute.xlu1 %696 }
 0x1f4   :  { %11433 = vst [vmem:[#allocation51_spill] sm:$0xff] %v8478_v31  ;;  %v773_v23 = vmul.f32 %v697_v1, %v8476_v29  ;;  %6593 = vmatprep.subr.bf16.mxu0 %v8478_v31  ;;  %6657 = vmatprep.subr.bf16.mxu1 %v8478_v31  ;;  %v804_v14 = vmul.f32 %v727_v51, %v8482_v55  ;;  %v8499_v1 = vld [vmem:[#allocation8 + $0x20] sm:$0xff] }
 0x1f5   :  { %6595 = vmatpush3.bf16.xpose.msra.mxu0 %v8478_v31  ;;  %608 = vrot.lane.b32.xlu1 %v8329_v59, %s7916_s7  ;;  %v788_v8 = vadd.f32 %v772_v11, %v756_v7  ;;  %v758_v7 = vmul.f32 %v8503_v15, %v8148_v44  ;;  %v8525_v31 = vld [vmem:[#allocation7 + $0x30] sm:$0xff] }
 0x1f6   :  { %v789_v38 = vadd.f32 %v773_v23, %v757_v35  ;;  %v8511_v23 = vld [vmem:[#allocation10 + $0x28] sm:$0xff]  ;;  %v759_v35 = vmul.f32 %v8158_v47, %v8170_v53  ;;  %v8527_v47 = vld [vmem:[#allocation10 + $0x30] sm:$0xff] }
 0x1f7   :  { %v729_v32 = vpop.permute.xlu1 %728  ;;  %v699_v18 = vpop.permute.xlu0 %698  ;;  %v820_v59 = vadd.f32 %v804_v14, %v788_v8 }
 0x1f8   :  { %v805_v27 = vmul.f32 %v729_v32, %v8491_v58  ;;  %v774_v51 = vmul.f32 %v699_v18, %v8499_v1 }
 0x1fa   :  { %v821_v45 = vadd.f32 %v805_v27, %v789_v38  ;;  %v790_v8 = vadd.f32 %v774_v51, %v758_v7  ;;  %v8521_v27 = vld [vmem:[#allocation8 + $0x30] sm:$0xff]  ;;  %v760_v7 = vmul.f32 %v8525_v31, %v8186_v60 }
 0x1fb   :  { %v731_v20 = vpop.permute.xlu0 %730  ;;  %v701_v36 = vpop.permute.xlu1 %700 }
 0x1fc   :  { %v8507_v40 = vpack.c.bf16 %v821_v45, %v820_v59  ;;  %v775_v11 = vmul.f32 %v701_v36, %v8501_v54  ;;  %v806_v14 = vmul.f32 %v731_v20, %v8505_v34  ;;  %v8523_v59 = vld [vmem:[#allocation8 + $0x38] sm:$0xff] }
 0x1fe   :  { %11434 = vst [vmem:[#allocation52_spill] sm:$0xff] %v8507_v40  ;;  %6597 = vmatprep.subr.bf16.mxu0 %v8507_v40  ;;  %v791_v18 = vadd.f32 %v775_v11, %v759_v35  ;;  %v822_v44 = vadd.f32 %v806_v14, %v790_v8  ;;  %v8533_v11 = vld [vmem:[#allocation10 + $0x38] sm:$0xff]  ;;  %v761_v35 = vmul.f32 %v8196_v63, %v8208_v6  ;;  %v8549_v63 = vld [vmem:[#allocation10 + $0x40] sm:$0xff] }
 0x1ff   :  { %6599 = vmatpush3.bf16.xpose.msra.mxu0 %v8507_v40  ;;  %v733_v45 = vpop.permute.xlu1 %732  ;;  %v703_v32 = vpop.permute.xlu0 %702  ;;  %11437 = vst [vmem:[#allocation55_spill] sm:$0xff] %v8549_v63 }
 0x200   :  { %v807_v38 = vmul.f32 %v733_v45, %v8511_v23  ;;  %v776_v40 = vmul.f32 %v703_v32, %v8521_v27 }
 0x202   :  { %v823_v36 = vadd.f32 %v807_v38, %v791_v18  ;;  %v792_v18 = vadd.f32 %v776_v40, %v760_v7  ;;  %v762_v7 = vmul.f32 %v8547_v19, %v8224_v13 }
 0x203   :  { %v735_v53 = vpop.permute.xlu0 %734  ;;  %v705_v20 = vpop.permute.xlu1 %704 }
 0x204   :  { %v8529_v28 = vpack.c.bf16 %v823_v36, %v822_v44  ;;  %v777_v51 = vmul.f32 %v705_v20, %v8523_v59  ;;  %v808_v14 = vmul.f32 %v735_v53, %v8527_v47  ;;  %v8543_v44 = vld [vmem:[#allocation8 + $0x40] sm:$0xff]  ;;  %v8545_v36 = vld [vmem:[#allocation8 + $0x48] sm:$0xff] }
 0x205   :  { %11436 = vst [vmem:[#allocation54_spill] sm:$0xff] %v8545_v36 }
 0x206   :  { %11435 = vst [vmem:[#allocation53_spill] sm:$0xff] %v8529_v28  ;;  %6601 = vmatprep.subr.bf16.mxu0 %v8529_v28  ;;  %v793_v32 = vadd.f32 %v777_v51, %v761_v35  ;;  %v824_v60 = vadd.f32 %v808_v14, %v792_v18  ;;  %v8555_v51 = vld [vmem:[#allocation10 + $0x48] sm:$0xff]  ;;  %v763_v35 = vmul.f32 %v8234_v16, %v8246_v22  ;;  %v8571_v16 = vld [vmem:[#allocation10 + $0x50] sm:$0xff] }
 0x207   :  { %6603 = vmatpush3.bf16.xpose.msra.mxu0 %v8529_v28  ;;  %v737_v45 = vpop.permute.xlu1 %736  ;;  %v707_v8 = vpop.permute.xlu0 %706  ;;  %11440 = vst [vmem:[#allocation58_spill] sm:$0xff] %v8571_v16 }
 0x208   :  { %v809_v38 = vmul.f32 %v737_v45, %v8533_v11  ;;  %v778_v28 = vmul.f32 %v707_v8, %v8543_v44 }
 0x20a   :  { %v825_v20 = vadd.f32 %v809_v38, %v793_v32  ;;  %v794_v32 = vadd.f32 %v778_v28, %v762_v7 }
 0x20b   :  { %v739_v6 = vpop.permute.xlu0 %738  ;;  %v709_v53 = vpop.permute.xlu1 %708 }
 0x20c   :  { %v8551_v30 = vpack.c.bf16 %v825_v20, %v824_v60  ;;  %v779_v40 = vmul.f32 %v709_v53, %v8545_v36  ;;  %v810_v14 = vmul.f32 %v739_v6, %v8549_v63  ;;  %v8565_v60 = vld [vmem:[#allocation8 + $0x50] sm:$0xff]  ;;  %v8567_v20 = vld [vmem:[#allocation8 + $0x58] sm:$0xff] }
 0x20d   :  { %11439 = vst [vmem:[#allocation57_spill] sm:$0xff] %v8567_v20  ;;  %v8569_v36 = vld [vmem:[#allocation7 + $0x50] sm:$0xff] }
 0x20e   :  { %11438 = vst [vmem:[#allocation56_spill] sm:$0xff] %v8551_v30  ;;  %6605 = vmatprep.subr.bf16.mxu0 %v8551_v30  ;;  %v795_v8 = vadd.f32 %v779_v40, %v763_v35  ;;  %v826_v13 = vadd.f32 %v810_v14, %v794_v32  ;;  %v8577_v40 = vld [vmem:[#allocation10 + $0x58] sm:$0xff]  ;;  %v764_v7 = vmul.f32 %v8569_v36, %v8262_v48 }
 0x20f   :  { %6607 = vmatpush3.bf16.xpose.msra.mxu0 %v8551_v30  ;;  %v741_v45 = vpop.permute.xlu1 %740  ;;  %v711_v18 = vpop.permute.xlu0 %710  ;;  %v765_v35 = vmul.f32 %v8272_v56, %v8284_v9  ;;  %v8593_v56 = vld [vmem:[#allocation10 + $0x60] sm:$0xff] }
 0x210   :  { %v811_v38 = vmul.f32 %v741_v45, %v8555_v51  ;;  %v780_v30 = vmul.f32 %v711_v18, %v8565_v60  ;;  %11443 = vst [vmem:[#allocation61_spill] sm:$0xff] %v8593_v56 }
 0x212   :  { %v827_v53 = vadd.f32 %v811_v38, %v795_v8  ;;  %v796_v8 = vadd.f32 %v780_v30, %v764_v7 }
 0x213   :  { %v743_v22 = vpop.permute.xlu0 %742  ;;  %v713_v6 = vpop.permute.xlu1 %712 }
 0x214   :  { %v8573_v63 = vpack.c.bf16 %v827_v53, %v826_v13  ;;  %v781_v28 = vmul.f32 %v713_v6, %v8567_v20  ;;  %v812_v14 = vmul.f32 %v743_v22, %v8571_v16  ;;  %v8587_v13 = vld [vmem:[#allocation8 + $0x60] sm:$0xff]  ;;  %v8589_v53 = vld [vmem:[#allocation8 + $0x68] sm:$0xff] }
 0x215   :  { %11442 = vst [vmem:[#allocation60_spill] sm:$0xff] %v8589_v53  ;;  %v8591_v20 = vld [vmem:[#allocation7 + $0x60] sm:$0xff] }
 0x216   :  { %11441 = vst [vmem:[#allocation59_spill] sm:$0xff] %v8573_v63  ;;  %6609 = vmatprep.subr.bf16.mxu0 %v8573_v63  ;;  %v797_v18 = vadd.f32 %v781_v28, %v765_v35  ;;  %v828_v48 = vadd.f32 %v812_v14, %v796_v8  ;;  %v8599_v28 = vld [vmem:[#allocation10 + $0x68] sm:$0xff]  ;;  %v766_v7 = vmul.f32 %v8591_v20, %v8298_v25 }
 0x217   :  { %6611 = vmatpush3.bf16.xpose.msra.mxu0 %v8573_v63  ;;  %v745_v45 = vpop.permute.xlu1 %744  ;;  %v715_v32 = vpop.permute.xlu0 %714  ;;  %v767_v35 = vmul.f32 %v8304_v46, %v8312_v4  ;;  %v8615_v46 = vld [vmem:[#allocation10 + $0x70] sm:$0xff] }
 0x218   :  { %v813_v38 = vmul.f32 %v745_v45, %v8577_v40  ;;  %v782_v63 = vmul.f32 %v715_v32, %v8587_v13  ;;  %11446 = vst [vmem:[#allocation64_spill] sm:$0xff] %v8615_v46 }
 0x21a   :  { %v829_v6 = vadd.f32 %v813_v38, %v797_v18  ;;  %v798_v18 = vadd.f32 %v782_v63, %v766_v7 }
 0x21b   :  { %v747_v9 = vpop.permute.xlu0 %746  ;;  %v717_v22 = vpop.permute.xlu1 %716 }
 0x21c   :  { %v8595_v16 = vpack.c.bf16 %v829_v6, %v828_v48  ;;  %v783_v30 = vmul.f32 %v717_v22, %v8589_v53  ;;  %v814_v14 = vmul.f32 %v747_v9, %v8593_v56  ;;  %v8609_v48 = vld [vmem:[#allocation8 + $0x70] sm:$0xff]  ;;  %v8611_v6 = vld [vmem:[#allocation8 + $0x78] sm:$0xff] }
 0x21d   :  { %11445 = vst [vmem:[#allocation63_spill] sm:$0xff] %v8611_v6  ;;  %v8613_v53 = vld [vmem:[#allocation7 + $0x70] sm:$0xff] }
 0x21e   :  { %11444 = vst [vmem:[#allocation62_spill] sm:$0xff] %v8595_v16  ;;  %6613 = vmatprep.subr.bf16.mxu0 %v8595_v16  ;;  %v799_v32 = vadd.f32 %v783_v30, %v767_v35  ;;  %v830_v25 = vadd.f32 %v814_v14, %v798_v18  ;;  %v8621_v30 = vld [vmem:[#allocation10 + $0x78] sm:$0xff]  ;;  %v768_v7 = vmul.f32 %v8613_v53, %v8320_v17 }
 0x21f   :  { %6615 = vmatpush3.bf16.xpose.msra.mxu0 %v8595_v16  ;;  %v749_v45 = vpop.permute.xlu1 %748  ;;  %v719_v8 = vpop.permute.xlu0 %718  ;;  %v769_v35 = vmul.f32 %v8327_v24, %v8335_v5  ;;  %v610_v17 = vmul.f32 %v8446_v2, %v8091_v26 }
 0x220   :  { %v815_v38 = vmul.f32 %v749_v45, %v8599_v28  ;;  %v784_v16 = vmul.f32 %v719_v8, %v8609_v48 }
 0x222   :  { %v831_v22 = vadd.f32 %v815_v38, %v799_v32  ;;  %v800_v32 = vadd.f32 %v784_v16, %v768_v7 }
 0x223   :  { %v751_v4 = vpop.permute.xlu0 %750  ;;  %v721_v9 = vpop.permute.xlu1 %720 }
 0x224   :  { %v8617_v56 = vpack.c.bf16 %v831_v22, %v830_v25  ;;  %v785_v63 = vmul.f32 %v721_v9, %v8611_v6  ;;  %v816_v14 = vmul.f32 %v751_v4, %v8615_v46 }
 0x226   :  { %11447 = vst [vmem:[#allocation65_spill] sm:$0xff] %v8617_v56  ;;  %6617 = vmatprep.subr.bf16.mxu0 %v8617_v56  ;;  %v801_v8 = vadd.f32 %v785_v63, %v769_v35  ;;  %v832_v22 = vadd.f32 %v816_v14, %v800_v32  ;;  %v11448_v35 = vld [vmem:[#allocation22_spill] sm:$0xff]  ;;  %v11449_v32 = vld [vmem:[#allocation21_spill] sm:$0xff] }
 0x227   :  { %6619 = vmatpush3.bf16.xpose.msra.mxu0 %v8617_v56  ;;  %v547_v45 = vpop.permute.xlu0 %546  ;;  %v753_v18 = vpop.permute.xlu1 %752 }
 0x228   :  { %v626_v38 = vmul.f32 %v547_v45, %v8444_v49  ;;  %v817_v25 = vmul.f32 %v753_v18, %v8621_v30 }
 0x22a   :  { %v833_v9 = vadd.f32 %v817_v25, %v801_v8  ;;  %v642_v4 = vadd.f32 %v626_v38, %v610_v17 }
 0x22b   :  { %v579_v5 = vpop.permute.xlu0 %578  ;;  %v549_v24 = vpop.permute.xlu1 %548 }
 0x22c   :  { %v8634_v6 = vpack.c.bf16 %v833_v9, %v832_v22  ;;  %v658_v56 = vmul.f32 %v579_v5, %v8457_v62  ;;  %v627_v46 = vmul.f32 %v549_v24, %v8453_v37  ;;  %v612_v37 = vmul.f32 %v8480_v12, %v8115_v33 }
 0x22e   :  { %v8638_v16 = vadd.f32 %v658_v56, %v642_v4  ;;  %v643_v49 = vadd.f32 %v627_v46, %v8105_v0  ;;  %6621 = vmatprep.subr.bf16.mxu0 %v8634_v6 }
 0x22f   :  { %v551_v63 = vpop.permute.xlu0 %550  ;;  %v581_v7 = vpop.permute.xlu1 %580  ;;  %6623 = vmatpush3.bf16.xpose.msra.mxu0 %v8634_v6 }
 0x230   :  { %v628_v26 = vmul.f32 %v551_v63, %v8470_v61  ;;  %v659_v2 = vmul.f32 %v581_v7, %v8459_v52  ;;  %v855_v14 = vmul.f32 %v11448_v35, %v8638_v16  ;;  %6689 = vmatprep.subr.bf16.mxu0 %v8348_v41  ;;  %v616_v63 = vmul.f32 %v8525_v31, %v8182_v57  ;;  %v11451_v57 = vld [vmem:[#allocation31_spill] sm:$0xff] }
 0x232   :  { %v8650_v62 = vadd.f32 %v659_v2, %v643_v49  ;;  %5608 = vmatprep.mubr.f32.mxu0 %v855_v14  ;;  %v644_v46 = vadd.f32 %v628_v26, %v612_v37 }
 0x233   :  { %v583_v0 = vpop.permute.xlu0 %582  ;;  %v553_v56 = vpop.permute.xlu1 %552 }
 0x234   :  { %v660_v45 = vmul.f32 %v583_v0, %v8482_v55  ;;  %v629_v61 = vmul.f32 %v553_v56, %v8476_v29  ;;  %v856_v52 = vmul.f32 %v11448_v35, %v8650_v62  ;;  %v614_v29 = vmul.f32 %v8503_v15, %v8144_v42  ;;  %v11450_v42 = vld [vmem:[#allocation26_spill] sm:$0xff] }
 0x236   :  { %v8656_v18 = vadd.f32 %v660_v45, %v644_v46  ;;  %v645_v8 = vadd.f32 %v629_v61, %v11449_v32  ;;  %5609 = vmatmul.mubr.f32.vlgmr.msra.gmra.mrb[32].mxu0 %v856_v52  ;;  %v618_v46 = vmul.f32 %v8547_v19, %v8220_v10  ;;  %v11452_v32 = vld [vmem:[#allocation55_spill] sm:$0xff]  ;;  %v11455_v10 = vld [vmem:[#allocation36_spill] sm:$0xff] }
 0x237   :  { %v555_v38 = vpop.permute.xlu0 %554  ;;  %v585_v33 = vpop.permute.xlu1 %584  ;;  %6691 = vmatpush3.bf16.msra.mxu0 %v8348_v41 }
 0x238   :  { %v630_v12 = vmul.f32 %v555_v38, %v8499_v1  ;;  %v661_v25 = vmul.f32 %v585_v33, %v8491_v58  ;;  %v857_v55 = vmul.f32 %v11448_v35, %v8656_v18  ;;  %6693 = vmatprep.subr.bf16.mxu0 %v8358_v21  ;;  %v11454_v33 = vld [vmem:[#allocation49_spill] sm:$0xff] }
 0x23a   :  { %v8667_v17 = vadd.f32 %v661_v25, %v645_v8  ;;  %5611 = vmatprep.mubr.f32.mxu0 %v857_v55  ;;  %v646_v41 = vadd.f32 %v630_v12, %v614_v29  ;;  %v11453_v8 = vld [vmem:[#allocation54_spill] sm:$0xff] }
 0x23b   :  { %v587_v22 = vpop.permute.xlu0 %586  ;;  %v557_v9 = vpop.permute.xlu1 %556  ;;  %6695 = vmatpush3.bf16.msra.mxu0 %v8358_v21 }
 0x23c   :  { %v662_v1 = vmul.f32 %v587_v22, %v8505_v34  ;;  %v631_v58 = vmul.f32 %v557_v9, %v8501_v54  ;;  %v858_v5 = vmul.f32 %v11448_v35, %v8667_v17  ;;  %6697 = vmatprep.subr.bf16.mxu0 %v8368_v43  ;;  %v11456_v9 = vld [vmem:[#allocation50_spill] sm:$0xff] }
 0x23e   :  { %v8675_v24 = vadd.f32 %v662_v1, %v646_v41  ;;  %v647_v15 = vadd.f32 %v631_v58, %v11450_v42  ;;  %5612 = vmatmul.mubr.f32.gmra.mrb[34].mxu0 %v858_v5  ;;  %v11457_v41 = vld [vmem:[#allocation38_spill] sm:$0xff] }
 0x23f   :  { %v559_v4 = vpop.permute.xlu0 %558  ;;  %v589_v49 = vpop.permute.xlu1 %588  ;;  %6699 = vmatpush3.bf16.msra.mxu0 %v8368_v43  ;;  %v620_v1 = vmul.f32 %v8569_v36, %v11457_v41  ;;  %v11461_v36 = vld [vmem:[#allocation42_spill] sm:$0xff]  ;;  %v11471_v41 = vld [vmem:[#allocation47_spill] sm:$0xff] }
 0x240   :  { %v632_v21 = vmul.f32 %v559_v4, %v8521_v27  ;;  %v663_v34 = vmul.f32 %v589_v49, %v8511_v23  ;;  %v859_v54 = vmul.f32 %v11448_v35, %v8675_v24  ;;  %6701 = vmatprep.subr.bf16.mxu0 %v8378_v50  ;;  %v11458_v4 = vld [vmem:[#allocation58_spill] sm:$0xff]  ;;  %v11459_v49 = vld [vmem:[#allocation57_spill] sm:$0xff] }
 0x242   :  { %v8686_v7 = vadd.f32 %v663_v34, %v647_v15  ;;  %5614 = vmatprep.mubr.f32.mxu0 %v859_v54  ;;  %v648_v43 = vadd.f32 %v632_v21, %v616_v63  ;;  %v11460_v21 = vld [vmem:[#allocation51_spill] sm:$0xff] }
 0x243   :  { %v591_v26 = vpop.permute.xlu0 %590  ;;  %v561_v2 = vpop.permute.xlu1 %560  ;;  %6703 = vmatpush3.bf16.msra.mxu0 %v8378_v50 }
 0x244   :  { %v664_v27 = vmul.f32 %v591_v26, %v8527_v47  ;;  %v633_v23 = vmul.f32 %v561_v2, %v8523_v59  ;;  %v860_v14 = vmul.f32 %v11448_v35, %v8686_v7  ;;  %6705 = vmatprep.subr.bf16.mxu0 %v8388_v39 }
 0x246   :  { %v8694_v37 = vadd.f32 %v664_v27, %v648_v43  ;;  %v649_v31 = vadd.f32 %v633_v23, %v11451_v57  ;;  %5615 = vmatmul.mubr.f32.gmra.mrb[36].mxu0 %v860_v14  ;;  %v11462_v14 = vld [vmem:[#allocation44_spill] sm:$0xff] }
 0x247   :  { %v563_v0 = vpop.permute.xlu0 %562  ;;  %v593_v56 = vpop.permute.xlu1 %592  ;;  %6707 = vmatpush3.bf16.msra.mxu0 %v8388_v39  ;;  %v622_v57 = vmul.f32 %v8591_v20, %v11462_v14 }
 0x248   :  { %v634_v50 = vmul.f32 %v563_v0, %v8543_v44  ;;  %v665_v47 = vmul.f32 %v593_v56, %v8533_v11  ;;  %v861_v59 = vmul.f32 %v11448_v35, %v8694_v37  ;;  %6709 = vmatprep.subr.bf16.mxu0 %v8398_v3 }
 0x24a   :  { %v8705_v45 = vadd.f32 %v665_v47, %v649_v31  ;;  %5617 = vmatprep.mubr.f32.mxu0 %v861_v59  ;;  %v650_v39 = vadd.f32 %v634_v50, %v618_v46  ;;  %v11463_v47 = vld [vmem:[#allocation61_spill] sm:$0xff]  ;;  %v11464_v46 = vld [vmem:[#allocation60_spill] sm:$0xff] }
 0x24b   :  { %v595_v61 = vpop.permute.xlu0 %594  ;;  %v565_v52 = vpop.permute.xlu1 %564  ;;  %6711 = vmatpush3.bf16.msra.mxu0 %v8398_v3 }
 0x24c   :  { %v666_v44 = vmul.f32 %v595_v61, %v11452_v32  ;;  %v635_v11 = vmul.f32 %v565_v52, %v11453_v8  ;;  %v862_v38 = vmul.f32 %v11448_v35, %v8705_v45  ;;  %6713 = vmatprep.subr.bf16.mxu0 %v11454_v33  ;;  %v11465_v52 = vld [vmem:[#allocation45_spill] sm:$0xff] }
 0x24e   :  { %v8713_v12 = vadd.f32 %v666_v44, %v650_v39  ;;  %v651_v19 = vadd.f32 %v635_v11, %v11455_v10  ;;  %5618 = vmatmul.mubr.f32.gmra.mrb[38].mxu0 %v862_v38  ;;  %v11466_v38 = vld [vmem:[#allocation46_spill] sm:$0xff] }
 0x24f   :  { %v567_v25 = vpop.permute.xlu0 %566  ;;  %v597_v55 = vpop.permute.xlu1 %596  ;;  %6715 = vmatpush3.bf16.msra.mxu0 %v11454_v33  ;;  %v624_v33 = vmul.f32 %v8613_v53, %v11466_v38 }
 0x250   :  { %v636_v3 = vmul.f32 %v567_v25, %v8565_v60  ;;  %v667_v29 = vmul.f32 %v597_v55, %v8555_v51  ;;  %v863_v22 = vmul.f32 %v11448_v35, %v8713_v12  ;;  %6717 = vmatprep.subr.bf16.mxu0 %v11456_v9 }
 0x252   :  { %v8724_v58 = vadd.f32 %v667_v29, %v651_v19  ;;  %5620 = vmatprep.mubr.f32.mxu0 %v863_v22  ;;  %v652_v15 = vadd.f32 %v636_v3, %v620_v1  ;;  %v11468_v3 = vld [vmem:[#allocation64_spill] sm:$0xff]  ;;  %v11469_v22 = vld [vmem:[#allocation63_spill] sm:$0xff] }
 0x253   :  { %v599_v5 = vpop.permute.xlu0 %598  ;;  %v569_v42 = vpop.permute.xlu1 %568  ;;  %6719 = vmatpush3.bf16.msra.mxu0 %v11456_v9 }
 0x254   :  { %v668_v60 = vmul.f32 %v599_v5, %v11458_v4  ;;  %v637_v51 = vmul.f32 %v569_v42, %v11459_v49  ;;  %6721 = vmatprep.subr.bf16.mxu0 %v11460_v21  ;;  %v864_v34 = vmul.f32 %v11448_v35, %v8724_v58 }
 0x256   :  { %v8732_v54 = vadd.f32 %v668_v60, %v652_v15  ;;  %v653_v63 = vadd.f32 %v637_v51, %v11461_v36  ;;  %5621 = vmatmul.mubr.f32.gmra.mrb[40].mxu0 %v864_v34  ;;  %v11473_v60 = vld [vmem:[#allocation20_spill] sm:$0xff] }
 0x257   :  { %v571_v26 = vpop.permute.xlu0 %570  ;;  %v601_v2 = vpop.permute.xlu1 %600  ;;  %v1825_v49 = vsub.s32 2, %v11473_v60  ;;  %v2311_v51 = vsub.s32 3, %v11473_v60  ;;  %v2797_v34 = vsub.s32 4, %v11473_v60  ;;  %v3283_v36 = vsub.s32 5, %v11473_v60 }
 0x258   :  { %v638_v43 = vmul.f32 %v571_v26, %v8587_v13  ;;  %v669_v27 = vmul.f32 %v601_v2, %v8577_v40  ;;  %v865_v23 = vmul.f32 %v11448_v35, %v8732_v54  ;;  %v3769_v26 = vsub.s32 6, %v11473_v60 }
 0x25a   :  { %v8741_v31 = vadd.f32 %v669_v27, %v653_v63  ;;  %5623 = vmatprep.mubr.f32.mxu0 %v865_v23  ;;  %v654_v50 = vadd.f32 %v638_v43, %v622_v57  ;;  %v11476_v43 = vld [vmem:[#allocation24_spill] sm:$0xff]  ;;  %v11477_v23 = vld [vmem:[#allocation23_spill] sm:$0xff] }
 0x25b   :  { %v603_v0 = vpop.permute.xlu0 %602  ;;  %v573_v56 = vpop.permute.xlu1 %572 }
 0x25c   :  { %v670_v59 = vmul.f32 %v603_v0, %v11463_v47  ;;  %v639_v61 = vmul.f32 %v573_v56, %v11464_v46  ;;  %v866_v13 = vmul.f32 %v11448_v35, %v8741_v31 }
 0x25e   :  { %v8747_v40 = vadd.f32 %v670_v59, %v654_v50  ;;  %v655_v39 = vadd.f32 %v639_v61, %v11465_v52  ;;  %5624 = vmatmul.mubr.f32.gmra.mrb[42].mxu0 %v866_v13 }
 0x25f   :  { %v575_v32 = vpop.permute.xlu0 %574  ;;  %v605_v20 = vpop.permute.xlu1 %604 }
 0x260   :  { %v640_v44 = vmul.f32 %v575_v32, %v8609_v48  ;;  %v671_v8 = vmul.f32 %v605_v20, %v8599_v28  ;;  %v867_v11 = vmul.f32 %v11448_v35, %v8747_v40  ;;  %v11483_v20 = vld [vmem:[#allocation27_spill] sm:$0xff] }
 0x262   :  { %v8756_v10 = vadd.f32 %v671_v8, %v655_v39  ;;  %5626 = vmatprep.mubr.f32.mxu0 %v867_v11  ;;  %v656_v55 = vadd.f32 %v640_v44, %v624_v33  ;;  %v11484_v8 = vld [vmem:[#allocation25_spill] sm:$0xff] }
 0x263   :  { %v607_v19 = vpop.permute.xlu0 %606  ;;  %v577_v25 = vpop.permute.xlu1 %576 }
 0x264   :  { %11467 = vst [vmem:[#allocation22_spill] sm:$0xff] %v8756_v10  ;;  %v672_v29 = vmul.f32 %v607_v19, %v11468_v3  ;;  %v641_v9 = vmul.f32 %v577_v25, %v11469_v22  ;;  %v868_v48 = vmul.f32 %v11448_v35, %v8756_v10 }
 0x266   :  { %v8762_v28 = vadd.f32 %v672_v29, %v656_v55  ;;  %v657_v1 = vadd.f32 %v641_v9, %v11471_v41  ;;  %5627 = vmatmul.mubr.f32.gmra.mrb[44].mxu0 %v868_v48  ;;  %v8829_v29 = vld [vmem:[#allocation11 + $0x8] sm:$0xff] }
 0x267   :  { %v609_v5 = vpop.permute.xlu1 %608  ;;  %11487 = vst [vmem:[#allocation51_spill] sm:$0xff] %v8829_v29 }
 0x268   :  { %11470 = vst [vmem:[#allocation21_spill] sm:$0xff] %v8762_v28  ;;  %v673_v53 = vmul.f32 %v609_v5, %v8621_v30  ;;  %v869_v42 = vmul.f32 %v11448_v35, %v8762_v28  ;;  %v7679_v30 = vld [vmem:[%s11149_s5] sm:$0xff] }
 0x269   :  { %v8779_v63 = vrot.slane %v7679_v30, %v1825_v49  ;;  %v8782_v2 = vrot.slane %v7679_v30, %v2311_v51  ;;  %v8789_v57 = vrot.slane %v7679_v30, %v2797_v34  ;;  %v8795_v50 = vrot.slane %v7679_v30, %v3283_v36  ;;  %v11491_v49 = vld [vmem:[#allocation29_spill] sm:$0xff]  ;;  %v11492_v34 = vld [vmem:[#allocation28_spill] sm:$0xff] }
 0x26a   :  { %v8768_v15 = vadd.f32 %v673_v53, %v657_v1  ;;  %5629 = vmatprep.mubr.f32.mxu0 %v869_v42  ;;  %v8803_v61 = vrot.slane %v7679_v30, %v3769_v26  ;;  %v8841_v1 = vld [vmem:[#allocation11] sm:$0xff] }
 0x26b   :  { %11474 = vst [vmem:[#allocation31_spill] sm:$0xff] %v8779_v63  ;;  %11475 = vst [vmem:[#allocation55_spill] sm:$0xff] %v8782_v2  ;;  %v2100_v27 = vmul.f32 %v8779_v63, %v11476_v43  ;;  %v2101_v14 = vmul.f32 %v11477_v23, %v8779_v63  ;;  %v2586_v0 = vmul.f32 %v8782_v2, %v11476_v43 }
 0x26c   :  { %11472 = vst [vmem:[#allocation26_spill] sm:$0xff] %v8768_v15  ;;  %v870_v4 = vmul.f32 %v11448_v35, %v8768_v15  ;;  %v4255_v35 = vsub.s32 7, %v11473_v60  ;;  %11478 = vst [vmem:[#allocation54_spill] sm:$0xff] %v8789_v57  ;;  %v2587_v56 = vmul.f32 %v11477_v23, %v8782_v2  ;;  %v3072_v59 = vmul.f32 %v8789_v57, %v11476_v43 }
 0x26d   :  { %11479 = vst [vmem:[#allocation49_spill] sm:$0xff] %v8795_v50  ;;  %v8797_v47 = vpack.c.bf16 %v2101_v14, %v2100_v27  ;;  %v3073_v46 = vmul.f32 %v11477_v23, %v8789_v57  ;;  %11480 = vst [vmem:[#allocation36_spill] sm:$0xff] %v8803_v61  ;;  %v3558_v52 = vmul.f32 %v8795_v50, %v11476_v43 }
 0x26e   :  { %5630 = vmatmul.mubr.f32.gmra.mrb[46].mxu0 %v870_v4  ;;  %v8805_v13 = vpack.c.bf16 %v2587_v56, %v2586_v0  ;;  %v3559_v39 = vmul.f32 %v11477_v23, %v8795_v50  ;;  %v8811_v32 = vrot.slane %v7679_v30, %v4255_v35  ;;  %v2102_v44 = vmul.f32 %v8779_v63, %v11483_v20 }
 0x26f   :  { %v2103_v11 = vmul.f32 %v11484_v8, %v8779_v63  ;;  %v8817_v38 = vpack.c.bf16 %v3073_v46, %v3072_v59  ;;  %v4044_v33 = vmul.f32 %v8803_v61, %v11476_v43  ;;  %v2588_v19 = vmul.f32 %v8782_v2, %v11483_v20  ;;  %11488 = vst [vmem:[#allocation42_spill] sm:$0xff] %v8841_v1 }
 0x270   :  { %11481 = vst [vmem:[#allocation50_spill] sm:$0xff] %v8805_v13  ;;  %11482 = vst [vmem:[#allocation38_spill] sm:$0xff] %v8811_v32  ;;  %v2589_v25 = vmul.f32 %v11484_v8, %v8782_v2  ;;  %v8825_v55 = vpack.c.bf16 %v3559_v39, %v3558_v52  ;;  %v4045_v3 = vmul.f32 %v11477_v23, %v8803_v61 }
 0x271   :  { %11485 = vst [vmem:[#allocation58_spill] sm:$0xff] %v8817_v38  ;;  %v8831_v22 = vpack.c.bf16 %v2103_v11, %v2102_v44  ;;  %v3074_v9 = vmul.f32 %v8789_v57, %v11483_v20  ;;  %v3075_v48 = vmul.f32 %v11484_v8, %v8789_v57  ;;  %v8839_v41 = vmul.f32 %v8811_v32, %v11476_v43 }
 0x272   :  { %11486 = vst [vmem:[#allocation57_spill] sm:$0xff] %v8825_v55  ;;  %v8843_v5 = vpack.c.bf16 %v2589_v25, %v2588_v19  ;;  %v3560_v53 = vmul.f32 %v8795_v50, %v11483_v20  ;;  %v3561_v42 = vmul.f32 %v11484_v8, %v8795_v50  ;;  %v8849_v4 = vpack.c.bf16 %v4045_v3, %v4044_v33  ;;  %v11496_v19 = vld [vmem:[#allocation32_spill] sm:$0xff]  ;;  %v11497_v3 = vld [vmem:[#allocation30_spill] sm:$0xff] }
 0x273   :  { %v2104_v51 = vmul.f32 %v8779_v63, %v11491_v49  ;;  %v2105_v36 = vmul.f32 %v11492_v34, %v8779_v63  ;;  %v8855_v30 = vpack.c.bf16 %v3075_v48, %v3074_v9  ;;  %v4046_v26 = vmul.f32 %v8803_v61, %v11483_v20 }
 0x274   :  { %11489 = vst [vmem:[#allocation44_spill] sm:$0xff] %v8843_v5  ;;  %11490 = vst [vmem:[#allocation61_spill] sm:$0xff] %v8849_v4  ;;  %v2590_v27 = vmul.f32 %v8782_v2, %v11491_v49  ;;  %v2591_v14 = vmul.f32 %v11492_v34, %v8782_v2  ;;  %v8866_v0 = vpack.c.bf16 %v3561_v42, %v3560_v53  ;;  %v8913_v4 = vld [vmem:[#allocation11 + $0x10] sm:$0xff]  ;;  %v8976_v5 = vld [vmem:[#allocation11 + $0x28] sm:$0xff] }
 0x275   :  { %11493 = vst [vmem:[#allocation60_spill] sm:$0xff] %v8855_v30  ;;  %v8871_v59 = vpack.c.bf16 %v2105_v36, %v2104_v51  ;;  %v3076_v46 = vmul.f32 %v8789_v57, %v11491_v49  ;;  %v3077_v52 = vmul.f32 %v11492_v34, %v8789_v57  ;;  %v3562_v44 = vmul.f32 %v8795_v50, %v11491_v49 }
 0x276   :  { %11494 = vst [vmem:[#allocation45_spill] sm:$0xff] %v8866_v0  ;;  %v8878_v39 = vpack.c.bf16 %v2591_v14, %v2590_v27  ;;  %v3563_v11 = vmul.f32 %v11492_v34, %v8795_v50  ;;  %v4047_v33 = vmul.f32 %v11484_v8, %v8803_v61  ;;  %v2106_v25 = vmul.f32 %v8779_v63, %v11496_v19 }
 0x277   :  { %v2107_v9 = vmul.f32 %v11497_v3, %v8779_v63  ;;  %v8891_v48 = vpack.c.bf16 %v3077_v52, %v3076_v46  ;;  %v4048_v53 = vmul.f32 %v8803_v61, %v11491_v49  ;;  %v2592_v42 = vmul.f32 %v8782_v2, %v11496_v19  ;;  %11502 = vst [vmem:[#allocation24_spill] sm:$0xff] %v8913_v4 }
 0x278   :  { %11495 = vst [vmem:[#allocation46_spill] sm:$0xff] %v8878_v39  ;;  %v8899_v51 = vpack.c.bf16 %v3563_v11, %v3562_v44  ;;  %v8901_v36 = vpack.c.bf16 %v4047_v33, %v4046_v26  ;;  %v3078_v14 = vmul.f32 %v8789_v57, %v11496_v19  ;;  %v3079_v46 = vmul.f32 %v11497_v3, %v8789_v57 }
 0x279   :  { %11498 = vst [vmem:[#allocation64_spill] sm:$0xff] %v8891_v48  ;;  %v8905_v27 = vpack.c.bf16 %v2107_v9, %v2106_v25  ;;  %v4049_v52 = vmul.f32 %v11492_v34, %v8803_v61  ;;  %v3564_v26 = vmul.f32 %v8795_v50, %v11496_v19  ;;  %v3565_v44 = vmul.f32 %v11497_v3, %v8795_v50  ;;  %v11504_v25 = vld [vmem:[#allocation34_spill] sm:$0xff] }
 0x27a   :  { %11499 = vst [vmem:[#allocation63_spill] sm:$0xff] %v8899_v51  ;;  %11500 = vst [vmem:[#allocation47_spill] sm:$0xff] %v8901_v36  ;;  %v8923_v11 = vmul.f32 %v11477_v23, %v8811_v32  ;;  %v2108_v9 = vmul.f32 %v8779_v63, %v11504_v25  ;;  %v11505_v36 = vld [vmem:[#allocation33_spill] sm:$0xff]  ;;  %v8929_v55 = vpack.c.bf16 %v3079_v46, %v3078_v14 }
 0x27b   :  { %v2109_v51 = vmul.f32 %v11505_v36, %v8779_v63  ;;  %v2594_v30 = vmul.f32 %v8782_v2, %v11504_v25  ;;  %v2595_v23 = vmul.f32 %v11505_v36, %v8782_v2  ;;  %v8940_v38 = vpack.c.bf16 %v3565_v44, %v3564_v26  ;;  %11514 = vst [vmem:[#allocation34_spill] sm:$0xff] %v8976_v5 }
 0x27c   :  { %11506 = vst [vmem:[#allocation27_spill] sm:$0xff] %v8929_v55  ;;  %v3081_v14 = vmul.f32 %v11505_v36, %v8789_v57  ;;  %v3567_v26 = vmul.f32 %v11505_v36, %v8795_v50 }
 0x27d   :  { %11508 = vst [vmem:[#allocation29_spill] sm:$0xff] %v8940_v38  ;;  %v8945_v39 = vpack.c.bf16 %v2109_v51, %v2108_v9  ;;  %v8951_v46 = vpack.c.bf16 %v2595_v23, %v2594_v30  ;;  %v11510_v51 = vld [vmem:[#allocation37_spill] sm:$0xff]  ;;  %v4051_v30 = vmul.f32 %v11497_v3, %v8803_v61 }
 0x27e   :  { %v2110_v44 = vmul.f32 %v8779_v63, %v11510_v51  ;;  %v2596_v23 = vmul.f32 %v8782_v2, %v11510_v51 }
 0x27f   :  { %11509 = vst [vmem:[#allocation28_spill] sm:$0xff] %v8951_v46  ;;  %v4052_v46 = vmul.f32 %v8803_v61, %v11504_v25 }
 0x309   :  { %v5610_v60 = vpop.f32.mrb[32].mxu0 }
 0x30a   :  { %v8860_v35 = vadd.f32 %v5610_v60, %v8829_v29  ;;  %v937_v43 = vpop.f32.mrb[33].mxu0  ;;  %v2593_v60 = vmul.f32 %v11497_v3, %v8782_v2 }
 0x30b   :  { %v8869_v56 = vadd.f32 %v937_v43, %v8841_v1  ;;  %v8903_v43 = vld [vmem:[#allocation11 + $0x18] sm:$0xff] }
 0x30c   :  { %1018 = vmax.xlane.f32.xlu1 %v8860_v35  ;;  %11501 = vst [vmem:[#allocation20_spill] sm:$0xff] %v8903_v43  ;;  %v8915_v0 = vpack.c.bf16 %v2593_v60, %v2592_v42  ;;  %v8931_v42 = vpack.c.bf16 %v4049_v52, %v4048_v53  ;;  %v3080_v53 = vmul.f32 %v8789_v57, %v11504_v25 }
 0x30d   :  { %1016 = vmax.xlane.f32.xlu0 %v8869_v56  ;;  %v3566_v52 = vmul.f32 %v8795_v50, %v11504_v25 }
 0x30e   :  { %11503 = vst [vmem:[#allocation23_spill] sm:$0xff] %v8915_v0  ;;  %11507 = vst [vmem:[#allocation25_spill] sm:$0xff] %v8931_v42  ;;  %v8964_v42 = vpack.c.bf16 %v3081_v14, %v3080_v53  ;;  %v3082_v53 = vmul.f32 %v8789_v57, %v11510_v51 }
 0x30f   :  { %v8972_v55 = vpack.c.bf16 %v3567_v26, %v3566_v52  ;;  %v3568_v52 = vmul.f32 %v8795_v50, %v11510_v51 }
 0x310   :  { %11512 = vst [vmem:[#allocation32_spill] sm:$0xff] %v8964_v42 }
 0x311   :  { %v5613_v33 = vpop.f32.mrb[34].mxu0  ;;  %11513 = vst [vmem:[#allocation30_spill] sm:$0xff] %v8972_v55  ;;  %v11518_v55 = vld [vmem:[#allocation40_spill] sm:$0xff] }
 0x312   :  { %v8934_v60 = vadd.f32 %v5613_v33, %v8903_v43  ;;  %v947_v48 = vpop.f32.mrb[35].mxu0  ;;  %v11511_v33 = vld [vmem:[#allocation35_spill] sm:$0xff]  ;;  %v2598_v29 = vmul.f32 %v8782_v2, %v11518_v55 }
 0x313   :  { %v8943_v0 = vadd.f32 %v947_v48, %v8913_v4  ;;  %v4050_v48 = vmul.f32 %v8803_v61, %v11496_v19  ;;  %v2111_v9 = vmul.f32 %v11511_v33, %v8779_v63  ;;  %v2597_v38 = vmul.f32 %v11511_v33, %v8782_v2  ;;  %v8986_v4 = vld [vmem:[#allocation11 + $0x20] sm:$0xff] }
 0x314   :  { %v3083_v14 = vmul.f32 %v11511_v33, %v8789_v57  ;;  %11516 = vst [vmem:[#allocation37_spill] sm:$0xff] %v8986_v4  ;;  %v3569_v26 = vmul.f32 %v11511_v33, %v8795_v50 }
 0x315   :  { %1020 = vmax.xlane.f32.xlu0 %v8943_v0  ;;  %v8978_v13 = vpack.c.bf16 %v2111_v9, %v2110_v44  ;;  %v8984_v42 = vpack.c.bf16 %v4051_v30, %v4050_v48  ;;  %v8988_v43 = vpack.c.bf16 %v2597_v38, %v2596_v23  ;;  %v4053_v44 = vmul.f32 %v11505_v36, %v8803_v61  ;;  %v11519_v30 = vld [vmem:[#allocation39_spill] sm:$0xff] }
 0x316   :  { %v2112_v48 = vmul.f32 %v8779_v63, %v11518_v55  ;;  %v9001_v38 = vpack.c.bf16 %v3083_v14, %v3082_v53  ;;  %v4054_v23 = vmul.f32 %v8803_v61, %v11510_v51  ;;  %v2599_v15 = vmul.f32 %v11519_v30, %v8782_v2 }
 0x317   :  { %11515 = vst [vmem:[#allocation33_spill] sm:$0xff] %v8984_v42  ;;  %11517 = vst [vmem:[#allocation35_spill] sm:$0xff] %v8988_v43  ;;  %v2113_v42 = vmul.f32 %v11519_v30, %v8779_v63  ;;  %v9012_v28 = vpack.c.bf16 %v3569_v26, %v3568_v52  ;;  %v3084_v14 = vmul.f32 %v8789_v57, %v11518_v55 }
 0x318   :  { %11520 = vst [vmem:[#allocation40_spill] sm:$0xff] %v9001_v38  ;;  %v9023_v38 = vpack.c.bf16 %v2599_v15, %v2598_v29  ;;  %v3571_v52 = vmul.f32 %v11519_v30, %v8795_v50  ;;  %v9029_v26 = vpack.c.bf16 %v4053_v44, %v4052_v46  ;;  %v4055_v44 = vmul.f32 %v11511_v33, %v8803_v61 }
 0x319   :  { %v5616_v9 = vpop.f32.mrb[36].mxu0  ;;  %1022 = vmax.xlane.f32.xlu0 %v8934_v60  ;;  %11521 = vst [vmem:[#allocation39_spill] sm:$0xff] %v9012_v28  ;;  %v9017_v53 = vpack.c.bf16 %v2113_v42, %v2112_v48  ;;  %v11526_v48 = vld [vmem:[#allocation41_spill] sm:$0xff] }
 0x31a   :  { %v9006_v43 = vadd.f32 %v5616_v9, %v8976_v5  ;;  %v957_v1 = vpop.f32.mrb[37].mxu0  ;;  %v3085_v9 = vmul.f32 %v11519_v30, %v8789_v57  ;;  %11523 = vst [vmem:[#allocation67_spill] sm:$0xff] %v9023_v38  ;;  %v3570_v5 = vmul.f32 %v8795_v50, %v11518_v55  ;;  %11524 = vst [vmem:[#allocation68_spill] sm:$0xff] %v9029_v26  ;;  %v9047_v26 = vld [vmem:[#allocation11 + $0x38] sm:$0xff] }
 0x31b   :  { %v9015_v10 = vadd.f32 %v957_v1, %v8986_v4  ;;  %11522 = vst [vmem:[#allocation66_spill] sm:$0xff] %v9017_v53  ;;  %v11525_v1 = vld [vmem:[#allocation43_spill] sm:$0xff]  ;;  %v2115_v28 = vmul.f32 %v11526_v48, %v8779_v63  ;;  %v2601_v38 = vmul.f32 %v11526_v48, %v8782_v2 }
 0x31c   :  { %v2114_v42 = vmul.f32 %v8779_v63, %v11525_v1  ;;  %v9037_v15 = vpack.c.bf16 %v3085_v9, %v3084_v14  ;;  %v2600_v29 = vmul.f32 %v8782_v2, %v11525_v1  ;;  %v9043_v46 = vpack.c.bf16 %v3571_v52, %v3570_v5 }
 0x31d   :  { %1024 = vmax.xlane.f32.xlu1 %v9015_v10  ;;  %1026 = vmax.xlane.f32.xlu0 %v9006_v43  ;;  %v3086_v63 = vmul.f32 %v8789_v57, %v11525_v1  ;;  %v3087_v14 = vmul.f32 %v11526_v48, %v8789_v57  ;;  %v4056_v9 = vmul.f32 %v8803_v61, %v11518_v55 }
 0x31e   :  { %11527 = vst [vmem:[#allocation43_spill] sm:$0xff] %v9037_v15  ;;  %11528 = vst [vmem:[#allocation41_spill] sm:$0xff] %v9043_v46  ;;  %v9049_v4 = vpack.c.bf16 %v2115_v28, %v2114_v42  ;;  %v9057_v15 = vld [vmem:[#allocation11 + $0x30] sm:$0xff]  ;;  %v9059_v5 = vpack.c.bf16 %v2601_v38, %v2600_v29  ;;  %v3572_v52 = vmul.f32 %v8795_v50, %v11525_v1 }
 0x31f   :  { %v3573_v28 = vmul.f32 %v11526_v48, %v8795_v50  ;;  %v9065_v42 = vpack.c.bf16 %v4055_v44, %v4054_v23  ;;  %v9067_v2 = vpack.c.bf16 %v3087_v14, %v3086_v63  ;;  %v4057_v57 = vmul.f32 %v11519_v30, %v8803_v61 }
 0x320   :  { %11529 = vst [vmem:[#allocation69_spill] sm:$0xff] %v9049_v4  ;;  %11530 = vst [vmem:[#allocation70_spill] sm:$0xff] %v9059_v5  ;;  %v4058_v4 = vmul.f32 %v8803_v61, %v11525_v1  ;;  %v4059_v38 = vmul.f32 %v11526_v48, %v8803_v61  ;;  %v9082_v23 = vpack.c.bf16 %v8923_v11, %v8839_v41 }
 0x321   :  { %11531 = vst [vmem:[#allocation71_spill] sm:$0xff] %v9065_v42  ;;  %v5619_v46 = vpop.f32.mrb[38].mxu0  ;;  %11532 = vst [vmem:[#allocation72_spill] sm:$0xff] %v9067_v2  ;;  %v9078_v53 = vpack.c.bf16 %v3573_v28, %v3572_v52  ;;  %v4532_v63 = vmul.f32 %v8811_v32, %v11483_v20  ;;  %v9089_v14 = vpack.c.bf16 %v4057_v57, %v4056_v9 }
 0x322   :  { %v9076_v29 = vadd.f32 %v5619_v46, %v9047_v26  ;;  %v967_v5 = vpop.f32.mrb[39].mxu0  ;;  %11534 = vst [vmem:[#allocation74_spill] sm:$0xff] %v9082_v23  ;;  %v9091_v42 = vpack.c.bf16 %v4059_v38, %v4058_v4  ;;  %v4533_v46 = vmul.f32 %v11484_v8, %v8811_v32  ;;  %v4534_v52 = vmul.f32 %v8811_v32, %v11491_v49  ;;  %v9131_v38 = vld [vmem:[#allocation11 + $0x40] sm:$0xff] }
 0x323   :  { %11533 = vst [vmem:[#allocation73_spill] sm:$0xff] %v9078_v53  ;;  %v9087_v44 = vadd.f32 %v967_v5, %v9057_v15  ;;  %11535 = vst [vmem:[#allocation75_spill] sm:$0xff] %v9089_v14  ;;  %v4535_v41 = vmul.f32 %v11492_v34, %v8811_v32  ;;  %v4536_v20 = vmul.f32 %v8811_v32, %v11496_v19  ;;  %v9121_v5 = vld [vmem:[#allocation11 + $0x48] sm:$0xff] }
 0x324   :  { %11536 = vst [vmem:[#allocation76_spill] sm:$0xff] %v9091_v42  ;;  %1030 = vmax.xlane.f32.xlu0 %v9076_v29  ;;  %v4537_v57 = vmul.f32 %v11497_v3, %v8811_v32  ;;  %v9105_v4 = vpack.c.bf16 %v4533_v46, %v4532_v63  ;;  %v4538_v8 = vmul.f32 %v8811_v32, %v11504_v25 }
 0x325   :  { %1028 = vmax.xlane.f32.xlu1 %v9087_v44  ;;  %v4539_v11 = vmul.f32 %v11505_v36, %v8811_v32  ;;  %v4540_v49 = vmul.f32 %v8811_v32, %v11510_v51  ;;  %v9113_v34 = vpack.c.bf16 %v4535_v41, %v4534_v52  ;;  %v4541_v19 = vmul.f32 %v11511_v33, %v8811_v32 }
 0x326   :  { %11537 = vst [vmem:[#allocation77_spill] sm:$0xff] %v9105_v4  ;;  %v9115_v9 = vpack.c.bf16 %v4537_v57, %v4536_v20  ;;  %v4542_v3 = vmul.f32 %v8811_v32, %v11518_v55  ;;  %v4543_v36 = vmul.f32 %v11519_v30, %v8811_v32  ;;  %v4544_v25 = vmul.f32 %v8811_v32, %v11525_v1  ;;  %v9147_v1 = vld [vmem:[#allocation11 + $0x58] sm:$0xff] }
 0x327   :  { %11538 = vst [vmem:[#allocation78_spill] sm:$0xff] %v9113_v34  ;;  %v9123_v28 = vpack.c.bf16 %v4539_v11, %v4538_v8  ;;  %v4545_v51 = vmul.f32 %v11526_v48, %v8811_v32  ;;  %v9133_v63 = vpack.c.bf16 %v4541_v19, %v4540_v49  ;;  %v9149_v48 = vld [vmem:[#allocation11 + $0x50] sm:$0xff]  ;;  %v9159_v49 = vld [vmem:[#allocation11 + $0x68] sm:$0xff]  ;;  %v9161_v19 = vld [vmem:[#allocation11 + $0x60] sm:$0xff] }
 0x328   :  { %11539 = vst [vmem:[#allocation79_spill] sm:$0xff] %v9115_v9  ;;  %v9135_v46 = vpack.c.bf16 %v4543_v36, %v4542_v3  ;;  %11544 = vst [vmem:[#allocation84_spill] sm:$0xff] %v9161_v19 }
 0x329   :  { %11540 = vst [vmem:[#allocation80_spill] sm:$0xff] %v9123_v28  ;;  %11541 = vst [vmem:[#allocation81_spill] sm:$0xff] %v9133_v63  ;;  %v5622_v33 = vpop.f32.mrb[40].mxu0  ;;  %v9137_v55 = vpack.c.bf16 %v4545_v51, %v4544_v25 }
 0x32a   :  { %11542 = vst [vmem:[#allocation82_spill] sm:$0xff] %v9135_v46  ;;  %v9140_v52 = vadd.f32 %v5622_v33, %v9121_v5  ;;  %v977_v41 = vpop.f32.mrb[41].mxu0  ;;  %v9171_v33 = vld [vmem:[#allocation11 + $0x78] sm:$0xff] }
 0x32b   :  { %11543 = vst [vmem:[#allocation83_spill] sm:$0xff] %v9137_v55  ;;  %v9143_v30 = vadd.f32 %v977_v41, %v9131_v38  ;;  %11545 = vst [vmem:[#allocation85_spill] sm:$0xff] %v9171_v33  ;;  %v9173_v41 = vld [vmem:[#allocation11 + $0x70] sm:$0xff] }
 0x32c   :  { %1034 = vmax.xlane.f32.xlu0 %v9140_v52  ;;  %11546 = vst [vmem:[#allocation86_spill] sm:$0xff] %v9173_v41 }
 0x32d   :  { %1032 = vmax.xlane.f32.xlu1 %v9143_v30 }
 0x331   :  { %v5625_v20 = vpop.f32.mrb[42].mxu0 }
 0x332   :  { %v9152_v57 = vadd.f32 %v5625_v20, %v9147_v1  ;;  %v987_v8 = vpop.f32.mrb[43].mxu0 }
 0x333   :  { %v9155_v11 = vadd.f32 %v987_v8, %v9149_v48 }
 0x334   :  { %1038 = vmax.xlane.f32.xlu0 %v9152_v57 }
 0x335   :  { %1036 = vmax.xlane.f32.xlu1 %v9155_v11 }
 0x339   :  { %v5628_v3 = vpop.f32.mrb[44].mxu0 }
 0x33a   :  { %v9164_v36 = vadd.f32 %v5628_v3, %v9159_v49  ;;  %v997_v25 = vpop.f32.mrb[45].mxu0 }
 0x33b   :  { %v9167_v51 = vadd.f32 %v997_v25, %v9161_v19 }
 0x33c   :  { %1042 = vmax.xlane.f32.xlu0 %v9164_v36 }
 0x33d   :  { %1040 = vmax.xlane.f32.xlu1 %v9167_v51 }
 0x341   :  { %v5631_v20 = vpop.f32.mrb[46].mxu0 }
 0x342   :  { %v9176_v8 = vadd.f32 %v5631_v20, %v9171_v33  ;;  %v1007_v32 = vpop.f32.mrb[47].mxu0 }
 0x343   :  { %v9179_v3 = vadd.f32 %v1007_v32, %v9173_v41 }
 0x344   :  { %1046 = vmax.xlane.f32.xlu0 %v9176_v8 }
 0x345   :  { %1044 = vmax.xlane.f32.xlu1 %v9179_v3 }
 0x399   :  { %v1019_v25 = vpop.xlane.xlu1 %1018 }
 0x39a   :  { %v1049_v55 = vsub.f32 %v8860_v35, %v1019_v25  ;;  %v1017_v46 = vpop.xlane.xlu0 %1016  ;;  %v11552_v25 = vld [vmem:[#allocation53_spill] sm:$0xff] }
 0x39b   :  { %v1048_v63 = vsub.f32 %v8869_v56, %v1017_v46 }
 0x39c   :  { %v1066_v28 = vmul.f32 1.442695, %v1049_v55 }
 0x39d   :  { %v1064_v9 = vmul.f32 1.442695, %v1048_v63 }
 0x39f   :  { %7167 = vpow2.f32 %v1064_v9 }
 0x3a0   :  { %7169 = vpow2.f32 %v1066_v28 }
 0x3a2   :  { %v1021_v20 = vpop.xlane.xlu0 %1020 }
 0x3a3   :  { %v1050_v34 = vsub.f32 %v8943_v0, %v1021_v20 }
 0x3a5   :  { %v1068_v4 = vmul.f32 1.442695, %v1050_v34 }
 0x3a6   :  { %v1023_v32 = vpop.xlane.xlu0 %1022 }
 0x3a7   :  { %7171 = vpow2.f32 %v1068_v4  ;;  %v1051_v23 = vsub.f32 %v8934_v60, %v1023_v32  ;;  %v11549_v4 = vld [vmem:[#allocation52_spill] sm:$0xff] }
 0x3a9   :  { %v9187_v61 = vpop.eup %7167  ;;  %v1070_v42 = vmul.f32 1.442695, %v1051_v23 }
 0x3aa   :  { %11547 = vst [vmem:[#allocation87_spill] sm:$0xff] %v9187_v61  ;;  %v9189_v14 = vpop.eup %7169  ;;  %v1025_v35 = vpop.xlane.xlu1 %1024  ;;  %5664 = vmatprep.mubr.f32.mxu1 %v9187_v61 }
 0x3ab   :  { %11548 = vst [vmem:[#allocation88_spill] sm:$0xff] %v9189_v14  ;;  %v1027_v56 = vpop.xlane.xlu0 %1026  ;;  %7173 = vpow2.f32 %v1070_v42  ;;  %v1052_v9 = vsub.f32 %v9015_v10, %v1025_v35  ;;  %5665 = vmatmul.mubr.f32.vlgmr.msra.gmra.mrb[16].mxu1 %v9189_v14 }
 0x3ac   :  { %v1053_v28 = vsub.f32 %v9006_v43, %v1027_v56  ;;  %6659 = vmatpush3.bf16.xpose.msra.mxu1 %v11460_v21 }
 0x3ad   :  { %v1072_v0 = vmul.f32 1.442695, %v1052_v9  ;;  %6661 = vmatprep.subr.bf16.mxu1 %v11549_v4 }
 0x3ae   :  { %v1074_v60 = vmul.f32 1.442695, %v1053_v28 }
 0x3af   :  { %7175 = vpow2.f32 %v1072_v0  ;;  %v11555_v0 = vld [vmem:[#allocation56_spill] sm:$0xff] }
 0x3b0   :  { %7177 = vpow2.f32 %v1074_v60 }
 0x3b1   :  { %v9197_v23 = vpop.eup %7171  ;;  %v1031_v34 = vpop.xlane.xlu0 %1030 }
 0x3b2   :  { %11550 = vst [vmem:[#allocation52_spill] sm:$0xff] %v9197_v23  ;;  %v1055_v63 = vsub.f32 %v9076_v29, %v1031_v34  ;;  %v1029_v42 = vpop.xlane.xlu1 %1028  ;;  %5667 = vmatprep.mubr.f32.mxu1 %v9197_v23 }
 0x3b3   :  { %v1054_v10 = vsub.f32 %v9087_v44, %v1029_v42 }
 0x3b4   :  { %v1078_v43 = vmul.f32 1.442695, %v1055_v63  ;;  %6663 = vmatpush3.bf16.xpose.msra.mxu1 %v11549_v4 }
 0x3b5   :  { %v9203_v46 = vpop.eup %7173  ;;  %v1076_v55 = vmul.f32 1.442695, %v1054_v10  ;;  %6665 = vmatprep.subr.bf16.mxu1 %v11552_v25 }
 0x3b6   :  { %11551 = vst [vmem:[#allocation89_spill] sm:$0xff] %v9203_v46  ;;  %5668 = vmatmul.mubr.f32.gmra.mrb[18].mxu1 %v9203_v46 }
 0x3b7   :  { %7179 = vpow2.f32 %v1076_v55  ;;  %v11558_v55 = vld [vmem:[#allocation59_spill] sm:$0xff] }
 0x3b8   :  { %7181 = vpow2.f32 %v1078_v43 }
 0x3b9   :  { %v9207_v20 = vpop.eup %7175  ;;  %v1035_v29 = vpop.xlane.xlu0 %1034 }
 0x3ba   :  { %11553 = vst [vmem:[#allocation53_spill] sm:$0xff] %v9207_v20  ;;  %v9209_v32 = vpop.eup %7177  ;;  %v1057_v35 = vsub.f32 %v9140_v52, %v1035_v29  ;;  %v1033_v44 = vpop.xlane.xlu1 %1032  ;;  %5670 = vmatprep.mubr.f32.mxu1 %v9207_v20 }
 0x3bb   :  { %11554 = vst [vmem:[#allocation90_spill] sm:$0xff] %v9209_v32  ;;  %v1056_v56 = vsub.f32 %v9143_v30, %v1033_v44  ;;  %5671 = vmatmul.mubr.f32.gmra.mrb[20].mxu1 %v9209_v32  ;;  %v11592_v32 = vld [vmem:[#allocation42_spill] sm:$0xff] }
 0x3bc   :  { %v1082_v9 = vmul.f32 1.442695, %v1057_v35  ;;  %6667 = vmatpush3.bf16.xpose.msra.mxu1 %v11552_v25 }
 0x3bd   :  { %v1080_v28 = vmul.f32 1.442695, %v1056_v56  ;;  %6669 = vmatprep.subr.bf16.mxu1 %v11555_v0 }
 0x3bf   :  { %7183 = vpow2.f32 %v1080_v28 }
 0x3c0   :  { %7185 = vpow2.f32 %v1082_v9 }
 0x3c1   :  { %v9217_v60 = vpop.eup %7179  ;;  %v1039_v34 = vpop.xlane.xlu0 %1038 }
 0x3c2   :  { %11556 = vst [vmem:[#allocation56_spill] sm:$0xff] %v9217_v60  ;;  %v9219_v63 = vpop.eup %7181  ;;  %v1059_v52 = vsub.f32 %v9152_v57, %v1039_v34  ;;  %v1037_v42 = vpop.xlane.xlu1 %1036  ;;  %5673 = vmatprep.mubr.f32.mxu1 %v9217_v60  ;;  %v11561_v34 = vld [vmem:[#allocation62_spill] sm:$0xff] }
 0x3c3   :  { %11557 = vst [vmem:[#allocation91_spill] sm:$0xff] %v9219_v63  ;;  %v1058_v30 = vsub.f32 %v9155_v11, %v1037_v42  ;;  %5674 = vmatmul.mubr.f32.gmra.mrb[22].mxu1 %v9219_v63 }
 0x3c4   :  { %v1086_v10 = vmul.f32 1.442695, %v1059_v52  ;;  %6671 = vmatpush3.bf16.xpose.msra.mxu1 %v11555_v0 }
 0x3c5   :  { %v1084_v43 = vmul.f32 1.442695, %v1058_v30  ;;  %6673 = vmatprep.subr.bf16.mxu1 %v11558_v55 }
 0x3c7   :  { %7187 = vpow2.f32 %v1084_v43 }
 0x3c8   :  { %7189 = vpow2.f32 %v1086_v10 }
 0x3c9   :  { %v9227_v29 = vpop.eup %7183  ;;  %v1043_v35 = vpop.xlane.xlu0 %1042 }
 0x3ca   :  { %11559 = vst [vmem:[#allocation59_spill] sm:$0xff] %v9227_v29  ;;  %v9229_v44 = vpop.eup %7185  ;;  %v1061_v57 = vsub.f32 %v9164_v36, %v1043_v35  ;;  %v1041_v56 = vpop.xlane.xlu1 %1040  ;;  %5676 = vmatprep.mubr.f32.mxu1 %v9227_v29 }
 0x3cb   :  { %11560 = vst [vmem:[#allocation92_spill] sm:$0xff] %v9229_v44  ;;  %v1060_v11 = vsub.f32 %v9167_v51, %v1041_v56  ;;  %5677 = vmatmul.mubr.f32.gmra.mrb[24].mxu1 %v9229_v44 }
 0x3cc   :  { %v1090_v9 = vmul.f32 1.442695, %v1061_v57  ;;  %6675 = vmatpush3.bf16.xpose.msra.mxu1 %v11558_v55  ;;  %v11564_v57 = vld [vmem:[#allocation65_spill] sm:$0xff] }
 0x3cd   :  { %v1088_v28 = vmul.f32 1.442695, %v1060_v11  ;;  %6677 = vmatprep.subr.bf16.mxu1 %v11561_v34 }
 0x3cf   :  { %7191 = vpow2.f32 %v1088_v28 }
 0x3d0   :  { %7193 = vpow2.f32 %v1090_v9  ;;  %v11569_v9 = vld [vmem:[#allocation48_spill] sm:$0xff] }
 0x3d1   :  { %v9237_v52 = vpop.eup %7187  ;;  %v1047_v42 = vpop.xlane.xlu0 %1046  ;;  %v1341_v28 = vmul.f32 %v11569_v9, %v8638_v16 }
 0x3d2   :  { %11562 = vst [vmem:[#allocation62_spill] sm:$0xff] %v9237_v52  ;;  %v9239_v30 = vpop.eup %7189  ;;  %v1063_v36 = vsub.f32 %v9176_v8, %v1047_v42  ;;  %v1045_v10 = vpop.xlane.xlu1 %1044  ;;  %5679 = vmatprep.mubr.f32.mxu1 %v9237_v52  ;;  %v1342_v42 = vmul.f32 %v11569_v9, %v8650_v62 }
 0x3d3   :  { %11563 = vst [vmem:[#allocation93_spill] sm:$0xff] %v9239_v30  ;;  %v1062_v51 = vsub.f32 %v9179_v3, %v1045_v10  ;;  %5680 = vmatmul.mubr.f32.gmra.mrb[26].mxu1 %v9239_v30  ;;  %v1344_v10 = vmul.f32 %v11569_v9, %v8667_v17  ;;  %v11594_v30 = vld [vmem:[#allocation24_spill] sm:$0xff] }
 0x3d4   :  { %v1094_v43 = vmul.f32 1.442695, %v1063_v36  ;;  %6679 = vmatpush3.bf16.xpose.msra.mxu1 %v11561_v34  ;;  %v1343_v36 = vmul.f32 %v11569_v9, %v8656_v18 }
 0x3d5   :  { %v1092_v35 = vmul.f32 1.442695, %v1062_v51  ;;  %6681 = vmatprep.subr.bf16.mxu1 %v11564_v57  ;;  %v1345_v51 = vmul.f32 %v11569_v9, %v8675_v24 }
 0x3d7   :  { %7195 = vpow2.f32 %v1092_v35  ;;  %v1348_v35 = vmul.f32 %v11569_v9, %v8705_v45 }
 0x3d8   :  { %7197 = vpow2.f32 %v1094_v43  ;;  %v1346_v43 = vmul.f32 %v11569_v9, %v8686_v7 }
 0x3d9   :  { %v9247_v56 = vpop.eup %7191 }
 0x3da   :  { %11565 = vst [vmem:[#allocation65_spill] sm:$0xff] %v9247_v56  ;;  %v9249_v11 = vpop.eup %7193  ;;  %5682 = vmatprep.mubr.f32.mxu1 %v9247_v56 }
 0x3db   :  { %11566 = vst [vmem:[#allocation94_spill] sm:$0xff] %v9249_v11  ;;  %5683 = vmatmul.mubr.f32.gmra.mrb[28].mxu1 %v9249_v11 }
 0x3dc   :  { %6683 = vmatpush3.bf16.xpose.msra.mxu1 %v11564_v57 }
 0x3dd   :  { %6685 = vmatprep.subr.bf16.mxu1 %v8634_v6 }
 0x3e1   :  { %v9255_v8 = vpop.eup %7195 }
 0x3e2   :  { %11567 = vst [vmem:[#allocation95_spill] sm:$0xff] %v9255_v8  ;;  %v9257_v3 = vpop.eup %7197  ;;  %5685 = vmatprep.mubr.f32.mxu1 %v9255_v8 }
 0x3e3   :  { %11568 = vst [vmem:[#allocation96_spill] sm:$0xff] %v9257_v3  ;;  %5686 = vmatmul.mubr.f32.gmra.mrb[30].mxu1 %v9257_v3 }
 0x3e4   :  { %6687 = vmatpush3.bf16.xpose.msra.mxu1 %v8634_v6  ;;  %5720 = vmatprep.mubr.f32.mxu1 %v1341_v28  ;;  %v1350_v28 = vmul.f32 %v11569_v9, %v8724_v58 }
 0x3e5   :  { %6753 = vmatprep.subr.bf16.mxu1 %v8797_v47 }
 0x3eb   :  { %5721 = vmatmul.mubr.f32.vlgmr.msra.gmra.mrb[32].mxu1 %v1342_v42  ;;  %v1352_v42 = vmul.f32 %v11569_v9, %v8741_v31 }
 0x3ec   :  { %5723 = vmatprep.mubr.f32.mxu1 %v1343_v36  ;;  %6755 = vmatpush3.bf16.msra.mxu1 %v8797_v47  ;;  %v1347_v47 = vmul.f32 %v11569_v9, %v8694_v37  ;;  %v11570_v36 = vld [vmem:[#allocation66_spill] sm:$0xff] }
 0x3ed   :  { %6757 = vmatprep.subr.bf16.mxu1 %v8831_v22 }
 0x3ef   :  { %5724 = vmatmul.mubr.f32.gmra.mrb[34].mxu1 %v1344_v10  ;;  %v11571_v10 = vld [vmem:[#allocation22_spill] sm:$0xff] }
 0x3f0   :  { %5726 = vmatprep.mubr.f32.mxu1 %v1345_v51  ;;  %6759 = vmatpush3.bf16.msra.mxu1 %v8831_v22  ;;  %v1349_v22 = vmul.f32 %v11569_v9, %v8713_v12  ;;  %v1354_v51 = vmul.f32 %v11569_v9, %v11571_v10 }
 0x3f1   :  { %6761 = vmatprep.subr.bf16.mxu1 %v8871_v59 }
 0x3f3   :  { %5727 = vmatmul.mubr.f32.gmra.mrb[36].mxu1 %v1346_v43  ;;  %v11572_v43 = vld [vmem:[#allocation21_spill] sm:$0xff] }
 0x3f4   :  { %5729 = vmatprep.mubr.f32.mxu1 %v1347_v47  ;;  %6763 = vmatpush3.bf16.msra.mxu1 %v8871_v59  ;;  %v1351_v59 = vmul.f32 %v11569_v9, %v8732_v54  ;;  %v11573_v47 = vld [vmem:[#allocation69_spill] sm:$0xff] }
 0x3f5   :  { %6765 = vmatprep.subr.bf16.mxu1 %v8905_v27 }
 0x3f7   :  { %5730 = vmatmul.mubr.f32.gmra.mrb[38].mxu1 %v1348_v35  ;;  %v11574_v35 = vld [vmem:[#allocation26_spill] sm:$0xff] }
 0x3f8   :  { %5732 = vmatprep.mubr.f32.mxu1 %v1349_v22  ;;  %6767 = vmatpush3.bf16.msra.mxu1 %v8905_v27  ;;  %v1353_v27 = vmul.f32 %v11569_v9, %v8747_v40  ;;  %v1356_v22 = vmul.f32 %v11569_v9, %v11574_v35 }
 0x3f9   :  { %6769 = vmatprep.subr.bf16.mxu1 %v8945_v39 }
 0x3fb   :  { %5733 = vmatmul.mubr.f32.gmra.mrb[40].mxu1 %v1350_v28 }
 0x3fc   :  { %5735 = vmatprep.mubr.f32.mxu1 %v1351_v59  ;;  %6771 = vmatpush3.bf16.msra.mxu1 %v8945_v39  ;;  %v1355_v39 = vmul.f32 %v11569_v9, %v11572_v43 }
 0x3fd   :  { %6773 = vmatprep.subr.bf16.mxu1 %v8978_v13 }
 0x3ff   :  { %5736 = vmatmul.mubr.f32.gmra.mrb[42].mxu1 %v1352_v42 }
 0x400   :  { %5738 = vmatprep.mubr.f32.mxu1 %v1353_v27  ;;  %6775 = vmatpush3.bf16.msra.mxu1 %v8978_v13 }
 0x401   :  { %6777 = vmatprep.subr.bf16.mxu1 %v11570_v36 }
 0x403   :  { %5739 = vmatmul.mubr.f32.gmra.mrb[44].mxu1 %v1354_v51 }
 0x404   :  { %5741 = vmatprep.mubr.f32.mxu1 %v1355_v39  ;;  %6779 = vmatpush3.bf16.msra.mxu1 %v11570_v36 }
 0x405   :  { %6781 = vmatprep.subr.bf16.mxu1 %v11573_v47 }
 0x407   :  { %5742 = vmatmul.mubr.f32.gmra.mrb[46].mxu1 %v1356_v22 }
 0x408   :  { %6783 = vmatpush3.bf16.msra.mxu1 %v11573_v47 }
 0x409   :  { %6785 = vmatprep.subr.bf16.mxu1 %v11460_v21 }
 0x47e   :  { %v9311_v13 = vpop.f32.mrb[16].mxu1 }
 0x47f   :  { %11575 = vst [vmem:[#allocation48_spill] sm:$0xff] %v9311_v13  ;;  %v9313_v28 = vpop.f32.mrb[17].mxu1 }
 0x480   :  { %11576 = vst [vmem:[#allocation66_spill] sm:$0xff] %v9313_v28 }
 0x489   :  { %v9315_v59 = vpop.f32.mrb[18].mxu1 }
 0x48a   :  { %11577 = vst [vmem:[#allocation22_spill] sm:$0xff] %v9315_v59  ;;  %v9317_v42 = vpop.f32.mrb[19].mxu1 }
 0x48b   :  { %11578 = vst [vmem:[#allocation21_spill] sm:$0xff] %v9317_v42 }
 0x48e   :  { %v9319_v27 = vpop.f32.mrb[20].mxu1 }
 0x48f   :  { %11579 = vst [vmem:[#allocation69_spill] sm:$0xff] %v9319_v27  ;;  %v9321_v36 = vpop.f32.mrb[21].mxu1 }
 0x490   :  { %11580 = vst [vmem:[#allocation26_spill] sm:$0xff] %v9321_v36 }
 0x496   :  { %v9323_v51 = vpop.f32.mrb[22].mxu1 }
 0x497   :  { %11581 = vst [vmem:[#allocation97_spill] sm:$0xff] %v9323_v51  ;;  %v9325_v9 = vpop.f32.mrb[23].mxu1  ;;  %v11591_v51 = vld [vmem:[#allocation51_spill] sm:$0xff] }
 0x498   :  { %11582 = vst [vmem:[#allocation98_spill] sm:$0xff] %v9325_v9 }
 0x49e   :  { %v9327_v39 = vpop.f32.mrb[24].mxu1 }
 0x49f   :  { %11583 = vst [vmem:[#allocation99_spill] sm:$0xff] %v9327_v39  ;;  %v9329_v47 = vpop.f32.mrb[25].mxu1 }
 0x4a0   :  { %11584 = vst [vmem:[#allocation100_spill] sm:$0xff] %v9329_v47 }
 0x4a6   :  { %v9331_v22 = vpop.f32.mrb[26].mxu1 }
 0x4a7   :  { %11585 = vst [vmem:[#allocation101_spill] sm:$0xff] %v9331_v22  ;;  %v9333_v63 = vpop.f32.mrb[27].mxu1  ;;  %v11593_v22 = vld [vmem:[#allocation20_spill] sm:$0xff] }
 0x4a8   :  { %11586 = vst [vmem:[#allocation102_spill] sm:$0xff] %v9333_v63  ;;  %v11596_v63 = vld [vmem:[#allocation37_spill] sm:$0xff] }
 0x4ae   :  { %v9335_v3 = vpop.f32.mrb[28].mxu1 }
 0x4af   :  { %11587 = vst [vmem:[#allocation103_spill] sm:$0xff] %v9335_v3  ;;  %v9337_v59 = vpop.f32.mrb[29].mxu1 }
 0x4b0   :  { %11588 = vst [vmem:[#allocation104_spill] sm:$0xff] %v9337_v59 }
 0x4b6   :  { %v9339_v60 = vpop.f32.mrb[30].mxu1 }
 0x4b7   :  { %11589 = vst [vmem:[#allocation105_spill] sm:$0xff] %v9339_v60  ;;  %v9341_v27 = vpop.f32.mrb[31].mxu1  ;;  %v11595_v60 = vld [vmem:[#allocation34_spill] sm:$0xff] }
 0x4b8   :  { %11590 = vst [vmem:[#allocation106_spill] sm:$0xff] %v9341_v27 }
 0x4be   :  { %v5722_v36 = vpop.f32.mrb[32].mxu1 }
 0x4bf   :  { %v1429_v8 = vadd.f32 %v5722_v36, %v11591_v51  ;;  %v1423_v9 = vpop.f32.mrb[33].mxu1 }
 0x4c0   :  { %v1424_v11 = vadd.f32 %v1423_v9, %v11592_v32 }
 0x4c1   :  { %1504 = vmax.xlane.f32.xlu0 %v1429_v8 }
 0x4c2   :  { %v5725_v20 = vpop.f32.mrb[34].mxu1  ;;  %1502 = vmax.xlane.f32.xlu1 %v1424_v11 }
 0x4c3   :  { %v1439_v56 = vadd.f32 %v5725_v20, %v11593_v22  ;;  %v1433_v46 = vpop.f32.mrb[35].mxu1 }
 0x4c4   :  { %v1434_v3 = vadd.f32 %v1433_v46, %v11594_v30 }
 0x4c5   :  { %1508 = vmax.xlane.f32.xlu0 %v1439_v56 }
 0x4c6   :  { %v5728_v59 = vpop.f32.mrb[36].mxu1  ;;  %1506 = vmax.xlane.f32.xlu1 %v1434_v3 }
 0x4c7   :  { %v1449_v42 = vadd.f32 %v5728_v59, %v11595_v60  ;;  %v1443_v27 = vpop.f32.mrb[37].mxu1 }
 0x4c8   :  { %v1444_v13 = vadd.f32 %v1443_v27, %v11596_v63 }
 0x4c9   :  { %1512 = vmax.xlane.f32.xlu0 %v1449_v42 }
 0x4ca   :  { %v5731_v36 = vpop.f32.mrb[38].mxu1  ;;  %1510 = vmax.xlane.f32.xlu1 %v1444_v13 }
 0x4cb   :  { %v1459_v32 = vadd.f32 %v5731_v36, %v9047_v26  ;;  %v1453_v51 = vpop.f32.mrb[39].mxu1 }
 0x4cc   :  { %v1454_v9 = vadd.f32 %v1453_v51, %v9057_v15 }
 0x4cd   :  { %1516 = vmax.xlane.f32.xlu0 %v1459_v32 }
 0x4ce   :  { %v5734_v20 = vpop.f32.mrb[40].mxu1  ;;  %1514 = vmax.xlane.f32.xlu1 %v1454_v9 }
 0x4cf   :  { %v9352_v46 = vadd.f32 %v5734_v20, %v9121_v5  ;;  %v1463_v30 = vpop.f32.mrb[41].mxu1 }
 0x4d0   :  { %v9355_v60 = vadd.f32 %v1463_v30, %v9131_v38 }
 0x4d1   :  { %1520 = vmax.xlane.f32.xlu0 %v9352_v46 }
 0x4d2   :  { %v5737_v63 = vpop.f32.mrb[42].mxu1  ;;  %1518 = vmax.xlane.f32.xlu1 %v9355_v60 }
 0x4d3   :  { %v9360_v59 = vadd.f32 %v5737_v63, %v9147_v1  ;;  %v1473_v27 = vpop.f32.mrb[43].mxu1 }
 0x4d4   :  { %v9363_v22 = vadd.f32 %v1473_v27, %v9149_v48 }
 0x4d5   :  { %1524 = vmax.xlane.f32.xlu0 %v9360_v59 }
 0x4d6   :  { %v5740_v36 = vpop.f32.mrb[44].mxu1  ;;  %1522 = vmax.xlane.f32.xlu1 %v9363_v22 }
 0x4d7   :  { %v9368_v51 = vadd.f32 %v5740_v36, %v9159_v49  ;;  %v1483_v20 = vpop.f32.mrb[45].mxu1 }
 0x4d8   :  { %v9371_v30 = vadd.f32 %v1483_v20, %v9161_v19 }
 0x4d9   :  { %1528 = vmax.xlane.f32.xlu0 %v9368_v51 }
 0x4da   :  { %v5743_v63 = vpop.f32.mrb[46].mxu1  ;;  %1526 = vmax.xlane.f32.xlu1 %v9371_v30 }
 0x4db   :  { %v9376_v27 = vadd.f32 %v5743_v63, %v9171_v33  ;;  %v1493_v39 = vpop.f32.mrb[47].mxu1 }
 0x4dc   :  { %v9379_v28 = vadd.f32 %v1493_v39, %v9173_v41 }
 0x4dd   :  { %1532 = vmax.xlane.f32.xlu0 %v9376_v27 }
 0x4de   :  { %1530 = vmax.xlane.f32.xlu1 %v9379_v28 }
 0x54e   :  { %v1505_v36 = vpop.xlane.xlu0 %1504 }
 0x54f   :  { %v1535_v47 = vsub.f32 %v1429_v8, %v1505_v36  ;;  %v1503_v20 = vpop.xlane.xlu1 %1502 }
 0x550   :  { %v1534_v23 = vsub.f32 %v1424_v11, %v1503_v20 }
 0x551   :  { %v1552_v52 = vmul.f32 1.442695, %v1535_v47 }
 0x552   :  { %v1550_v14 = vmul.f32 1.442695, %v1534_v23  ;;  %v1509_v44 = vpop.xlane.xlu0 %1508 }
 0x553   :  { %v1537_v61 = vsub.f32 %v1439_v56, %v1509_v44  ;;  %v1507_v29 = vpop.xlane.xlu1 %1506 }
 0x554   :  { %7199 = vpow2.f32 %v1550_v14  ;;  %v1536_v63 = vsub.f32 %v1434_v3, %v1507_v29 }
 0x555   :  { %7201 = vpow2.f32 %v1552_v52  ;;  %v1556_v50 = vmul.f32 1.442695, %v1537_v61 }
 0x556   :  { %v1554_v53 = vmul.f32 1.442695, %v1536_v63  ;;  %v1513_v39 = vpop.xlane.xlu0 %1512 }
 0x557   :  { %v1539_v2 = vsub.f32 %v1449_v42, %v1513_v39  ;;  %v1511_v41 = vpop.xlane.xlu1 %1510 }
 0x558   :  { %7203 = vpow2.f32 %v1554_v53  ;;  %v1538_v33 = vsub.f32 %v1444_v13, %v1511_v41 }
 0x559   :  { %7205 = vpow2.f32 %v1556_v50  ;;  %v1560_v19 = vmul.f32 1.442695, %v1539_v2 }
 0x55a   :  { %v1558_v8 = vmul.f32 1.442695, %v1538_v33  ;;  %v1517_v36 = vpop.xlane.xlu0 %1516 }
 0x55b   :  { %v1541_v11 = vsub.f32 %v1459_v32, %v1517_v36  ;;  %v1515_v47 = vpop.xlane.xlu1 %1514 }
 0x55c   :  { %7207 = vpow2.f32 %v1558_v8  ;;  %v1540_v23 = vsub.f32 %v1454_v9, %v1515_v47 }
 0x55d   :  { %7209 = vpow2.f32 %v1560_v19  ;;  %v1564_v44 = vmul.f32 1.442695, %v1541_v11 }
 0x55e   :  { %v9383_v14 = vpop.eup %7199  ;;  %v1562_v29 = vmul.f32 1.442695, %v1540_v23  ;;  %v1521_v61 = vpop.xlane.xlu0 %1520 }
 0x55f   :  { %11597 = vst [vmem:[#allocation51_spill] sm:$0xff] %v9383_v14  ;;  %v9385_v52 = vpop.eup %7201  ;;  %v1543_v56 = vsub.f32 %v9352_v46, %v1521_v61  ;;  %5776 = vmatprep.mubr.f32.mxu0 %v9383_v14  ;;  %v1519_v50 = vpop.xlane.xlu1 %1518 }
 0x560   :  { %11598 = vst [vmem:[#allocation42_spill] sm:$0xff] %v9385_v52  ;;  %7211 = vpow2.f32 %v1562_v29  ;;  %v1542_v2 = vsub.f32 %v9355_v60, %v1519_v50  ;;  %5777 = vmatmul.mubr.f32.vlgmr.msra.gmra.mrb[48].mxu0 %v9385_v52 }
 0x561   :  { %7213 = vpow2.f32 %v1564_v44  ;;  %v1568_v53 = vmul.f32 1.442695, %v1543_v56  ;;  %6723 = vmatpush3.bf16.xpose.msra.mxu0 %v11460_v21 }
 0x562   :  { %v9392_v19 = vpop.eup %7203  ;;  %v1566_v33 = vmul.f32 1.442695, %v1542_v2  ;;  %6725 = vmatprep.subr.bf16.mxu0 %v11549_v4  ;;  %v1525_v41 = vpop.xlane.xlu0 %1524 }
 0x563   :  { %11599 = vst [vmem:[#allocation20_spill] sm:$0xff] %v9392_v19  ;;  %v9395_v3 = vpop.eup %7205  ;;  %v1545_v13 = vsub.f32 %v9360_v59, %v1525_v41  ;;  %5779 = vmatprep.mubr.f32.mxu0 %v9392_v19  ;;  %v1523_v42 = vpop.xlane.xlu1 %1522 }
 0x564   :  { %11600 = vst [vmem:[#allocation24_spill] sm:$0xff] %v9395_v3  ;;  %7215 = vpow2.f32 %v1566_v33  ;;  %v1544_v32 = vsub.f32 %v9363_v22, %v1523_v42  ;;  %5780 = vmatmul.mubr.f32.gmra.mrb[50].mxu0 %v9395_v3 }
 0x565   :  { %7217 = vpow2.f32 %v1568_v53  ;;  %v1572_v9 = vmul.f32 1.442695, %v1545_v13  ;;  %v11613_v13 = vld [vmem:[#allocation31_spill] sm:$0xff] }
 0x566   :  { %v9401_v46 = vpop.eup %7207  ;;  %v1570_v60 = vmul.f32 1.442695, %v1544_v32  ;;  %v1529_v20 = vpop.xlane.xlu0 %1528  ;;  %v1827_v42 = vmul.f32 %v11613_v13, %v8638_v16  ;;  %v11614_v32 = vld [vmem:[#allocation50_spill] sm:$0xff] }
 0x567   :  { %11601 = vst [vmem:[#allocation34_spill] sm:$0xff] %v9401_v46  ;;  %v9403_v63 = vpop.eup %7209  ;;  %v1547_v39 = vsub.f32 %v9368_v51, %v1529_v20  ;;  %5782 = vmatprep.mubr.f32.mxu0 %v9401_v46  ;;  %v1527_v59 = vpop.xlane.xlu1 %1526  ;;  %v11615_v20 = vld [vmem:[#allocation44_spill] sm:$0xff] }
 0x568   :  { %11602 = vst [vmem:[#allocation37_spill] sm:$0xff] %v9403_v63  ;;  %7219 = vpow2.f32 %v1570_v60  ;;  %v1546_v8 = vsub.f32 %v9371_v30, %v1527_v59  ;;  %5783 = vmatmul.mubr.f32.gmra.mrb[52].mxu0 %v9403_v63  ;;  %v1829_v60 = vmul.f32 %v11613_v13, %v8656_v18  ;;  %v1831_v59 = vmul.f32 %v11613_v13, %v8675_v24 }
 0x569   :  { %7221 = vpow2.f32 %v1572_v9  ;;  %v1576_v22 = vmul.f32 1.442695, %v1547_v39  ;;  %6727 = vmatpush3.bf16.xpose.msra.mxu0 %v11549_v4  ;;  %v1828_v9 = vmul.f32 %v11613_v13, %v8650_v62  ;;  %v1830_v39 = vmul.f32 %v11613_v13, %v8667_v17 }
 0x56a   :  { %v9410_v36 = vpop.eup %7211  ;;  %v1574_v11 = vmul.f32 1.442695, %v1546_v8  ;;  %6729 = vmatprep.subr.bf16.mxu0 %v11552_v25  ;;  %v1533_v47 = vpop.xlane.xlu0 %1532  ;;  %v11616_v8 = vld [vmem:[#allocation46_spill] sm:$0xff] }
 0x56b   :  { %11603 = vst [vmem:[#allocation107_spill] sm:$0xff] %v9410_v36  ;;  %v9413_v23 = vpop.eup %7213  ;;  %v1549_v51 = vsub.f32 %v9376_v27, %v1533_v47  ;;  %5785 = vmatprep.mubr.f32.mxu0 %v9410_v36  ;;  %v1531_v44 = vpop.xlane.xlu1 %1530  ;;  %v11617_v47 = vld [vmem:[#allocation23_spill] sm:$0xff] }
 0x56c   :  { %11604 = vst [vmem:[#allocation108_spill] sm:$0xff] %v9413_v23  ;;  %7223 = vpow2.f32 %v1574_v11  ;;  %v1548_v30 = vsub.f32 %v9379_v28, %v1531_v44  ;;  %5786 = vmatmul.mubr.f32.gmra.mrb[54].mxu0 %v9413_v23  ;;  %v1833_v11 = vmul.f32 %v11613_v13, %v8694_v37  ;;  %v1835_v44 = vmul.f32 %v11613_v13, %v8713_v12  ;;  %v9544_v23 = vld [vmem:[#allocation11 + $0x10] sm:$0xff] }
 0x56d   :  { %7225 = vpow2.f32 %v1576_v22  ;;  %v1580_v29 = vmul.f32 1.442695, %v1549_v51  ;;  %v1832_v22 = vmul.f32 %v11613_v13, %v8686_v7  ;;  %v1834_v51 = vmul.f32 %v11613_v13, %v8705_v45 }
 0x56e   :  { %v9419_v61 = vpop.eup %7215  ;;  %v1578_v56 = vmul.f32 1.442695, %v1548_v30  ;;  %v11618_v30 = vld [vmem:[#allocation28_spill] sm:$0xff] }
 0x56f   :  { %11605 = vst [vmem:[#allocation109_spill] sm:$0xff] %v9419_v61  ;;  %v9421_v50 = vpop.eup %7217  ;;  %5788 = vmatprep.mubr.f32.mxu0 %v9419_v61 }
 0x570   :  { %11606 = vst [vmem:[#allocation110_spill] sm:$0xff] %v9421_v50  ;;  %7227 = vpow2.f32 %v1578_v56  ;;  %5789 = vmatmul.mubr.f32.gmra.mrb[56].mxu0 %v9421_v50  ;;  %v1837_v56 = vmul.f32 %v11613_v13, %v8732_v54 }
 0x571   :  { %7229 = vpow2.f32 %v1580_v29  ;;  %6731 = vmatpush3.bf16.xpose.msra.mxu0 %v11552_v25  ;;  %v1836_v29 = vmul.f32 %v11613_v13, %v8724_v58 }
 0x572   :  { %v9426_v27 = vpop.eup %7219  ;;  %6733 = vmatprep.subr.bf16.mxu0 %v11555_v0 }
 0x573   :  { %11607 = vst [vmem:[#allocation111_spill] sm:$0xff] %v9426_v27  ;;  %v9429_v28 = vpop.eup %7221  ;;  %5791 = vmatprep.mubr.f32.mxu0 %v9426_v27 }
 0x574   :  { %11608 = vst [vmem:[#allocation112_spill] sm:$0xff] %v9429_v28  ;;  %5792 = vmatmul.mubr.f32.gmra.mrb[58].mxu0 %v9429_v28 }
 0x576   :  { %v9433_v2 = vpop.eup %7223 }
 0x577   :  { %11609 = vst [vmem:[#allocation113_spill] sm:$0xff] %v9433_v2  ;;  %v9435_v53 = vpop.eup %7225  ;;  %5794 = vmatprep.mubr.f32.mxu0 %v9433_v2 }
 0x578   :  { %11610 = vst [vmem:[#allocation114_spill] sm:$0xff] %v9435_v53  ;;  %5795 = vmatmul.mubr.f32.gmra.mrb[60].mxu0 %v9435_v53 }
 0x579   :  { %6735 = vmatpush3.bf16.xpose.msra.mxu0 %v11555_v0 }
 0x57a   :  { %v9440_v33 = vpop.eup %7227  ;;  %6737 = vmatprep.subr.bf16.mxu0 %v11558_v55 }
 0x57b   :  { %11611 = vst [vmem:[#allocation115_spill] sm:$0xff] %v9440_v33  ;;  %v9443_v41 = vpop.eup %7229  ;;  %5797 = vmatprep.mubr.f32.mxu0 %v9440_v33  ;;  %v9550_v33 = vld [vmem:[#allocation11 + $0x20] sm:$0xff] }
 0x57c   :  { %11612 = vst [vmem:[#allocation116_spill] sm:$0xff] %v9443_v41  ;;  %5798 = vmatmul.mubr.f32.gmra.mrb[62].mxu0 %v9443_v41 }
 0x57d   :  { %5832 = vmatprep.mubr.f32.mxu0 %v1827_v42  ;;  %v11619_v42 = vld [vmem:[#allocation35_spill] sm:$0xff] }
 0x581   :  { %6739 = vmatpush3.bf16.xpose.msra.mxu0 %v11558_v55 }
 0x582   :  { %6741 = vmatprep.subr.bf16.mxu0 %v11561_v34 }
 0x589   :  { %6743 = vmatpush3.bf16.xpose.msra.mxu0 %v11561_v34 }
 0x58a   :  { %6745 = vmatprep.subr.bf16.mxu0 %v11564_v57 }
 0x591   :  { %6747 = vmatpush3.bf16.xpose.msra.mxu0 %v11564_v57 }
 0x592   :  { %6749 = vmatprep.subr.bf16.mxu0 %v8634_v6 }
 0x599   :  { %6751 = vmatpush3.bf16.xpose.msra.mxu0 %v8634_v6 }
 0x59a   :  { %6817 = vmatprep.subr.bf16.mxu0 %v11614_v32 }
 0x5a0   :  { %5833 = vmatmul.mubr.f32.vlgmr.msra.gmra.mrb[64].mxu0 %v1828_v9  ;;  %v1839_v9 = vmul.f32 %v11613_v13, %v8747_v40 }
 0x5a1   :  { %5835 = vmatprep.mubr.f32.mxu0 %v1829_v60  ;;  %6819 = vmatpush3.bf16.msra.mxu0 %v11614_v32  ;;  %v1838_v32 = vmul.f32 %v11613_v13, %v8741_v31  ;;  %v11620_v60 = vld [vmem:[#allocation67_spill] sm:$0xff] }
 0x5a2   :  { %6821 = vmatprep.subr.bf16.mxu0 %v11615_v20 }
 0x5a4   :  { %5836 = vmatmul.mubr.f32.gmra.mrb[66].mxu0 %v1830_v39  ;;  %v1841_v39 = vmul.f32 %v11613_v13, %v11572_v43 }
 0x5a5   :  { %5838 = vmatprep.mubr.f32.mxu0 %v1831_v59  ;;  %6823 = vmatpush3.bf16.msra.mxu0 %v11615_v20  ;;  %v1840_v20 = vmul.f32 %v11613_v13, %v11571_v10  ;;  %v11621_v59 = vld [vmem:[#allocation70_spill] sm:$0xff] }
 0x5a6   :  { %6825 = vmatprep.subr.bf16.mxu0 %v11616_v8 }
 0x5a8   :  { %5839 = vmatmul.mubr.f32.gmra.mrb[68].mxu0 %v1832_v22 }
 0x5a9   :  { %5841 = vmatprep.mubr.f32.mxu0 %v1833_v11  ;;  %6827 = vmatpush3.bf16.msra.mxu0 %v11616_v8  ;;  %v1842_v8 = vmul.f32 %v11613_v13, %v11574_v35 }
 0x5aa   :  { %6829 = vmatprep.subr.bf16.mxu0 %v11617_v47 }
 0x5ac   :  { %5842 = vmatmul.mubr.f32.gmra.mrb[70].mxu0 %v1834_v51 }
 0x5ad   :  { %5844 = vmatprep.mubr.f32.mxu0 %v1835_v44  ;;  %6831 = vmatpush3.bf16.msra.mxu0 %v11617_v47 }
 0x5ae   :  { %6833 = vmatprep.subr.bf16.mxu0 %v11618_v30 }
 0x5b0   :  { %5845 = vmatmul.mubr.f32.gmra.mrb[72].mxu0 %v1836_v29 }
 0x5b1   :  { %5847 = vmatprep.mubr.f32.mxu0 %v1837_v56  ;;  %6835 = vmatpush3.bf16.msra.mxu0 %v11618_v30 }
 0x5b2   :  { %6837 = vmatprep.subr.bf16.mxu0 %v11619_v42 }
 0x5b4   :  { %5848 = vmatmul.mubr.f32.gmra.mrb[74].mxu0 %v1838_v32 }
 0x5b5   :  { %5850 = vmatprep.mubr.f32.mxu0 %v1839_v9  ;;  %6839 = vmatpush3.bf16.msra.mxu0 %v11619_v42 }
 0x5b6   :  { %6841 = vmatprep.subr.bf16.mxu0 %v11620_v60 }
 0x5b8   :  { %5851 = vmatmul.mubr.f32.gmra.mrb[76].mxu0 %v1840_v20 }
 0x5b9   :  { %5853 = vmatprep.mubr.f32.mxu0 %v1841_v39  ;;  %6843 = vmatpush3.bf16.msra.mxu0 %v11620_v60 }
 0x5ba   :  { %6845 = vmatprep.subr.bf16.mxu0 %v11621_v59 }
 0x5bc   :  { %5854 = vmatmul.mubr.f32.gmra.mrb[78].mxu0 %v1842_v8 }
 0x5bd   :  { %6847 = vmatpush3.bf16.msra.mxu0 %v11621_v59 }
 0x5be   :  { %6849 = vmatprep.subr.bf16.mxu0 %v11460_v21 }
 0x633   :  { %v9503_v22 = vpop.f32.mrb[48].mxu0 }
 0x634   :  { %11622 = vst [vmem:[#allocation31_spill] sm:$0xff] %v9503_v22  ;;  %v9505_v11 = vpop.f32.mrb[49].mxu0 }
 0x635   :  { %11623 = vst [vmem:[#allocation50_spill] sm:$0xff] %v9505_v11 }
 0x637   :  { %v9507_v47 = vpop.f32.mrb[50].mxu0 }
 0x638   :  { %11624 = vst [vmem:[#allocation44_spill] sm:$0xff] %v9507_v47  ;;  %v9509_v51 = vpop.f32.mrb[51].mxu0 }
 0x639   :  { %11625 = vst [vmem:[#allocation46_spill] sm:$0xff] %v9509_v51  ;;  %v11640_v51 = vld [vmem:[#allocation86_spill] sm:$0xff] }
 0x63b   :  { %v9511_v44 = vpop.f32.mrb[52].mxu0 }
 0x63c   :  { %11626 = vst [vmem:[#allocation23_spill] sm:$0xff] %v9511_v44  ;;  %v9513_v30 = vpop.f32.mrb[53].mxu0 }
 0x63d   :  { %11627 = vst [vmem:[#allocation28_spill] sm:$0xff] %v9513_v30  ;;  %v9538_v30 = vld [vmem:[#allocation11] sm:$0xff] }
 0x63f   :  { %v9515_v29 = vpop.f32.mrb[54].mxu0 }
 0x640   :  { %11628 = vst [vmem:[#allocation35_spill] sm:$0xff] %v9515_v29  ;;  %v9517_v13 = vpop.f32.mrb[55].mxu0  ;;  %v9535_v29 = vld [vmem:[#allocation11 + $0x8] sm:$0xff] }
 0x641   :  { %11629 = vst [vmem:[#allocation67_spill] sm:$0xff] %v9517_v13 }
 0x643   :  { %v9519_v56 = vpop.f32.mrb[56].mxu0 }
 0x644   :  { %11630 = vst [vmem:[#allocation70_spill] sm:$0xff] %v9519_v56  ;;  %v9521_v42 = vpop.f32.mrb[57].mxu0 }
 0x645   :  { %11631 = vst [vmem:[#allocation117_spill] sm:$0xff] %v9521_v42 }
 0x647   :  { %v9523_v32 = vpop.f32.mrb[58].mxu0 }
 0x648   :  { %11632 = vst [vmem:[#allocation118_spill] sm:$0xff] %v9523_v32  ;;  %v9525_v9 = vpop.f32.mrb[59].mxu0 }
 0x649   :  { %11633 = vst [vmem:[#allocation119_spill] sm:$0xff] %v9525_v9 }
 0x64b   :  { %v9527_v60 = vpop.f32.mrb[60].mxu0 }
 0x64c   :  { %11634 = vst [vmem:[#allocation120_spill] sm:$0xff] %v9527_v60  ;;  %v9529_v20 = vpop.f32.mrb[61].mxu0  ;;  %v9541_v60 = vld [vmem:[#allocation11 + $0x18] sm:$0xff] }
 0x64d   :  { %11635 = vst [vmem:[#allocation121_spill] sm:$0xff] %v9529_v20 }
 0x64f   :  { %v9531_v39 = vpop.f32.mrb[62].mxu0 }
 0x650   :  { %11636 = vst [vmem:[#allocation122_spill] sm:$0xff] %v9531_v39  ;;  %v9533_v59 = vpop.f32.mrb[63].mxu0 }
 0x651   :  { %11637 = vst [vmem:[#allocation123_spill] sm:$0xff] %v9533_v59 }
 0x673   :  { %v5834_v8 = vpop.f32.mrb[64].mxu0 }
 0x674   :  { %v1915_v13 = vadd.f32 %v9535_v29, %v5834_v8  ;;  %v1909_v44 = vpop.f32.mrb[65].mxu0  ;;  %v9547_v8 = vld [vmem:[#allocation11 + $0x28] sm:$0xff] }
 0x675   :  { %v1910_v47 = vadd.f32 %v9538_v30, %v1909_v44 }
 0x676   :  { %1990 = vmax.xlane.f32.xlu0 %v1915_v13 }
 0x677   :  { %v5837_v32 = vpop.f32.mrb[66].mxu0  ;;  %1988 = vmax.xlane.f32.xlu1 %v1910_v47 }
 0x678   :  { %v1925_v20 = vadd.f32 %v9541_v60, %v5837_v32  ;;  %v1919_v39 = vpop.f32.mrb[67].mxu0 }
 0x679   :  { %v1920_v59 = vadd.f32 %v9544_v23, %v1919_v39 }
 0x67a   :  { %1994 = vmax.xlane.f32.xlu0 %v1925_v20 }
 0x67b   :  { %v5840_v41 = vpop.f32.mrb[68].mxu0  ;;  %1992 = vmax.xlane.f32.xlu1 %v1920_v59 }
 0x67c   :  { %v1935_v36 = vadd.f32 %v9547_v8, %v5840_v41  ;;  %v1929_v44 = vpop.f32.mrb[69].mxu0 }
 0x67d   :  { %v1930_v63 = vadd.f32 %v9550_v33, %v1929_v44 }
 0x67e   :  { %1998 = vmax.xlane.f32.xlu0 %v1935_v36 }
 0x67f   :  { %v5843_v53 = vpop.f32.mrb[70].mxu0  ;;  %1996 = vmax.xlane.f32.xlu1 %v1930_v63 }
 0x680   :  { %v1945_v32 = vadd.f32 %v5843_v53, %v9047_v26  ;;  %v1939_v46 = vpop.f32.mrb[71].mxu0 }
 0x681   :  { %v1940_v39 = vadd.f32 %v1939_v46, %v9057_v15 }
 0x682   :  { %2002 = vmax.xlane.f32.xlu0 %v1945_v32 }
 0x683   :  { %v5846_v2 = vpop.f32.mrb[72].mxu0  ;;  %2000 = vmax.xlane.f32.xlu1 %v1940_v39 }
 0x684   :  { %v9556_v3 = vadd.f32 %v5846_v2, %v9121_v5  ;;  %v1949_v41 = vpop.f32.mrb[73].mxu0  ;;  %v11638_v2 = vld [vmem:[#allocation84_spill] sm:$0xff] }
 0x685   :  { %v9559_v28 = vadd.f32 %v1949_v41, %v9131_v38 }
 0x686   :  { %2006 = vmax.xlane.f32.xlu0 %v9556_v3 }
 0x687   :  { %v5849_v44 = vpop.f32.mrb[74].mxu0  ;;  %2004 = vmax.xlane.f32.xlu1 %v9559_v28 }
 0x688   :  { %v9564_v26 = vadd.f32 %v5849_v44, %v9147_v1  ;;  %v1959_v53 = vpop.f32.mrb[75].mxu0  ;;  %v11639_v44 = vld [vmem:[#allocation85_spill] sm:$0xff] }
 0x689   :  { %v9567_v15 = vadd.f32 %v1959_v53, %v9149_v48 }
 0x68a   :  { %2010 = vmax.xlane.f32.xlu0 %v9564_v26 }
 0x68b   :  { %v5852_v5 = vpop.f32.mrb[76].mxu0  ;;  %2008 = vmax.xlane.f32.xlu1 %v9567_v15 }
 0x68c   :  { %v9572_v38 = vadd.f32 %v5852_v5, %v9159_v49  ;;  %v1969_v46 = vpop.f32.mrb[77].mxu0 }
 0x68d   :  { %v9575_v41 = vadd.f32 %v1969_v46, %v11638_v2 }
 0x68e   :  { %2014 = vmax.xlane.f32.xlu0 %v9572_v38 }
 0x68f   :  { %v5855_v1 = vpop.f32.mrb[78].mxu0  ;;  %2012 = vmax.xlane.f32.xlu1 %v9575_v41 }
 0x690   :  { %v9580_v48 = vadd.f32 %v5855_v1, %v11639_v44  ;;  %v1979_v53 = vpop.f32.mrb[79].mxu0 }
 0x691   :  { %v9583_v9 = vadd.f32 %v1979_v53, %v11640_v51 }
 0x692   :  { %2018 = vmax.xlane.f32.xlu0 %v9580_v48 }
 0x693   :  { %2016 = vmax.xlane.f32.xlu1 %v9583_v9 }
 0x703   :  { %v1991_v49 = vpop.xlane.xlu0 %1990 }
 0x704   :  { %v2021_v5 = vsub.f32 %v1915_v13, %v1991_v49  ;;  %v1989_v46 = vpop.xlane.xlu1 %1988 }
 0x705   :  { %v2020_v2 = vsub.f32 %v1910_v47, %v1989_v46 }
 0x706   :  { %v2038_v22 = vmul.f32 1.442695, %v2021_v5 }
 0x707   :  { %v2036_v56 = vmul.f32 1.442695, %v2020_v2  ;;  %v1995_v11 = vpop.xlane.xlu0 %1994 }
 0x708   :  { %v2023_v42 = vsub.f32 %v1925_v20, %v1995_v11  ;;  %v1993_v19 = vpop.xlane.xlu1 %1992 }
 0x709   :  { %7231 = vpow2.f32 %v2036_v56  ;;  %v2022_v1 = vsub.f32 %v1920_v59, %v1993_v19 }
 0x70a   :  { %7233 = vpow2.f32 %v2038_v22  ;;  %v2042_v44 = vmul.f32 1.442695, %v2023_v42 }
 0x70b   :  { %v2040_v27 = vmul.f32 1.442695, %v2022_v1  ;;  %v1999_v51 = vpop.xlane.xlu0 %1998 }
 0x70c   :  { %v2025_v53 = vsub.f32 %v1935_v36, %v1999_v51  ;;  %v1997_v52 = vpop.xlane.xlu1 %1996 }
 0x70d   :  { %7235 = vpow2.f32 %v2040_v27  ;;  %v2024_v50 = vsub.f32 %v1930_v63, %v1997_v52 }
 0x70e   :  { %7237 = vpow2.f32 %v2042_v44  ;;  %v2046_v14 = vmul.f32 1.442695, %v2025_v53 }
 0x70f   :  { %v2044_v13 = vmul.f32 1.442695, %v2024_v50  ;;  %v2003_v49 = vpop.xlane.xlu0 %2002 }
 0x710   :  { %v2027_v47 = vsub.f32 %v1945_v32, %v2003_v49  ;;  %v2001_v5 = vpop.xlane.xlu1 %2000 }
 0x711   :  { %7239 = vpow2.f32 %v2044_v13  ;;  %v2026_v46 = vsub.f32 %v1940_v39, %v2001_v5 }
 0x712   :  { %7241 = vpow2.f32 %v2046_v14  ;;  %v2050_v11 = vmul.f32 1.442695, %v2027_v47 }
 0x713   :  { %v9587_v56 = vpop.eup %7231  ;;  %v2048_v19 = vmul.f32 1.442695, %v2026_v46  ;;  %v2007_v22 = vpop.xlane.xlu0 %2006 }
 0x714   :  { %11641 = vst [vmem:[#allocation84_spill] sm:$0xff] %v9587_v56  ;;  %v9589_v42 = vpop.eup %7233  ;;  %v2029_v36 = vsub.f32 %v9556_v3, %v2007_v22  ;;  %5888 = vmatprep.mubr.f32.mxu1 %v9587_v56  ;;  %v2005_v52 = vpop.xlane.xlu1 %2004 }
 0x715   :  { %11642 = vst [vmem:[#allocation85_spill] sm:$0xff] %v9589_v42  ;;  %7243 = vpow2.f32 %v2048_v19  ;;  %v2028_v63 = vsub.f32 %v9559_v28, %v2005_v52  ;;  %5889 = vmatmul.mubr.f32.vlgmr.msra.gmra.mrb[48].mxu1 %v9589_v42 }
 0x716   :  { %7245 = vpow2.f32 %v2050_v11  ;;  %v2054_v50 = vmul.f32 1.442695, %v2029_v36  ;;  %6787 = vmatpush3.bf16.xpose.msra.mxu1 %v11460_v21 }
 0x717   :  { %v9596_v14 = vpop.eup %7235  ;;  %v2052_v27 = vmul.f32 1.442695, %v2028_v63  ;;  %6789 = vmatprep.subr.bf16.mxu1 %v11549_v4  ;;  %v2011_v20 = vpop.xlane.xlu0 %2010 }
 0x718   :  { %11643 = vst [vmem:[#allocation86_spill] sm:$0xff] %v9596_v14  ;;  %v9599_v59 = vpop.eup %7237  ;;  %v2031_v3 = vsub.f32 %v9564_v26, %v2011_v20  ;;  %5891 = vmatprep.mubr.f32.mxu1 %v9596_v14  ;;  %v2009_v32 = vpop.xlane.xlu1 %2008 }
 0x719   :  { %11644 = vst [vmem:[#allocation124_spill] sm:$0xff] %v9599_v59  ;;  %7247 = vpow2.f32 %v2052_v27  ;;  %v2030_v28 = vsub.f32 %v9567_v15, %v2009_v32  ;;  %5892 = vmatmul.mubr.f32.gmra.mrb[50].mxu1 %v9599_v59  ;;  %v9790_v59 = vld [vmem:[#allocation11 + $0x68] sm:$0xff] }
 0x71a   :  { %7249 = vpow2.f32 %v2054_v50  ;;  %v2058_v39 = vmul.f32 1.442695, %v2031_v3  ;;  %v11657_v3 = vld [vmem:[#allocation55_spill] sm:$0xff]  ;;  %11685 = vst [vmem:[#allocation147_spill] sm:$0xff] %v9790_v59 }
 0x71b   :  { %v9605_v2 = vpop.eup %7239  ;;  %v2056_v1 = vmul.f32 1.442695, %v2030_v28  ;;  %v2015_v44 = vpop.xlane.xlu0 %2014  ;;  %v2313_v32 = vmul.f32 %v11657_v3, %v8638_v16  ;;  %v11658_v28 = vld [vmem:[#allocation58_spill] sm:$0xff] }
 0x71c   :  { %11645 = vst [vmem:[#allocation125_spill] sm:$0xff] %v9605_v2  ;;  %v9607_v51 = vpop.eup %7241  ;;  %v2033_v53 = vsub.f32 %v9572_v38, %v2015_v44  ;;  %5894 = vmatprep.mubr.f32.mxu1 %v9605_v2  ;;  %v2013_v26 = vpop.xlane.xlu1 %2012  ;;  %v11659_v44 = vld [vmem:[#allocation60_spill] sm:$0xff] }
 0x71d   :  { %11646 = vst [vmem:[#allocation126_spill] sm:$0xff] %v9607_v51  ;;  %7251 = vpow2.f32 %v2056_v1  ;;  %v2032_v13 = vsub.f32 %v9575_v41, %v2013_v26  ;;  %5895 = vmatmul.mubr.f32.gmra.mrb[52].mxu1 %v9607_v51  ;;  %v2315_v1 = vmul.f32 %v11657_v3, %v8656_v18  ;;  %v2317_v26 = vmul.f32 %v11657_v3, %v8675_v24  ;;  %v9778_v51 = vld [vmem:[#allocation11 + $0x58] sm:$0xff] }
 0x71e   :  { %7253 = vpow2.f32 %v2058_v39  ;;  %v2062_v15 = vmul.f32 1.442695, %v2033_v53  ;;  %6791 = vmatpush3.bf16.xpose.msra.mxu1 %v11549_v4  ;;  %v2314_v39 = vmul.f32 %v11657_v3, %v8650_v62  ;;  %v2316_v53 = vmul.f32 %v11657_v3, %v8667_v17  ;;  %11683 = vst [vmem:[#allocation145_spill] sm:$0xff] %v9778_v51 }
 0x71f   :  { %v9614_v49 = vpop.eup %7243  ;;  %v2060_v47 = vmul.f32 1.442695, %v2032_v13  ;;  %6793 = vmatprep.subr.bf16.mxu1 %v11552_v25  ;;  %v2019_v5 = vpop.xlane.xlu0 %2018  ;;  %v11660_v13 = vld [vmem:[#allocation64_spill] sm:$0xff] }
 0x720   :  { %11647 = vst [vmem:[#allocation127_spill] sm:$0xff] %v9614_v49  ;;  %v9617_v46 = vpop.eup %7245  ;;  %v2035_v38 = vsub.f32 %v9580_v48, %v2019_v5  ;;  %5897 = vmatprep.mubr.f32.mxu1 %v9614_v49  ;;  %v2017_v11 = vpop.xlane.xlu1 %2016  ;;  %v11661_v5 = vld [vmem:[#allocation27_spill] sm:$0xff] }
 0x721   :  { %11648 = vst [vmem:[#allocation128_spill] sm:$0xff] %v9617_v46  ;;  %7255 = vpow2.f32 %v2060_v47  ;;  %v2034_v41 = vsub.f32 %v9583_v9, %v2017_v11  ;;  %5898 = vmatmul.mubr.f32.gmra.mrb[54].mxu1 %v9617_v46  ;;  %v2319_v47 = vmul.f32 %v11657_v3, %v8694_v37  ;;  %v2321_v11 = vmul.f32 %v11657_v3, %v8713_v12  ;;  %v9766_v46 = vld [vmem:[#allocation11 + $0x48] sm:$0xff] }
 0x722   :  { %7257 = vpow2.f32 %v2062_v15  ;;  %v2066_v19 = vmul.f32 1.442695, %v2035_v38  ;;  %v2318_v15 = vmul.f32 %v11657_v3, %v8686_v7  ;;  %v2320_v38 = vmul.f32 %v11657_v3, %v8705_v45 }
 0x723   :  { %v9623_v22 = vpop.eup %7247  ;;  %v2064_v36 = vmul.f32 1.442695, %v2034_v41  ;;  %v11662_v41 = vld [vmem:[#allocation32_spill] sm:$0xff] }
 0x724   :  { %11649 = vst [vmem:[#allocation129_spill] sm:$0xff] %v9623_v22  ;;  %v9625_v52 = vpop.eup %7249  ;;  %5900 = vmatprep.mubr.f32.mxu1 %v9623_v22 }
 0x725   :  { %11650 = vst [vmem:[#allocation130_spill] sm:$0xff] %v9625_v52  ;;  %7259 = vpow2.f32 %v2064_v36  ;;  %5901 = vmatmul.mubr.f32.gmra.mrb[56].mxu1 %v9625_v52  ;;  %v2323_v36 = vmul.f32 %v11657_v3, %v8732_v54 }
 0x726   :  { %7261 = vpow2.f32 %v2066_v19  ;;  %6795 = vmatpush3.bf16.xpose.msra.mxu1 %v11552_v25  ;;  %v2322_v19 = vmul.f32 %v11657_v3, %v8724_v58 }
 0x727   :  { %v9630_v48 = vpop.eup %7251  ;;  %6797 = vmatprep.subr.bf16.mxu1 %v11555_v0 }
 0x728   :  { %11651 = vst [vmem:[#allocation131_spill] sm:$0xff] %v9630_v48  ;;  %v9633_v9 = vpop.eup %7253  ;;  %5903 = vmatprep.mubr.f32.mxu1 %v9630_v48  ;;  %v9795_v48 = vld [vmem:[#allocation11 + $0x60] sm:$0xff] }
 0x729   :  { %11652 = vst [vmem:[#allocation132_spill] sm:$0xff] %v9633_v9  ;;  %5904 = vmatmul.mubr.f32.gmra.mrb[58].mxu1 %v9633_v9  ;;  %11686 = vst [vmem:[#allocation148_spill] sm:$0xff] %v9795_v48 }
 0x72b   :  { %v9637_v63 = vpop.eup %7255 }
 0x72c   :  { %11653 = vst [vmem:[#allocation133_spill] sm:$0xff] %v9637_v63  ;;  %v9639_v50 = vpop.eup %7257  ;;  %5906 = vmatprep.mubr.f32.mxu1 %v9637_v63  ;;  %v9783_v63 = vld [vmem:[#allocation11 + $0x50] sm:$0xff] }
 0x72d   :  { %11654 = vst [vmem:[#allocation134_spill] sm:$0xff] %v9639_v50  ;;  %5907 = vmatmul.mubr.f32.gmra.mrb[60].mxu1 %v9639_v50  ;;  %11684 = vst [vmem:[#allocation146_spill] sm:$0xff] %v9783_v63 }
 0x72e   :  { %6799 = vmatpush3.bf16.xpose.msra.mxu1 %v11555_v0 }
 0x72f   :  { %v9644_v27 = vpop.eup %7259  ;;  %6801 = vmatprep.subr.bf16.mxu1 %v11558_v55 }
 0x730   :  { %11655 = vst [vmem:[#allocation135_spill] sm:$0xff] %v9644_v27  ;;  %v9647_v20 = vpop.eup %7261  ;;  %5909 = vmatprep.mubr.f32.mxu1 %v9644_v27  ;;  %v9771_v27 = vld [vmem:[#allocation11 + $0x40] sm:$0xff] }
 0x731   :  { %11656 = vst [vmem:[#allocation136_spill] sm:$0xff] %v9647_v20  ;;  %5910 = vmatmul.mubr.f32.gmra.mrb[62].mxu1 %v9647_v20  ;;  %11682 = vst [vmem:[#allocation144_spill] sm:$0xff] %v9771_v27 }
 0x732   :  { %5944 = vmatprep.mubr.f32.mxu1 %v2313_v32  ;;  %v11663_v32 = vld [vmem:[#allocation40_spill] sm:$0xff] }
 0x736   :  { %6803 = vmatpush3.bf16.xpose.msra.mxu1 %v11558_v55 }
 0x737   :  { %6805 = vmatprep.subr.bf16.mxu1 %v11561_v34 }
 0x73e   :  { %6807 = vmatpush3.bf16.xpose.msra.mxu1 %v11561_v34 }
 0x73f   :  { %6809 = vmatprep.subr.bf16.mxu1 %v11564_v57 }
 0x746   :  { %6811 = vmatpush3.bf16.xpose.msra.mxu1 %v11564_v57 }
 0x747   :  { %6813 = vmatprep.subr.bf16.mxu1 %v8634_v6 }
 0x74e   :  { %6815 = vmatpush3.bf16.xpose.msra.mxu1 %v8634_v6 }
 0x74f   :  { %6881 = vmatprep.subr.bf16.mxu1 %v11658_v28 }
 0x755   :  { %5945 = vmatmul.mubr.f32.vlgmr.msra.gmra.mrb[64].mxu1 %v2314_v39  ;;  %v2325_v39 = vmul.f32 %v11657_v3, %v8747_v40 }
 0x756   :  { %5947 = vmatprep.mubr.f32.mxu1 %v2315_v1  ;;  %6883 = vmatpush3.bf16.msra.mxu1 %v11658_v28  ;;  %v2324_v28 = vmul.f32 %v11657_v3, %v8741_v31  ;;  %v11664_v1 = vld [vmem:[#allocation43_spill] sm:$0xff] }
 0x757   :  { %6885 = vmatprep.subr.bf16.mxu1 %v11659_v44 }
 0x759   :  { %5948 = vmatmul.mubr.f32.gmra.mrb[66].mxu1 %v2316_v53  ;;  %v2327_v53 = vmul.f32 %v11657_v3, %v11572_v43 }
 0x75a   :  { %5950 = vmatprep.mubr.f32.mxu1 %v2317_v26  ;;  %6887 = vmatpush3.bf16.msra.mxu1 %v11659_v44  ;;  %v2326_v44 = vmul.f32 %v11657_v3, %v11571_v10  ;;  %v11665_v26 = vld [vmem:[#allocation72_spill] sm:$0xff] }
 0x75b   :  { %6889 = vmatprep.subr.bf16.mxu1 %v11660_v13 }
 0x75d   :  { %5951 = vmatmul.mubr.f32.gmra.mrb[68].mxu1 %v2318_v15 }
 0x75e   :  { %5953 = vmatprep.mubr.f32.mxu1 %v2319_v47  ;;  %6891 = vmatpush3.bf16.msra.mxu1 %v11660_v13  ;;  %v2328_v13 = vmul.f32 %v11657_v3, %v11574_v35 }
 0x75f   :  { %6893 = vmatprep.subr.bf16.mxu1 %v11661_v5 }
 0x761   :  { %5954 = vmatmul.mubr.f32.gmra.mrb[70].mxu1 %v2320_v38 }
 0x762   :  { %5956 = vmatprep.mubr.f32.mxu1 %v2321_v11  ;;  %6895 = vmatpush3.bf16.msra.mxu1 %v11661_v5 }
 0x763   :  { %6897 = vmatprep.subr.bf16.mxu1 %v11662_v41 }
 0x765   :  { %5957 = vmatmul.mubr.f32.gmra.mrb[72].mxu1 %v2322_v19 }
 0x766   :  { %5959 = vmatprep.mubr.f32.mxu1 %v2323_v36  ;;  %6899 = vmatpush3.bf16.msra.mxu1 %v11662_v41 }
 0x767   :  { %6901 = vmatprep.subr.bf16.mxu1 %v11663_v32 }
 0x769   :  { %5960 = vmatmul.mubr.f32.gmra.mrb[74].mxu1 %v2324_v28 }
 0x76a   :  { %5962 = vmatprep.mubr.f32.mxu1 %v2325_v39  ;;  %6903 = vmatpush3.bf16.msra.mxu1 %v11663_v32 }
 0x76b   :  { %6905 = vmatprep.subr.bf16.mxu1 %v11664_v1 }
 0x76d   :  { %5963 = vmatmul.mubr.f32.gmra.mrb[76].mxu1 %v2326_v44 }
 0x76e   :  { %5965 = vmatprep.mubr.f32.mxu1 %v2327_v53  ;;  %6907 = vmatpush3.bf16.msra.mxu1 %v11664_v1 }
 0x76f   :  { %6909 = vmatprep.subr.bf16.mxu1 %v11665_v26 }
 0x771   :  { %5966 = vmatmul.mubr.f32.gmra.mrb[78].mxu1 %v2328_v13 }
 0x772   :  { %6911 = vmatpush3.bf16.msra.mxu1 %v11665_v26 }
 0x773   :  { %6913 = vmatprep.subr.bf16.mxu1 %v11460_v21 }
 0x7e8   :  { %v9707_v15 = vpop.f32.mrb[48].mxu1 }
 0x7e9   :  { %11666 = vst [vmem:[#allocation55_spill] sm:$0xff] %v9707_v15  ;;  %v9709_v47 = vpop.f32.mrb[49].mxu1  ;;  %v9802_v15 = vld [vmem:[#allocation11 + $0x78] sm:$0xff] }
 0x7ea   :  { %11667 = vst [vmem:[#allocation58_spill] sm:$0xff] %v9709_v47  ;;  %11687 = vst [vmem:[#allocation149_spill] sm:$0xff] %v9802_v15 }
 0x7ec   :  { %v9711_v5 = vpop.f32.mrb[50].mxu1 }
 0x7ed   :  { %11668 = vst [vmem:[#allocation60_spill] sm:$0xff] %v9711_v5  ;;  %v9713_v38 = vpop.f32.mrb[51].mxu1 }
 0x7ee   :  { %11669 = vst [vmem:[#allocation64_spill] sm:$0xff] %v9713_v38 }
 0x7f0   :  { %v9715_v11 = vpop.f32.mrb[52].mxu1 }
 0x7f1   :  { %11670 = vst [vmem:[#allocation27_spill] sm:$0xff] %v9715_v11  ;;  %v9717_v41 = vpop.f32.mrb[53].mxu1 }
 0x7f2   :  { %11671 = vst [vmem:[#allocation32_spill] sm:$0xff] %v9717_v41 }
 0x7f4   :  { %v9719_v19 = vpop.f32.mrb[54].mxu1 }
 0x7f5   :  { %11672 = vst [vmem:[#allocation40_spill] sm:$0xff] %v9719_v19  ;;  %v9721_v3 = vpop.f32.mrb[55].mxu1 }
 0x7f6   :  { %11673 = vst [vmem:[#allocation43_spill] sm:$0xff] %v9721_v3 }
 0x7f8   :  { %v9723_v36 = vpop.f32.mrb[56].mxu1 }
 0x7f9   :  { %11674 = vst [vmem:[#allocation72_spill] sm:$0xff] %v9723_v36  ;;  %v9725_v32 = vpop.f32.mrb[57].mxu1 }
 0x7fa   :  { %11675 = vst [vmem:[#allocation137_spill] sm:$0xff] %v9725_v32  ;;  %v9807_v32 = vld [vmem:[#allocation11 + $0x70] sm:$0xff] }
 0x7fb   :  { %11688 = vst [vmem:[#allocation150_spill] sm:$0xff] %v9807_v32 }
 0x7fc   :  { %v9727_v28 = vpop.f32.mrb[58].mxu1 }
 0x7fd   :  { %11676 = vst [vmem:[#allocation138_spill] sm:$0xff] %v9727_v28  ;;  %v9729_v39 = vpop.f32.mrb[59].mxu1 }
 0x7fe   :  { %11677 = vst [vmem:[#allocation139_spill] sm:$0xff] %v9729_v39  ;;  %v9759_v39 = vld [vmem:[#allocation11 + $0x30] sm:$0xff] }
 0x800   :  { %v9731_v1 = vpop.f32.mrb[60].mxu1 }
 0x801   :  { %11678 = vst [vmem:[#allocation140_spill] sm:$0xff] %v9731_v1  ;;  %v9733_v44 = vpop.f32.mrb[61].mxu1 }
 0x802   :  { %11679 = vst [vmem:[#allocation141_spill] sm:$0xff] %v9733_v44 }
 0x804   :  { %v9735_v53 = vpop.f32.mrb[62].mxu1 }
 0x805   :  { %11680 = vst [vmem:[#allocation142_spill] sm:$0xff] %v9735_v53  ;;  %v9737_v26 = vpop.f32.mrb[63].mxu1 }
 0x806   :  { %11681 = vst [vmem:[#allocation143_spill] sm:$0xff] %v9737_v26 }
 0x828   :  { %v5946_v13 = vpop.f32.mrb[64].mxu1 }
 0x829   :  { %v2401_v19 = vadd.f32 %v9535_v29, %v5946_v13  ;;  %v2395_v3 = vpop.f32.mrb[65].mxu1 }
 0x82a   :  { %v2396_v11 = vadd.f32 %v9538_v30, %v2395_v3 }
 0x82b   :  { %2476 = vmax.xlane.f32.xlu0 %v2401_v19 }
 0x82c   :  { %v5949_v41 = vpop.f32.mrb[66].mxu1  ;;  %2474 = vmax.xlane.f32.xlu1 %v2396_v11 }
 0x82d   :  { %v9742_v5 = vadd.f32 %v9541_v60, %v5949_v41  ;;  %v2405_v28 = vpop.f32.mrb[67].mxu1  ;;  %v9754_v41 = vld [vmem:[#allocation11 + $0x38] sm:$0xff] }
 0x82e   :  { %v2406_v1 = vadd.f32 %v9544_v23, %v2405_v28 }
 0x82f   :  { %2480 = vmax.xlane.f32.xlu0 %v9742_v5 }
 0x830   :  { %v5952_v53 = vpop.f32.mrb[68].mxu1  ;;  %2478 = vmax.xlane.f32.xlu1 %v2406_v1 }
 0x831   :  { %v9747_v26 = vadd.f32 %v9547_v8, %v5952_v53  ;;  %v2415_v13 = vpop.f32.mrb[69].mxu1 }
 0x832   :  { %v9750_v44 = vadd.f32 %v9550_v33, %v2415_v13 }
 0x833   :  { %2484 = vmax.xlane.f32.xlu0 %v9747_v26 }
 0x834   :  { %v5955_v3 = vpop.f32.mrb[70].mxu1  ;;  %2482 = vmax.xlane.f32.xlu1 %v9750_v44 }
 0x835   :  { %v9757_v28 = vadd.f32 %v9754_v41, %v5955_v3  ;;  %v2425_v38 = vpop.f32.mrb[71].mxu1 }
 0x836   :  { %v9762_v53 = vadd.f32 %v9759_v39, %v2425_v38 }
 0x837   :  { %2488 = vmax.xlane.f32.xlu0 %v9757_v28 }
 0x838   :  { %v5958_v13 = vpop.f32.mrb[72].mxu1  ;;  %2486 = vmax.xlane.f32.xlu1 %v9762_v53 }
 0x839   :  { %v9769_v20 = vadd.f32 %v9766_v46, %v5958_v13  ;;  %v2435_v49 = vpop.f32.mrb[73].mxu1 }
 0x83a   :  { %v9774_v3 = vadd.f32 %v9771_v27, %v2435_v49 }
 0x83b   :  { %2492 = vmax.xlane.f32.xlu0 %v9769_v20 }
 0x83c   :  { %v5961_v38 = vpop.f32.mrb[74].mxu1  ;;  %2490 = vmax.xlane.f32.xlu1 %v9774_v3 }
 0x83d   :  { %v9781_v50 = vadd.f32 %v9778_v51, %v5961_v38  ;;  %v2445_v2 = vpop.f32.mrb[75].mxu1 }
 0x83e   :  { %v9786_v13 = vadd.f32 %v9783_v63, %v2445_v2 }
 0x83f   :  { %2496 = vmax.xlane.f32.xlu0 %v9781_v50 }
 0x840   :  { %v5964_v49 = vpop.f32.mrb[76].mxu1  ;;  %2494 = vmax.xlane.f32.xlu1 %v9786_v13 }
 0x841   :  { %v9793_v9 = vadd.f32 %v9790_v59, %v5964_v49  ;;  %v2455_v14 = vpop.f32.mrb[77].mxu1 }
 0x842   :  { %v9798_v38 = vadd.f32 %v9795_v48, %v2455_v14 }
 0x843   :  { %2500 = vmax.xlane.f32.xlu0 %v9793_v9 }
 0x844   :  { %v5967_v2 = vpop.f32.mrb[78].mxu1  ;;  %2498 = vmax.xlane.f32.xlu1 %v9798_v38 }
 0x845   :  { %v9805_v36 = vadd.f32 %v9802_v15, %v5967_v2  ;;  %v2465_v47 = vpop.f32.mrb[79].mxu1 }
 0x846   :  { %v9810_v49 = vadd.f32 %v9807_v32, %v2465_v47 }
 0x847   :  { %2504 = vmax.xlane.f32.xlu0 %v9805_v36 }
 0x848   :  { %2502 = vmax.xlane.f32.xlu1 %v9810_v49 }
 0x8b8   :  { %v2477_v14 = vpop.xlane.xlu0 %2476 }
 0x8b9   :  { %v2507_v42 = vsub.f32 %v2401_v19, %v2477_v14  ;;  %v2475_v52 = vpop.xlane.xlu1 %2474 }
 0x8ba   :  { %v2506_v56 = vsub.f32 %v2396_v11, %v2475_v52 }
 0x8bb   :  { %v2524_v22 = vmul.f32 1.442695, %v2507_v42 }
 0x8bc   :  { %v2522_v61 = vmul.f32 1.442695, %v2506_v56  ;;  %v2481_v48 = vpop.xlane.xlu0 %2480 }
 0x8bd   :  { %v2509_v2 = vsub.f32 %v9742_v5, %v2481_v48  ;;  %v2479_v15 = vpop.xlane.xlu1 %2478 }
 0x8be   :  { %7263 = vpow2.f32 %v2522_v61  ;;  %v2508_v59 = vsub.f32 %v2406_v1, %v2479_v15 }
 0x8bf   :  { %7265 = vpow2.f32 %v2524_v22  ;;  %v2528_v63 = vmul.f32 1.442695, %v2509_v2 }
 0x8c0   :  { %v2526_v47 = vmul.f32 1.442695, %v2508_v59  ;;  %v2485_v32 = vpop.xlane.xlu0 %2484 }
 0x8c1   :  { %v2511_v51 = vsub.f32 %v9747_v26, %v2485_v32  ;;  %v2483_v27 = vpop.xlane.xlu1 %2482 }
 0x8c2   :  { %7267 = vpow2.f32 %v2526_v47  ;;  %v2510_v19 = vsub.f32 %v9750_v44, %v2483_v27 }
 0x8c3   :  { %7269 = vpow2.f32 %v2528_v63  ;;  %v2532_v52 = vmul.f32 1.442695, %v2511_v51 }
 0x8c4   :  { %v2530_v42 = vmul.f32 1.442695, %v2510_v19  ;;  %v2489_v56 = vpop.xlane.xlu0 %2488 }
 0x8c5   :  { %v2513_v11 = vsub.f32 %v9757_v28, %v2489_v56  ;;  %v2487_v48 = vpop.xlane.xlu1 %2486 }
 0x8c6   :  { %7271 = vpow2.f32 %v2530_v42  ;;  %v2512_v61 = vsub.f32 %v9762_v53, %v2487_v48 }
 0x8c7   :  { %7273 = vpow2.f32 %v2532_v52  ;;  %v2536_v22 = vmul.f32 1.442695, %v2513_v11 }
 0x8c8   :  { %v9819_v59 = vpop.eup %7263  ;;  %v2534_v15 = vmul.f32 1.442695, %v2512_v61  ;;  %v2493_v5 = vpop.xlane.xlu0 %2492 }
 0x8c9   :  { %11689 = vst [vmem:[#allocation151_spill] sm:$0xff] %v9819_v59  ;;  %v9821_v32 = vpop.eup %7265  ;;  %v2515_v27 = vsub.f32 %v9769_v20, %v2493_v5  ;;  %6000 = vmatprep.mubr.f32.mxu0 %v9819_v59  ;;  %v2491_v51 = vpop.xlane.xlu1 %2490 }
 0x8ca   :  { %11690 = vst [vmem:[#allocation152_spill] sm:$0xff] %v9821_v32  ;;  %7275 = vpow2.f32 %v2534_v15  ;;  %v2514_v63 = vsub.f32 %v9774_v3, %v2491_v51  ;;  %6001 = vmatmul.mubr.f32.vlgmr.msra.gmra.mrb[80].mxu0 %v9821_v32 }
 0x8cb   :  { %7277 = vpow2.f32 %v2536_v22  ;;  %v2540_v1 = vmul.f32 1.442695, %v2515_v27  ;;  %6851 = vmatpush3.bf16.xpose.msra.mxu0 %v11460_v21 }
 0x8cc   :  { %v9828_v44 = vpop.eup %7267  ;;  %v2538_v26 = vmul.f32 1.442695, %v2514_v63  ;;  %6853 = vmatprep.subr.bf16.mxu0 %v11549_v4  ;;  %v2497_v28 = vpop.xlane.xlu0 %2496 }
 0x8cd   :  { %11691 = vst [vmem:[#allocation153_spill] sm:$0xff] %v9828_v44  ;;  %v9831_v53 = vpop.eup %7269  ;;  %v2517_v20 = vsub.f32 %v9781_v50, %v2497_v28  ;;  %6003 = vmatprep.mubr.f32.mxu0 %v9828_v44  ;;  %v2495_v14 = vpop.xlane.xlu1 %2494 }
 0x8ce   :  { %11692 = vst [vmem:[#allocation154_spill] sm:$0xff] %v9831_v53  ;;  %7279 = vpow2.f32 %v2538_v26  ;;  %v2516_v3 = vsub.f32 %v9786_v13, %v2495_v14  ;;  %6004 = vmatmul.mubr.f32.gmra.mrb[82].mxu0 %v9831_v53 }
 0x8cf   :  { %7281 = vpow2.f32 %v2540_v1  ;;  %v2544_v2 = vmul.f32 1.442695, %v2517_v20 }
 0x8d0   :  { %v9837_v47 = vpop.eup %7271  ;;  %v2542_v19 = vmul.f32 1.442695, %v2516_v3  ;;  %v2501_v52 = vpop.xlane.xlu0 %2500  ;;  %v11705_v3 = vld [vmem:[#allocation54_spill] sm:$0xff] }
 0x8d1   :  { %11693 = vst [vmem:[#allocation155_spill] sm:$0xff] %v9837_v47  ;;  %v9839_v42 = vpop.eup %7273  ;;  %v2519_v56 = vsub.f32 %v9793_v9, %v2501_v52  ;;  %6006 = vmatprep.mubr.f32.mxu0 %v9837_v47  ;;  %v2499_v50 = vpop.xlane.xlu1 %2498  ;;  %v2800_v52 = vmul.f32 %v11705_v3, %v8650_v62  ;;  %v11736_v47 = vld [vmem:[#allocation150_spill] sm:$0xff] }
 0x8d2   :  { %11694 = vst [vmem:[#allocation156_spill] sm:$0xff] %v9839_v42  ;;  %7283 = vpow2.f32 %v2542_v19  ;;  %v2518_v11 = vsub.f32 %v9798_v38, %v2499_v50  ;;  %6007 = vmatmul.mubr.f32.gmra.mrb[84].mxu0 %v9839_v42  ;;  %v11706_v19 = vld [vmem:[#allocation57_spill] sm:$0xff] }
 0x8d3   :  { %7285 = vpow2.f32 %v2544_v2  ;;  %v2548_v13 = vmul.f32 1.442695, %v2519_v56  ;;  %6855 = vmatpush3.bf16.xpose.msra.mxu0 %v11549_v4  ;;  %v2799_v2 = vmul.f32 %v11705_v3, %v8638_v16  ;;  %v2801_v56 = vmul.f32 %v11705_v3, %v8656_v18  ;;  %v11707_v50 = vld [vmem:[#allocation45_spill] sm:$0xff] }
 0x8d4   :  { %v9846_v48 = vpop.eup %7275  ;;  %v2546_v61 = vmul.f32 1.442695, %v2518_v11  ;;  %6857 = vmatprep.subr.bf16.mxu0 %v11552_v25  ;;  %v2505_v22 = vpop.xlane.xlu0 %2504  ;;  %v2802_v11 = vmul.f32 %v11705_v3, %v8667_v17  ;;  %v11735_v42 = vld [vmem:[#allocation149_spill] sm:$0xff] }
 0x8d5   :  { %11695 = vst [vmem:[#allocation157_spill] sm:$0xff] %v9846_v48  ;;  %v9849_v15 = vpop.eup %7277  ;;  %v2521_v9 = vsub.f32 %v9805_v36, %v2505_v22  ;;  %6009 = vmatprep.mubr.f32.mxu0 %v9846_v48  ;;  %v2503_v5 = vpop.xlane.xlu1 %2502  ;;  %v2804_v22 = vmul.f32 %v11705_v3, %v8686_v7  ;;  %v11734_v48 = vld [vmem:[#allocation148_spill] sm:$0xff] }
 0x8d6   :  { %11696 = vst [vmem:[#allocation158_spill] sm:$0xff] %v9849_v15  ;;  %7287 = vpow2.f32 %v2546_v61  ;;  %v2520_v38 = vsub.f32 %v9810_v49, %v2503_v5  ;;  %6010 = vmatmul.mubr.f32.gmra.mrb[86].mxu0 %v9849_v15  ;;  %v11708_v61 = vld [vmem:[#allocation63_spill] sm:$0xff]  ;;  %v11709_v5 = vld [vmem:[#allocation29_spill] sm:$0xff] }
 0x8d7   :  { %7289 = vpow2.f32 %v2548_v13  ;;  %v2552_v27 = vmul.f32 1.442695, %v2521_v9  ;;  %v2803_v13 = vmul.f32 %v11705_v3, %v8675_v24  ;;  %v2805_v9 = vmul.f32 %v11705_v3, %v8694_v37  ;;  %v11733_v15 = vld [vmem:[#allocation147_spill] sm:$0xff] }
 0x8d8   :  { %v9855_v51 = vpop.eup %7279  ;;  %v2550_v63 = vmul.f32 1.442695, %v2520_v38  ;;  %v2806_v38 = vmul.f32 %v11705_v3, %v8705_v45 }
 0x8d9   :  { %11697 = vst [vmem:[#allocation159_spill] sm:$0xff] %v9855_v51  ;;  %v9857_v1 = vpop.eup %7281  ;;  %6012 = vmatprep.mubr.f32.mxu0 %v9855_v51 }
 0x8da   :  { %11698 = vst [vmem:[#allocation160_spill] sm:$0xff] %v9857_v1  ;;  %7291 = vpow2.f32 %v2550_v63  ;;  %6013 = vmatmul.mubr.f32.gmra.mrb[88].mxu0 %v9857_v1  ;;  %v11710_v63 = vld [vmem:[#allocation30_spill] sm:$0xff] }
 0x8db   :  { %7293 = vpow2.f32 %v2552_v27  ;;  %6859 = vmatpush3.bf16.xpose.msra.mxu0 %v11552_v25  ;;  %v2807_v27 = vmul.f32 %v11705_v3, %v8713_v12 }
 0x8dc   :  { %v9862_v36 = vpop.eup %7283  ;;  %6861 = vmatprep.subr.bf16.mxu0 %v11555_v0 }
 0x8dd   :  { %11699 = vst [vmem:[#allocation161_spill] sm:$0xff] %v9862_v36  ;;  %v9865_v49 = vpop.eup %7285  ;;  %6015 = vmatprep.mubr.f32.mxu0 %v9862_v36 }
 0x8de   :  { %11700 = vst [vmem:[#allocation162_spill] sm:$0xff] %v9865_v49  ;;  %6016 = vmatmul.mubr.f32.gmra.mrb[90].mxu0 %v9865_v49 }
 0x8e0   :  { %v9869_v26 = vpop.eup %7287 }
 0x8e1   :  { %11701 = vst [vmem:[#allocation163_spill] sm:$0xff] %v9869_v26  ;;  %v9871_v28 = vpop.eup %7289  ;;  %6018 = vmatprep.mubr.f32.mxu0 %v9869_v26 }
 0x8e2   :  { %11702 = vst [vmem:[#allocation164_spill] sm:$0xff] %v9871_v28  ;;  %6019 = vmatmul.mubr.f32.gmra.mrb[92].mxu0 %v9871_v28 }
 0x8e3   :  { %6863 = vmatpush3.bf16.xpose.msra.mxu0 %v11555_v0 }
 0x8e4   :  { %v9876_v20 = vpop.eup %7291  ;;  %6865 = vmatprep.subr.bf16.mxu0 %v11558_v55 }
 0x8e5   :  { %11703 = vst [vmem:[#allocation165_spill] sm:$0xff] %v9876_v20  ;;  %v9879_v14 = vpop.eup %7293  ;;  %6021 = vmatprep.mubr.f32.mxu0 %v9876_v20 }
 0x8e6   :  { %11704 = vst [vmem:[#allocation166_spill] sm:$0xff] %v9879_v14  ;;  %6022 = vmatmul.mubr.f32.gmra.mrb[94].mxu0 %v9879_v14 }
 0x8e7   :  { %6056 = vmatprep.mubr.f32.mxu0 %v2799_v2  ;;  %v2808_v2 = vmul.f32 %v11705_v3, %v8724_v58 }
 0x8eb   :  { %6867 = vmatpush3.bf16.xpose.msra.mxu0 %v11558_v55 }
 0x8ec   :  { %6869 = vmatprep.subr.bf16.mxu0 %v11561_v34 }
 0x8f3   :  { %6871 = vmatpush3.bf16.xpose.msra.mxu0 %v11561_v34 }
 0x8f4   :  { %6873 = vmatprep.subr.bf16.mxu0 %v11564_v57 }
 0x8fb   :  { %6875 = vmatpush3.bf16.xpose.msra.mxu0 %v11564_v57 }
 0x8fc   :  { %6877 = vmatprep.subr.bf16.mxu0 %v8634_v6 }
 0x903   :  { %6879 = vmatpush3.bf16.xpose.msra.mxu0 %v8634_v6 }
 0x904   :  { %6945 = vmatprep.subr.bf16.mxu0 %v11706_v19 }
 0x90a   :  { %6057 = vmatmul.mubr.f32.vlgmr.msra.gmra.mrb[96].mxu0 %v2800_v52  ;;  %v11711_v52 = vld [vmem:[#allocation39_spill] sm:$0xff] }
 0x90b   :  { %6059 = vmatprep.mubr.f32.mxu0 %v2801_v56  ;;  %6947 = vmatpush3.bf16.msra.mxu0 %v11706_v19  ;;  %v2809_v19 = vmul.f32 %v11705_v3, %v8732_v54  ;;  %v2810_v56 = vmul.f32 %v11705_v3, %v8741_v31 }
 0x90c   :  { %6949 = vmatprep.subr.bf16.mxu0 %v11707_v50 }
 0x90e   :  { %6060 = vmatmul.mubr.f32.gmra.mrb[98].mxu0 %v2802_v11  ;;  %v11712_v11 = vld [vmem:[#allocation41_spill] sm:$0xff] }
 0x90f   :  { %6062 = vmatprep.mubr.f32.mxu0 %v2803_v13  ;;  %6951 = vmatpush3.bf16.msra.mxu0 %v11707_v50  ;;  %v2811_v50 = vmul.f32 %v11705_v3, %v8747_v40  ;;  %v2812_v13 = vmul.f32 %v11705_v3, %v11571_v10 }
 0x910   :  { %6953 = vmatprep.subr.bf16.mxu0 %v11708_v61 }
 0x912   :  { %6063 = vmatmul.mubr.f32.gmra.mrb[100].mxu0 %v2804_v22  ;;  %v11713_v22 = vld [vmem:[#allocation73_spill] sm:$0xff] }
 0x913   :  { %6065 = vmatprep.mubr.f32.mxu0 %v2805_v9  ;;  %6955 = vmatpush3.bf16.msra.mxu0 %v11708_v61  ;;  %v2813_v61 = vmul.f32 %v11705_v3, %v11572_v43  ;;  %v2814_v9 = vmul.f32 %v11705_v3, %v11574_v35 }
 0x914   :  { %6957 = vmatprep.subr.bf16.mxu0 %v11709_v5 }
 0x916   :  { %6066 = vmatmul.mubr.f32.gmra.mrb[102].mxu0 %v2806_v38 }
 0x917   :  { %6068 = vmatprep.mubr.f32.mxu0 %v2807_v27  ;;  %6959 = vmatpush3.bf16.msra.mxu0 %v11709_v5 }
 0x918   :  { %6961 = vmatprep.subr.bf16.mxu0 %v11710_v63 }
 0x91a   :  { %6069 = vmatmul.mubr.f32.gmra.mrb[104].mxu0 %v2808_v2 }
 0x91b   :  { %6071 = vmatprep.mubr.f32.mxu0 %v2809_v19  ;;  %6963 = vmatpush3.bf16.msra.mxu0 %v11710_v63 }
 0x91c   :  { %6965 = vmatprep.subr.bf16.mxu0 %v11711_v52 }
 0x91e   :  { %6072 = vmatmul.mubr.f32.gmra.mrb[106].mxu0 %v2810_v56 }
 0x91f   :  { %6074 = vmatprep.mubr.f32.mxu0 %v2811_v50  ;;  %6967 = vmatpush3.bf16.msra.mxu0 %v11711_v52 }
 0x920   :  { %6969 = vmatprep.subr.bf16.mxu0 %v11712_v11 }
 0x922   :  { %6075 = vmatmul.mubr.f32.gmra.mrb[108].mxu0 %v2812_v13 }
 0x923   :  { %6077 = vmatprep.mubr.f32.mxu0 %v2813_v61  ;;  %6971 = vmatpush3.bf16.msra.mxu0 %v11712_v11 }
 0x924   :  { %6973 = vmatprep.subr.bf16.mxu0 %v11713_v22 }
 0x926   :  { %6078 = vmatmul.mubr.f32.gmra.mrb[110].mxu0 %v2814_v9 }
 0x927   :  { %6975 = vmatpush3.bf16.msra.mxu0 %v11713_v22 }
 0x928   :  { %6977 = vmatprep.subr.bf16.mxu0 %v11460_v21 }
 0x99d   :  { %v9939_v5 = vpop.f32.mrb[80].mxu0 }
 0x99e   :  { %11714 = vst [vmem:[#allocation54_spill] sm:$0xff] %v9939_v5  ;;  %v9941_v38 = vpop.f32.mrb[81].mxu0 }
 0x99f   :  { %11715 = vst [vmem:[#allocation57_spill] sm:$0xff] %v9941_v38 }
 0x9a1   :  { %v9943_v27 = vpop.f32.mrb[82].mxu0 }
 0x9a2   :  { %11716 = vst [vmem:[#allocation45_spill] sm:$0xff] %v9943_v27  ;;  %v9945_v63 = vpop.f32.mrb[83].mxu0 }
 0x9a3   :  { %11717 = vst [vmem:[#allocation63_spill] sm:$0xff] %v9945_v63 }
 0x9a5   :  { %v9947_v2 = vpop.f32.mrb[84].mxu0 }
 0x9a6   :  { %11718 = vst [vmem:[#allocation29_spill] sm:$0xff] %v9947_v2  ;;  %v9949_v19 = vpop.f32.mrb[85].mxu0 }
 0x9a7   :  { %11719 = vst [vmem:[#allocation30_spill] sm:$0xff] %v9949_v19 }
 0x9a9   :  { %v9951_v52 = vpop.f32.mrb[86].mxu0 }
 0x9aa   :  { %11720 = vst [vmem:[#allocation39_spill] sm:$0xff] %v9951_v52  ;;  %v9953_v3 = vpop.f32.mrb[87].mxu0 }
 0x9ab   :  { %11721 = vst [vmem:[#allocation41_spill] sm:$0xff] %v9953_v3 }
 0x9ad   :  { %v9955_v56 = vpop.f32.mrb[88].mxu0 }
 0x9ae   :  { %11722 = vst [vmem:[#allocation73_spill] sm:$0xff] %v9955_v56  ;;  %v9957_v50 = vpop.f32.mrb[89].mxu0 }
 0x9af   :  { %11723 = vst [vmem:[#allocation167_spill] sm:$0xff] %v9957_v50 }
 0x9b1   :  { %v9959_v11 = vpop.f32.mrb[90].mxu0 }
 0x9b2   :  { %11724 = vst [vmem:[#allocation168_spill] sm:$0xff] %v9959_v11  ;;  %v9961_v13 = vpop.f32.mrb[91].mxu0 }
 0x9b3   :  { %11725 = vst [vmem:[#allocation169_spill] sm:$0xff] %v9961_v13 }
 0x9b5   :  { %v9963_v61 = vpop.f32.mrb[92].mxu0 }
 0x9b6   :  { %11726 = vst [vmem:[#allocation170_spill] sm:$0xff] %v9963_v61  ;;  %v9965_v22 = vpop.f32.mrb[93].mxu0 }
 0x9b7   :  { %11727 = vst [vmem:[#allocation171_spill] sm:$0xff] %v9965_v22 }
 0x9b9   :  { %v9967_v9 = vpop.f32.mrb[94].mxu0 }
 0x9ba   :  { %11728 = vst [vmem:[#allocation172_spill] sm:$0xff] %v9967_v9  ;;  %v9969_v2 = vpop.f32.mrb[95].mxu0 }
 0x9bb   :  { %11729 = vst [vmem:[#allocation173_spill] sm:$0xff] %v9969_v2 }
 0x9dd   :  { %v6058_v19 = vpop.f32.mrb[96].mxu0 }
 0x9de   :  { %v2887_v52 = vadd.f32 %v9535_v29, %v6058_v19  ;;  %v2881_v3 = vpop.f32.mrb[97].mxu0 }
 0x9df   :  { %v2882_v27 = vadd.f32 %v9538_v30, %v2881_v3 }
 0x9e0   :  { %2962 = vmax.xlane.f32.xlu0 %v2887_v52 }
 0x9e1   :  { %v6061_v63 = vpop.f32.mrb[98].mxu0  ;;  %2960 = vmax.xlane.f32.xlu1 %v2882_v27 }
 0x9e2   :  { %v2897_v11 = vadd.f32 %v9541_v60, %v6061_v63  ;;  %v2891_v13 = vpop.f32.mrb[99].mxu0 }
 0x9e3   :  { %v2892_v61 = vadd.f32 %v9544_v23, %v2891_v13  ;;  %v11730_v13 = vld [vmem:[#allocation144_spill] sm:$0xff] }
 0x9e4   :  { %2966 = vmax.xlane.f32.xlu0 %v2897_v11 }
 0x9e5   :  { %v6064_v22 = vpop.f32.mrb[100].mxu0  ;;  %2964 = vmax.xlane.f32.xlu1 %v2892_v61 }
 0x9e6   :  { %v2907_v9 = vadd.f32 %v9547_v8, %v6064_v22  ;;  %v2901_v2 = vpop.f32.mrb[101].mxu0 }
 0x9e7   :  { %v2902_v5 = vadd.f32 %v9550_v33, %v2901_v2  ;;  %v11731_v2 = vld [vmem:[#allocation145_spill] sm:$0xff] }
 0x9e8   :  { %2970 = vmax.xlane.f32.xlu0 %v2907_v9 }
 0x9e9   :  { %v6067_v29 = vpop.f32.mrb[102].mxu0  ;;  %2968 = vmax.xlane.f32.xlu1 %v2902_v5 }
 0x9ea   :  { %v2917_v30 = vadd.f32 %v9754_v41, %v6067_v29  ;;  %v2911_v19 = vpop.f32.mrb[103].mxu0 }
 0x9eb   :  { %v2912_v3 = vadd.f32 %v9759_v39, %v2911_v19  ;;  %v11732_v19 = vld [vmem:[#allocation146_spill] sm:$0xff] }
 0x9ec   :  { %2974 = vmax.xlane.f32.xlu0 %v2917_v30 }
 0x9ed   :  { %v6070_v60 = vpop.f32.mrb[104].mxu0  ;;  %2972 = vmax.xlane.f32.xlu1 %v2912_v3 }
 0x9ee   :  { %v9980_v23 = vadd.f32 %v9766_v46, %v6070_v60  ;;  %v2921_v63 = vpop.f32.mrb[105].mxu0 }
 0x9ef   :  { %v9983_v8 = vadd.f32 %v11730_v13, %v2921_v63 }
 0x9f0   :  { %2978 = vmax.xlane.f32.xlu0 %v9980_v23 }
 0x9f1   :  { %v6073_v33 = vpop.f32.mrb[106].mxu0  ;;  %2976 = vmax.xlane.f32.xlu1 %v9983_v8 }
 0x9f2   :  { %v9988_v22 = vadd.f32 %v11731_v2, %v6073_v33  ;;  %v2931_v29 = vpop.f32.mrb[107].mxu0 }
 0x9f3   :  { %v9991_v56 = vadd.f32 %v11732_v19, %v2931_v29 }
 0x9f4   :  { %2982 = vmax.xlane.f32.xlu0 %v9988_v22 }
 0x9f5   :  { %v6076_v60 = vpop.f32.mrb[108].mxu0  ;;  %2980 = vmax.xlane.f32.xlu1 %v9991_v56 }
 0x9f6   :  { %v9996_v63 = vadd.f32 %v11733_v15, %v6076_v60  ;;  %v2941_v14 = vpop.f32.mrb[109].mxu0 }
 0x9f7   :  { %v9999_v20 = vadd.f32 %v11734_v48, %v2941_v14 }
 0x9f8   :  { %2986 = vmax.xlane.f32.xlu0 %v9996_v63 }
 0x9f9   :  { %v6079_v33 = vpop.f32.mrb[110].mxu0  ;;  %2984 = vmax.xlane.f32.xlu1 %v9999_v20 }
 0x9fa   :  { %v10004_v29 = vadd.f32 %v11735_v42, %v6079_v33  ;;  %v2951_v28 = vpop.f32.mrb[111].mxu0 }
 0x9fb   :  { %v10007_v26 = vadd.f32 %v11736_v47, %v2951_v28 }
 0x9fc   :  { %2990 = vmax.xlane.f32.xlu0 %v10004_v29 }
 0x9fd   :  { %2988 = vmax.xlane.f32.xlu1 %v10007_v26 }
 0xa6d   :  { %v2963_v60 = vpop.xlane.xlu0 %2962 }
 0xa6e   :  { %v2993_v53 = vsub.f32 %v2887_v52, %v2963_v60  ;;  %v2961_v14 = vpop.xlane.xlu1 %2960 }
 0xa6f   :  { %v2992_v49 = vsub.f32 %v2882_v27, %v2961_v14 }
 0xa70   :  { %v3010_v44 = vmul.f32 1.442695, %v2993_v53 }
 0xa71   :  { %v3008_v36 = vmul.f32 1.442695, %v2992_v49  ;;  %v2967_v32 = vpop.xlane.xlu0 %2966 }
 0xa72   :  { %v2995_v1 = vsub.f32 %v2897_v11, %v2967_v32  ;;  %v2965_v38 = vpop.xlane.xlu1 %2964 }
 0xa73   :  { %7295 = vpow2.f32 %v3008_v36  ;;  %v2994_v33 = vsub.f32 %v2892_v61, %v2965_v38 }
 0xa74   :  { %7297 = vpow2.f32 %v3010_v44  ;;  %v3014_v50 = vmul.f32 1.442695, %v2995_v1 }
 0xa75   :  { %v3012_v59 = vmul.f32 1.442695, %v2994_v33  ;;  %v2971_v28 = vpop.xlane.xlu0 %2970 }
 0xa76   :  { %v2997_v51 = vsub.f32 %v2907_v9, %v2971_v28  ;;  %v2969_v47 = vpop.xlane.xlu1 %2968 }
 0xa77   :  { %7299 = vpow2.f32 %v3012_v59  ;;  %v2996_v42 = vsub.f32 %v2902_v5, %v2969_v47 }
 0xa78   :  { %7301 = vpow2.f32 %v3014_v50  ;;  %v3018_v48 = vmul.f32 1.442695, %v2997_v51 }
 0xa79   :  { %v3016_v52 = vmul.f32 1.442695, %v2996_v42  ;;  %v2975_v60 = vpop.xlane.xlu0 %2974 }
 0xa7a   :  { %v2999_v27 = vsub.f32 %v2917_v30, %v2975_v60  ;;  %v2973_v53 = vpop.xlane.xlu1 %2972 }
 0xa7b   :  { %7303 = vpow2.f32 %v3016_v52  ;;  %v2998_v49 = vsub.f32 %v2912_v3, %v2973_v53 }
 0xa7c   :  { %7305 = vpow2.f32 %v3018_v48  ;;  %v3022_v32 = vmul.f32 1.442695, %v2999_v27 }
 0xa7d   :  { %v10011_v36 = vpop.eup %7295  ;;  %v3020_v44 = vmul.f32 1.442695, %v2998_v49  ;;  %v2979_v1 = vpop.xlane.xlu0 %2978 }
 0xa7e   :  { %11737 = vst [vmem:[#allocation144_spill] sm:$0xff] %v10011_v36  ;;  %v10013_v38 = vpop.eup %7297  ;;  %v3001_v11 = vsub.f32 %v9980_v23, %v2979_v1  ;;  %6112 = vmatprep.mubr.f32.mxu1 %v10011_v36  ;;  %v2977_v59 = vpop.xlane.xlu1 %2976 }
 0xa7f   :  { %11738 = vst [vmem:[#allocation145_spill] sm:$0xff] %v10013_v38  ;;  %7307 = vpow2.f32 %v3020_v44  ;;  %v3000_v47 = vsub.f32 %v9983_v8, %v2977_v59  ;;  %6113 = vmatmul.mubr.f32.vlgmr.msra.gmra.mrb[80].mxu1 %v10013_v38 }
 0xa80   :  { %7309 = vpow2.f32 %v3022_v32  ;;  %v3026_v42 = vmul.f32 1.442695, %v3001_v11  ;;  %6915 = vmatpush3.bf16.xpose.msra.mxu1 %v11460_v21 }
 0xa81   :  { %v10020_v48 = vpop.eup %7299  ;;  %v3024_v51 = vmul.f32 1.442695, %v3000_v47  ;;  %6917 = vmatprep.subr.bf16.mxu1 %v11549_v4  ;;  %v2983_v5 = vpop.xlane.xlu0 %2982 }
 0xa82   :  { %11739 = vst [vmem:[#allocation146_spill] sm:$0xff] %v10020_v48  ;;  %v10023_v50 = vpop.eup %7301  ;;  %v3003_v61 = vsub.f32 %v9988_v22, %v2983_v5  ;;  %6115 = vmatprep.mubr.f32.mxu1 %v10020_v48  ;;  %v2981_v9 = vpop.xlane.xlu1 %2980 }
 0xa83   :  { %11740 = vst [vmem:[#allocation147_spill] sm:$0xff] %v10023_v50  ;;  %7311 = vpow2.f32 %v3024_v51  ;;  %v3002_v30 = vsub.f32 %v9991_v56, %v2981_v9  ;;  %6116 = vmatmul.mubr.f32.gmra.mrb[82].mxu1 %v10023_v50 }
 0xa84   :  { %7313 = vpow2.f32 %v3026_v42  ;;  %v3030_v3 = vmul.f32 1.442695, %v3003_v61  ;;  %v11753_v61 = vld [vmem:[#allocation49_spill] sm:$0xff] }
 0xa85   :  { %v10029_v23 = vpop.eup %7303  ;;  %v3028_v8 = vmul.f32 1.442695, %v3002_v30  ;;  %v2987_v14 = vpop.xlane.xlu0 %2986  ;;  %v3285_v9 = vmul.f32 %v11753_v61, %v8638_v16  ;;  %v11754_v30 = vld [vmem:[#allocation61_spill] sm:$0xff] }
 0xa86   :  { %11741 = vst [vmem:[#allocation174_spill] sm:$0xff] %v10029_v23  ;;  %v10031_v33 = vpop.eup %7305  ;;  %v3005_v28 = vsub.f32 %v9996_v63, %v2987_v14  ;;  %6118 = vmatprep.mubr.f32.mxu1 %v10029_v23  ;;  %v2985_v22 = vpop.xlane.xlu1 %2984  ;;  %v11755_v14 = vld [vmem:[#allocation47_spill] sm:$0xff] }
 0xa87   :  { %11742 = vst [vmem:[#allocation175_spill] sm:$0xff] %v10031_v33  ;;  %7315 = vpow2.f32 %v3028_v8  ;;  %v3004_v52 = vsub.f32 %v9999_v20, %v2985_v22  ;;  %6119 = vmatmul.mubr.f32.gmra.mrb[84].mxu1 %v10031_v33  ;;  %v3287_v8 = vmul.f32 %v11753_v61, %v8656_v18  ;;  %v3289_v22 = vmul.f32 %v11753_v61, %v8675_v24  ;;  %v11780_v33 = vld [vmem:[#allocation150_spill] sm:$0xff] }
 0xa88   :  { %7317 = vpow2.f32 %v3030_v3  ;;  %v3034_v56 = vmul.f32 1.442695, %v3005_v28  ;;  %6919 = vmatpush3.bf16.xpose.msra.mxu1 %v11549_v4  ;;  %v3286_v3 = vmul.f32 %v11753_v61, %v8650_v62  ;;  %v3288_v28 = vmul.f32 %v11753_v61, %v8667_v17 }
 0xa89   :  { %v10038_v60 = vpop.eup %7307  ;;  %v3032_v27 = vmul.f32 1.442695, %v3004_v52  ;;  %6921 = vmatprep.subr.bf16.mxu1 %v11552_v25  ;;  %v2991_v53 = vpop.xlane.xlu0 %2990  ;;  %v11756_v52 = vld [vmem:[#allocation25_spill] sm:$0xff] }
 0xa8a   :  { %11743 = vst [vmem:[#allocation176_spill] sm:$0xff] %v10038_v60  ;;  %v10041_v49 = vpop.eup %7309  ;;  %v3007_v63 = vsub.f32 %v10004_v29, %v2991_v53  ;;  %6121 = vmatprep.mubr.f32.mxu1 %v10038_v60  ;;  %v2989_v32 = vpop.xlane.xlu1 %2988  ;;  %v11757_v53 = vld [vmem:[#allocation33_spill] sm:$0xff] }
 0xa8b   :  { %11744 = vst [vmem:[#allocation177_spill] sm:$0xff] %v10041_v49  ;;  %7319 = vpow2.f32 %v3032_v27  ;;  %v3006_v20 = vsub.f32 %v10007_v26, %v2989_v32  ;;  %6122 = vmatmul.mubr.f32.gmra.mrb[86].mxu1 %v10041_v49  ;;  %v3291_v27 = vmul.f32 %v11753_v61, %v8694_v37  ;;  %v3293_v32 = vmul.f32 %v11753_v61, %v8713_v12 }
 0xa8c   :  { %7321 = vpow2.f32 %v3034_v56  ;;  %v3038_v44 = vmul.f32 1.442695, %v3007_v63  ;;  %v3290_v56 = vmul.f32 %v11753_v61, %v8686_v7  ;;  %v3292_v63 = vmul.f32 %v11753_v61, %v8705_v45 }
 0xa8d   :  { %v10047_v1 = vpop.eup %7311  ;;  %v3036_v11 = vmul.f32 1.442695, %v3006_v20  ;;  %v11758_v20 = vld [vmem:[#allocation68_spill] sm:$0xff] }
 0xa8e   :  { %11745 = vst [vmem:[#allocation178_spill] sm:$0xff] %v10047_v1  ;;  %v10049_v59 = vpop.eup %7313  ;;  %6124 = vmatprep.mubr.f32.mxu1 %v10047_v1 }
 0xa8f   :  { %11746 = vst [vmem:[#allocation179_spill] sm:$0xff] %v10049_v59  ;;  %7323 = vpow2.f32 %v3036_v11  ;;  %6125 = vmatmul.mubr.f32.gmra.mrb[88].mxu1 %v10049_v59  ;;  %v3295_v11 = vmul.f32 %v11753_v61, %v8732_v54 }
 0xa90   :  { %7325 = vpow2.f32 %v3038_v44  ;;  %6923 = vmatpush3.bf16.xpose.msra.mxu1 %v11552_v25  ;;  %v3294_v44 = vmul.f32 %v11753_v61, %v8724_v58 }
 0xa91   :  { %v10054_v29 = vpop.eup %7315  ;;  %6925 = vmatprep.subr.bf16.mxu1 %v11555_v0 }
 0xa92   :  { %11747 = vst [vmem:[#allocation180_spill] sm:$0xff] %v10054_v29  ;;  %v10057_v26 = vpop.eup %7317  ;;  %6127 = vmatprep.mubr.f32.mxu1 %v10054_v29 }
 0xa93   :  { %11748 = vst [vmem:[#allocation181_spill] sm:$0xff] %v10057_v26  ;;  %6128 = vmatmul.mubr.f32.gmra.mrb[90].mxu1 %v10057_v26 }
 0xa95   :  { %v10061_v47 = vpop.eup %7319 }
 0xa96   :  { %11749 = vst [vmem:[#allocation182_spill] sm:$0xff] %v10061_v47  ;;  %v10063_v42 = vpop.eup %7321  ;;  %6130 = vmatprep.mubr.f32.mxu1 %v10061_v47 }
 0xa97   :  { %11750 = vst [vmem:[#allocation183_spill] sm:$0xff] %v10063_v42  ;;  %6131 = vmatmul.mubr.f32.gmra.mrb[92].mxu1 %v10063_v42 }
 0xa98   :  { %6927 = vmatpush3.bf16.xpose.msra.mxu1 %v11555_v0 }
 0xa99   :  { %v10068_v51 = vpop.eup %7323  ;;  %6929 = vmatprep.subr.bf16.mxu1 %v11558_v55 }
 0xa9a   :  { %11751 = vst [vmem:[#allocation184_spill] sm:$0xff] %v10068_v51  ;;  %v10071_v5 = vpop.eup %7325  ;;  %6133 = vmatprep.mubr.f32.mxu1 %v10068_v51 }
 0xa9b   :  { %11752 = vst [vmem:[#allocation185_spill] sm:$0xff] %v10071_v5  ;;  %6134 = vmatmul.mubr.f32.gmra.mrb[94].mxu1 %v10071_v5 }
 0xa9c   :  { %6168 = vmatprep.mubr.f32.mxu1 %v3285_v9  ;;  %v11759_v9 = vld [vmem:[#allocation71_spill] sm:$0xff] }
 0xaa0   :  { %6931 = vmatpush3.bf16.xpose.msra.mxu1 %v11558_v55 }
 0xaa1   :  { %6933 = vmatprep.subr.bf16.mxu1 %v11561_v34 }
 0xaa8   :  { %6935 = vmatpush3.bf16.xpose.msra.mxu1 %v11561_v34 }
 0xaa9   :  { %6937 = vmatprep.subr.bf16.mxu1 %v11564_v57 }
 0xab0   :  { %6939 = vmatpush3.bf16.xpose.msra.mxu1 %v11564_v57 }
 0xab1   :  { %6941 = vmatprep.subr.bf16.mxu1 %v8634_v6 }
 0xab8   :  { %6943 = vmatpush3.bf16.xpose.msra.mxu1 %v8634_v6 }
 0xab9   :  { %7009 = vmatprep.subr.bf16.mxu1 %v11754_v30 }
 0xabf   :  { %6169 = vmatmul.mubr.f32.vlgmr.msra.gmra.mrb[96].mxu1 %v3286_v3  ;;  %v3297_v3 = vmul.f32 %v11753_v61, %v8747_v40 }
 0xac0   :  { %6171 = vmatprep.mubr.f32.mxu1 %v3287_v8  ;;  %7011 = vmatpush3.bf16.msra.mxu1 %v11754_v30  ;;  %v3296_v30 = vmul.f32 %v11753_v61, %v8741_v31  ;;  %v11760_v8 = vld [vmem:[#allocation75_spill] sm:$0xff] }
 0xac1   :  { %7013 = vmatprep.subr.bf16.mxu1 %v11755_v14 }
 0xac3   :  { %6172 = vmatmul.mubr.f32.gmra.mrb[98].mxu1 %v3288_v28  ;;  %v3299_v28 = vmul.f32 %v11753_v61, %v11572_v43 }
 0xac4   :  { %6174 = vmatprep.mubr.f32.mxu1 %v3289_v22  ;;  %7015 = vmatpush3.bf16.msra.mxu1 %v11755_v14  ;;  %v3298_v14 = vmul.f32 %v11753_v61, %v11571_v10  ;;  %v11761_v22 = vld [vmem:[#allocation76_spill] sm:$0xff] }
 0xac5   :  { %7017 = vmatprep.subr.bf16.mxu1 %v11756_v52 }
 0xac7   :  { %6175 = vmatmul.mubr.f32.gmra.mrb[100].mxu1 %v3290_v56 }
 0xac8   :  { %6177 = vmatprep.mubr.f32.mxu1 %v3291_v27  ;;  %7019 = vmatpush3.bf16.msra.mxu1 %v11756_v52  ;;  %v3300_v52 = vmul.f32 %v11753_v61, %v11574_v35 }
 0xac9   :  { %7021 = vmatprep.subr.bf16.mxu1 %v11757_v53 }
 0xacb   :  { %6178 = vmatmul.mubr.f32.gmra.mrb[102].mxu1 %v3292_v63 }
 0xacc   :  { %6180 = vmatprep.mubr.f32.mxu1 %v3293_v32  ;;  %7023 = vmatpush3.bf16.msra.mxu1 %v11757_v53 }
 0xacd   :  { %7025 = vmatprep.subr.bf16.mxu1 %v11758_v20 }
 0xacf   :  { %6181 = vmatmul.mubr.f32.gmra.mrb[104].mxu1 %v3294_v44 }
 0xad0   :  { %6183 = vmatprep.mubr.f32.mxu1 %v3295_v11  ;;  %7027 = vmatpush3.bf16.msra.mxu1 %v11758_v20 }
 0xad1   :  { %7029 = vmatprep.subr.bf16.mxu1 %v11759_v9 }
 0xad3   :  { %6184 = vmatmul.mubr.f32.gmra.mrb[106].mxu1 %v3296_v30 }
 0xad4   :  { %6186 = vmatprep.mubr.f32.mxu1 %v3297_v3  ;;  %7031 = vmatpush3.bf16.msra.mxu1 %v11759_v9 }
 0xad5   :  { %7033 = vmatprep.subr.bf16.mxu1 %v11760_v8 }
 0xad7   :  { %6187 = vmatmul.mubr.f32.gmra.mrb[108].mxu1 %v3298_v14 }
 0xad8   :  { %6189 = vmatprep.mubr.f32.mxu1 %v3299_v28  ;;  %7035 = vmatpush3.bf16.msra.mxu1 %v11760_v8 }
 0xad9   :  { %7037 = vmatprep.subr.bf16.mxu1 %v11761_v22 }
 0xadb   :  { %6190 = vmatmul.mubr.f32.gmra.mrb[110].mxu1 %v3300_v52 }
 0xadc   :  { %7039 = vmatpush3.bf16.msra.mxu1 %v11761_v22 }
 0xadd   :  { %7041 = vmatprep.subr.bf16.mxu1 %v11460_v21 }
 0xb52   :  { %v10131_v56 = vpop.f32.mrb[80].mxu1 }
 0xb53   :  { %11762 = vst [vmem:[#allocation49_spill] sm:$0xff] %v10131_v56  ;;  %v10133_v27 = vpop.f32.mrb[81].mxu1 }
 0xb54   :  { %11763 = vst [vmem:[#allocation61_spill] sm:$0xff] %v10133_v27 }
 0xb56   :  { %v10135_v53 = vpop.f32.mrb[82].mxu1 }
 0xb57   :  { %11764 = vst [vmem:[#allocation47_spill] sm:$0xff] %v10135_v53  ;;  %v10137_v63 = vpop.f32.mrb[83].mxu1 }
 0xb58   :  { %11765 = vst [vmem:[#allocation25_spill] sm:$0xff] %v10137_v63  ;;  %v10172_v63 = vld [vmem:[#allocation11 + $0x10] sm:$0xff] }
 0xb5a   :  { %v10139_v32 = vpop.f32.mrb[84].mxu1 }
 0xb5b   :  { %11766 = vst [vmem:[#allocation33_spill] sm:$0xff] %v10139_v32  ;;  %v10141_v20 = vpop.f32.mrb[85].mxu1 }
 0xb5c   :  { %11767 = vst [vmem:[#allocation68_spill] sm:$0xff] %v10141_v20  ;;  %v10166_v20 = vld [vmem:[#allocation11] sm:$0xff] }
 0xb5e   :  { %v10143_v44 = vpop.f32.mrb[86].mxu1 }
 0xb5f   :  { %11768 = vst [vmem:[#allocation71_spill] sm:$0xff] %v10143_v44  ;;  %v10145_v61 = vpop.f32.mrb[87].mxu1  ;;  %v10163_v44 = vld [vmem:[#allocation11 + $0x8] sm:$0xff] }
 0xb60   :  { %11769 = vst [vmem:[#allocation75_spill] sm:$0xff] %v10145_v61 }
 0xb62   :  { %v10147_v11 = vpop.f32.mrb[88].mxu1 }
 0xb63   :  { %11770 = vst [vmem:[#allocation76_spill] sm:$0xff] %v10147_v11  ;;  %v10149_v9 = vpop.f32.mrb[89].mxu1  ;;  %v10178_v11 = vld [vmem:[#allocation11 + $0x20] sm:$0xff] }
 0xb64   :  { %11771 = vst [vmem:[#allocation186_spill] sm:$0xff] %v10149_v9 }
 0xb66   :  { %v10151_v30 = vpop.f32.mrb[90].mxu1 }
 0xb67   :  { %11772 = vst [vmem:[#allocation187_spill] sm:$0xff] %v10151_v30  ;;  %v10153_v3 = vpop.f32.mrb[91].mxu1 }
 0xb68   :  { %11773 = vst [vmem:[#allocation188_spill] sm:$0xff] %v10153_v3 }
 0xb6a   :  { %v10155_v8 = vpop.f32.mrb[92].mxu1 }
 0xb6b   :  { %11774 = vst [vmem:[#allocation189_spill] sm:$0xff] %v10155_v8  ;;  %v10157_v14 = vpop.f32.mrb[93].mxu1  ;;  %v10169_v8 = vld [vmem:[#allocation11 + $0x18] sm:$0xff] }
 0xb6c   :  { %11775 = vst [vmem:[#allocation190_spill] sm:$0xff] %v10157_v14 }
 0xb6e   :  { %v10159_v28 = vpop.f32.mrb[94].mxu1 }
 0xb6f   :  { %11776 = vst [vmem:[#allocation191_spill] sm:$0xff] %v10159_v28  ;;  %v10161_v22 = vpop.f32.mrb[95].mxu1 }
 0xb70   :  { %11777 = vst [vmem:[#allocation192_spill] sm:$0xff] %v10161_v22 }
 0xb92   :  { %v6170_v52 = vpop.f32.mrb[96].mxu1 }
 0xb93   :  { %v3373_v61 = vadd.f32 %v10163_v44, %v6170_v52  ;;  %v3367_v32 = vpop.f32.mrb[97].mxu1  ;;  %v10175_v52 = vld [vmem:[#allocation11 + $0x28] sm:$0xff] }
 0xb94   :  { %v3368_v53 = vadd.f32 %v10166_v20, %v3367_v32 }
 0xb95   :  { %3448 = vmax.xlane.f32.xlu0 %v3373_v61 }
 0xb96   :  { %v6173_v30 = vpop.f32.mrb[98].mxu1  ;;  %3446 = vmax.xlane.f32.xlu1 %v3368_v53 }
 0xb97   :  { %v3383_v14 = vadd.f32 %v10169_v8, %v6173_v30  ;;  %v3377_v28 = vpop.f32.mrb[99].mxu1 }
 0xb98   :  { %v3378_v22 = vadd.f32 %v10172_v63, %v3377_v28 }
 0xb99   :  { %3452 = vmax.xlane.f32.xlu0 %v3383_v14 }
 0xb9a   :  { %v6176_v3 = vpop.f32.mrb[100].mxu1  ;;  %3450 = vmax.xlane.f32.xlu1 %v3378_v22 }
 0xb9b   :  { %v3393_v56 = vadd.f32 %v10175_v52, %v6176_v3  ;;  %v3387_v32 = vpop.f32.mrb[101].mxu1 }
 0xb9c   :  { %v3388_v27 = vadd.f32 %v10178_v11, %v3387_v32 }
 0xb9d   :  { %3456 = vmax.xlane.f32.xlu0 %v3393_v56 }
 0xb9e   :  { %v6179_v9 = vpop.f32.mrb[102].mxu1  ;;  %3454 = vmax.xlane.f32.xlu1 %v3388_v27 }
 0xb9f   :  { %v3403_v30 = vadd.f32 %v9754_v41, %v6179_v9  ;;  %v3397_v49 = vpop.f32.mrb[103].mxu1 }
 0xba0   :  { %v3398_v28 = vadd.f32 %v9759_v39, %v3397_v49 }
 0xba1   :  { %3460 = vmax.xlane.f32.xlu0 %v3403_v30 }
 0xba2   :  { %v6182_v5 = vpop.f32.mrb[104].mxu1  ;;  %3458 = vmax.xlane.f32.xlu1 %v3398_v28 }
 0xba3   :  { %v10184_v60 = vadd.f32 %v9766_v46, %v6182_v5  ;;  %v3407_v3 = vpop.f32.mrb[105].mxu1  ;;  %v11778_v5 = vld [vmem:[#allocation148_spill] sm:$0xff] }
 0xba4   :  { %v10187_v51 = vadd.f32 %v11730_v13, %v3407_v3 }
 0xba5   :  { %3464 = vmax.xlane.f32.xlu0 %v10184_v60 }
 0xba6   :  { %v6185_v32 = vpop.f32.mrb[106].mxu1  ;;  %3462 = vmax.xlane.f32.xlu1 %v10187_v51 }
 0xba7   :  { %v10192_v41 = vadd.f32 %v11731_v2, %v6185_v32  ;;  %v3417_v9 = vpop.f32.mrb[107].mxu1  ;;  %v11779_v32 = vld [vmem:[#allocation149_spill] sm:$0xff] }
 0xba8   :  { %v10195_v39 = vadd.f32 %v11732_v19, %v3417_v9 }
 0xba9   :  { %3468 = vmax.xlane.f32.xlu0 %v10192_v41 }
 0xbaa   :  { %v6188_v46 = vpop.f32.mrb[108].mxu1  ;;  %3466 = vmax.xlane.f32.xlu1 %v10195_v39 }
 0xbab   :  { %v10200_v13 = vadd.f32 %v11733_v15, %v6188_v46  ;;  %v3427_v49 = vpop.f32.mrb[109].mxu1 }
 0xbac   :  { %v10203_v3 = vadd.f32 %v11778_v5, %v3427_v49 }
 0xbad   :  { %3472 = vmax.xlane.f32.xlu0 %v10200_v13 }
 0xbae   :  { %v6191_v2 = vpop.f32.mrb[110].mxu1  ;;  %3470 = vmax.xlane.f32.xlu1 %v10203_v3 }
 0xbaf   :  { %v10208_v19 = vadd.f32 %v11779_v32, %v6191_v2  ;;  %v3437_v9 = vpop.f32.mrb[111].mxu1 }
 0xbb0   :  { %v10211_v42 = vadd.f32 %v11780_v33, %v3437_v9 }
 0xbb1   :  { %3476 = vmax.xlane.f32.xlu0 %v10208_v19 }
 0xbb2   :  { %3474 = vmax.xlane.f32.xlu1 %v10211_v42 }
 0xc22   :  { %v3449_v15 = vpop.xlane.xlu0 %3448 }
 0xc23   :  { %v3479_v46 = vsub.f32 %v3373_v61, %v3449_v15  ;;  %v3447_v49 = vpop.xlane.xlu1 %3446 }
 0xc24   :  { %v3478_v5 = vsub.f32 %v3368_v53, %v3447_v49 }
 0xc25   :  { %v3496_v23 = vmul.f32 1.442695, %v3479_v46 }
 0xc26   :  { %v3494_v47 = vmul.f32 1.442695, %v3478_v5  ;;  %v3453_v50 = vpop.xlane.xlu0 %3452 }
 0xc27   :  { %v3481_v26 = vsub.f32 %v3383_v14, %v3453_v50  ;;  %v3451_v48 = vpop.xlane.xlu1 %3450 }
 0xc28   :  { %7327 = vpow2.f32 %v3494_v47  ;;  %v3480_v2 = vsub.f32 %v3378_v22, %v3451_v48 }
 0xc29   :  { %7329 = vpow2.f32 %v3496_v23  ;;  %v3500_v32 = vmul.f32 1.442695, %v3481_v26 }
 0xc2a   :  { %v3498_v29 = vmul.f32 1.442695, %v3480_v2  ;;  %v3457_v33 = vpop.xlane.xlu0 %3456 }
 0xc2b   :  { %v3483_v9 = vsub.f32 %v3393_v56, %v3457_v33  ;;  %v3455_v38 = vpop.xlane.xlu1 %3454 }
 0xc2c   :  { %7331 = vpow2.f32 %v3498_v29  ;;  %v3482_v59 = vsub.f32 %v3388_v27, %v3455_v38 }
 0xc2d   :  { %7333 = vpow2.f32 %v3500_v32  ;;  %v3504_v36 = vmul.f32 1.442695, %v3483_v9 }
 0xc2e   :  { %v3502_v61 = vmul.f32 1.442695, %v3482_v59  ;;  %v3461_v15 = vpop.xlane.xlu0 %3460 }
 0xc2f   :  { %v3485_v53 = vsub.f32 %v3403_v30, %v3461_v15  ;;  %v3459_v46 = vpop.xlane.xlu1 %3458 }
 0xc30   :  { %7335 = vpow2.f32 %v3502_v61  ;;  %v3484_v49 = vsub.f32 %v3398_v28, %v3459_v46 }
 0xc31   :  { %7337 = vpow2.f32 %v3504_v36  ;;  %v3508_v50 = vmul.f32 1.442695, %v3485_v53 }
 0xc32   :  { %v10215_v47 = vpop.eup %7327  ;;  %v3506_v48 = vmul.f32 1.442695, %v3484_v49  ;;  %v3465_v23 = vpop.xlane.xlu0 %3464 }
 0xc33   :  { %11781 = vst [vmem:[#allocation148_spill] sm:$0xff] %v10215_v47  ;;  %v10217_v26 = vpop.eup %7329  ;;  %v3487_v56 = vsub.f32 %v10184_v60, %v3465_v23  ;;  %6224 = vmatprep.mubr.f32.mxu0 %v10215_v47  ;;  %v3463_v38 = vpop.xlane.xlu1 %3462 }
 0xc34   :  { %11782 = vst [vmem:[#allocation149_spill] sm:$0xff] %v10217_v26  ;;  %7339 = vpow2.f32 %v3506_v48  ;;  %v3486_v59 = vsub.f32 %v10187_v51, %v3463_v38  ;;  %6225 = vmatmul.mubr.f32.vlgmr.msra.gmra.mrb[112].mxu0 %v10217_v26  ;;  %v11832_v26 = vld [vmem:[#allocation84_spill] sm:$0xff] }
 0xc35   :  { %7341 = vpow2.f32 %v3508_v50  ;;  %v3512_v29 = vmul.f32 1.442695, %v3487_v56  ;;  %6979 = vmatpush3.bf16.xpose.msra.mxu0 %v11460_v21 }
 0xc36   :  { %v10224_v36 = vpop.eup %7331  ;;  %v3510_v27 = vmul.f32 1.442695, %v3486_v59  ;;  %6981 = vmatprep.subr.bf16.mxu0 %v11549_v4  ;;  %v3469_v14 = vpop.xlane.xlu0 %3468 }
 0xc37   :  { %11783 = vst [vmem:[#allocation150_spill] sm:$0xff] %v10224_v36  ;;  %v10227_v22 = vpop.eup %7333  ;;  %v3489_v60 = vsub.f32 %v10192_v41, %v3469_v14  ;;  %6227 = vmatprep.mubr.f32.mxu0 %v10224_v36  ;;  %v3467_v30 = vpop.xlane.xlu1 %3466  ;;  %v11829_v36 = vld [vmem:[#allocation110_spill] sm:$0xff] }
 0xc38   :  { %11784 = vst [vmem:[#allocation193_spill] sm:$0xff] %v10227_v22  ;;  %7343 = vpow2.f32 %v3510_v27  ;;  %v3488_v51 = vsub.f32 %v10195_v39, %v3467_v30  ;;  %6228 = vmatmul.mubr.f32.gmra.mrb[114].mxu0 %v10227_v22  ;;  %v11826_v22 = vld [vmem:[#allocation51_spill] sm:$0xff] }
 0xc39   :  { %7345 = vpow2.f32 %v3512_v29  ;;  %v3516_v28 = vmul.f32 1.442695, %v3489_v60  ;;  %v11797_v60 = vld [vmem:[#allocation36_spill] sm:$0xff] }
 0xc3a   :  { %v10233_v5 = vpop.eup %7335  ;;  %v3514_v2 = vmul.f32 1.442695, %v3488_v51  ;;  %v3473_v32 = vpop.xlane.xlu0 %3472  ;;  %v3771_v30 = vmul.f32 %v11797_v60, %v8638_v16  ;;  %v11798_v51 = vld [vmem:[#allocation74_spill] sm:$0xff] }
 0xc3b   :  { %11785 = vst [vmem:[#allocation194_spill] sm:$0xff] %v10233_v5  ;;  %v10235_v33 = vpop.eup %7337  ;;  %v3491_v9 = vsub.f32 %v10200_v13, %v3473_v32  ;;  %6230 = vmatprep.mubr.f32.mxu0 %v10233_v5  ;;  %v3471_v41 = vpop.xlane.xlu1 %3470  ;;  %v11799_v32 = vld [vmem:[#allocation77_spill] sm:$0xff]  ;;  %v11824_v5 = vld [vmem:[#allocation87_spill] sm:$0xff] }
 0xc3c   :  { %11786 = vst [vmem:[#allocation195_spill] sm:$0xff] %v10235_v33  ;;  %7347 = vpow2.f32 %v3514_v2  ;;  %v3490_v61 = vsub.f32 %v10203_v3, %v3471_v41  ;;  %6231 = vmatmul.mubr.f32.gmra.mrb[116].mxu0 %v10235_v33  ;;  %v3773_v2 = vmul.f32 %v11797_v60, %v8656_v18  ;;  %v3775_v41 = vmul.f32 %v11797_v60, %v8675_v24 }
 0xc3d   :  { %7349 = vpow2.f32 %v3516_v28  ;;  %v3520_v39 = vmul.f32 1.442695, %v3491_v9  ;;  %6983 = vmatpush3.bf16.xpose.msra.mxu0 %v11549_v4  ;;  %v3772_v28 = vmul.f32 %v11797_v60, %v8650_v62  ;;  %v3774_v9 = vmul.f32 %v11797_v60, %v8667_v17 }
 0xc3e   :  { %v10242_v15 = vpop.eup %7339  ;;  %v3518_v53 = vmul.f32 1.442695, %v3490_v61  ;;  %6985 = vmatprep.subr.bf16.mxu0 %v11552_v25  ;;  %v3477_v46 = vpop.xlane.xlu0 %3476  ;;  %v11800_v61 = vld [vmem:[#allocation78_spill] sm:$0xff] }
 0xc3f   :  { %11787 = vst [vmem:[#allocation196_spill] sm:$0xff] %v10242_v15  ;;  %v10245_v49 = vpop.eup %7341  ;;  %v3493_v13 = vsub.f32 %v10208_v19, %v3477_v46  ;;  %6233 = vmatprep.mubr.f32.mxu0 %v10242_v15  ;;  %v3475_v50 = vpop.xlane.xlu1 %3474  ;;  %v11801_v46 = vld [vmem:[#allocation79_spill] sm:$0xff] }
 0xc40   :  { %11788 = vst [vmem:[#allocation197_spill] sm:$0xff] %v10245_v49  ;;  %7351 = vpow2.f32 %v3518_v53  ;;  %v3492_v3 = vsub.f32 %v10211_v42, %v3475_v50  ;;  %6234 = vmatmul.mubr.f32.gmra.mrb[118].mxu0 %v10245_v49  ;;  %v3777_v53 = vmul.f32 %v11797_v60, %v8694_v37  ;;  %v3779_v50 = vmul.f32 %v11797_v60, %v8713_v12  ;;  %v10438_v15 = vld [vmem:[#allocation11 + $0x78] sm:$0xff] }
 0xc41   :  { %7353 = vpow2.f32 %v3520_v39  ;;  %v3524_v48 = vmul.f32 1.442695, %v3493_v13  ;;  %v3776_v39 = vmul.f32 %v11797_v60, %v8686_v7  ;;  %v3778_v13 = vmul.f32 %v11797_v60, %v8705_v45 }
 0xc42   :  { %v10251_v23 = vpop.eup %7343  ;;  %v3522_v56 = vmul.f32 1.442695, %v3492_v3  ;;  %v11802_v3 = vld [vmem:[#allocation80_spill] sm:$0xff] }
 0xc43   :  { %11789 = vst [vmem:[#allocation198_spill] sm:$0xff] %v10251_v23  ;;  %v10253_v38 = vpop.eup %7345  ;;  %6236 = vmatprep.mubr.f32.mxu0 %v10251_v23 }
 0xc44   :  { %11790 = vst [vmem:[#allocation199_spill] sm:$0xff] %v10253_v38  ;;  %7355 = vpow2.f32 %v3522_v56  ;;  %6237 = vmatmul.mubr.f32.gmra.mrb[120].mxu0 %v10253_v38  ;;  %v3781_v56 = vmul.f32 %v11797_v60, %v8732_v54  ;;  %v11833_v38 = vld [vmem:[#allocation130_spill] sm:$0xff] }
 0xc45   :  { %7357 = vpow2.f32 %v3524_v48  ;;  %6987 = vmatpush3.bf16.xpose.msra.mxu0 %v11552_v25  ;;  %v3780_v48 = vmul.f32 %v11797_v60, %v8724_v58 }
 0xc46   :  { %v10258_v19 = vpop.eup %7347  ;;  %6989 = vmatprep.subr.bf16.mxu0 %v11555_v0 }
 0xc47   :  { %11791 = vst [vmem:[#allocation200_spill] sm:$0xff] %v10258_v19  ;;  %v10261_v42 = vpop.eup %7349  ;;  %6239 = vmatprep.mubr.f32.mxu0 %v10258_v19  ;;  %v11831_v19 = vld [vmem:[#allocation129_spill] sm:$0xff] }
 0xc48   :  { %11792 = vst [vmem:[#allocation201_spill] sm:$0xff] %v10261_v42  ;;  %6240 = vmatmul.mubr.f32.gmra.mrb[122].mxu0 %v10261_v42  ;;  %v11828_v42 = vld [vmem:[#allocation88_spill] sm:$0xff] }
 0xc4a   :  { %v10265_v59 = vpop.eup %7351 }
 0xc4b   :  { %11793 = vst [vmem:[#allocation202_spill] sm:$0xff] %v10265_v59  ;;  %v10267_v29 = vpop.eup %7353  ;;  %6242 = vmatprep.mubr.f32.mxu0 %v10265_v59  ;;  %v11825_v59 = vld [vmem:[#allocation109_spill] sm:$0xff] }
 0xc4c   :  { %11794 = vst [vmem:[#allocation203_spill] sm:$0xff] %v10267_v29  ;;  %6243 = vmatmul.mubr.f32.gmra.mrb[124].mxu0 %v10267_v29  ;;  %v10443_v29 = vld [vmem:[#allocation11 + $0x70] sm:$0xff] }
 0xc4d   :  { %6991 = vmatpush3.bf16.xpose.msra.mxu0 %v11555_v0  ;;  %11822 = vst [vmem:[#allocation213_spill] sm:$0xff] %v10443_v29 }
 0xc4e   :  { %v10272_v27 = vpop.eup %7355  ;;  %6993 = vmatprep.subr.bf16.mxu0 %v11558_v55 }
 0xc4f   :  { %11795 = vst [vmem:[#allocation204_spill] sm:$0xff] %v10272_v27  ;;  %v10275_v14 = vpop.eup %7357  ;;  %6245 = vmatprep.mubr.f32.mxu0 %v10272_v27 }
 0xc50   :  { %11796 = vst [vmem:[#allocation205_spill] sm:$0xff] %v10275_v14  ;;  %6246 = vmatmul.mubr.f32.gmra.mrb[126].mxu0 %v10275_v14  ;;  %v10431_v14 = vld [vmem:[#allocation11 + $0x60] sm:$0xff] }
 0xc51   :  { %6280 = vmatprep.mubr.f32.mxu0 %v3771_v30  ;;  %v11803_v30 = vld [vmem:[#allocation81_spill] sm:$0xff] }
 0xc55   :  { %6995 = vmatpush3.bf16.xpose.msra.mxu0 %v11558_v55 }
 0xc56   :  { %6997 = vmatprep.subr.bf16.mxu0 %v11561_v34 }
 0xc5d   :  { %6999 = vmatpush3.bf16.xpose.msra.mxu0 %v11561_v34 }
 0xc5e   :  { %7001 = vmatprep.subr.bf16.mxu0 %v11564_v57 }
 0xc65   :  { %7003 = vmatpush3.bf16.xpose.msra.mxu0 %v11564_v57 }
 0xc66   :  { %7005 = vmatprep.subr.bf16.mxu0 %v8634_v6 }
 0xc6d   :  { %7007 = vmatpush3.bf16.xpose.msra.mxu0 %v8634_v6 }
 0xc6e   :  { %7073 = vmatprep.subr.bf16.mxu0 %v11798_v51 }
 0xc74   :  { %6281 = vmatmul.mubr.f32.vlgmr.msra.gmra.mrb[128].mxu0 %v3772_v28  ;;  %v3783_v28 = vmul.f32 %v11797_v60, %v8747_v40 }
 0xc75   :  { %6283 = vmatprep.mubr.f32.mxu0 %v3773_v2  ;;  %7075 = vmatpush3.bf16.msra.mxu0 %v11798_v51  ;;  %v3782_v51 = vmul.f32 %v11797_v60, %v8741_v31  ;;  %v11804_v2 = vld [vmem:[#allocation82_spill] sm:$0xff] }
 0xc76   :  { %7077 = vmatprep.subr.bf16.mxu0 %v11799_v32 }
 0xc78   :  { %6284 = vmatmul.mubr.f32.gmra.mrb[130].mxu0 %v3774_v9  ;;  %v3785_v9 = vmul.f32 %v11797_v60, %v11572_v43 }
 0xc79   :  { %6286 = vmatprep.mubr.f32.mxu0 %v3775_v41  ;;  %7079 = vmatpush3.bf16.msra.mxu0 %v11799_v32  ;;  %v3784_v32 = vmul.f32 %v11797_v60, %v11571_v10  ;;  %v11805_v41 = vld [vmem:[#allocation83_spill] sm:$0xff] }
 0xc7a   :  { %7081 = vmatprep.subr.bf16.mxu0 %v11800_v61 }
 0xc7c   :  { %6287 = vmatmul.mubr.f32.gmra.mrb[132].mxu0 %v3776_v39 }
 0xc7d   :  { %6289 = vmatprep.mubr.f32.mxu0 %v3777_v53  ;;  %7083 = vmatpush3.bf16.msra.mxu0 %v11800_v61  ;;  %v3786_v61 = vmul.f32 %v11797_v60, %v11574_v35 }
 0xc7e   :  { %7085 = vmatprep.subr.bf16.mxu0 %v11801_v46 }
 0xc80   :  { %6290 = vmatmul.mubr.f32.gmra.mrb[134].mxu0 %v3778_v13 }
 0xc81   :  { %6292 = vmatprep.mubr.f32.mxu0 %v3779_v50  ;;  %7087 = vmatpush3.bf16.msra.mxu0 %v11801_v46 }
 0xc82   :  { %7089 = vmatprep.subr.bf16.mxu0 %v11802_v3 }
 0xc84   :  { %6293 = vmatmul.mubr.f32.gmra.mrb[136].mxu0 %v3780_v48 }
 0xc85   :  { %6295 = vmatprep.mubr.f32.mxu0 %v3781_v56  ;;  %7091 = vmatpush3.bf16.msra.mxu0 %v11802_v3 }
 0xc86   :  { %7093 = vmatprep.subr.bf16.mxu0 %v11803_v30 }
 0xc88   :  { %6296 = vmatmul.mubr.f32.gmra.mrb[138].mxu0 %v3782_v51 }
 0xc89   :  { %6298 = vmatprep.mubr.f32.mxu0 %v3783_v28  ;;  %7095 = vmatpush3.bf16.msra.mxu0 %v11803_v30 }
 0xc8a   :  { %7097 = vmatprep.subr.bf16.mxu0 %v11804_v2 }
 0xc8c   :  { %6299 = vmatmul.mubr.f32.gmra.mrb[140].mxu0 %v3784_v32 }
 0xc8d   :  { %6301 = vmatprep.mubr.f32.mxu0 %v3785_v9  ;;  %7099 = vmatpush3.bf16.msra.mxu0 %v11804_v2 }
 0xc8e   :  { %7101 = vmatprep.subr.bf16.mxu0 %v11805_v41 }
 0xc90   :  { %6302 = vmatmul.mubr.f32.gmra.mrb[142].mxu0 %v3786_v61 }
 0xc91   :  { %7103 = vmatpush3.bf16.msra.mxu0 %v11805_v41 }
 0xd07   :  { %v10334_v39 = vpop.f32.mrb[112].mxu0 }
 0xd08   :  { %11806 = vst [vmem:[#allocation36_spill] sm:$0xff] %v10334_v39  ;;  %v10336_v53 = vpop.f32.mrb[113].mxu0 }
 0xd09   :  { %11807 = vst [vmem:[#allocation74_spill] sm:$0xff] %v10336_v53  ;;  %v10426_v53 = vld [vmem:[#allocation11 + $0x68] sm:$0xff] }
 0xd0b   :  { %v10338_v46 = vpop.f32.mrb[114].mxu0 }
 0xd0c   :  { %11808 = vst [vmem:[#allocation77_spill] sm:$0xff] %v10338_v46  ;;  %v10340_v13 = vpop.f32.mrb[115].mxu0 }
 0xd0d   :  { %11809 = vst [vmem:[#allocation78_spill] sm:$0xff] %v10340_v13  ;;  %v10414_v13 = vld [vmem:[#allocation11 + $0x58] sm:$0xff] }
 0xd0f   :  { %v10342_v50 = vpop.f32.mrb[116].mxu0 }
 0xd10   :  { %11810 = vst [vmem:[#allocation79_spill] sm:$0xff] %v10342_v50  ;;  %v10344_v3 = vpop.f32.mrb[117].mxu0 }
 0xd11   :  { %11811 = vst [vmem:[#allocation80_spill] sm:$0xff] %v10344_v3 }
 0xd13   :  { %v10346_v48 = vpop.f32.mrb[118].mxu0 }
 0xd14   :  { %11812 = vst [vmem:[#allocation81_spill] sm:$0xff] %v10346_v48  ;;  %v10348_v56 = vpop.f32.mrb[119].mxu0 }
 0xd15   :  { %11813 = vst [vmem:[#allocation82_spill] sm:$0xff] %v10348_v56 }
 0xd17   :  { %v10350_v60 = vpop.f32.mrb[120].mxu0 }
 0xd18   :  { %11814 = vst [vmem:[#allocation83_spill] sm:$0xff] %v10350_v60  ;;  %v10352_v30 = vpop.f32.mrb[121].mxu0  ;;  %v10419_v60 = vld [vmem:[#allocation11 + $0x50] sm:$0xff] }
 0xd19   :  { %11815 = vst [vmem:[#allocation206_spill] sm:$0xff] %v10352_v30 }
 0xd1b   :  { %v10354_v51 = vpop.f32.mrb[122].mxu0 }
 0xd1c   :  { %11816 = vst [vmem:[#allocation207_spill] sm:$0xff] %v10354_v51  ;;  %v10356_v28 = vpop.f32.mrb[123].mxu0  ;;  %v10407_v51 = vld [vmem:[#allocation11 + $0x40] sm:$0xff] }
 0xd1d   :  { %11817 = vst [vmem:[#allocation208_spill] sm:$0xff] %v10356_v28 }
 0xd1f   :  { %v10358_v2 = vpop.f32.mrb[124].mxu0 }
 0xd20   :  { %11818 = vst [vmem:[#allocation209_spill] sm:$0xff] %v10358_v2  ;;  %v10360_v32 = vpop.f32.mrb[125].mxu0 }
 0xd21   :  { %11819 = vst [vmem:[#allocation210_spill] sm:$0xff] %v10360_v32 }
 0xd23   :  { %v10362_v9 = vpop.f32.mrb[126].mxu0 }
 0xd24   :  { %11820 = vst [vmem:[#allocation211_spill] sm:$0xff] %v10362_v9  ;;  %v10364_v41 = vpop.f32.mrb[127].mxu0 }
 0xd25   :  { %11821 = vst [vmem:[#allocation212_spill] sm:$0xff] %v10364_v41  ;;  %v10395_v41 = vld [vmem:[#allocation11 + $0x30] sm:$0xff] }
 0xd47   :  { %v6282_v61 = vpop.f32.mrb[128].mxu0 }
 0xd48   :  { %v10367_v48 = vadd.f32 %v10163_v44, %v6282_v61  ;;  %v3853_v56 = vpop.f32.mrb[129].mxu0 }
 0xd49   :  { %v10370_v50 = vadd.f32 %v10166_v20, %v3853_v56 }
 0xd4a   :  { %3934 = vmax.xlane.f32.xlu0 %v10367_v48 }
 0xd4b   :  { %v6285_v3 = vpop.f32.mrb[130].mxu0  ;;  %3932 = vmax.xlane.f32.xlu1 %v10370_v50 }
 0xd4c   :  { %v10375_v2 = vadd.f32 %v10169_v8, %v6285_v3  ;;  %v3863_v32 = vpop.f32.mrb[131].mxu0  ;;  %v10390_v3 = vld [vmem:[#allocation11 + $0x38] sm:$0xff] }
 0xd4d   :  { %v10378_v9 = vadd.f32 %v10172_v63, %v3863_v32 }
 0xd4e   :  { %3938 = vmax.xlane.f32.xlu0 %v10375_v2 }
 0xd4f   :  { %v6288_v44 = vpop.f32.mrb[132].mxu0  ;;  %3936 = vmax.xlane.f32.xlu1 %v10378_v9 }
 0xd50   :  { %v10383_v20 = vadd.f32 %v10175_v52, %v6288_v44  ;;  %v3873_v56 = vpop.f32.mrb[133].mxu0  ;;  %v10402_v44 = vld [vmem:[#allocation11 + $0x48] sm:$0xff] }
 0xd51   :  { %v10386_v61 = vadd.f32 %v10178_v11, %v3873_v56 }
 0xd52   :  { %3942 = vmax.xlane.f32.xlu0 %v10383_v20 }
 0xd53   :  { %v6291_v8 = vpop.f32.mrb[134].mxu0  ;;  %3940 = vmax.xlane.f32.xlu1 %v10386_v61 }
 0xd54   :  { %v10393_v63 = vadd.f32 %v10390_v3, %v6291_v8  ;;  %v3883_v32 = vpop.f32.mrb[135].mxu0 }
 0xd55   :  { %v10398_v52 = vadd.f32 %v10395_v41, %v3883_v32 }
 0xd56   :  { %3946 = vmax.xlane.f32.xlu0 %v10393_v63 }
 0xd57   :  { %v6294_v11 = vpop.f32.mrb[136].mxu0  ;;  %3944 = vmax.xlane.f32.xlu1 %v10398_v52 }
 0xd58   :  { %v10405_v56 = vadd.f32 %v10402_v44, %v6294_v11  ;;  %v3893_v46 = vpop.f32.mrb[137].mxu0 }
 0xd59   :  { %v10410_v8 = vadd.f32 %v10407_v51, %v3893_v46 }
 0xd5a   :  { %3950 = vmax.xlane.f32.xlu0 %v10405_v56 }
 0xd5b   :  { %v6297_v32 = vpop.f32.mrb[138].mxu0  ;;  %3948 = vmax.xlane.f32.xlu1 %v10410_v8 }
 0xd5c   :  { %v10417_v28 = vadd.f32 %v10414_v13, %v6297_v32  ;;  %v3903_v39 = vpop.f32.mrb[139].mxu0 }
 0xd5d   :  { %v10422_v11 = vadd.f32 %v10419_v60, %v3903_v39 }
 0xd5e   :  { %3954 = vmax.xlane.f32.xlu0 %v10417_v28 }
 0xd5f   :  { %v6300_v46 = vpop.f32.mrb[140].mxu0  ;;  %3952 = vmax.xlane.f32.xlu1 %v10422_v11 }
 0xd60   :  { %v10429_v30 = vadd.f32 %v10426_v53, %v6300_v46  ;;  %v3913_v49 = vpop.f32.mrb[141].mxu0 }
 0xd61   :  { %v10434_v32 = vadd.f32 %v10431_v14, %v3913_v49  ;;  %v11823_v49 = vld [vmem:[#allocation59_spill] sm:$0xff] }
 0xd62   :  { %3958 = vmax.xlane.f32.xlu0 %v10429_v30 }
 0xd63   :  { %v6303_v39 = vpop.f32.mrb[142].mxu0  ;;  %3956 = vmax.xlane.f32.xlu1 %v10434_v32 }
 0xd64   :  { %v10441_v27 = vadd.f32 %v10438_v15, %v6303_v39  ;;  %v3923_v33 = vpop.f32.mrb[143].mxu0  ;;  %v11827_v39 = vld [vmem:[#allocation92_spill] sm:$0xff] }
 0xd65   :  { %v10446_v46 = vadd.f32 %v10443_v29, %v3923_v33  ;;  %v11830_v33 = vld [vmem:[#allocation42_spill] sm:$0xff] }
 0xd66   :  { %3962 = vmax.xlane.f32.xlu0 %v10441_v27 }
 0xd67   :  { %3960 = vmax.xlane.f32.xlu1 %v10446_v46 }
 0xd6a   :  { %1112 = vadd.xlane.f32.xlu0 %v11823_v49  ;;  %v11834_v49 = vld [vmem:[#allocation85_spill] sm:$0xff] }
 0xd6b   :  { %1096 = vadd.xlane.f32.xlu1 %v11824_v5  ;;  %v11835_v5 = vld [vmem:[#allocation62_spill] sm:$0xff] }
 0xd6e   :  { %1598 = vadd.xlane.f32.xlu0 %v11825_v59  ;;  %v11836_v59 = vld [vmem:[#allocation52_spill] sm:$0xff] }
 0xd6f   :  { %1582 = vadd.xlane.f32.xlu1 %v11826_v22  ;;  %v11837_v22 = vld [vmem:[#allocation111_spill] sm:$0xff] }
 0xd72   :  { %1114 = vadd.xlane.f32.xlu0 %v11827_v39  ;;  %v11838_v39 = vld [vmem:[#allocation20_spill] sm:$0xff] }
 0xd73   :  { %1098 = vadd.xlane.f32.xlu1 %v11828_v42  ;;  %v11839_v42 = vld [vmem:[#allocation159_spill] sm:$0xff] }
 0xd76   :  { %1600 = vadd.xlane.f32.xlu0 %v11829_v36  ;;  %v11840_v36 = vld [vmem:[#allocation151_spill] sm:$0xff] }
 0xd77   :  { %1584 = vadd.xlane.f32.xlu1 %v11830_v33 }
 0xd7a   :  { %2084 = vadd.xlane.f32.xlu0 %v11831_v19 }
 0xd7b   :  { %2068 = vadd.xlane.f32.xlu1 %v11832_v26 }
 0xd7e   :  { %2086 = vadd.xlane.f32.xlu0 %v11833_v38 }
 0xd7f   :  { %2070 = vadd.xlane.f32.xlu1 %v11834_v49 }
 0xd82   :  { %1116 = vadd.xlane.f32.xlu0 %v11835_v5 }
 0xd83   :  { %1100 = vadd.xlane.f32.xlu1 %v11836_v59 }
 0xd86   :  { %1602 = vadd.xlane.f32.xlu0 %v11837_v22 }
 0xd87   :  { %1586 = vadd.xlane.f32.xlu1 %v11838_v39 }
 0xd8a   :  { %2570 = vadd.xlane.f32.xlu0 %v11839_v42 }
 0xd8b   :  { %2554 = vadd.xlane.f32.xlu1 %v11840_v36 }
 0xdd7   :  { %v3935_v33 = vpop.xlane.xlu0 %3934 }
 0xdd8   :  { %v3965_v19 = vsub.f32 %v10367_v48, %v3935_v33  ;;  %v3933_v26 = vpop.xlane.xlu1 %3932 }
 0xdd9   :  { %v3964_v38 = vsub.f32 %v10370_v50, %v3933_v26 }
 0xdda   :  { %v3982_v47 = vmul.f32 1.442695, %v3965_v19 }
 0xddb   :  { %v3980_v49 = vmul.f32 1.442695, %v3964_v38  ;;  %v3939_v23 = vpop.xlane.xlu0 %3938 }
 0xddc   :  { %v3967_v5 = vsub.f32 %v10375_v2, %v3939_v23  ;;  %v3937_v59 = vpop.xlane.xlu1 %3936 }
 0xddd   :  { %7359 = vpow2.f32 %v3980_v49  ;;  %v3966_v22 = vsub.f32 %v10378_v9, %v3937_v59 }
 0xdde   :  { %7361 = vpow2.f32 %v3982_v47  ;;  %v3986_v39 = vmul.f32 1.442695, %v3967_v5 }
 0xddf   :  { %v3984_v42 = vmul.f32 1.442695, %v3966_v22  ;;  %v3943_v1 = vpop.xlane.xlu0 %3942 }
 0xde0   :  { %v3969_v36 = vsub.f32 %v10383_v20, %v3943_v1  ;;  %v3941_v29 = vpop.xlane.xlu1 %3940 }
 0xde1   :  { %7363 = vpow2.f32 %v3984_v42  ;;  %v3968_v48 = vsub.f32 %v10386_v61, %v3941_v29 }
 0xde2   :  { %7365 = vpow2.f32 %v3986_v39  ;;  %v3990_v50 = vmul.f32 1.442695, %v3969_v36 }
 0xde3   :  { %v3988_v33 = vmul.f32 1.442695, %v3968_v48  ;;  %v3947_v19 = vpop.xlane.xlu0 %3946 }
 0xde4   :  { %v3971_v23 = vsub.f32 %v10393_v63, %v3947_v19  ;;  %v3945_v2 = vpop.xlane.xlu1 %3944 }
 0xde5   :  { %7367 = vpow2.f32 %v3988_v33  ;;  %v3970_v9 = vsub.f32 %v10398_v52, %v3945_v2 }
 0xde6   :  { %7369 = vpow2.f32 %v3990_v50  ;;  %v3994_v47 = vmul.f32 1.442695, %v3971_v23 }
 0xde7   :  { %v10476_v26 = vpop.eup %7359  ;;  %v3992_v38 = vmul.f32 1.442695, %v3970_v9  ;;  %v3951_v1 = vpop.xlane.xlu0 %3950 }
 0xde8   :  { %v10478_v20 = vpop.eup %7361  ;;  %v3973_v29 = vsub.f32 %v10405_v56, %v3951_v1  ;;  %6336 = vmatprep.mubr.f32.mxu1 %v10476_v26  ;;  %v3949_v61 = vpop.xlane.xlu1 %3948 }
 0xde9   :  { %7371 = vpow2.f32 %v3992_v38  ;;  %v3972_v63 = vsub.f32 %v10410_v8, %v3949_v61  ;;  %6337 = vmatmul.mubr.f32.vlgmr.msra.gmra.mrb[112].mxu1 %v10478_v20 }
 0xdea   :  { %7373 = vpow2.f32 %v3994_v47  ;;  %v3998_v52 = vmul.f32 1.442695, %v3973_v29  ;;  %7043 = vmatpush3.bf16.xpose.msra.mxu1 %v11460_v21 }
 0xdeb   :  { %v10485_v49 = vpop.eup %7363  ;;  %v3996_v5 = vmul.f32 1.442695, %v3972_v63  ;;  %7045 = vmatprep.subr.bf16.mxu1 %v11549_v4  ;;  %v3955_v59 = vpop.xlane.xlu0 %3954 }
 0xdec   :  { %v10488_v22 = vpop.eup %7365  ;;  %v3975_v56 = vsub.f32 %v10417_v28, %v3955_v59  ;;  %6339 = vmatprep.mubr.f32.mxu1 %v10485_v49  ;;  %v3953_v39 = vpop.xlane.xlu1 %3952 }
 0xded   :  { %7375 = vpow2.f32 %v3996_v5  ;;  %v3974_v8 = vsub.f32 %v10422_v11, %v3953_v39  ;;  %6340 = vmatmul.mubr.f32.gmra.mrb[114].mxu1 %v10488_v22 }
 0xdee   :  { %7377 = vpow2.f32 %v3998_v52  ;;  %v4002_v21 = vmul.f32 1.442695, %v3975_v56 }
 0xdef   :  { %v10494_v42 = vpop.eup %7367  ;;  %v4000_v36 = vmul.f32 1.442695, %v3974_v8  ;;  %v3959_v48 = vpop.xlane.xlu0 %3958 }
 0xdf0   :  { %v10496_v50 = vpop.eup %7369  ;;  %v3977_v33 = vsub.f32 %v10429_v30, %v3959_v48  ;;  %6342 = vmatprep.mubr.f32.mxu1 %v10494_v42  ;;  %v3957_v28 = vpop.xlane.xlu1 %3956 }
 0xdf1   :  { %7379 = vpow2.f32 %v4000_v36  ;;  %v3976_v19 = vsub.f32 %v10434_v32, %v3957_v28  ;;  %6343 = vmatmul.mubr.f32.gmra.mrb[116].mxu1 %v10496_v50 }
 0xdf2   :  { %7381 = vpow2.f32 %v4002_v21  ;;  %v4006_v11 = vmul.f32 1.442695, %v3977_v33  ;;  %7047 = vmatpush3.bf16.xpose.msra.mxu1 %v11549_v4 }
 0xdf3   :  { %v10503_v23 = vpop.eup %7371  ;;  %v4004_v2 = vmul.f32 1.442695, %v3976_v19  ;;  %7049 = vmatprep.subr.bf16.mxu1 %v11552_v25  ;;  %v3963_v9 = vpop.xlane.xlu0 %3962  ;;  %v11844_v19 = vld [vmem:[#allocation38_spill] sm:$0xff] }
 0xdf4   :  { %11841 = vst [vmem:[#allocation59_spill] sm:$0xff] %v10503_v23  ;;  %v10506_v47 = vpop.eup %7373  ;;  %v3979_v30 = vsub.f32 %v10441_v27, %v3963_v9  ;;  %6345 = vmatprep.mubr.f32.mxu1 %v10503_v23  ;;  %v3961_v38 = vpop.xlane.xlu1 %3960 }
 0xdf5   :  { %11842 = vst [vmem:[#allocation87_spill] sm:$0xff] %v10506_v47  ;;  %7383 = vpow2.f32 %v4004_v2  ;;  %v3978_v32 = vsub.f32 %v10446_v46, %v3961_v38  ;;  %6346 = vmatmul.mubr.f32.gmra.mrb[118].mxu1 %v10506_v47 }
 0xdf6   :  { %7385 = vpow2.f32 %v4006_v11  ;;  %v4010_v4 = vmul.f32 1.442695, %v3979_v30  ;;  %v4257_v11 = vmul.f32 %v11844_v19, %v8638_v16  ;;  %v11845_v30 = vld [vmem:[#allocation100_spill] sm:$0xff] }
 0xdf7   :  { %v10512_v1 = vpop.eup %7375  ;;  %v4008_v29 = vmul.f32 1.442695, %v3978_v32  ;;  %v1113_v61 = vpop.xlane.xlu0 %1112  ;;  %v11846_v32 = vld [vmem:[#allocation117_spill] sm:$0xff] }
 0xdf8   :  { %v10514_v63 = vpop.eup %7377  ;;  %7387 = vpow2.f32 %v4010_v4  ;;  %6348 = vmatprep.mubr.f32.mxu1 %v10512_v1  ;;  %v1097_v27 = vpop.xlane.xlu1 %1096 }
 0xdf9   :  { %7389 = vpow2.f32 %v4008_v29  ;;  %6349 = vmatmul.mubr.f32.gmra.mrb[120].mxu1 %v10514_v63 }
 0xdfa   :  { %7391 = vrcp.f32 %v1113_v61  ;;  %7051 = vmatpush3.bf16.xpose.msra.mxu1 %v11552_v25  ;;  %v11847_v61 = vld [vmem:[#allocation66_spill] sm:$0xff] }
 0xdfb   :  { %v10519_v46 = vpop.eup %7379  ;;  %7393 = vrcp.f32 %v1097_v27  ;;  %7053 = vmatprep.subr.bf16.mxu1 %v11555_v0  ;;  %v1599_v52 = vpop.xlane.xlu0 %1598 }
 0xdfc   :  { %v10522_v5 = vpop.eup %7381  ;;  %7395 = vrcp.f32 %v1599_v52  ;;  %6351 = vmatprep.mubr.f32.mxu1 %v10519_v46  ;;  %v1583_v59 = vpop.xlane.xlu1 %1582  ;;  %v11848_v52 = vld [vmem:[#allocation50_spill] sm:$0xff] }
 0xdfd   :  { %7397 = vrcp.f32 %v1583_v59  ;;  %6352 = vmatmul.mubr.f32.gmra.mrb[122].mxu1 %v10522_v5 }
 0xdff   :  { %v10526_v56 = vpop.eup %7383  ;;  %v1115_v39 = vpop.xlane.xlu0 %1114 }
 0xe00   :  { %v10528_v8 = vpop.eup %7385  ;;  %6354 = vmatprep.mubr.f32.mxu1 %v10526_v56  ;;  %v1099_v25 = vpop.xlane.xlu1 %1098  ;;  %7399 = vrcp.f32 %v1115_v39 }
 0xe01   :  { %6355 = vmatmul.mubr.f32.gmra.mrb[124].mxu1 %v10528_v8  ;;  %7401 = vrcp.f32 %v1099_v25 }
 0xe02   :  { %v10532_v21 = vpop.eup %7387  ;;  %7055 = vmatpush3.bf16.xpose.msra.mxu1 %v11555_v0 }
 0xe03   :  { %11843 = vst [vmem:[#allocation109_spill] sm:$0xff] %v10532_v21  ;;  %v10535_v36 = vpop.eup %7389  ;;  %7057 = vmatprep.subr.bf16.mxu1 %v11558_v55  ;;  %v1601_v48 = vpop.xlane.xlu0 %1600 }
 0xe04   :  { %v7392_v33 = vpop.eup %7391  ;;  %7403 = vrcp.f32 %v1601_v48  ;;  %6357 = vmatprep.mubr.f32.mxu1 %v10535_v36  ;;  %v1585_v28 = vpop.xlane.xlu1 %1584 }
 0xe05   :  { %v7394_v2 = vpop.eup %7393  ;;  %7405 = vrcp.f32 %v1585_v28  ;;  %6358 = vmatmul.mubr.f32.gmra.mrb[126].mxu1 %v10532_v21  ;;  %v1313_v38 = vmul.f32 %v7392_v33, %v11845_v30 }
 0xe06   :  { %v7396_v9 = vpop.eup %7395  ;;  %6392 = vmatprep.mubr.f32.mxu1 %v4257_v11  ;;  %v1305_v27 = vmul.f32 %v7394_v2, %v11847_v61  ;;  %v11849_v2 = vld [vmem:[#allocation99_spill] sm:$0xff] }
 0xe07   :  { %v7398_v0 = vpop.eup %7397  ;;  %v1799_v4 = vmul.f32 %v7396_v9, %v11846_v32  ;;  %v2085_v29 = vpop.xlane.xlu0 %2084 }
 0xe08   :  { %v1791_v59 = vmul.f32 %v7398_v0, %v11848_v52  ;;  %7407 = vrcp.f32 %v2085_v29  ;;  %v2069_v39 = vpop.xlane.xlu1 %2068  ;;  %v11850_v0 = vld [vmem:[#allocation70_spill] sm:$0xff]  ;;  %v11851_v52 = vld [vmem:[#allocation48_spill] sm:$0xff] }
 0xe09   :  { %7409 = vrcp.f32 %v2069_v39  ;;  %v1815_v16 = vadd.f32 %v1799_v4, %v1313_v38  ;;  %v11852_v4 = vld [vmem:[#allocation31_spill] sm:$0xff] }
 0xe0a   :  { %7059 = vmatpush3.bf16.xpose.msra.mxu1 %v11558_v55  ;;  %v1807_v25 = vadd.f32 %v1791_v59, %v1305_v27  ;;  %v7400_v28 = vpop.eup %7399 }
 0xe0b   :  { %7061 = vmatprep.subr.bf16.mxu1 %v11561_v34  ;;  %v2087_v48 = vpop.xlane.xlu0 %2086  ;;  %v7402_v11 = vpop.eup %7401  ;;  %v1314_v32 = vmul.f32 %v7400_v28, %v11849_v2 }
 0xe0c   :  { %7411 = vrcp.f32 %v2087_v48  ;;  %v2071_v33 = vpop.xlane.xlu1 %2070  ;;  %v1306_v38 = vmul.f32 %v7402_v11, %v11851_v52 }
 0xe0d   :  { %7413 = vrcp.f32 %v2071_v33  ;;  %v11853_v33 = vld [vmem:[#allocation137_spill] sm:$0xff] }
 0xe0e   :  { %v7404_v9 = vpop.eup %7403 }
 0xe0f   :  { %v7406_v30 = vpop.eup %7405  ;;  %v1800_v29 = vmul.f32 %v7404_v9, %v11850_v0  ;;  %v1117_v61 = vpop.xlane.xlu0 %1116  ;;  %v11854_v9 = vld [vmem:[#allocation58_spill] sm:$0xff] }
 0xe10   :  { %v1792_v55 = vmul.f32 %v7406_v30, %v11852_v4  ;;  %v1101_v27 = vpop.xlane.xlu1 %1100  ;;  %7415 = vrcp.f32 %v1117_v61  ;;  %v11855_v61 = vld [vmem:[#allocation72_spill] sm:$0xff] }
 0xe11   :  { %v1816_v59 = vadd.f32 %v1800_v29, %v1314_v32  ;;  %7417 = vrcp.f32 %v1101_v27 }
 0xe12   :  { %v7408_v39 = vpop.eup %7407  ;;  %7063 = vmatpush3.bf16.xpose.msra.mxu1 %v11561_v34  ;;  %v1808_v48 = vadd.f32 %v1792_v55, %v1306_v38  ;;  %v11856_v38 = vld [vmem:[#allocation55_spill] sm:$0xff] }
 0xe13   :  { %v7410_v47 = vpop.eup %7409  ;;  %v2285_v21 = vmul.f32 %v7408_v39, %v11853_v33  ;;  %7065 = vmatprep.subr.bf16.mxu1 %v11564_v57  ;;  %v1603_v28 = vpop.xlane.xlu0 %1602  ;;  %v11857_v33 = vld [vmem:[#allocation102_spill] sm:$0xff] }
 0xe14   :  { %v2277_v2 = vmul.f32 %v7410_v47, %v11854_v9  ;;  %7419 = vrcp.f32 %v1603_v28  ;;  %v1587_v11 = vpop.xlane.xlu1 %1586  ;;  %v11858_v9 = vld [vmem:[#allocation119_spill] sm:$0xff] }
 0xe15   :  { %7421 = vrcp.f32 %v1587_v11  ;;  %v2301_v30 = vadd.f32 %v2285_v21, %v1815_v16  ;;  %v11859_v11 = vld [vmem:[#allocation21_spill] sm:$0xff] }
 0xe16   :  { %v7412_v0 = vpop.eup %7411  ;;  %v2293_v32 = vadd.f32 %v2277_v2, %v1807_v25 }
 0xe17   :  { %v7414_v29 = vpop.eup %7413  ;;  %v2286_v52 = vmul.f32 %v7412_v0, %v11855_v61  ;;  %v2571_v34 = vpop.xlane.xlu0 %2570 }
 0xe18   :  { %v2278_v4 = vmul.f32 %v7414_v29, %v11856_v38  ;;  %7423 = vrcp.f32 %v2571_v34  ;;  %v2555_v55 = vpop.xlane.xlu1 %2554  ;;  %v11860_v29 = vld [vmem:[#allocation46_spill] sm:$0xff]  ;;  %v11861_v34 = vld [vmem:[#allocation167_spill] sm:$0xff] }
 0xe19   :  { %7425 = vrcp.f32 %v2555_v55  ;;  %v10558_v27 = vadd.f32 %v2286_v52, %v1816_v59 }
 0xe1a   :  { %7067 = vmatpush3.bf16.xpose.msra.mxu1 %v11564_v57  ;;  %v10561_v47 = vadd.f32 %v2278_v4, %v1808_v48  ;;  %v7416_v21 = vpop.eup %7415  ;;  %v11862_v4 = vld [vmem:[#allocation57_spill] sm:$0xff] }
 0xe1b   :  { %7069 = vmatprep.subr.bf16.mxu1 %v8634_v6  ;;  %v7418_v16 = vpop.eup %7417  ;;  %v1315_v28 = vmul.f32 %v7416_v21, %v11857_v33 }
 0xe1c   :  { %v1307_v0 = vmul.f32 %v7418_v16, %v11859_v11  ;;  %v4258_v16 = vmul.f32 %v11844_v19, %v8650_v62  ;;  %v4264_v62 = vmul.f32 %v11844_v19, %v8705_v45  ;;  %v4270_v45 = vmul.f32 %v11844_v19, %v11571_v10 }
 0xe1e   :  { %v7420_v25 = vpop.eup %7419 }
 0xe1f   :  { %v7422_v39 = vpop.eup %7421  ;;  %v1801_v2 = vmul.f32 %v7420_v25, %v11858_v9  ;;  %v4259_v25 = vmul.f32 %v11844_v19, %v8656_v18  ;;  %v4265_v18 = vmul.f32 %v11844_v19, %v8713_v12  ;;  %v4271_v12 = vmul.f32 %v11844_v19, %v11572_v43 }
 0xe20   :  { %v1793_v61 = vmul.f32 %v7422_v39, %v11860_v29  ;;  %v4261_v39 = vmul.f32 %v11844_v19, %v8675_v24  ;;  %v4267_v24 = vmul.f32 %v11844_v19, %v8732_v54 }
 0xe21   :  { %v10568_v59 = vadd.f32 %v1801_v2, %v1315_v28 }
 0xe22   :  { %v7424_v52 = vpop.eup %7423  ;;  %7071 = vmatpush3.bf16.xpose.msra.mxu1 %v8634_v6  ;;  %v10571_v57 = vadd.f32 %v1793_v61, %v1307_v0  ;;  %v4260_v6 = vmul.f32 %v11844_v19, %v8667_v17  ;;  %v4266_v17 = vmul.f32 %v11844_v19, %v8724_v58  ;;  %v4272_v58 = vmul.f32 %v11844_v19, %v11574_v35 }
 0xe23   :  { %v7426_v48 = vpop.eup %7425  ;;  %v2771_v38 = vmul.f32 %v7424_v52, %v11861_v34  ;;  %v7712_v34 = vld [vmem:[#allocation11 + $0x8] sm:$0xff] }
 0xe24   :  { %v2763_v55 = vmul.f32 %v7426_v48, %v11862_v4 }
 0xe25   :  { %v10575_v23 = vadd.f32 %v2771_v38, %v2301_v30  ;;  %v4262_v30 = vmul.f32 %v11844_v19, %v8686_v7  ;;  %v4268_v7 = vmul.f32 %v11844_v19, %v8741_v31 }
 0xe26   :  { %v10577_v21 = vadd.f32 %v2763_v55, %v2293_v32  ;;  %v4263_v32 = vmul.f32 %v11844_v19, %v8694_v37  ;;  %v4269_v37 = vmul.f32 %v11844_v19, %v8747_v40  ;;  %v7713_v55 = vld [vmem:[#allocation11] sm:$0xff] }
 0xe29   :  { %6393 = vmatmul.mubr.f32.vlgmr.msra.gmra.mrb[128].mxu1 %v4258_v16 }
 0xe2a   :  { %6395 = vmatprep.mubr.f32.mxu1 %v4259_v25 }
 0xe2d   :  { %6396 = vmatmul.mubr.f32.gmra.mrb[130].mxu1 %v4260_v6  ;;  %v7714_v6 = vld [vmem:[#allocation11 + $0x18] sm:$0xff] }
 0xe2e   :  { %6398 = vmatprep.mubr.f32.mxu1 %v4261_v39 }
 0xe31   :  { %6399 = vmatmul.mubr.f32.gmra.mrb[132].mxu1 %v4262_v30 }
 0xe32   :  { %6401 = vmatprep.mubr.f32.mxu1 %v4263_v32  ;;  %v7715_v32 = vld [vmem:[#allocation11 + $0x10] sm:$0xff] }
 0xe35   :  { %6402 = vmatmul.mubr.f32.gmra.mrb[134].mxu1 %v4264_v62 }
 0xe36   :  { %6404 = vmatprep.mubr.f32.mxu1 %v4265_v18 }
 0xe39   :  { %6405 = vmatmul.mubr.f32.gmra.mrb[136].mxu1 %v4266_v17  ;;  %v7716_v17 = vld [vmem:[#allocation11 + $0x28] sm:$0xff] }
 0xe3a   :  { %6407 = vmatprep.mubr.f32.mxu1 %v4267_v24 }
 0xe3d   :  { %6408 = vmatmul.mubr.f32.gmra.mrb[138].mxu1 %v4268_v7 }
 0xe3e   :  { %6410 = vmatprep.mubr.f32.mxu1 %v4269_v37  ;;  %v7717_v37 = vld [vmem:[#allocation11 + $0x20] sm:$0xff] }
 0xe41   :  { %6411 = vmatmul.mubr.f32.gmra.mrb[140].mxu1 %v4270_v45 }
 0xe42   :  { %6413 = vmatprep.mubr.f32.mxu1 %v4271_v12 }
 0xe45   :  { %6414 = vmatmul.mubr.f32.gmra.mrb[142].mxu1 %v4272_v58 }
 0xebc   :  { %v10609_v54 = vpop.f32.mrb[112].mxu1 }
 0xebd   :  { %v10611_v31 = vpop.f32.mrb[113].mxu1 }
 0xec0   :  { %v10613_v33 = vpop.f32.mrb[114].mxu1 }
 0xec1   :  { %v10615_v40 = vpop.f32.mrb[115].mxu1 }
 0xec4   :  { %v10617_v28 = vpop.f32.mrb[116].mxu1 }
 0xec5   :  { %v10619_v10 = vpop.f32.mrb[117].mxu1 }
 0xec8   :  { %v10621_v9 = vpop.f32.mrb[118].mxu1 }
 0xec9   :  { %v10623_v43 = vpop.f32.mrb[119].mxu1 }
 0xecc   :  { %v10625_v2 = vpop.f32.mrb[120].mxu1 }
 0xecd   :  { %v10627_v35 = vpop.f32.mrb[121].mxu1 }
 0xed0   :  { %v10629_v19 = vpop.f32.mrb[122].mxu1 }
 0xed1   :  { %v10631_v11 = vpop.f32.mrb[123].mxu1 }
 0xed4   :  { %v10633_v0 = vpop.f32.mrb[124].mxu1 }
 0xed5   :  { %v10635_v29 = vpop.f32.mrb[125].mxu1 }
 0xed8   :  { %v10637_v61 = vpop.f32.mrb[126].mxu1 }
 0xed9   :  { %v10639_v52 = vpop.f32.mrb[127].mxu1 }
 0xefc   :  { %v6394_v48 = vpop.f32.mrb[128].mxu1 }
 0xefd   :  { %v10641_v38 = vadd.f32 %v7712_v34, %v6394_v48  ;;  %v4339_v4 = vpop.f32.mrb[129].mxu1 }
 0xefe   :  { %v10643_v16 = vadd.f32 %v7713_v55, %v4339_v4 }
 0xeff   :  { %4420 = vmax.xlane.f32.xlu0 %v10641_v38 }
 0xf00   :  { %v6397_v25 = vpop.f32.mrb[130].mxu1  ;;  %4418 = vmax.xlane.f32.xlu1 %v10643_v16 }
 0xf01   :  { %v10647_v39 = vadd.f32 %v7714_v6, %v6397_v25  ;;  %v4349_v30 = vpop.f32.mrb[131].mxu1 }
 0xf02   :  { %v10649_v62 = vadd.f32 %v7715_v32, %v4349_v30 }
 0xf03   :  { %4424 = vmax.xlane.f32.xlu0 %v10647_v39 }
 0xf04   :  { %v6400_v18 = vpop.f32.mrb[132].mxu1  ;;  %4422 = vmax.xlane.f32.xlu1 %v10649_v62 }
 0xf05   :  { %v10653_v24 = vadd.f32 %v7716_v17, %v6400_v18  ;;  %v4359_v7 = vpop.f32.mrb[133].mxu1 }
 0xf06   :  { %v10655_v45 = vadd.f32 %v7717_v37, %v4359_v7  ;;  %v11863_v37 = vld [vmem:[#allocation213_spill] sm:$0xff] }
 0xf07   :  { %4428 = vmax.xlane.f32.xlu0 %v10653_v24 }
 0xf08   :  { %v6403_v12 = vpop.f32.mrb[134].mxu1  ;;  %4426 = vmax.xlane.f32.xlu1 %v10655_v45 }
 0xf09   :  { %v10660_v58 = vadd.f32 %v10390_v3, %v6403_v12  ;;  %v4369_v48 = vpop.f32.mrb[135].mxu1 }
 0xf0a   :  { %v10663_v34 = vadd.f32 %v10395_v41, %v4369_v48  ;;  %v11866_v48 = vld [vmem:[#allocation112_spill] sm:$0xff] }
 0xf0b   :  { %4432 = vmax.xlane.f32.xlu0 %v10660_v58 }
 0xf0c   :  { %v6406_v4 = vpop.f32.mrb[136].mxu1  ;;  %4430 = vmax.xlane.f32.xlu1 %v10663_v34 }
 0xf0d   :  { %v10668_v55 = vadd.f32 %v10402_v44, %v6406_v4  ;;  %v4379_v25 = vpop.f32.mrb[137].mxu1  ;;  %v11867_v4 = vld [vmem:[#allocation24_spill] sm:$0xff] }
 0xf0e   :  { %v10671_v6 = vadd.f32 %v10407_v51, %v4379_v25  ;;  %v11868_v25 = vld [vmem:[#allocation160_spill] sm:$0xff] }
 0xf0f   :  { %4436 = vmax.xlane.f32.xlu0 %v10668_v55 }
 0xf10   :  { %v6409_v3 = vpop.f32.mrb[138].mxu1  ;;  %4434 = vmax.xlane.f32.xlu1 %v10671_v6 }
 0xf11   :  { %v10676_v41 = vadd.f32 %v10414_v13, %v6409_v3  ;;  %v4389_v30 = vpop.f32.mrb[139].mxu1  ;;  %v11870_v3 = vld [vmem:[#allocation131_spill] sm:$0xff] }
 0xf12   :  { %v10679_v32 = vadd.f32 %v10419_v60, %v4389_v30  ;;  %v11871_v30 = vld [vmem:[#allocation86_spill] sm:$0xff] }
 0xf13   :  { %4440 = vmax.xlane.f32.xlu0 %v10676_v41 }
 0xf14   :  { %v6412_v44 = vpop.f32.mrb[140].mxu1  ;;  %4438 = vmax.xlane.f32.xlu1 %v10679_v32 }
 0xf15   :  { %v10684_v51 = vadd.f32 %v10426_v53, %v6412_v44  ;;  %v4399_v18 = vpop.f32.mrb[141].mxu1  ;;  %v11864_v53 = vld [vmem:[#allocation93_spill] sm:$0xff]  ;;  %v11872_v44 = vld [vmem:[#allocation178_spill] sm:$0xff] }
 0xf16   :  { %v10687_v17 = vadd.f32 %v10431_v14, %v4399_v18  ;;  %v11865_v14 = vld [vmem:[#allocation89_spill] sm:$0xff]  ;;  %v11873_v18 = vld [vmem:[#allocation144_spill] sm:$0xff] }
 0xf17   :  { %4444 = vmax.xlane.f32.xlu0 %v10684_v51 }
 0xf18   :  { %v6415_v13 = vpop.f32.mrb[142].mxu1  ;;  %4442 = vmax.xlane.f32.xlu1 %v10687_v17 }
 0xf19   :  { %v10692_v60 = vadd.f32 %v10438_v15, %v6415_v13  ;;  %v4409_v7 = vpop.f32.mrb[143].mxu1  ;;  %v11869_v15 = vld [vmem:[#allocation152_spill] sm:$0xff] }
 0xf1a   :  { %v10695_v12 = vadd.f32 %v11863_v37, %v4409_v7  ;;  %v11874_v13 = vld [vmem:[#allocation132_spill] sm:$0xff]  ;;  %v11876_v37 = vld [vmem:[#allocation179_spill] sm:$0xff] }
 0xf1b   :  { %4448 = vmax.xlane.f32.xlu0 %v10692_v60  ;;  %v11875_v7 = vld [vmem:[#allocation124_spill] sm:$0xff] }
 0xf1c   :  { %4446 = vmax.xlane.f32.xlu1 %v10695_v12 }
 0xf1f   :  { %1118 = vadd.xlane.f32.xlu0 %v11864_v53  ;;  %v11877_v53 = vld [vmem:[#allocation145_spill] sm:$0xff] }
 0xf20   :  { %1102 = vadd.xlane.f32.xlu1 %v11865_v14  ;;  %v11878_v14 = vld [vmem:[#allocation65_spill] sm:$0xff] }
 0xf23   :  { %1604 = vadd.xlane.f32.xlu0 %v11866_v48  ;;  %v11879_v48 = vld [vmem:[#allocation53_spill] sm:$0xff] }
 0xf24   :  { %1588 = vadd.xlane.f32.xlu1 %v11867_v4  ;;  %v11880_v4 = vld [vmem:[#allocation113_spill] sm:$0xff] }
 0xf27   :  { %2572 = vadd.xlane.f32.xlu0 %v11868_v25  ;;  %v11881_v25 = vld [vmem:[#allocation34_spill] sm:$0xff] }
 0xf28   :  { %2556 = vadd.xlane.f32.xlu1 %v11869_v15  ;;  %v11882_v15 = vld [vmem:[#allocation161_spill] sm:$0xff] }
 0xf2b   :  { %2088 = vadd.xlane.f32.xlu0 %v11870_v3  ;;  %v11883_v3 = vld [vmem:[#allocation153_spill] sm:$0xff] }
 0xf2c   :  { %2072 = vadd.xlane.f32.xlu1 %v11871_v30  ;;  %v11884_v30 = vld [vmem:[#allocation198_spill] sm:$0xff] }
 0xf2f   :  { %3056 = vadd.xlane.f32.xlu0 %v11872_v44  ;;  %v11885_v44 = vld [vmem:[#allocation148_spill] sm:$0xff] }
 0xf30   :  { %3040 = vadd.xlane.f32.xlu1 %v11873_v18  ;;  %v11886_v18 = vld [vmem:[#allocation94_spill] sm:$0xff] }
 0xf33   :  { %2090 = vadd.xlane.f32.xlu0 %v11874_v13  ;;  %v11887_v13 = vld [vmem:[#allocation90_spill] sm:$0xff] }
 0xf34   :  { %2074 = vadd.xlane.f32.xlu1 %v11875_v7  ;;  %v11888_v7 = vld [vmem:[#allocation114_spill] sm:$0xff] }
 0xf37   :  { %3058 = vadd.xlane.f32.xlu0 %v11876_v37  ;;  %v11889_v37 = vld [vmem:[#allocation37_spill] sm:$0xff] }
 0xf38   :  { %3042 = vadd.xlane.f32.xlu1 %v11877_v53  ;;  %v11890_v53 = vld [vmem:[#allocation162_spill] sm:$0xff] }
 0xf3b   :  { %1120 = vadd.xlane.f32.xlu0 %v11878_v14  ;;  %v11891_v14 = vld [vmem:[#allocation154_spill] sm:$0xff] }
 0xf3c   :  { %1104 = vadd.xlane.f32.xlu1 %v11879_v48  ;;  %v11892_v48 = vld [vmem:[#allocation199_spill] sm:$0xff] }
 0xf3f   :  { %1606 = vadd.xlane.f32.xlu0 %v11880_v4  ;;  %v11893_v4 = vld [vmem:[#allocation149_spill] sm:$0xff] }
 0xf40   :  { %1590 = vadd.xlane.f32.xlu1 %v11881_v25  ;;  %v11894_v25 = vld [vmem:[#allocation133_spill] sm:$0xff] }
 0xf43   :  { %2574 = vadd.xlane.f32.xlu0 %v11882_v15  ;;  %v11895_v15 = vld [vmem:[#allocation125_spill] sm:$0xff] }
 0xf44   :  { %2558 = vadd.xlane.f32.xlu1 %v11883_v3  ;;  %v11896_v3 = vld [vmem:[#allocation180_spill] sm:$0xff] }
 0xf47   :  { %3542 = vadd.xlane.f32.xlu0 %v11884_v30  ;;  %v11897_v30 = vld [vmem:[#allocation146_spill] sm:$0xff] }
 0xf48   :  { %3526 = vadd.xlane.f32.xlu1 %v11885_v44  ;;  %v11898_v44 = vld [vmem:[#allocation134_spill] sm:$0xff] }
 0xf4b   :  { %1122 = vadd.xlane.f32.xlu0 %v11886_v18  ;;  %v11899_v18 = vld [vmem:[#allocation126_spill] sm:$0xff] }
 0xf4c   :  { %1106 = vadd.xlane.f32.xlu1 %v11887_v13  ;;  %v11900_v13 = vld [vmem:[#allocation181_spill] sm:$0xff] }
 0xf4f   :  { %1608 = vadd.xlane.f32.xlu0 %v11888_v7  ;;  %v11901_v7 = vld [vmem:[#allocation147_spill] sm:$0xff] }
 0xf50   :  { %1592 = vadd.xlane.f32.xlu1 %v11889_v37  ;;  %v11902_v37 = vld [vmem:[#allocation95_spill] sm:$0xff] }
 0xf53   :  { %2576 = vadd.xlane.f32.xlu0 %v11890_v53  ;;  %v11903_v53 = vld [vmem:[#allocation56_spill] sm:$0xff] }
 0xf54   :  { %2560 = vadd.xlane.f32.xlu1 %v11891_v14  ;;  %v11904_v14 = vld [vmem:[#allocation115_spill] sm:$0xff] }
 0xf57   :  { %3544 = vadd.xlane.f32.xlu0 %v11892_v48  ;;  %v11907_v48 = vld [vmem:[#allocation155_spill] sm:$0xff] }
 0xf58   :  { %3528 = vadd.xlane.f32.xlu1 %v11893_v4  ;;  %v11908_v4 = vld [vmem:[#allocation200_spill] sm:$0xff] }
 0xf5b   :  { %2092 = vadd.xlane.f32.xlu0 %v11894_v25  ;;  %v11909_v25 = vld [vmem:[#allocation150_spill] sm:$0xff] }
 0xf5c   :  { %2076 = vadd.xlane.f32.xlu1 %v11895_v15  ;;  %v11910_v15 = vld [vmem:[#allocation96_spill] sm:$0xff] }
 0xf5f   :  { %3060 = vadd.xlane.f32.xlu0 %v11896_v3  ;;  %v11913_v3 = vld [vmem:[#allocation108_spill] sm:$0xff] }
 0xf60   :  { %3044 = vadd.xlane.f32.xlu1 %v11897_v30  ;;  %v11914_v30 = vld [vmem:[#allocation164_spill] sm:$0xff] }
 0xf63   :  { %4028 = vadd.xlane.f32.xlu0 %v10512_v1  ;;  %v11905_v1 = vld [vmem:[#allocation107_spill] sm:$0xff] }
 0xf64   :  { %4012 = vadd.xlane.f32.xlu1 %v10476_v26  ;;  %v11906_v26 = vld [vmem:[#allocation163_spill] sm:$0xff] }
 0xf67   :  { %2094 = vadd.xlane.f32.xlu0 %v11898_v44 }
 0xf68   :  { %2078 = vadd.xlane.f32.xlu1 %v11899_v18  ;;  %v11915_v18 = vld [vmem:[#allocation156_spill] sm:$0xff] }
 0xf6b   :  { %3062 = vadd.xlane.f32.xlu0 %v11900_v13 }
 0xf6c   :  { %3046 = vadd.xlane.f32.xlu1 %v11901_v7 }
 0xf6f   :  { %4030 = vadd.xlane.f32.xlu0 %v10514_v63  ;;  %v11911_v63 = vld [vmem:[#allocation91_spill] sm:$0xff] }
 0xf70   :  { %4014 = vadd.xlane.f32.xlu1 %v10478_v20  ;;  %v11912_v20 = vld [vmem:[#allocation116_spill] sm:$0xff] }
 0xf73   :  { %1124 = vadd.xlane.f32.xlu0 %v11902_v37 }
 0xf74   :  { %1108 = vadd.xlane.f32.xlu1 %v11903_v53 }
 0xf77   :  { %1610 = vadd.xlane.f32.xlu0 %v11904_v14  ;;  %v11916_v14 = vld [vmem:[#allocation201_spill] sm:$0xff] }
 0xf78   :  { %1594 = vadd.xlane.f32.xlu1 %v11905_v1 }
 0xf7b   :  { %2578 = vadd.xlane.f32.xlu0 %v11906_v26 }
 0xf7c   :  { %2562 = vadd.xlane.f32.xlu1 %v11907_v48  ;;  %v11917_v48 = vld [vmem:[#allocation193_spill] sm:$0xff] }
 0xf7f   :  { %3546 = vadd.xlane.f32.xlu0 %v11908_v4 }
 0xf80   :  { %3530 = vadd.xlane.f32.xlu1 %v11909_v25 }
 0xf83   :  { %1126 = vadd.xlane.f32.xlu0 %v11910_v15 }
 0xf84   :  { %1110 = vadd.xlane.f32.xlu1 %v11911_v63 }
 0xf87   :  { %1612 = vadd.xlane.f32.xlu0 %v11912_v20  ;;  %v11918_v20 = vld [vmem:[#allocation135_spill] sm:$0xff] }
 0xf88   :  { %1596 = vadd.xlane.f32.xlu1 %v11913_v3 }
 0xf8b   :  { %2580 = vadd.xlane.f32.xlu0 %v11914_v30 }
 0xf8c   :  { %v4421_v44 = vpop.xlane.xlu0 %4420  ;;  %2564 = vadd.xlane.f32.xlu1 %v11915_v18 }
 0xf8d   :  { %v4451_v13 = vsub.f32 %v10641_v38, %v4421_v44  ;;  %v4419_v7 = vpop.xlane.xlu1 %4418 }
 0xf8e   :  { %v4450_v37 = vsub.f32 %v10643_v16, %v4419_v7  ;;  %v11919_v16 = vld [vmem:[#allocation127_spill] sm:$0xff] }
 0xf8f   :  { %v4468_v53 = vmul.f32 1.442695, %v4451_v13  ;;  %3548 = vadd.xlane.f32.xlu0 %v11916_v14  ;;  %v11920_v13 = vld [vmem:[#allocation182_spill] sm:$0xff] }
 0xf90   :  { %v4466_v1 = vmul.f32 1.442695, %v4450_v37  ;;  %v4425_v26 = vpop.xlane.xlu0 %4424  ;;  %3532 = vadd.xlane.f32.xlu1 %v11917_v48  ;;  %v11921_v37 = vld [vmem:[#allocation174_spill] sm:$0xff] }
 0xf91   :  { %v4453_v4 = vsub.f32 %v10647_v39, %v4425_v26  ;;  %v4423_v25 = vpop.xlane.xlu1 %4422 }
 0xf92   :  { %7427 = vpow2.f32 %v4466_v1  ;;  %v4452_v15 = vsub.f32 %v10649_v62, %v4423_v25 }
 0xf93   :  { %7429 = vpow2.f32 %v4468_v53  ;;  %v4472_v63 = vmul.f32 1.442695, %v4453_v4  ;;  %2096 = vadd.xlane.f32.xlu0 %v11918_v20 }
 0xf94   :  { %v4470_v38 = vmul.f32 1.442695, %v4452_v15  ;;  %v4429_v3 = vpop.xlane.xlu0 %4428  ;;  %2080 = vadd.xlane.f32.xlu1 %v11919_v16  ;;  %v11922_v15 = vld [vmem:[#allocation136_spill] sm:$0xff] }
 0xf95   :  { %v4455_v30 = vsub.f32 %v10653_v24, %v4429_v3  ;;  %v4427_v44 = vpop.xlane.xlu1 %4426 }
 0xf96   :  { %7431 = vpow2.f32 %v4470_v38  ;;  %v4454_v18 = vsub.f32 %v10655_v45, %v4427_v44  ;;  %v11923_v38 = vld [vmem:[#allocation128_spill] sm:$0xff]  ;;  %v11924_v44 = vld [vmem:[#allocation183_spill] sm:$0xff] }
 0xf97   :  { %7433 = vpow2.f32 %v4472_v63  ;;  %v4476_v39 = vmul.f32 1.442695, %v4455_v30  ;;  %3064 = vadd.xlane.f32.xlu0 %v11920_v13 }
 0xf98   :  { %v4474_v7 = vmul.f32 1.442695, %v4454_v18  ;;  %v4433_v62 = vpop.xlane.xlu0 %4432  ;;  %3048 = vadd.xlane.f32.xlu1 %v11921_v37 }
 0xf99   :  { %v4457_v53 = vsub.f32 %v10660_v58, %v4433_v62  ;;  %v4431_v14 = vpop.xlane.xlu1 %4430 }
 0xf9a   :  { %7435 = vpow2.f32 %v4474_v7  ;;  %v4456_v1 = vsub.f32 %v10663_v34, %v4431_v14  ;;  %v11925_v7 = vld [vmem:[#allocation175_spill] sm:$0xff] }
 0xf9b   :  { %7437 = vpow2.f32 %v4476_v39  ;;  %v4480_v24 = vmul.f32 1.442695, %v4457_v53  ;;  %4032 = vadd.xlane.f32.xlu0 %v10519_v46 }
 0xf9c   :  { %v10770_v26 = vpop.eup %7427  ;;  %v4478_v45 = vmul.f32 1.442695, %v4456_v1  ;;  %v4437_v48 = vpop.xlane.xlu0 %4436  ;;  %4016 = vadd.xlane.f32.xlu1 %v10485_v49 }
 0xf9d   :  { %v10773_v4 = vpop.eup %7429  ;;  %v4459_v25 = vsub.f32 %v10668_v55, %v4437_v48  ;;  %6448 = vmatprep.mubr.f32.mxu0 %v10770_v26  ;;  %v4435_v58 = vpop.xlane.xlu1 %4434 }
 0xf9e   :  { %7439 = vpow2.f32 %v4478_v45  ;;  %v4458_v34 = vsub.f32 %v10671_v6, %v4435_v58  ;;  %6449 = vmatmul.mubr.f32.vlgmr.msra.gmra.mrb[144].mxu0 %v10773_v4 }
 0xf9f   :  { %7441 = vpow2.f32 %v4480_v24  ;;  %v4484_v46 = vmul.f32 1.442695, %v4459_v25  ;;  %2098 = vadd.xlane.f32.xlu0 %v11922_v15  ;;  %v11926_v25 = vld [vmem:[#allocation165_spill] sm:$0xff] }
 0xfa0   :  { %v10780_v63 = vpop.eup %7431  ;;  %v4482_v20 = vmul.f32 1.442695, %v4458_v34  ;;  %v4441_v49 = vpop.xlane.xlu0 %4440  ;;  %2082 = vadd.xlane.f32.xlu1 %v11923_v38  ;;  %v11929_v38 = vld [vmem:[#allocation194_spill] sm:$0xff] }
 0xfa1   :  { %v10783_v3 = vpop.eup %7433  ;;  %v4461_v55 = vsub.f32 %v10676_v41, %v4441_v49  ;;  %6451 = vmatprep.mubr.f32.mxu0 %v10780_v63  ;;  %v4439_v16 = vpop.xlane.xlu1 %4438 }
 0xfa2   :  { %7443 = vpow2.f32 %v4482_v20  ;;  %v4460_v6 = vsub.f32 %v10679_v32, %v4439_v16  ;;  %6452 = vmatmul.mubr.f32.gmra.mrb[146].mxu0 %v10783_v3 }
 0xfa3   :  { %7445 = vpow2.f32 %v4484_v46  ;;  %v4488_v30 = vmul.f32 1.442695, %v4461_v55  ;;  %3066 = vadd.xlane.f32.xlu0 %v11924_v44  ;;  %v11927_v46 = vld [vmem:[#allocation157_spill] sm:$0xff] }
 0xfa4   :  { %v10790_v18 = vpop.eup %7435  ;;  %v4486_v39 = vmul.f32 1.442695, %v4460_v6  ;;  %v4445_v13 = vpop.xlane.xlu0 %4444  ;;  %3050 = vadd.xlane.f32.xlu1 %v11925_v7  ;;  %v11930_v6 = vld [vmem:[#allocation166_spill] sm:$0xff] }
 0xfa5   :  { %v10793_v62 = vpop.eup %7437  ;;  %v4463_v41 = vsub.f32 %v10684_v51, %v4445_v13  ;;  %6454 = vmatprep.mubr.f32.mxu0 %v10790_v18  ;;  %v4443_v37 = vpop.xlane.xlu1 %4442 }
 0xfa6   :  { %7447 = vpow2.f32 %v4486_v39  ;;  %v4462_v32 = vsub.f32 %v10687_v17, %v4443_v37  ;;  %6455 = vmatmul.mubr.f32.gmra.mrb[148].mxu0 %v10793_v62  ;;  %v11931_v39 = vld [vmem:[#allocation158_spill] sm:$0xff]  ;;  %v11932_v37 = vld [vmem:[#allocation203_spill] sm:$0xff] }
 0xfa7   :  { %7449 = vpow2.f32 %v4488_v30  ;;  %v4492_v53 = vmul.f32 1.442695, %v4463_v41  ;;  %4034 = vadd.xlane.f32.xlu0 %v10522_v5 }
 0xfa8   :  { %v10800_v14 = vpop.eup %7439  ;;  %v4490_v1 = vmul.f32 1.442695, %v4462_v32  ;;  %v4449_v24 = vpop.xlane.xlu0 %4448  ;;  %4018 = vadd.xlane.f32.xlu1 %v10488_v22 }
 0xfa9   :  { %v10803_v45 = vpop.eup %7441  ;;  %v4465_v51 = vsub.f32 %v10692_v60, %v4449_v24  ;;  %6457 = vmatprep.mubr.f32.mxu0 %v10800_v14  ;;  %v4447_v48 = vpop.xlane.xlu1 %4446 }
 0xfaa   :  { %7451 = vpow2.f32 %v4490_v1  ;;  %v4464_v17 = vsub.f32 %v10695_v12, %v4447_v48  ;;  %6458 = vmatmul.mubr.f32.gmra.mrb[150].mxu0 %v10803_v45  ;;  %v11928_v12 = vld [vmem:[#allocation202_spill] sm:$0xff]  ;;  %v11933_v1 = vld [vmem:[#allocation195_spill] sm:$0xff] }
 0xfab   :  { %7453 = vpow2.f32 %v4492_v53  ;;  %v4496_v5 = vmul.f32 1.442695, %v4465_v51  ;;  %2582 = vadd.xlane.f32.xlu0 %v11926_v25 }
 0xfac   :  { %v10810_v58 = vpop.eup %7443  ;;  %v4494_v34 = vmul.f32 1.442695, %v4464_v17  ;;  %v1119_v22 = vpop.xlane.xlu0 %1118  ;;  %2566 = vadd.xlane.f32.xlu1 %v11927_v46  ;;  %v11934_v17 = vld [vmem:[#allocation101_spill] sm:$0xff]  ;;  %v11936_v46 = vld [vmem:[#allocation184_spill] sm:$0xff] }
 0xfad   :  { %v10813_v15 = vpop.eup %7445  ;;  %7455 = vpow2.f32 %v4496_v5  ;;  %6460 = vmatprep.mubr.f32.mxu0 %v10810_v58  ;;  %v1103_v60 = vpop.xlane.xlu1 %1102 }
 0xfae   :  { %7457 = vpow2.f32 %v4494_v34  ;;  %6461 = vmatmul.mubr.f32.gmra.mrb[152].mxu0 %v10813_v15  ;;  %v11935_v34 = vld [vmem:[#allocation22_spill] sm:$0xff] }
 0xfaf   :  { %7459 = vrcp.f32 %v1119_v22  ;;  %3550 = vadd.xlane.f32.xlu0 %v11928_v12  ;;  %v11937_v12 = vld [vmem:[#allocation118_spill] sm:$0xff] }
 0xfb0   :  { %v10818_v20 = vpop.eup %7447  ;;  %7461 = vrcp.f32 %v1103_v60  ;;  %v1605_v49 = vpop.xlane.xlu0 %1604  ;;  %3534 = vadd.xlane.f32.xlu1 %v11929_v38 }
 0xfb1   :  { %v10821_v55 = vpop.eup %7449  ;;  %7463 = vrcp.f32 %v1605_v49  ;;  %6463 = vmatprep.mubr.f32.mxu0 %v10818_v20  ;;  %v1589_v16 = vpop.xlane.xlu1 %1588 }
 0xfb2   :  { %7465 = vrcp.f32 %v1589_v16  ;;  %6464 = vmatmul.mubr.f32.gmra.mrb[154].mxu0 %v10821_v55  ;;  %v11938_v16 = vld [vmem:[#allocation176_spill] sm:$0xff] }
 0xfb3   :  { %2584 = vadd.xlane.f32.xlu0 %v11930_v6  ;;  %v11939_v6 = vld [vmem:[#allocation44_spill] sm:$0xff] }
 0xfb4   :  { %v10826_v30 = vpop.eup %7451  ;;  %v2573_v44 = vpop.xlane.xlu0 %2572  ;;  %2568 = vadd.xlane.f32.xlu1 %v11931_v39 }
 0xfb5   :  { %v10829_v13 = vpop.eup %7453  ;;  %7467 = vrcp.f32 %v2573_v44  ;;  %6466 = vmatprep.mubr.f32.mxu0 %v10826_v30  ;;  %v2557_v7 = vpop.xlane.xlu1 %2556 }
 0xfb6   :  { %7469 = vrcp.f32 %v2557_v7  ;;  %6467 = vmatmul.mubr.f32.gmra.mrb[156].mxu0 %v10829_v13 }
 0xfb7   :  { %v10833_v41 = vpop.eup %7455  ;;  %3552 = vadd.xlane.f32.xlu0 %v11932_v37 }
 0xfb8   :  { %v10836_v32 = vpop.eup %7457  ;;  %v2089_v53 = vpop.xlane.xlu0 %2088  ;;  %3536 = vadd.xlane.f32.xlu1 %v11933_v1 }
 0xfb9   :  { %v7460_v24 = vpop.eup %7459  ;;  %7471 = vrcp.f32 %v2089_v53  ;;  %6469 = vmatprep.mubr.f32.mxu0 %v10836_v32  ;;  %v2073_v51 = vpop.xlane.xlu1 %2072 }
 0xfba   :  { %v7462_v48 = vpop.eup %7461  ;;  %v1316_v5 = vmul.f32 %v7460_v24, %v11934_v17  ;;  %7473 = vrcp.f32 %v2073_v51  ;;  %6470 = vmatmul.mubr.f32.gmra.mrb[158].mxu0 %v10833_v41  ;;  %v11940_v51 = vld [vmem:[#allocation73_spill] sm:$0xff] }
 0xfbb   :  { %v7464_v25 = vpop.eup %7463  ;;  %v1308_v22 = vmul.f32 %v7462_v48, %v11935_v34  ;;  %3068 = vadd.xlane.f32.xlu0 %v11936_v46 }
 0xfbc   :  { %v7466_v60 = vpop.eup %7465  ;;  %v1802_v49 = vmul.f32 %v7464_v25, %v11937_v12  ;;  %v3057_v38 = vpop.xlane.xlu0 %3056  ;;  %3052 = vadd.xlane.f32.xlu1 %v11938_v16  ;;  %v11941_v25 = vld [vmem:[#allocation54_spill] sm:$0xff]  ;;  %v11942_v12 = vld [vmem:[#allocation185_spill] sm:$0xff] }
 0xfbd   :  { %v1794_v44 = vmul.f32 %v7466_v60, %v11939_v6  ;;  %7475 = vrcp.f32 %v3057_v38  ;;  %v3041_v39 = vpop.xlane.xlu1 %3040  ;;  %v11944_v16 = vld [vmem:[#allocation177_spill] sm:$0xff] }
 0xfbe   :  { %7477 = vrcp.f32 %v3041_v39  ;;  %v1818_v7 = vadd.f32 %v1802_v49, %v1316_v5 }
 0xfbf   :  { %v7468_v37 = vpop.eup %7467  ;;  %4036 = vadd.xlane.f32.xlu0 %v10526_v56  ;;  %v1810_v53 = vadd.f32 %v1794_v44, %v1308_v22  ;;  %v11943_v22 = vld [vmem:[#allocation139_spill] sm:$0xff] }
 0xfc0   :  { %v7470_v1 = vpop.eup %7469  ;;  %v2091_v24 = vpop.xlane.xlu0 %2090  ;;  %4020 = vadd.xlane.f32.xlu1 %v10494_v42  ;;  %v2772_v48 = vmul.f32 %v7468_v37, %v11940_v51  ;;  %v11945_v42 = vld [vmem:[#allocation64_spill] sm:$0xff] }
 0xfc1   :  { %7479 = vrcp.f32 %v2091_v24  ;;  %v2075_v17 = vpop.xlane.xlu1 %2074  ;;  %v2764_v34 = vmul.f32 %v7470_v1, %v11941_v25  ;;  %v11946_v24 = vld [vmem:[#allocation186_spill] sm:$0xff] }
 0xfc2   :  { %7481 = vrcp.f32 %v2075_v17  ;;  %v2788_v46 = vadd.f32 %v2772_v48, %v10558_v27  ;;  %v11947_v17 = vld [vmem:[#allocation61_spill] sm:$0xff] }
 0xfc3   :  { %v7472_v60 = vpop.eup %7471  ;;  %3070 = vadd.xlane.f32.xlu0 %v11942_v12  ;;  %v2780_v5 = vadd.f32 %v2764_v34, %v10561_v47  ;;  %v11949_v12 = vld [vmem:[#allocation138_spill] sm:$0xff] }
 0xfc4   :  { %v7474_v56 = vpop.eup %7473  ;;  %v2287_v49 = vmul.f32 %v7472_v60, %v11943_v22  ;;  %v3059_v38 = vpop.xlane.xlu0 %3058  ;;  %3054 = vadd.xlane.f32.xlu1 %v11944_v16  ;;  %v11948_v60 = vld [vmem:[#allocation204_spill] sm:$0xff] }
 0xfc5   :  { %v2279_v6 = vmul.f32 %v7474_v56, %v11945_v42  ;;  %7483 = vrcp.f32 %v3059_v38  ;;  %v3043_v44 = vpop.xlane.xlu1 %3042  ;;  %v11950_v22 = vld [vmem:[#allocation196_spill] sm:$0xff] }
 0xfc6   :  { %7485 = vrcp.f32 %v3043_v44  ;;  %v10858_v39 = vadd.f32 %v2287_v49, %v10568_v59  ;;  %v11951_v49 = vld [vmem:[#allocation60_spill] sm:$0xff] }
 0xfc7   :  { %v7476_v27 = vpop.eup %7475  ;;  %4038 = vadd.xlane.f32.xlu0 %v10528_v8  ;;  %v10862_v37 = vadd.f32 %v2279_v6, %v10571_v57  ;;  %v11952_v6 = vld [vmem:[#allocation205_spill] sm:$0xff] }
 0xfc8   :  { %v7478_v47 = vpop.eup %7477  ;;  %v1121_v1 = vpop.xlane.xlu0 %1120  ;;  %4022 = vadd.xlane.f32.xlu1 %v10496_v50  ;;  %v3257_v51 = vmul.f32 %v7476_v27, %v11946_v24 }
 0xfc9   :  { %7487 = vrcp.f32 %v1121_v1  ;;  %v1105_v48 = vpop.xlane.xlu1 %1104  ;;  %v3249_v25 = vmul.f32 %v7478_v47, %v11947_v17  ;;  %v11953_v47 = vld [vmem:[#allocation197_spill] sm:$0xff]  ;;  %v11954_v1 = vld [vmem:[#allocation76_spill] sm:$0xff] }
 0xfca   :  { %7489 = vrcp.f32 %v1105_v48  ;;  %v10868_v59 = vadd.f32 %v3257_v51, %v10575_v23  ;;  %v11955_v48 = vld [vmem:[#allocation49_spill] sm:$0xff] }
 0xfcb   :  { %v7480_v34 = vpop.eup %7479  ;;  %3554 = vadd.xlane.f32.xlu0 %v11948_v60  ;;  %v10872_v8 = vadd.f32 %v3249_v25, %v10577_v21  ;;  %v11956_v60 = vld [vmem:[#allocation104_spill] sm:$0xff] }
 0xfcc   :  { %v7482_v57 = vpop.eup %7481  ;;  %v2288_v56 = vmul.f32 %v7480_v34, %v11949_v12  ;;  %v1607_v50 = vpop.xlane.xlu0 %1606  ;;  %3538 = vadd.xlane.f32.xlu1 %v11950_v22 }
 0xfcd   :  { %v2280_v38 = vmul.f32 %v7482_v57, %v11951_v49  ;;  %7491 = vrcp.f32 %v1607_v50  ;;  %v1591_v16 = vpop.xlane.xlu1 %1590  ;;  %v11958_v50 = vld [vmem:[#allocation26_spill] sm:$0xff] }
 0xfce   :  { %7493 = vrcp.f32 %v1591_v16  ;;  %v10877_v42 = vadd.f32 %v2288_v56, %v1818_v7  ;;  %v11957_v56 = vld [vmem:[#allocation59_spill] sm:$0xff]  ;;  %v11959_v16 = vld [vmem:[#allocation109_spill] sm:$0xff] }
 0xfcf   :  { %v7484_v23 = vpop.eup %7483  ;;  %3556 = vadd.xlane.f32.xlu0 %v11952_v6  ;;  %v10880_v44 = vadd.f32 %v2280_v38, %v1810_v53 }
 0xfd0   :  { %v7486_v21 = vpop.eup %7485  ;;  %v2575_v27 = vpop.xlane.xlu0 %2574  ;;  %3540 = vadd.xlane.f32.xlu1 %v11953_v47  ;;  %v3258_v24 = vmul.f32 %v7484_v23, %v11954_v1  ;;  %v11960_v23 = vld [vmem:[#allocation121_spill] sm:$0xff] }
 0xfd1   :  { %7495 = vrcp.f32 %v2575_v27  ;;  %v2559_v51 = vpop.xlane.xlu1 %2558  ;;  %v3250_v17 = vmul.f32 %v7486_v21, %v11955_v48  ;;  %v11962_v21 = vld [vmem:[#allocation28_spill] sm:$0xff] }
 0xfd2   :  { %7497 = vrcp.f32 %v2559_v51  ;;  %v10885_v25 = vadd.f32 %v3258_v24, %v2788_v46 }
 0xfd3   :  { %v7488_v7 = vpop.eup %7487  ;;  %4040 = vadd.xlane.f32.xlu0 %v10535_v36  ;;  %v10888_v34 = vadd.f32 %v3250_v17, %v2780_v5  ;;  %v11961_v5 = vld [vmem:[#allocation87_spill] sm:$0xff]  ;;  %v11963_v17 = vld [vmem:[#allocation169_spill] sm:$0xff] }
 0xfd4   :  { %v7490_v53 = vpop.eup %7489  ;;  %v1317_v57 = vmul.f32 %v7488_v7, %v11956_v60  ;;  %v3543_v12 = vpop.xlane.xlu0 %3542  ;;  %4024 = vadd.xlane.f32.xlu1 %v11957_v56  ;;  %v11964_v60 = vld [vmem:[#allocation63_spill] sm:$0xff] }
 0xfd5   :  { %v1309_v22 = vmul.f32 %v7490_v53, %v11958_v50  ;;  %7499 = vrcp.f32 %v3543_v12  ;;  %v3527_v49 = vpop.xlane.xlu1 %3526  ;;  %v4739_v50 = vld [vmem:[#allocation13] sm:$0xff] }
 0xfd6   :  { %7501 = vrcp.f32 %v3527_v49  ;;  %v4740_v49 = vld [vmem:[#allocation13 + $0x8] sm:$0xff] }
 0xfd7   :  { %v7492_v38 = vpop.eup %7491  ;;  %4042 = vadd.xlane.f32.xlu0 %v11959_v16 }
 0xfd8   :  { %v7494_v46 = vpop.eup %7493  ;;  %v1803_v6 = vmul.f32 %v7492_v38, %v11960_v23  ;;  %v1123_v36 = vpop.xlane.xlu0 %1122  ;;  %4026 = vadd.xlane.f32.xlu1 %v11961_v5  ;;  %v4742_v5 = vld [vmem:[#allocation13 + $0x18] sm:$0xff] }
 0xfd9   :  { %v1795_v27 = vmul.f32 %v7494_v46, %v11962_v21  ;;  %7503 = vrcp.f32 %v1123_v36  ;;  %v1107_v47 = vpop.xlane.xlu1 %1106  ;;  %v4741_v36 = vld [vmem:[#allocation13 + $0x10] sm:$0xff] }
 0xfda   :  { %v10897_v1 = vadd.f32 %v1803_v6, %v1317_v57  ;;  %7505 = vrcp.f32 %v1107_v47  ;;  %v7104_v57 = vpack.c.bf16 %v4740_v49, %v4739_v50  ;;  %v11969_v50 = vld [vmem:[#allocation120_spill] sm:$0xff] }
 0xfdb   :  { %v7496_v24 = vpop.eup %7495  ;;  %v10899_v51 = vadd.f32 %v1795_v27, %v1309_v22  ;;  %4516 = vadd.xlane.f32.xlu0 %v10813_v15 }
 0xfdc   :  { %v7498_v48 = vpop.eup %7497  ;;  %v2773_v7 = vmul.f32 %v7496_v24, %v11963_v17  ;;  %v1609_v53 = vpop.xlane.xlu0 %1608  ;;  %4500 = vadd.xlane.f32.xlu1 %v10773_v4  ;;  %7105 = vmatprep.subr.bf16.mxu0 %v7104_v57  ;;  %v11965_v4 = vld [vmem:[#allocation206_spill] sm:$0xff]  ;;  %v11967_v24 = vld [vmem:[#allocation103_spill] sm:$0xff] }
 0xfdd   :  { %v2765_v12 = vmul.f32 %v7498_v48, %v11964_v60  ;;  %7507 = vrcp.f32 %v1609_v53  ;;  %v1593_v56 = vpop.xlane.xlu1 %1592  ;;  %7107 = vmatpush3.bf16.msra.mxu0 %v7104_v57  ;;  %7136 = vmatprep.subr.bf16.mxu1 %v7104_v57 }
 0xfde   :  { %7509 = vrcp.f32 %v1593_v56  ;;  %v10906_v38 = vadd.f32 %v2773_v7, %v10858_v39  ;;  %v11966_v39 = vld [vmem:[#allocation74_spill] sm:$0xff]  ;;  %7144 = vmatpush3.bf16.msra.mxu1 %v7104_v57  ;;  %v11968_v7 = vld [vmem:[#allocation69_spill] sm:$0xff] }
 0xfdf   :  { %v7500_v22 = vpop.eup %7499  ;;  %4514 = vadd.xlane.f32.xlu0 %v10810_v58  ;;  %v10910_v15 = vadd.f32 %v2765_v12, %v10862_v37  ;;  %v7108_v58 = vpack.c.bf16 %v4742_v5, %v4741_v36  ;;  %v4744_v12 = vld [vmem:[#allocation13 + $0x28] sm:$0xff]  ;;  %v11971_v5 = vld [vmem:[#allocation168_spill] sm:$0xff] }
 0xfe0   :  { %v7502_v16 = vpop.eup %7501  ;;  %v2577_v46 = vpop.xlane.xlu0 %2576  ;;  %4498 = vadd.xlane.f32.xlu1 %v10770_v26  ;;  %v3743_v23 = vmul.f32 %v7500_v22, %v11965_v4  ;;  %v4746_v4 = vld [vmem:[#allocation13 + $0x38] sm:$0xff] }
 0xfe1   :  { %7511 = vrcp.f32 %v2577_v46  ;;  %v2561_v6 = vpop.xlane.xlu1 %2560  ;;  %v3735_v21 = vmul.f32 %v7502_v16, %v11966_v39  ;;  %7109 = vmatprep.subr.bf16.mxu0 %v7108_v58  ;;  %7137 = vmatprep.subr.bf16.mxu1 %v7108_v58  ;;  %v4745_v46 = vld [vmem:[#allocation13 + $0x30] sm:$0xff] }
 0xfe2   :  { %7513 = vrcp.f32 %v2561_v6  ;;  %v10916_v37 = vadd.f32 %v3743_v23, %v10868_v59  ;;  %7111 = vmatpush3.bf16.msra.mxu0 %v7108_v58  ;;  %v4743_v59 = vld [vmem:[#allocation13 + $0x20] sm:$0xff]  ;;  %7145 = vmatpush3.bf16.msra.mxu1 %v7108_v58  ;;  %v7116_v6 = vpack.c.bf16 %v4746_v4, %v4745_v46  ;;  %v11972_v58 = vld [vmem:[#allocation45_spill] sm:$0xff] }
 0xfe3   :  { %v7504_v27 = vpop.eup %7503  ;;  %4520 = vadd.xlane.f32.xlu0 %v10821_v55  ;;  %v10920_v26 = vadd.f32 %v3735_v21, %v10872_v8  ;;  %v7112_v55 = vpack.c.bf16 %v4744_v12, %v4743_v59  ;;  %v11973_v59 = vld [vmem:[#allocation83_spill] sm:$0xff]  ;;  %v11976_v46 = vld [vmem:[#allocation32_spill] sm:$0xff] }
 0xfe4   :  { %v7506_v47 = vpop.eup %7505  ;;  %v1318_v48 = vmul.f32 %v7504_v27, %v11967_v24  ;;  %v3545_v17 = vpop.xlane.xlu0 %3544  ;;  %4504 = vadd.xlane.f32.xlu1 %v10783_v3  ;;  %v11970_v3 = vld [vmem:[#allocation23_spill] sm:$0xff]  ;;  %v4747_v24 = vld [vmem:[#allocation13 + $0x40] sm:$0xff] }
 0xfe5   :  { %v1310_v53 = vmul.f32 %v7506_v47, %v11968_v7  ;;  %7515 = vrcp.f32 %v3545_v17  ;;  %v3529_v60 = vpop.xlane.xlu1 %3528  ;;  %7113 = vmatprep.subr.bf16.mxu0 %v7112_v55  ;;  %7138 = vmatprep.subr.bf16.mxu1 %v7112_v55 }
 0xfe6   :  { %7517 = vrcp.f32 %v3529_v60  ;;  %7115 = vmatpush3.bf16.msra.mxu0 %v7112_v55  ;;  %7146 = vmatpush3.bf16.msra.mxu1 %v7112_v55 }
 0xfe7   :  { %v7508_v8 = vpop.eup %7507  ;;  %4518 = vadd.xlane.f32.xlu0 %v10818_v20  ;;  %7117 = vmatprep.subr.bf16.mxu0 %v7116_v6 }
 0xfe8   :  { %v7510_v56 = vpop.eup %7509  ;;  %v1804_v49 = vmul.f32 %v7508_v8, %v11969_v50  ;;  %v2093_v57 = vpop.xlane.xlu0 %2092  ;;  %4502 = vadd.xlane.f32.xlu1 %v10780_v63  ;;  %7139 = vmatprep.subr.bf16.mxu1 %v7116_v6  ;;  %v11974_v8 = vld [vmem:[#allocation36_spill] sm:$0xff]  ;;  %v4750_v50 = vld [vmem:[#allocation13 + $0x58] sm:$0xff] }
 0xfe9   :  { %v1796_v22 = vmul.f32 %v7510_v56, %v11970_v3  ;;  %7519 = vrcp.f32 %v2093_v57  ;;  %v2077_v16 = vpop.xlane.xlu1 %2076  ;;  %v11975_v3 = vld [vmem:[#allocation141_spill] sm:$0xff] }
 0xfea   :  { %v10929_v23 = vadd.f32 %v1804_v49, %v1318_v48  ;;  %7521 = vrcp.f32 %v2077_v16  ;;  %7119 = vmatpush3.bf16.msra.mxu0 %v7116_v6  ;;  %v4748_v48 = vld [vmem:[#allocation13 + $0x48] sm:$0xff]  ;;  %7147 = vmatpush3.bf16.msra.mxu1 %v7116_v6 }
 0xfeb   :  { %v7512_v20 = vpop.eup %7511  ;;  %v10931_v36 = vadd.f32 %v1796_v22, %v1310_v53  ;;  %4524 = vadd.xlane.f32.xlu0 %v10829_v13  ;;  %v7120_v17 = vpack.c.bf16 %v4748_v48, %v4747_v24  ;;  %v4754_v48 = vld [vmem:[#allocation13 + $0x78] sm:$0xff] }
 0xfec   :  { %v7514_v63 = vpop.eup %7513  ;;  %v2774_v39 = vmul.f32 %v7512_v20, %v11971_v5  ;;  %v3061_v21 = vpop.xlane.xlu0 %3060  ;;  %4508 = vadd.xlane.f32.xlu1 %v10793_v62  ;;  %v4752_v20 = vld [vmem:[#allocation13 + $0x68] sm:$0xff] }
 0xfed   :  { %v2766_v27 = vmul.f32 %v7514_v63, %v11972_v58  ;;  %7523 = vrcp.f32 %v3061_v21  ;;  %v3045_v47 = vpop.xlane.xlu1 %3044  ;;  %7121 = vmatprep.subr.bf16.mxu0 %v7120_v17  ;;  %7140 = vmatprep.subr.bf16.mxu1 %v7120_v17  ;;  %v11977_v21 = vld [vmem:[#allocation188_spill] sm:$0xff] }
 0xfee   :  { %7525 = vrcp.f32 %v3045_v47  ;;  %v10938_v13 = vadd.f32 %v2774_v39, %v10877_v42  ;;  %7123 = vmatpush3.bf16.msra.mxu0 %v7120_v17  ;;  %v4749_v42 = vld [vmem:[#allocation13 + $0x50] sm:$0xff]  ;;  %7148 = vmatpush3.bf16.msra.mxu1 %v7120_v17  ;;  %v11978_v47 = vld [vmem:[#allocation25_spill] sm:$0xff] }
 0xfef   :  { %v7516_v7 = vpop.eup %7515  ;;  %4522 = vadd.xlane.f32.xlu0 %v10826_v30  ;;  %v10942_v62 = vadd.f32 %v2766_v27, %v10880_v44  ;;  %v7124_v30 = vpack.c.bf16 %v4750_v50, %v4749_v42 }
 0xff0   :  { %v7518_v53 = vpop.eup %7517  ;;  %v4029_v60 = vpop.xlane.xlu0 %4028  ;;  %4506 = vadd.xlane.f32.xlu1 %v10790_v18  ;;  %v3744_v12 = vmul.f32 %v7516_v7, %v11973_v59 }
 0xff1   :  { %7527 = vrcp.f32 %v4029_v60  ;;  %v4013_v55 = vpop.xlane.xlu1 %4012  ;;  %v3736_v56 = vmul.f32 %v7518_v53, %v11974_v8  ;;  %7125 = vmatprep.subr.bf16.mxu0 %v7124_v30  ;;  %7141 = vmatprep.subr.bf16.mxu1 %v7124_v30 }
 0xff2   :  { %7529 = vrcp.f32 %v4013_v55  ;;  %v10948_v44 = vadd.f32 %v3744_v12, %v10885_v25  ;;  %7127 = vmatpush3.bf16.msra.mxu0 %v7124_v30  ;;  %v4751_v25 = vld [vmem:[#allocation13 + $0x60] sm:$0xff]  ;;  %7149 = vmatpush3.bf16.msra.mxu1 %v7124_v30 }
 0xff3   :  { %v7520_v49 = vpop.eup %7519  ;;  %4526 = vadd.xlane.f32.xlu0 %v10836_v32  ;;  %v10952_v18 = vadd.f32 %v3736_v56, %v10888_v34  ;;  %v7128_v32 = vpack.c.bf16 %v4752_v20, %v4751_v25  ;;  %v11979_v56 = vld [vmem:[#allocation140_spill] sm:$0xff] }
 0xff4   :  { %v7522_v57 = vpop.eup %7521  ;;  %v2289_v22 = vmul.f32 %v7520_v49, %v11975_v3  ;;  %v2095_v16 = vpop.xlane.xlu0 %2094  ;;  %4510 = vadd.xlane.f32.xlu1 %v10800_v14 }
 0xff5   :  { %v2281_v4 = vmul.f32 %v7522_v57, %v11976_v46  ;;  %7531 = vrcp.f32 %v2095_v16  ;;  %v2079_v6 = vpop.xlane.xlu1 %2078  ;;  %7129 = vmatprep.subr.bf16.mxu0 %v7128_v32  ;;  %7142 = vmatprep.subr.bf16.mxu1 %v7128_v32 }
 0xff6   :  { %7533 = vrcp.f32 %v2079_v6  ;;  %v10958_v34 = vadd.f32 %v2289_v22, %v10897_v1  ;;  %7131 = vmatpush3.bf16.msra.mxu0 %v7128_v32  ;;  %v4753_v1 = vld [vmem:[#allocation13 + $0x70] sm:$0xff]  ;;  %7150 = vmatpush3.bf16.msra.mxu1 %v7128_v32 }
 0xff7   :  { %v7524_v63 = vpop.eup %7523  ;;  %v10961_v5 = vadd.f32 %v2281_v4, %v10899_v51  ;;  %4528 = vadd.xlane.f32.xlu0 %v10833_v41  ;;  %v7132_v51 = vpack.c.bf16 %v4754_v48, %v4753_v1  ;;  %v11982_v4 = vld [vmem:[#allocation47_spill] sm:$0xff]  ;;  %v11984_v1 = vld [vmem:[#allocation98_spill] sm:$0xff] }
 0xff8   :  { %v7526_v14 = vpop.eup %7525  ;;  %v3063_v39 = vpop.xlane.xlu0 %3062  ;;  %4512 = vadd.xlane.f32.xlu1 %v10803_v45  ;;  %v3259_v58 = vmul.f32 %v7524_v63, %v11977_v21 }
 0xff9   :  { %7535 = vrcp.f32 %v3063_v39  ;;  %v3047_v27 = vpop.xlane.xlu1 %3046  ;;  %v3251_v24 = vmul.f32 %v7526_v14, %v11978_v47  ;;  %7133 = vmatprep.subr.bf16.mxu0 %v7132_v51  ;;  %7143 = vmatprep.subr.bf16.mxu1 %v7132_v51  ;;  %v11983_v47 = vld [vmem:[#allocation106_spill] sm:$0xff] }
 0xffa   :  { %7537 = vrcp.f32 %v3047_v27  ;;  %v10968_v41 = vadd.f32 %v3259_v58, %v10906_v38  ;;  %7135 = vmatpush3.bf16.msra.mxu0 %v7132_v51  ;;  %7151 = vmatpush3.bf16.msra.mxu1 %v7132_v51 }
 0xffb   :  { %v7528_v17 = vpop.eup %7527  ;;  %v10971_v45 = vadd.f32 %v3251_v24, %v10910_v15 }
 0xffc   :  { %v7530_v7 = vpop.eup %7529  ;;  %v4031_v53 = vpop.xlane.xlu0 %4030  ;;  %v4229_v60 = vmul.f32 %v7528_v17, %v10627_v35  ;;  %v11980_v35 = vld [vmem:[#allocation27_spill] sm:$0xff] }
 0xffd   :  { %7539 = vrcp.f32 %v4031_v53  ;;  %v4015_v59 = vpop.xlane.xlu1 %4014  ;;  %v4221_v12 = vmul.f32 %v7530_v7, %v10611_v31 }
 0xffe   :  { %7541 = vrcp.f32 %v4015_v59  ;;  %v10976_v55 = vadd.f32 %v4229_v60, %v10916_v37 }
 0xfff   :  { %v7532_v38 = vpop.eup %7531  ;;  %v10979_v15 = vadd.f32 %v4221_v12, %v10920_v26  ;;  %v11981_v26 = vld [vmem:[#allocation187_spill] sm:$0xff] }
0x1000   :  { %v7534_v8 = vpop.eup %7533  ;;  %v2290_v42 = vmul.f32 %v7532_v38, %v11979_v56  ;;  %v1125_v50 = vpop.xlane.xlu0 %1124  ;;  %v11987_v56 = vld [vmem:[#allocation171_spill] sm:$0xff] }
0x1001   :  { %v2282_v30 = vmul.f32 %v7534_v8, %v11980_v35  ;;  %7543 = vrcp.f32 %v1125_v50  ;;  %v1109_v49 = vpop.xlane.xlu1 %1108  ;;  %v11988_v35 = vld [vmem:[#allocation30_spill] sm:$0xff] }
0x1002   :  { %7545 = vrcp.f32 %v1109_v49  ;;  %v10984_v31 = vadd.f32 %v2290_v42, %v10929_v23 }
0x1003   :  { %v7536_v57 = vpop.eup %7535  ;;  %v10987_v37 = vadd.f32 %v2282_v30, %v10931_v36 }
0x1004   :  { %v7538_v3 = vpop.eup %7537  ;;  %v1611_v22 = vpop.xlane.xlu0 %1610  ;;  %v3260_v16 = vmul.f32 %v7536_v57, %v11981_v26 }
0x1005   :  { %7547 = vrcp.f32 %v1611_v22  ;;  %v1595_v46 = vpop.xlane.xlu1 %1594  ;;  %v3252_v6 = vmul.f32 %v7538_v3, %v11982_v4 }
0x1006   :  { %7549 = vrcp.f32 %v1595_v46  ;;  %v10992_v25 = vadd.f32 %v3260_v16, %v10938_v13  ;;  %v11989_v46 = vld [vmem:[#allocation208_spill] sm:$0xff] }
0x1007   :  { %v7540_v20 = vpop.eup %7539  ;;  %v10995_v23 = vadd.f32 %v3252_v6, %v10942_v62 }
0x1008   :  { %v7542_v32 = vpop.eup %7541  ;;  %v2579_v63 = vpop.xlane.xlu0 %2578  ;;  %v4230_v36 = vmul.f32 %v7540_v20, %v10625_v2  ;;  %v11990_v20 = vld [vmem:[#allocation78_spill] sm:$0xff] }
0x1009   :  { %7551 = vrcp.f32 %v2579_v63  ;;  %v2563_v14 = vpop.xlane.xlu1 %2562  ;;  %v4222_v39 = vmul.f32 %v7542_v32, %v10609_v54  ;;  %v11985_v54 = vld [vmem:[#allocation123_spill] sm:$0xff] }
0x100a   :  { %7553 = vrcp.f32 %v2563_v14  ;;  %v11000_v21 = vadd.f32 %v4230_v36, %v10948_v44  ;;  %v11986_v44 = vld [vmem:[#allocation67_spill] sm:$0xff] }
0x100b   :  { %v7544_v58 = vpop.eup %7543  ;;  %v11003_v13 = vadd.f32 %v4222_v39, %v10952_v18  ;;  %v11991_v39 = vld [vmem:[#allocation105_spill] sm:$0xff] }
0x100c   :  { %v7546_v27 = vpop.eup %7545  ;;  %v1319_v62 = vmul.f32 %v7544_v58, %v11983_v47  ;;  %v3547_v24 = vpop.xlane.xlu0 %3546 }
0x100d   :  { %v1311_v48 = vmul.f32 %v7546_v27, %v11984_v1  ;;  %7555 = vrcp.f32 %v3547_v24  ;;  %v3531_v2 = vpop.xlane.xlu1 %3530  ;;  %v11992_v27 = vld [vmem:[#allocation97_spill] sm:$0xff] }
0x100e   :  { %7557 = vrcp.f32 %v3531_v2 }
0x100f   :  { %v7548_v51 = vpop.eup %7547 }
0x1010   :  { %v7550_v17 = vpop.eup %7549  ;;  %v1805_v7 = vmul.f32 %v7548_v51, %v11985_v54  ;;  %v1127_v53 = vpop.xlane.xlu0 %1126 }
0x1011   :  { %v1797_v60 = vmul.f32 %v7550_v17, %v11986_v44  ;;  %7559 = vrcp.f32 %v1127_v53  ;;  %v1111_v59 = vpop.xlane.xlu1 %1110 }
0x1012   :  { %v11009_v18 = vadd.f32 %v1805_v7, %v1319_v62  ;;  %7561 = vrcp.f32 %v1111_v59 }
0x1013   :  { %v7552_v12 = vpop.eup %7551  ;;  %v11011_v38 = vadd.f32 %v1797_v60, %v1311_v48  ;;  %v11993_v48 = vld [vmem:[#allocation122_spill] sm:$0xff] }
0x1014   :  { %v7554_v8 = vpop.eup %7553  ;;  %v2775_v42 = vmul.f32 %v7552_v12, %v11987_v56  ;;  %v1613_v50 = vpop.xlane.xlu0 %1612  ;;  %v11995_v60 = vld [vmem:[#allocation170_spill] sm:$0xff] }
0x1015   :  { %v2767_v30 = vmul.f32 %v7554_v8, %v11988_v35  ;;  %7563 = vrcp.f32 %v1613_v50  ;;  %v1597_v49 = vpop.xlane.xlu1 %1596  ;;  %v11996_v8 = vld [vmem:[#allocation29_spill] sm:$0xff] }
0x1016   :  { %7565 = vrcp.f32 %v1597_v49  ;;  %v11016_v57 = vadd.f32 %v2775_v42, %v10958_v34 }
0x1017   :  { %v7556_v3 = vpop.eup %7555  ;;  %v11019_v22 = vadd.f32 %v2767_v30, %v10961_v5 }
0x1018   :  { %v7558_v26 = vpop.eup %7557  ;;  %v2581_v16 = vpop.xlane.xlu0 %2580  ;;  %v3745_v4 = vmul.f32 %v7556_v3, %v11989_v46 }
0x1019   :  { %7567 = vrcp.f32 %v2581_v16  ;;  %v2565_v6 = vpop.xlane.xlu1 %2564  ;;  %v3737_v32 = vmul.f32 %v7558_v26, %v11990_v20  ;;  %v11997_v26 = vld [vmem:[#allocation207_spill] sm:$0xff] }
0x101a   :  { %7569 = vrcp.f32 %v2565_v6  ;;  %v11024_v63 = vadd.f32 %v3745_v4, %v10968_v41  ;;  %v11994_v41 = vld [vmem:[#allocation35_spill] sm:$0xff]  ;;  %v11998_v4 = vld [vmem:[#allocation77_spill] sm:$0xff] }
0x101b   :  { %v7560_v36 = vpop.eup %7559  ;;  %v11027_v34 = vadd.f32 %v3737_v32, %v10971_v45 }
0x101c   :  { %v7562_v14 = vpop.eup %7561  ;;  %v1320_v5 = vmul.f32 %v7560_v36, %v11991_v39  ;;  %v3549_v58 = vpop.xlane.xlu0 %3548  ;;  %v11999_v39 = vld [vmem:[#allocation143_spill] sm:$0xff] }
0x101d   :  { %v1312_v47 = vmul.f32 %v7562_v14, %v11992_v27  ;;  %7571 = vrcp.f32 %v3549_v58  ;;  %v3533_v62 = vpop.xlane.xlu1 %3532  ;;  %v12000_v58 = vld [vmem:[#allocation43_spill] sm:$0xff] }
0x101e   :  { %7573 = vrcp.f32 %v3533_v62 }
0x101f   :  { %v7564_v24 = vpop.eup %7563 }
0x1020   :  { %v7566_v1 = vpop.eup %7565  ;;  %v1806_v2 = vmul.f32 %v7564_v24, %v11993_v48  ;;  %v2097_v51 = vpop.xlane.xlu0 %2096 }
0x1021   :  { %v1798_v17 = vmul.f32 %v7566_v1, %v11994_v41  ;;  %7575 = vrcp.f32 %v2097_v51  ;;  %v2081_v54 = vpop.xlane.xlu1 %2080  ;;  %v12002_v51 = vld [vmem:[#allocation68_spill] sm:$0xff] }
0x1022   :  { %v1822_v45 = vadd.f32 %v1806_v2, %v1320_v5  ;;  %7577 = vrcp.f32 %v2081_v54 }
0x1023   :  { %v7568_v7 = vpop.eup %7567  ;;  %v1814_v53 = vadd.f32 %v1798_v17, %v1312_v47 }
0x1024   :  { %v7570_v44 = vpop.eup %7569  ;;  %v2776_v59 = vmul.f32 %v7568_v7, %v11995_v60  ;;  %v3065_v12 = vpop.xlane.xlu0 %3064 }
0x1025   :  { %v2768_v56 = vmul.f32 %v7570_v44, %v11996_v8  ;;  %7579 = vrcp.f32 %v3065_v12  ;;  %v3049_v42 = vpop.xlane.xlu1 %3048 }
0x1026   :  { %7581 = vrcp.f32 %v3049_v42  ;;  %v2792_v50 = vadd.f32 %v2776_v59, %v10984_v31  ;;  %v12003_v42 = vld [vmem:[#allocation142_spill] sm:$0xff] }
0x1027   :  { %v7572_v35 = vpop.eup %7571  ;;  %v2784_v30 = vadd.f32 %v2768_v56, %v10987_v37 }
0x1028   :  { %v7574_v49 = vpop.eup %7573  ;;  %v4033_v3 = vpop.xlane.xlu0 %4032  ;;  %v3746_v16 = vmul.f32 %v7572_v35, %v11997_v26 }
0x1029   :  { %7583 = vrcp.f32 %v4033_v3  ;;  %v4017_v46 = vpop.xlane.xlu1 %4016  ;;  %v3738_v6 = vmul.f32 %v7574_v49, %v11998_v4  ;;  %v12004_v49 = vld [vmem:[#allocation40_spill] sm:$0xff] }
0x102a   :  { %7585 = vrcp.f32 %v4017_v46  ;;  %v3762_v20 = vadd.f32 %v3746_v16, %v10992_v25  ;;  %v12001_v25 = vld [vmem:[#allocation190_spill] sm:$0xff] }
0x102b   :  { %v7576_v32 = vpop.eup %7575  ;;  %v3754_v36 = vadd.f32 %v3738_v6, %v10995_v23 }
0x102c   :  { %v7578_v14 = vpop.eup %7577  ;;  %v2291_v31 = vmul.f32 %v7576_v32, %v11999_v39  ;;  %v2099_v5 = vpop.xlane.xlu0 %2098  ;;  %v12006_v32 = vld [vmem:[#allocation33_spill] sm:$0xff] }
0x102d   :  { %v2283_v37 = vmul.f32 %v7578_v14, %v12000_v58  ;;  %7587 = vrcp.f32 %v2099_v5  ;;  %v2083_v27 = vpop.xlane.xlu1 %2082 }
0x102e   :  { %7589 = vrcp.f32 %v2083_v27  ;;  %v2307_v47 = vadd.f32 %v2291_v31, %v11009_v18 }
0x102f   :  { %v7580_v62 = vpop.eup %7579  ;;  %v2299_v24 = vadd.f32 %v2283_v37, %v11011_v38 }
0x1030   :  { %v7582_v1 = vpop.eup %7581  ;;  %v3067_v48 = vpop.xlane.xlu0 %3066  ;;  %v3261_v2 = vmul.f32 %v7580_v62, %v12001_v25 }
0x1031   :  { %v3253_v23 = vmul.f32 %v7582_v1, %v12002_v51  ;;  %7591 = vrcp.f32 %v3067_v48  ;;  %v3051_v41 = vpop.xlane.xlu1 %3050 }
0x1032   :  { %7593 = vrcp.f32 %v3051_v41  ;;  %v3277_v17 = vadd.f32 %v3261_v2, %v11016_v57  ;;  %v12007_v2 = vld [vmem:[#allocation173_spill] sm:$0xff] }
0x1033   :  { %v7584_v54 = vpop.eup %7583  ;;  %v3269_v7 = vadd.f32 %v3253_v23, %v11019_v22  ;;  %v12008_v23 = vld [vmem:[#allocation41_spill] sm:$0xff] }
0x1034   :  { %v7586_v44 = vpop.eup %7585  ;;  %v4035_v60 = vpop.xlane.xlu0 %4034  ;;  %v4231_v18 = vmul.f32 %v7584_v54, %v10631_v11 }
0x1035   :  { %7595 = vrcp.f32 %v4035_v60  ;;  %v4019_v38 = vpop.xlane.xlu1 %4018  ;;  %v4223_v59 = vmul.f32 %v7586_v44, %v10615_v40 }
0x1036   :  { %7597 = vrcp.f32 %v4019_v38  ;;  %v11052_v12 = vadd.f32 %v4231_v18, %v11024_v63  ;;  %v12005_v63 = vld [vmem:[#allocation189_spill] sm:$0xff]  ;;  %v12009_v18 = vld [vmem:[#allocation210_spill] sm:$0xff] }
0x1037   :  { %v7588_v8 = vpop.eup %7587  ;;  %v11055_v56 = vadd.f32 %v4223_v59, %v11027_v34 }
0x1038   :  { %v7590_v57 = vpop.eup %7589  ;;  %v2292_v35 = vmul.f32 %v7588_v8, %v12003_v42  ;;  %v2583_v22 = vpop.xlane.xlu0 %2582 }
0x1039   :  { %v2284_v3 = vmul.f32 %v7590_v57, %v12004_v49  ;;  %7599 = vrcp.f32 %v2583_v22  ;;  %v2567_v11 = vpop.xlane.xlu1 %2566  ;;  %v12011_v22 = vld [vmem:[#allocation172_spill] sm:$0xff] }
0x103a   :  { %7601 = vrcp.f32 %v2567_v11  ;;  %v2308_v26 = vadd.f32 %v2292_v35, %v1822_v45  ;;  %v12012_v11 = vld [vmem:[#allocation39_spill] sm:$0xff] }
0x103b   :  { %v7592_v16 = vpop.eup %7591  ;;  %v2300_v40 = vadd.f32 %v2284_v3, %v1814_v53 }
0x103c   :  { %v7594_v46 = vpop.eup %7593  ;;  %v3551_v4 = vpop.xlane.xlu0 %3550  ;;  %v3262_v6 = vmul.f32 %v7592_v16, %v12005_v63 }
0x103d   :  { %v3254_v14 = vmul.f32 %v7594_v46, %v12006_v32  ;;  %7603 = vrcp.f32 %v3551_v4  ;;  %v3535_v34 = vpop.xlane.xlu1 %3534  ;;  %v12013_v32 = vld [vmem:[#allocation209_spill] sm:$0xff] }
0x103e   :  { %7605 = vrcp.f32 %v3535_v34  ;;  %v3278_v39 = vadd.f32 %v3262_v6, %v2792_v50  ;;  %v12014_v34 = vld [vmem:[#allocation79_spill] sm:$0xff] }
0x103f   :  { %v7596_v31 = vpop.eup %7595  ;;  %v3270_v5 = vadd.f32 %v3254_v14, %v2784_v30 }
0x1040   :  { %v7598_v58 = vpop.eup %7597  ;;  %v2585_v37 = vpop.xlane.xlu0 %2584  ;;  %v4232_v27 = vmul.f32 %v7596_v31, %v10629_v19 }
0x1041   :  { %7607 = vrcp.f32 %v2585_v37  ;;  %v2569_v45 = vpop.xlane.xlu1 %2568  ;;  %v4224_v53 = vmul.f32 %v7598_v58, %v10613_v33 }
0x1042   :  { %7609 = vrcp.f32 %v2569_v45  ;;  %v11063_v62 = vadd.f32 %v4232_v27, %v3762_v20 }
0x1043   :  { %v7600_v1 = vpop.eup %7599  ;;  %v11065_v48 = vadd.f32 %v4224_v53, %v3754_v36  ;;  %v12010_v36 = vld [vmem:[#allocation80_spill] sm:$0xff] }
0x1044   :  { %v7602_v25 = vpop.eup %7601  ;;  %v2777_v51 = vmul.f32 %v7600_v1, %v12007_v2  ;;  %v3553_v50 = vpop.xlane.xlu0 %3552  ;;  %v12015_v53 = vld [vmem:[#allocation192_spill] sm:$0xff] }
0x1045   :  { %v2769_v30 = vmul.f32 %v7602_v25, %v12008_v23  ;;  %7611 = vrcp.f32 %v3553_v50  ;;  %v3537_v41 = vpop.xlane.xlu1 %3536  ;;  %v12016_v25 = vld [vmem:[#allocation75_spill] sm:$0xff] }
0x1046   :  { %7613 = vrcp.f32 %v3537_v41  ;;  %v2793_v19 = vadd.f32 %v2777_v51, %v2307_v47 }
0x1047   :  { %v7604_v54 = vpop.eup %7603  ;;  %v2785_v44 = vadd.f32 %v2769_v30, %v2299_v24 }
0x1048   :  { %v7606_v60 = vpop.eup %7605  ;;  %v3069_v33 = vpop.xlane.xlu0 %3068  ;;  %v3747_v20 = vmul.f32 %v7604_v54, %v12009_v18 }
0x1049   :  { %7615 = vrcp.f32 %v3069_v33  ;;  %v3053_v38 = vpop.xlane.xlu1 %3052  ;;  %v3739_v59 = vmul.f32 %v7606_v60, %v12010_v36  ;;  %v12018_v36 = vld [vmem:[#allocation71_spill] sm:$0xff] }
0x104a   :  { %7617 = vrcp.f32 %v3053_v38  ;;  %v3763_v8 = vadd.f32 %v3747_v20, %v3277_v17  ;;  %v12017_v38 = vld [vmem:[#allocation191_spill] sm:$0xff] }
0x104b   :  { %v7608_v57 = vpop.eup %7607  ;;  %v3755_v42 = vadd.f32 %v3739_v59, %v3269_v7 }
0x104c   :  { %v7610_v35 = vpop.eup %7609  ;;  %v2778_v49 = vmul.f32 %v7608_v57, %v12011_v22  ;;  %v4037_v3 = vpop.xlane.xlu0 %4036 }
0x104d   :  { %v2770_v47 = vmul.f32 %v7610_v35, %v12012_v11  ;;  %7619 = vrcp.f32 %v4037_v3  ;;  %v4021_v24 = vpop.xlane.xlu1 %4020 }
0x104e   :  { %7621 = vrcp.f32 %v4021_v24  ;;  %v2794_v16 = vadd.f32 %v2778_v49, %v2308_v26 }
0x104f   :  { %v7612_v46 = vpop.eup %7611  ;;  %v2786_v4 = vadd.f32 %v2770_v47, %v2300_v40 }
0x1050   :  { %v7614_v63 = vpop.eup %7613  ;;  %v3071_v6 = vpop.xlane.xlu0 %3070  ;;  %v3748_v14 = vmul.f32 %v7612_v46, %v12013_v32 }
0x1051   :  { %7623 = vrcp.f32 %v3071_v6  ;;  %v3055_v17 = vpop.xlane.xlu1 %3054  ;;  %v3740_v7 = vmul.f32 %v7614_v63, %v12014_v34  ;;  %v12019_v63 = vld [vmem:[#allocation212_spill] sm:$0xff]  ;;  %v12020_v6 = vld [vmem:[#allocation82_spill] sm:$0xff] }
0x1052   :  { %7625 = vrcp.f32 %v3055_v17  ;;  %v3764_v31 = vadd.f32 %v3748_v14, %v3278_v39 }
0x1053   :  { %v7616_v58 = vpop.eup %7615  ;;  %v3756_v37 = vadd.f32 %v3740_v7, %v3270_v5  ;;  %v12021_v7 = vld [vmem:[#allocation211_spill] sm:$0xff] }
0x1054   :  { %v7618_v27 = vpop.eup %7617  ;;  %v4039_v45 = vpop.xlane.xlu0 %4038  ;;  %v3263_v1 = vmul.f32 %v7616_v58, %v12015_v53 }
0x1055   :  { %v3255_v26 = vmul.f32 %v7618_v27, %v12016_v25  ;;  %7627 = vrcp.f32 %v4039_v45  ;;  %v4023_v40 = vpop.xlane.xlu1 %4022  ;;  %v12022_v27 = vld [vmem:[#allocation81_spill] sm:$0xff] }
0x1056   :  { %7629 = vrcp.f32 %v4023_v40  ;;  %v3279_v2 = vadd.f32 %v3263_v1, %v2793_v19 }
0x1057   :  { %v7620_v51 = vpop.eup %7619  ;;  %v3271_v50 = vadd.f32 %v3255_v26, %v2785_v44 }
0x1058   :  { %v7622_v23 = vpop.eup %7621  ;;  %v3555_v30 = vpop.xlane.xlu0 %3554  ;;  %v4233_v41 = vmul.f32 %v7620_v51, %v10635_v29 }
0x1059   :  { %7631 = vrcp.f32 %v3555_v30  ;;  %v3539_v39 = vpop.xlane.xlu1 %3538  ;;  %v4225_v5 = vmul.f32 %v7622_v23, %v10619_v10 }
0x105a   :  { %7633 = vrcp.f32 %v3539_v39  ;;  %v11079_v54 = vadd.f32 %v4233_v41, %v3763_v8 }
0x105b   :  { %v7624_v60 = vpop.eup %7623  ;;  %v11081_v33 = vadd.f32 %v4225_v5, %v3755_v42 }
0x105c   :  { %v7626_v18 = vpop.eup %7625  ;;  %v3557_v20 = vpop.xlane.xlu0 %3556  ;;  %v3264_v19 = vmul.f32 %v7624_v60, %v12017_v38 }
0x105d   :  { %v3256_v44 = vmul.f32 %v7626_v18, %v12018_v36  ;;  %7635 = vrcp.f32 %v3557_v20  ;;  %v3541_v59 = vpop.xlane.xlu1 %3540 }
0x105e   :  { %7637 = vrcp.f32 %v3541_v59  ;;  %v3280_v29 = vadd.f32 %v3264_v19, %v2794_v16 }
0x105f   :  { %v7628_v57 = vpop.eup %7627  ;;  %v3272_v35 = vadd.f32 %v3256_v44, %v2786_v4 }
0x1060   :  { %v7630_v22 = vpop.eup %7629  ;;  %v4041_v10 = vpop.xlane.xlu0 %4040  ;;  %v4234_v8 = vmul.f32 %v7628_v57, %v10633_v0 }
0x1061   :  { %7639 = vrcp.f32 %v4041_v10  ;;  %v4025_v49 = vpop.xlane.xlu1 %4024  ;;  %v4226_v42 = vmul.f32 %v7630_v22, %v10617_v28 }
0x1062   :  { %7641 = vrcp.f32 %v4025_v49  ;;  %v11087_v3 = vadd.f32 %v4234_v8, %v3764_v31 }
0x1063   :  { %v7632_v11 = vpop.eup %7631  ;;  %v11089_v47 = vadd.f32 %v4226_v42, %v3756_v37 }
0x1064   :  { %v7634_v24 = vpop.eup %7633  ;;  %v4043_v46 = vpop.xlane.xlu0 %4042  ;;  %v3749_v16 = vmul.f32 %v7632_v11, %v12019_v63 }
0x1065   :  { %7643 = vrcp.f32 %v4043_v46  ;;  %v4027_v4 = vpop.xlane.xlu1 %4026  ;;  %v3741_v32 = vmul.f32 %v7634_v24, %v12020_v6 }
0x1066   :  { %7645 = vrcp.f32 %v4027_v4  ;;  %v3765_v0 = vadd.f32 %v3749_v16, %v3279_v2 }
0x1067   :  { %v7636_v14 = vpop.eup %7635  ;;  %v3757_v17 = vadd.f32 %v3741_v32, %v3271_v50 }
0x1068   :  { %v7638_v34 = vpop.eup %7637  ;;  %v4517_v28 = vpop.xlane.xlu0 %4516  ;;  %v3750_v31 = vmul.f32 %v7636_v14, %v12021_v7 }
0x1069   :  { %v4501_v58 = vpop.xlane.xlu1 %4500  ;;  %v3742_v37 = vmul.f32 %v7638_v34, %v12022_v27 }
0x106a   :  { %7647 = vrcp.f32 %v4501_v58  ;;  %v3766_v45 = vadd.f32 %v3750_v31, %v3280_v29 }
0x106b   :  { %v7640_v53 = vpop.eup %7639  ;;  %v3758_v1 = vadd.f32 %v3742_v37, %v3272_v35 }
0x106c   :  { %v7642_v25 = vpop.eup %7641  ;;  %v4515_v26 = vpop.xlane.xlu0 %4514  ;;  %v4235_v40 = vmul.f32 %v7640_v53, %v10639_v52 }
0x106d   :  { %v4499_v51 = vpop.xlane.xlu1 %4498  ;;  %v4227_v2 = vmul.f32 %v7642_v25, %v10623_v43 }
0x106e   :  { %7649 = vrcp.f32 %v4499_v51  ;;  %v11097_v50 = vadd.f32 %v4235_v40, %v3765_v0 }
0x106f   :  { %v7644_v23 = vpop.eup %7643  ;;  %v11099_v30 = vadd.f32 %v4227_v2, %v3757_v17 }
0x1070   :  { %v7646_v41 = vpop.eup %7645  ;;  %v4521_v39 = vpop.xlane.xlu0 %4520  ;;  %v4236_v5 = vmul.f32 %v7644_v23, %v10637_v61 }
0x1071   :  { %v6450_v60 = vpop.f32.mrb[144].mxu0  ;;  %v4505_v18 = vpop.xlane.xlu1 %4504  ;;  %v4228_v20 = vmul.f32 %v7646_v41, %v10621_v9 }
0x1072   :  { %7651 = vrcp.f32 %v4505_v18  ;;  %v4612_v38 = vpop.f32.mrb[145].mxu0  ;;  %v11103_v52 = vadd.f32 %v4236_v5, %v3766_v45 }
0x1073   :  { %v11105_v19 = vadd.f32 %v4228_v20, %v3758_v1 }
0x1074   :  { %v7648_v43 = vpop.eup %7647  ;;  %v4519_v36 = vpop.xlane.xlu0 %4518 }
0x1075   :  { %v4708_v44 = vmul.f32 %v7648_v43, %v6450_v60  ;;  %v6453_v59 = vpop.f32.mrb[146].mxu0  ;;  %v4503_v29 = vpop.xlane.xlu1 %4502 }
0x1076   :  { %7653 = vrcp.f32 %v4503_v29  ;;  %v4622_v57 = vpop.f32.mrb[147].mxu0 }
0x1077   :  { %7655 = vrcp.f32 %v4517_v28  ;;  %v4724_v61 = vadd.f32 %v4708_v44, %v11003_v13 }
0x1078   :  { %v7650_v35 = vpop.eup %7649  ;;  %7657 = vrcp.f32 %v4515_v26  ;;  %v4525_v22 = vpop.xlane.xlu0 %4524 }
0x1079   :  { %v4707_v9 = vmul.f32 %v7650_v35, %v4612_v38  ;;  %v6456_v10 = vpop.f32.mrb[148].mxu0  ;;  %v4509_v8 = vpop.xlane.xlu1 %4508 }
0x107a   :  { %7659 = vrcp.f32 %v4509_v8  ;;  %v4632_v49 = vpop.f32.mrb[149].mxu0 }
0x107b   :  { %7661 = vrcp.f32 %v4521_v39  ;;  %v4723_v42 = vadd.f32 %v4707_v9, %v10979_v15 }
0x107c   :  { %v7652_v11 = vpop.eup %7651  ;;  %7663 = vrcp.f32 %v4519_v36  ;;  %v4523_v24 = vpop.xlane.xlu0 %4522 }
0x107d   :  { %v4710_v46 = vmul.f32 %v7652_v11, %v6453_v59  ;;  %v11109_v63 = vpop.f32.mrb[150].mxu0  ;;  %6504 = vmatprep.mubr.f32.mxu0 %v4723_v42  ;;  %v4507_v16 = vpop.xlane.xlu1 %4506 }
0x107e   :  { %7665 = vrcp.f32 %v4507_v16  ;;  %v4642_v13 = vpop.f32.mrb[151].mxu0  ;;  %6505 = vmatmul.mubr.f32.vlgmr.msra.gmra.mrb[160].mxu0 %v4724_v61 }
0x107f   :  { %v4726_v4 = vadd.f32 %v4710_v46, %v11065_v48  ;;  %7667 = vrcp.f32 %v4525_v22 }
0x1080   :  { %v7654_v6 = vpop.eup %7653  ;;  %7669 = vrcp.f32 %v4523_v24  ;;  %v4527_v32 = vpop.xlane.xlu0 %4526 }
0x1081   :  { %v7656_v0 = vpop.eup %7655  ;;  %v4709_v14 = vmul.f32 %v7654_v6, %v4622_v57  ;;  %v6462_v15 = vpop.f32.mrb[152].mxu0 }
0x1082   :  { %v4511_v17 = vpop.xlane.xlu1 %4510  ;;  %v7658_v34 = vpop.eup %7657  ;;  %v4716_v28 = vmul.f32 %v7656_v0, %v6462_v15 }
0x1083   :  { %7671 = vrcp.f32 %v4511_v17  ;;  %v4652_v7 = vpop.f32.mrb[153].mxu0  ;;  %v4725_v31 = vadd.f32 %v4709_v14, %v11055_v56 }
0x1084   :  { %v4715_v58 = vmul.f32 %v7658_v34, %v4652_v7  ;;  %v7660_v27 = vpop.eup %7659  ;;  %7673 = vrcp.f32 %v4527_v32  ;;  %v4732_v37 = vadd.f32 %v4716_v28, %v11000_v21  ;;  %v4529_v48 = vpop.xlane.xlu0 %4528 }
0x1085   :  { %v7662_v45 = vpop.eup %7661  ;;  %7675 = vrcp.f32 %v4529_v48  ;;  %v6465_v1 = vpop.f32.mrb[154].mxu0  ;;  %6507 = vmatprep.mubr.f32.mxu0 %v4725_v31  ;;  %v4712_v26 = vmul.f32 %v7660_v27, %v6456_v10 }
0x1086   :  { %v4731_v53 = vadd.f32 %v4715_v58, %v10976_v55  ;;  %v4513_v25 = vpop.xlane.xlu1 %4512  ;;  %v7664_v40 = vpop.eup %7663  ;;  %v4718_v51 = vmul.f32 %v7662_v45, %v6465_v1  ;;  %6508 = vmatmul.mubr.f32.gmra.mrb[162].mxu0 %v4726_v4 }
0x1087   :  { %7677 = vrcp.f32 %v4513_v25  ;;  %v4662_v2 = vpop.f32.mrb[155].mxu0  ;;  %v4728_v23 = vadd.f32 %v4712_v26, %v11089_v47 }
0x1088   :  { %v4717_v56 = vmul.f32 %v7664_v40, %v4662_v2  ;;  %6516 = vmatprep.mubr.f32.mxu1 %v4731_v53  ;;  %v7666_v41 = vpop.eup %7665  ;;  %v4734_v21 = vadd.f32 %v4718_v51, %v11063_v62 }
0x1089   :  { %6517 = vmatmul.mubr.f32.vlgmr.msra.gmra.mrb[144].mxu1 %v4732_v37  ;;  %v7668_v39 = vpop.eup %7667  ;;  %v6468_v5 = vpop.f32.mrb[156].mxu0  ;;  %v4711_v60 = vmul.f32 %v7666_v41, %v4632_v49  ;;  %v4943_v49 = vld [vmem:[%s11152_s8] ss:$0 sm:$0xff]  ;;  %s7918_s8 = smov [#allocation14]  }
0x108a   :  { %v4733_v55 = vadd.f32 %v4717_v56, %v11052_v12  ;;  %v7670_v18 = vpop.eup %7669  ;;  %v4720_v20 = vmul.f32 %v7668_v39, %v6468_v5  ;;  %v4672_v38 = vpop.f32.mrb[157].mxu0  ;;  %s4928_s1 = sshll.u32 %s7918_s8, 4  ;;  %s4929_s1 = int_to_ptr.vmem [resolvable:$true] %s4928_s1 }
0x108b   :  { %v4719_v43 = vmul.f32 %v7670_v18, %v4672_v38  ;;  %v4727_v36 = vadd.f32 %v4711_v60, %v11081_v33  ;;  %s7872_s15 = scalar_lea.vmem %s4929_s1, 2048  ;;  %p7877_p1 = scmp.lt.s32.totalorder %s4929_s1, %s4929_s1 }
0x108c   :  { %6519 = vmatprep.mubr.f32.mxu1 %v4733_v55  ;;  %v4736_v59 = vadd.f32 %v4720_v20, %v11087_v3  ;;  %p7873_p0 = scmp.ne.s32.totalorder %s4929_s1, %s7872_s15  ;;  %p7878_p2 = scmp.lt.s32.totalorder %s7872_s15, %s7872_s15 }
0x108d   :  { %v7672_v44 = vpop.eup %7671  ;;  %6520 = vmatmul.mubr.f32.gmra.mrb[146].mxu1 %v4734_v21  ;;  %v4735_v47 = vadd.f32 %v4719_v43, %v11079_v54  ;;  %v6471_v62 = vpop.f32.mrb[158].mxu0  ;;  %6510 = vmatprep.mubr.f32.mxu0 %v4727_v36 }
0x108e   :  { %v4713_v29 = vmul.f32 %v7672_v44, %v4642_v13  ;;  %v7674_v57 = vpop.eup %7673  ;;  %v4682_v12 = vpop.f32.mrb[159].mxu0  ;;  %6511 = vmatmul.mubr.f32.gmra.mrb[164].mxu0 %v4728_v23  ;;  %p7879_p3 = por %p7878_p2, %p7877_p1 }
0x108f   :  { %v7676_v61 = vpop.eup %7675  ;;  %v4721_v35 = vmul.f32 %v7674_v57, %v4682_v12  ;;  %6522 = vmatprep.mubr.f32.mxu1 %v4735_v47 }
0x1090   :  { %v4729_v22 = vadd.f32 %v4713_v29, %v11099_v30  ;;  %v4722_v10 = vmul.f32 %v7676_v61, %v6471_v62  ;;  %p7880_p4 = pnand %p7879_p3, %p7873_p0 }
0x1091   :  { %v7678_v9 = vpop.eup %7677  ;;  %6523 = vmatmul.mubr.f32.gmra.mrb[148].mxu1 %v4736_v59  ;;  %v4737_v33 = vadd.f32 %v4721_v35, %v11097_v50 }
0x1092   :  { %6513 = vmatprep.mubr.f32.mxu0 %v4729_v22  ;;  %v4714_v3 = vmul.f32 %v7678_v9, %v11109_v63  ;;  %v4738_v54 = vadd.f32 %v4722_v10, %v11103_v52 }
0x1093   :  { %6525 = vmatprep.mubr.f32.mxu1 %v4737_v33 }
0x1094   :  { %v4730_v8 = vadd.f32 %v4714_v3, %v11105_v19 }
0x1095   :  { %6526 = vmatmul.mubr.f32.gmra.mrb[150].mxu1 %v4738_v54 }
0x1096   :  { %6514 = vmatmul.mubr.f32.gmra.mrb[166].mxu0 %v4730_v8 }
0x1151   :  { %v6506_v30 = vpop.f32.mrb[160].mxu0 }
0x1152   :  { %v4834_v42 = vadd.f32 %v6506_v30, %v4943_v49  ;;  %v4828_v11 = vpop.f32.mrb[161].mxu0 }
0x1153   :  { %v4829_v24 = vadd.f32 %v4943_v49, %v4828_v11 }
0x1154   :  { %4908 = vst [vmem:[#allocation14 + $0x8] sm:$0xff] %v4834_v42 }
0x1155   :  { %4907 = vst [vmem:[#allocation14] sm:$0xff] %v4829_v24 }
0x1159   :  { %v6509_v50 = vpop.f32.mrb[162].mxu0 }
0x115a   :  { %v4844_v46 = vadd.f32 %v6509_v50, %v4943_v49  ;;  %v4838_v63 = vpop.f32.mrb[163].mxu0 }
0x115b   :  { %v4839_v16 = vadd.f32 %v4943_v49, %v4838_v63 }
0x115c   :  { %v6518_v52 = vpop.f32.mrb[144].mxu1  ;;  %4910 = vst [vmem:[#allocation14 + $0x18] sm:$0xff] %v4844_v46 }
0x115d   :  { %v4874_v13 = vadd.f32 %v6518_v52, %v4943_v49  ;;  %v4868_v19 = vpop.f32.mrb[145].mxu1  ;;  %4909 = vst [vmem:[#allocation14 + $0x10] sm:$0xff] %v4839_v16 }
0x115e   :  { %v4869_v4 = vadd.f32 %v4943_v49, %v4868_v19 }
0x115f   :  { %4916 = vst [vmem:[#allocation14 + $0x48] sm:$0xff] %v4874_v13 }
0x1160   :  { %4915 = vst [vmem:[#allocation14 + $0x40] sm:$0xff] %v4869_v4  ;;  %v6521_v6 = vpop.f32.mrb[146].mxu1 }
0x1161   :  { %v4884_v32 = vadd.f32 %v6521_v6, %v4943_v49  ;;  %v4878_v0 = vpop.f32.mrb[147].mxu1  ;;  %v6512_v15 = vpop.f32.mrb[164].mxu0 }
0x1162   :  { %v4879_v14 = vadd.f32 %v4943_v49, %v4878_v0  ;;  %v4854_v17 = vadd.f32 %v6512_v15, %v4943_v49  ;;  %v4848_v34 = vpop.f32.mrb[165].mxu0 }
0x1163   :  { %4918 = vst [vmem:[#allocation14 + $0x58] sm:$0xff] %v4884_v32  ;;  %v4849_v28 = vadd.f32 %v4943_v49, %v4848_v34 }
0x1164   :  { %4917 = vst [vmem:[#allocation14 + $0x50] sm:$0xff] %v4879_v14  ;;  %v6524_v7 = vpop.f32.mrb[148].mxu1  ;;  %4912 = vst [vmem:[#allocation14 + $0x28] sm:$0xff] %v4854_v17 }
0x1165   :  { %v4894_v31 = vadd.f32 %v6524_v7, %v4943_v49  ;;  %v4888_v58 = vpop.f32.mrb[149].mxu1  ;;  %4911 = vst [vmem:[#allocation14 + $0x20] sm:$0xff] %v4849_v28 }
0x1166   :  { %v4889_v27 = vadd.f32 %v4943_v49, %v4888_v58 }
0x1167   :  { %4920 = vst [vmem:[#allocation14 + $0x68] sm:$0xff] %v4894_v31 }
0x1168   :  { %4919 = vst [vmem:[#allocation14 + $0x60] sm:$0xff] %v4889_v27  ;;  %v6527_v37 = vpop.f32.mrb[150].mxu1 }
0x1169   :  { %v4904_v48 = vadd.f32 %v6527_v37, %v4943_v49  ;;  %v6515_v45 = vpop.f32.mrb[166].mxu0  ;;  %v4898_v53 = vpop.f32.mrb[151].mxu1 }
0x116a   :  { %v4864_v1 = vadd.f32 %v6515_v45, %v4943_v49  ;;  %v4899_v25 = vadd.f32 %v4943_v49, %v4898_v53  ;;  %v4858_v26 = vpop.f32.mrb[167].mxu0 }
0x116b   :  { %4922 = vst [vmem:[#allocation14 + $0x78] sm:$0xff] %v4904_v48  ;;  %v4859_v40 = vadd.f32 %v4943_v49, %v4858_v26 }
0x116c   :  { %4914 = vst [vmem:[#allocation14 + $0x38] sm:$0xff] %v4864_v1  ;;  %4921 = vst [vmem:[#allocation14 + $0x70] sm:$0xff] %v4899_v25 }
0x116d   :  { %4913 = vst [vmem:[#allocation14 + $0x30] sm:$0xff] %v4859_v40 }
0x116e   :  { %7883 = shalt.err (!%p7880_p4)
}
0x116f   :  { %s7884_s6 = scalar_lea.hbm %s11153_s9, 2048 }
0x1170   :  { %p7885_p5 = scmp.ne.s32.totalorder %s11153_s9, %s7884_s6  ;;  %p7888_p6 = scmp.lt.u32.totalorder %s7884_s6, %s11153_s9 }
0x1172   :  { %p7890_p7 = pnand %p7888_p6, %p7885_p5 }
0x1174   :  { %7893 = shalt.err (!%p7890_p7)
}
0x1175   :  { %4934 = dma.vmem_to_hbm [thread:$0]  %s4929_s1, 2048, %s11153_s9, [#allocation4], %s7909_s10, %s7909_s10, %s7910_s14  }
0x1176   :  { %7902 = dma.done.wait [#allocation4], 2048  }
0x1177   :  { %7903 = vsyncadd [#allocation4], 4294965248 }
0x1178   :  { %4938 = vsyncpa [#allocation3], 1 }
0x1179   :  { %4939 = vsyncpa [#allocation6], 1 }
0x117a   :  { %4940 = vsyncpa [#allocation9], 1 }
0x117b   :  { %4941 = vsyncpa [#allocation12], 1 }
0x117c   :  { %4942 = vsyncpa [#allocation4], 1 }

</bundles_post_ra>
